<compile_context>
chip_gen: v6e
topology: v6e:2x2x1
jax: 0.10.0
libtpu: 0.0.40
codegen_flags: <defaults>
</compile_context>

<pallas_src>
import jax
import jax.numpy as jnp
from jax.experimental import pallas as pl
from jax.experimental.pallas import tpu as pltpu


# ----------------------- fused GRU + attention kernel ------------------------
def fused_attn_decoder_kernel(emb_ref, ctx_ref, h0_ref, wih_ref, whh_ref,
                              brzn_ref, bhn_ref, wa_ref, wo_ref,
                              out_ref, hid_ref, rnn_scr):
    """emb_ref:(B,T,E) ctx_ref:(B,S,H) h0_ref:(B,H)
       wih_ref:(3,E,H) whh_ref:(3,H,H) brzn_ref:(3,1,H) bhn_ref:(1,H)
       wa_ref:(H,H) wo_ref:(2,H,H)
       out_ref:(B,T,H) hid_ref:(B,H) rnn_scr:(T,H) VMEM scratch."""
    B, T, _E = emb_ref.shape
    f32 = jnp.float32

    # Hoisted once: per-gate weights / biases (nothing re-broadcast per step).
    wih_r, wih_z, wih_n = wih_ref[0], wih_ref[1], wih_ref[2]
    whh_r, whh_z, whh_n = whh_ref[0], whh_ref[1], whh_ref[2]
    b_r, b_z, b_in = brzn_ref[0], brzn_ref[1], brzn_ref[2]     # each (1, H)
    b_hn = bhn_ref[...]                                        # (1, H)
    wa = wa_ref[...]                                           # (H, H)
    woc, woh = wo_ref[0], wo_ref[1]                            # (H, H) each

    # B and T are small & static -> full unroll keeps every index static and
    # gives the LLO scheduler full visibility (== lax.fori_loop unroll=True).
    for b in range(B):
        x = emb_ref[b]                       # (T, E)
        cx = ctx_ref[b]                      # (S, H) encoder memory for this row

        # Input-side gate pre-activations for every time step at once
        # (folds T into the matmul M dim; r/z biases already include b_hh).
        gi_r = jnp.dot(x, wih_r, preferred_element_type=f32) + b_r    # (T, H)
        gi_z = jnp.dot(x, wih_z, preferred_element_type=f32) + b_z
        gi_n = jnp.dot(x, wih_n, preferred_element_type=f32) + b_in

        # Serial GRU recurrence (PyTorch gate order r, z, n), fully unrolled.
        h = h0_ref[b:b + 1, :]               # (1, H)
        for t in range(T):
            gh_r = jnp.dot(h, whh_r, preferred_element_type=f32)
            gh_z = jnp.dot(h, whh_z, preferred_element_type=f32)
            gh_n = jnp.dot(h, whh_n, preferred_element_type=f32) + b_hn
            r = jax.nn.sigmoid(gi_r[t:t + 1, :] + gh_r)
            z = jax.nn.sigmoid(gi_z[t:t + 1, :] + gh_z)
            n = jnp.tanh(gi_n[t:t + 1, :] + r * gh_n)
            h = (1.0 - z) * n + z * h
            rnn_scr[t:t + 1, :] = h
        hid_ref[b:b + 1, :] = h.astype(hid_ref.dtype)

        # GlobalAttention, "general" score: (ht W_a) . ctx^T  (no ctx transpose
        # materialized -- contraction on the H axis of both operands).
        ht = rnn_scr[...]                                              # (T, H)
        q = jnp.dot(ht, wa, preferred_element_type=f32)                # (T, H)
        scores = jax.lax.dot_general(
            q, cx, (((1,), (1,)), ((), ())),
            preferred_element_type=f32)                                # (T, S)
        m = jnp.max(scores, axis=-1, keepdims=True)
        e = jnp.exp(scores - m)
        align = e * pl.reciprocal(jnp.sum(e, axis=-1, keepdims=True),
                                  approx=True)                         # softmax
        c = jnp.dot(align, cx, preferred_element_type=f32)             # (T, H)
        # linear_out([c; ht]) as two matmuls (== concat then matmul).
        attn_h = jnp.tanh(jnp.dot(c, woc, preferred_element_type=f32)
                          + jnp.dot(ht, woh, preferred_element_type=f32))
        out_ref[b] = attn_h.astype(out_ref.dtype)


# -------------------------- full AttnDecoder forward -------------------------
def attn_decoder_forward(tokens, context, state, params):
    """tokens: (T, B) int32; context: (S, B, H) f32; state: (1, B, H) f32."""
    T, B = tokens.shape
    H = params["w_hh"].shape[1]

    # Embedding gather done batch-major directly (re-layout of the tiny int
    # index matrix is free); nn.Dropout(0.1) is identity in eval mode.
    emb = params["embedding"][tokens.T]                  # (B, T, E)
    ctx_b = jnp.transpose(context, (1, 0, 2))            # (B, S, H)  (~2.5 KB)
    h0 = state[0]                                        # (B, H), num_layers == 1

    w_ih, w_hh = params["w_ih"], params["w_hh"]
    b_ih, b_hh = params["b_ih"], params["b_hh"]
    # Per-gate transposed weights (PyTorch GRU gate order: r, z, n).
    wih = jnp.stack([w_ih[:H].T, w_ih[H:2 * H].T, w_ih[2 * H:].T])     # (3, E, H)
    whh = jnp.stack([w_hh[:H].T, w_hh[H:2 * H].T, w_hh[2 * H:].T])     # (3, H, H)
    # r/z gates: fold ih+hh biases; n gate: hidden-side bias stays inside r*(...).
    brzn = jnp.stack([(b_ih[:H] + b_hh[:H])[None, :],
                      (b_ih[H:2 * H] + b_hh[H:2 * H])[None, :],
                      b_ih[2 * H:][None, :]])                          # (3, 1, H)
    bhn = b_hh[2 * H:][None, :]                                        # (1, H)
    wa = params["w_a"].T                                               # (H, H)
    wo_t = params["w_out"].T                                           # (2H, H)
    wo = jnp.stack([wo_t[:H], wo_t[H:]])                               # (2, H, H)

    out_bth, hid_bh = pl.pallas_call(
        fused_attn_decoder_kernel,
        out_shape=(jax.ShapeDtypeStruct((B, T, H), jnp.float32),
                   jax.ShapeDtypeStruct((B, H), jnp.float32)),
        scratch_shapes=[pltpu.VMEM((T, H), jnp.float32)],
    )(emb, ctx_b, h0, wih, whh, brzn, bhn, wa, wo)

    outputs = jnp.transpose(out_bth, (1, 0, 2))          # (T, B, H) module layout
    hidden = hid_bh[None]                                # (1, B, H)
    # Original module returns attn = attn_outputs (the raw scores were unused).
    return outputs, hidden, outputs


# ---------------------------------- reference --------------------------------
def reference_forward(tokens, context, state, params):
    emb = params["embedding"][tokens]
    h = state[0]
    H = h.shape[-1]
    outs = []
    for t in range(emb.shape[0]):
        gi = emb[t] @ params["w_ih"].T + params["b_ih"]
        gh = h @ params["w_hh"].T + params["b_hh"]
        r = jax.nn.sigmoid(gi[:, :H] + gh[:, :H])
        z = jax.nn.sigmoid(gi[:, H:2 * H] + gh[:, H:2 * H])
        n = jnp.tanh(gi[:, 2 * H:] + r * gh[:, 2 * H:])
        h = (1 - z) * n + z * h
        outs.append(h)
    rnn_out = jnp.stack(outs)                             # (T, B, H)
    ht = rnn_out.transpose(1, 0, 2)                       # (B, T, H)
    ctx = context.transpose(1, 0, 2)                      # (B, S, H)
    q = ht @ params["w_a"].T
    scores = jnp.einsum("bth,bsh->bts", q, ctx)
    align = jax.nn.softmax(scores, axis=-1)
    c = jnp.einsum("bts,bsh->bth", align, ctx)
    attn_h = jnp.tanh(jnp.concatenate([c, ht], axis=-1) @ params["w_out"].T)
    outputs = attn_h.transpose(1, 0, 2)
    return outputs, rnn_out[-1:], outputs


if __name__ == "__main__":
    # Full-precision f32 matmuls in the XLA reference so the comparison is tight.
    jax.config.update("jax_default_matmul_precision", "highest")

    T, B, S = 8, 2, 10        # tgt_len, batch, src_len
    E, H = 32, 32             # input_size (emb dim), hidden_size
    VOCAB = 50

    key = jax.random.PRNGKey(0)
    ks = jax.random.split(key, 10)
    params = {
        "embedding": jax.random.normal(ks[0], (VOCAB, E), jnp.float32) * 0.1,
        "w_ih": jax.random.normal(ks[1], (3 * H, E), jnp.float32) * 0.1,
        "w_hh": jax.random.normal(ks[2], (3 * H, H), jnp.float32) * 0.1,
        "b_ih": jax.random.normal(ks[3], (3 * H,), jnp.float32) * 0.1,
        "b_hh": jax.random.normal(ks[4], (3 * H,), jnp.float32) * 0.1,
        "w_a": jax.random.normal(ks[5], (H, H), jnp.float32) * 0.1,        # linear_in
        "w_out": jax.random.normal(ks[6], (H, 2 * H), jnp.float32) * 0.1,  # linear_out
    }
    tokens = jax.random.randint(ks[7], (T, B), 0, VOCAB, jnp.int32)
    context = jax.random.normal(ks[8], (S, B, H), jnp.float32)
    state = jax.random.normal(ks[9], (1, B, H), jnp.float32)

    outputs, hidden, attn = jax.jit(attn_decoder_forward)(tokens, context, state, params)
    jax.block_until_ready((outputs, hidden, attn))

    ref_out, ref_hid, _ = reference_forward(tokens, context, state, params)
    out_err = float(jnp.max(jnp.abs(outputs - ref_out)))
    hid_err = float(jnp.max(jnp.abs(hidden - ref_hid)))
    # GRU path is pure f32 (tight); attention path includes the approximate EUP
    # reciprocal in the softmax, so it gets a slightly looser bound.
    if hid_err > 1e-3 or out_err > 5e-3:
        raise AssertionError(f"mismatch vs reference: out={out_err} hid={hid_err}")

    print("KERNEL_OK")
</pallas_src>

<mosaic_0001>
module attributes {stable_mosaic.version = 11 : i64} {
  func.func @fused_attn_decoder_kernel(%arg0: memref<2x8x32xf32, #tpu.memory_space<vmem>>, %arg1: memref<2x10x32xf32, #tpu.memory_space<vmem>>, %arg2: memref<2x32xf32, #tpu.memory_space<vmem>>, %arg3: memref<3x32x32xf32, #tpu.memory_space<vmem>>, %arg4: memref<3x32x32xf32, #tpu.memory_space<vmem>>, %arg5: memref<3x1x32xf32, #tpu.memory_space<vmem>>, %arg6: memref<1x32xf32, #tpu.memory_space<vmem>>, %arg7: memref<32x32xf32, #tpu.memory_space<vmem>>, %arg8: memref<2x32x32xf32, #tpu.memory_space<vmem>>, %arg9: memref<2x8x32xf32, #tpu.memory_space<vmem>>, %arg10: memref<2x32xf32, #tpu.memory_space<vmem>>, %arg11: memref<8x32xf32, #tpu.memory_space<vmem>>) attributes {dimension_semantics = [], scalar_prefetch = 0 : i64, scratch_operands = 1 : i64, tpu.core_type = #tpu.core_type<tc>} {
    %c0 = arith.constant 0 : index
    %c0_0 = arith.constant 0 : index
    %c0_1 = arith.constant 0 : index
    %0 = vector.load %arg3[%c0, %c0_0, %c0_1] : memref<3x32x32xf32, #tpu.memory_space<vmem>>, vector<1x32x32xf32>
    %1 = vector.shape_cast %0 : vector<1x32x32xf32> to vector<32x32xf32>
    %c1 = arith.constant 1 : index
    %c0_2 = arith.constant 0 : index
    %c0_3 = arith.constant 0 : index
    %2 = vector.load %arg3[%c1, %c0_2, %c0_3] : memref<3x32x32xf32, #tpu.memory_space<vmem>>, vector<1x32x32xf32>
    %3 = vector.shape_cast %2 : vector<1x32x32xf32> to vector<32x32xf32>
    %c2 = arith.constant 2 : index
    %c0_4 = arith.constant 0 : index
    %c0_5 = arith.constant 0 : index
    %4 = vector.load %arg3[%c2, %c0_4, %c0_5] : memref<3x32x32xf32, #tpu.memory_space<vmem>>, vector<1x32x32xf32>
    %5 = vector.shape_cast %4 : vector<1x32x32xf32> to vector<32x32xf32>
    %c0_6 = arith.constant 0 : index
    %c0_7 = arith.constant 0 : index
    %c0_8 = arith.constant 0 : index
    %6 = vector.load %arg4[%c0_6, %c0_7, %c0_8] : memref<3x32x32xf32, #tpu.memory_space<vmem>>, vector<1x32x32xf32>
    %7 = vector.shape_cast %6 : vector<1x32x32xf32> to vector<32x32xf32>
    %c1_9 = arith.constant 1 : index
    %c0_10 = arith.constant 0 : index
    %c0_11 = arith.constant 0 : index
    %8 = vector.load %arg4[%c1_9, %c0_10, %c0_11] : memref<3x32x32xf32, #tpu.memory_space<vmem>>, vector<1x32x32xf32>
    %9 = vector.shape_cast %8 : vector<1x32x32xf32> to vector<32x32xf32>
    %c2_12 = arith.constant 2 : index
    %c0_13 = arith.constant 0 : index
    %c0_14 = arith.constant 0 : index
    %10 = vector.load %arg4[%c2_12, %c0_13, %c0_14] : memref<3x32x32xf32, #tpu.memory_space<vmem>>, vector<1x32x32xf32>
    %11 = vector.shape_cast %10 : vector<1x32x32xf32> to vector<32x32xf32>
    %c0_15 = arith.constant 0 : index
    %c0_16 = arith.constant 0 : index
    %c0_17 = arith.constant 0 : index
    %12 = vector.load %arg5[%c0_15, %c0_16, %c0_17] : memref<3x1x32xf32, #tpu.memory_space<vmem>>, vector<1x1x32xf32>
    %13 = vector.shape_cast %12 : vector<1x1x32xf32> to vector<1x32xf32>
    %c1_18 = arith.constant 1 : index
    %c0_19 = arith.constant 0 : index
    %c0_20 = arith.constant 0 : index
    %14 = vector.load %arg5[%c1_18, %c0_19, %c0_20] : memref<3x1x32xf32, #tpu.memory_space<vmem>>, vector<1x1x32xf32>
    %15 = vector.shape_cast %14 : vector<1x1x32xf32> to vector<1x32xf32>
    %c2_21 = arith.constant 2 : index
    %c0_22 = arith.constant 0 : index
    %c0_23 = arith.constant 0 : index
    %16 = vector.load %arg5[%c2_21, %c0_22, %c0_23] : memref<3x1x32xf32, #tpu.memory_space<vmem>>, vector<1x1x32xf32>
    %17 = vector.shape_cast %16 : vector<1x1x32xf32> to vector<1x32xf32>
    %c0_24 = arith.constant 0 : index
    %c0_25 = arith.constant 0 : index
    %18 = vector.load %arg6[%c0_24, %c0_25] : memref<1x32xf32, #tpu.memory_space<vmem>>, vector<1x32xf32>
    %c0_26 = arith.constant 0 : index
    %c0_27 = arith.constant 0 : index
    %19 = vector.load %arg7[%c0_26, %c0_27] : memref<32x32xf32, #tpu.memory_space<vmem>>, vector<32x32xf32>
    %c0_28 = arith.constant 0 : index
    %c0_29 = arith.constant 0 : index
    %c0_30 = arith.constant 0 : index
    %20 = vector.load %arg8[%c0_28, %c0_29, %c0_30] : memref<2x32x32xf32, #tpu.memory_space<vmem>>, vector<1x32x32xf32>
    %21 = vector.shape_cast %20 : vector<1x32x32xf32> to vector<32x32xf32>
    %c1_31 = arith.constant 1 : index
    %c0_32 = arith.constant 0 : index
    %c0_33 = arith.constant 0 : index
    %22 = vector.load %arg8[%c1_31, %c0_32, %c0_33] : memref<2x32x32xf32, #tpu.memory_space<vmem>>, vector<1x32x32xf32>
    %23 = vector.shape_cast %22 : vector<1x32x32xf32> to vector<32x32xf32>
    %c0_34 = arith.constant 0 : index
    %c0_35 = arith.constant 0 : index
    %c0_36 = arith.constant 0 : index
    %24 = vector.load %arg0[%c0_34, %c0_35, %c0_36] : memref<2x8x32xf32, #tpu.memory_space<vmem>>, vector<1x8x32xf32>
    %25 = vector.shape_cast %24 : vector<1x8x32xf32> to vector<8x32xf32>
    %c0_37 = arith.constant 0 : index
    %c0_38 = arith.constant 0 : index
    %c0_39 = arith.constant 0 : index
    %26 = vector.load %arg1[%c0_37, %c0_38, %c0_39] : memref<2x10x32xf32, #tpu.memory_space<vmem>>, vector<1x10x32xf32>
    %27 = vector.shape_cast %26 : vector<1x10x32xf32> to vector<10x32xf32>
    %cst = arith.constant dense<0.000000e+00> : vector<8x32xf32>
    %28 = tpu.matmul %25, %1, %cst {dimension_numbers = #tpu.dot_dimension_numbers<[1], [0], [0], [1], [0, 0, 1, 1], [], []>, precision = #tpu.contract_precision<fp32>} : vector<8x32xf32>, vector<32x32xf32>, vector<8x32xf32> -> vector<8x32xf32>
    %29 = vector.broadcast %13 : vector<1x32xf32> to vector<8x32xf32>
    %30 = arith.addf %28, %29 : vector<8x32xf32>
    %cst_40 = arith.constant dense<0.000000e+00> : vector<8x32xf32>
    %31 = tpu.matmul %25, %3, %cst_40 {dimension_numbers = #tpu.dot_dimension_numbers<[1], [0], [0], [1], [0, 0, 1, 1], [], []>, precision = #tpu.contract_precision<fp32>} : vector<8x32xf32>, vector<32x32xf32>, vector<8x32xf32> -> vector<8x32xf32>
    %32 = vector.broadcast %15 : vector<1x32xf32> to vector<8x32xf32>
    %33 = arith.addf %31, %32 : vector<8x32xf32>
    %cst_41 = arith.constant dense<0.000000e+00> : vector<8x32xf32>
    %34 = tpu.matmul %25, %5, %cst_41 {dimension_numbers = #tpu.dot_dimension_numbers<[1], [0], [0], [1], [0, 0, 1, 1], [], []>, precision = #tpu.contract_precision<fp32>} : vector<8x32xf32>, vector<32x32xf32>, vector<8x32xf32> -> vector<8x32xf32>
    %35 = vector.broadcast %17 : vector<1x32xf32> to vector<8x32xf32>
    %36 = arith.addf %34, %35 : vector<8x32xf32>
    %c0_42 = arith.constant 0 : index
    %c0_43 = arith.constant 0 : index
    %37 = vector.load %arg2[%c0_42, %c0_43] : memref<2x32xf32, #tpu.memory_space<vmem>>, vector<1x32xf32>
    %cst_44 = arith.constant dense<0.000000e+00> : vector<1x32xf32>
    %38 = tpu.matmul %37, %7, %cst_44 {dimension_numbers = #tpu.dot_dimension_numbers<[1], [0], [0], [1], [0, 0, 1, 1], [], []>, precision = #tpu.contract_precision<fp32>} : vector<1x32xf32>, vector<32x32xf32>, vector<1x32xf32> -> vector<1x32xf32>
    %cst_45 = arith.constant dense<0.000000e+00> : vector<1x32xf32>
    %39 = tpu.matmul %37, %9, %cst_45 {dimension_numbers = #tpu.dot_dimension_numbers<[1], [0], [0], [1], [0, 0, 1, 1], [], []>, precision = #tpu.contract_precision<fp32>} : vector<1x32xf32>, vector<32x32xf32>, vector<1x32xf32> -> vector<1x32xf32>
    %cst_46 = arith.constant dense<0.000000e+00> : vector<1x32xf32>
    %40 = tpu.matmul %37, %11, %cst_46 {dimension_numbers = #tpu.dot_dimension_numbers<[1], [0], [0], [1], [0, 0, 1, 1], [], []>, precision = #tpu.contract_precision<fp32>} : vector<1x32xf32>, vector<32x32xf32>, vector<1x32xf32> -> vector<1x32xf32>
    %41 = arith.addf %40, %18 : vector<1x32xf32>
    %42 = vector.extract_strided_slice %30 {offsets = [0, 0], sizes = [1, 32], strides = [1, 1]} : vector<8x32xf32> to vector<1x32xf32>
    %43 = arith.addf %42, %38 : vector<1x32xf32>
    %44 = arith.negf %43 : vector<1x32xf32>
    %45 = math.exp %44 : vector<1x32xf32>
    %cst_47 = arith.constant 1.000000e+00 : f32
    %46 = vector.broadcast %cst_47 : f32 to vector<1x32xf32>
    %47 = arith.addf %46, %45 : vector<1x32xf32>
    %48 = arith.divf %46, %47 : vector<1x32xf32>
    %49 = vector.extract_strided_slice %33 {offsets = [0, 0], sizes = [1, 32], strides = [1, 1]} : vector<8x32xf32> to vector<1x32xf32>
    %50 = arith.addf %49, %39 : vector<1x32xf32>
    %51 = arith.negf %50 : vector<1x32xf32>
    %52 = math.exp %51 : vector<1x32xf32>
    %cst_48 = arith.constant 1.000000e+00 : f32
    %53 = vector.broadcast %cst_48 : f32 to vector<1x32xf32>
    %54 = arith.addf %53, %52 : vector<1x32xf32>
    %55 = arith.divf %53, %54 : vector<1x32xf32>
    %56 = vector.extract_strided_slice %36 {offsets = [0, 0], sizes = [1, 32], strides = [1, 1]} : vector<8x32xf32> to vector<1x32xf32>
    %57 = arith.mulf %48, %41 : vector<1x32xf32>
    %58 = arith.addf %56, %57 : vector<1x32xf32>
    %59 = math.tanh %58 : vector<1x32xf32>
    %cst_49 = arith.constant 1.000000e+00 : f32
    %60 = vector.broadcast %cst_49 : f32 to vector<1x32xf32>
    %61 = arith.subf %60, %55 : vector<1x32xf32>
    %62 = arith.mulf %61, %59 : vector<1x32xf32>
    %63 = arith.mulf %55, %37 : vector<1x32xf32>
    %64 = arith.addf %62, %63 : vector<1x32xf32>
    %c0_50 = arith.constant 0 : index
    %c0_51 = arith.constant 0 : index
    %65 = vector.load %arg11[%c0_50, %c0_51] : memref<8x32xf32, #tpu.memory_space<vmem>>, vector<1x32xf32>
    tpu.vector_store %arg11[%c0_50, %c0_51], %64 {strides = array<i32>} : memref<8x32xf32, #tpu.memory_space<vmem>>, vector<1x32xf32>,
    %cst_52 = arith.constant dense<0.000000e+00> : vector<1x32xf32>
    %66 = tpu.matmul %64, %7, %cst_52 {dimension_numbers = #tpu.dot_dimension_numbers<[1], [0], [0], [1], [0, 0, 1, 1], [], []>, precision = #tpu.contract_precision<fp32>} : vector<1x32xf32>, vector<32x32xf32>, vector<1x32xf32> -> vector<1x32xf32>
    %cst_53 = arith.constant dense<0.000000e+00> : vector<1x32xf32>
    %67 = tpu.matmul %64, %9, %cst_53 {dimension_numbers = #tpu.dot_dimension_numbers<[1], [0], [0], [1], [0, 0, 1, 1], [], []>, precision = #tpu.contract_precision<fp32>} : vector<1x32xf32>, vector<32x32xf32>, vector<1x32xf32> -> vector<1x32xf32>
    %cst_54 = arith.constant dense<0.000000e+00> : vector<1x32xf32>
    %68 = tpu.matmul %64, %11, %cst_54 {dimension_numbers = #tpu.dot_dimension_numbers<[1], [0], [0], [1], [0, 0, 1, 1], [], []>, precision = #tpu.contract_precision<fp32>} : vector<1x32xf32>, vector<32x32xf32>, vector<1x32xf32> -> vector<1x32xf32>
    %69 = arith.addf %68, %18 : vector<1x32xf32>
    %70 = vector.extract_strided_slice %30 {offsets = [1, 0], sizes = [1, 32], strides = [1, 1]} : vector<8x32xf32> to vector<1x32xf32>
    %71 = arith.addf %70, %66 : vector<1x32xf32>
    %72 = arith.negf %71 : vector<1x32xf32>
    %73 = math.exp %72 : vector<1x32xf32>
    %cst_55 = arith.constant 1.000000e+00 : f32
    %74 = vector.broadcast %cst_55 : f32 to vector<1x32xf32>
    %75 = arith.addf %74, %73 : vector<1x32xf32>
    %76 = arith.divf %74, %75 : vector<1x32xf32>
    %77 = vector.extract_strided_slice %33 {offsets = [1, 0], sizes = [1, 32], strides = [1, 1]} : vector<8x32xf32> to vector<1x32xf32>
    %78 = arith.addf %77, %67 : vector<1x32xf32>
    %79 = arith.negf %78 : vector<1x32xf32>
    %80 = math.exp %79 : vector<1x32xf32>
    %cst_56 = arith.constant 1.000000e+00 : f32
    %81 = vector.broadcast %cst_56 : f32 to vector<1x32xf32>
    %82 = arith.addf %81, %80 : vector<1x32xf32>
    %83 = arith.divf %81, %82 : vector<1x32xf32>
    %84 = vector.extract_strided_slice %36 {offsets = [1, 0], sizes = [1, 32], strides = [1, 1]} : vector<8x32xf32> to vector<1x32xf32>
    %85 = arith.mulf %76, %69 : vector<1x32xf32>
    %86 = arith.addf %84, %85 : vector<1x32xf32>
    %87 = math.tanh %86 : vector<1x32xf32>
    %cst_57 = arith.constant 1.000000e+00 : f32
    %88 = vector.broadcast %cst_57 : f32 to vector<1x32xf32>
    %89 = arith.subf %88, %83 : vector<1x32xf32>
    %90 = arith.mulf %89, %87 : vector<1x32xf32>
    %91 = arith.mulf %83, %64 : vector<1x32xf32>
    %92 = arith.addf %90, %91 : vector<1x32xf32>
    %c1_58 = arith.constant 1 : index
    %c0_59 = arith.constant 0 : index
    %93 = vector.load %arg11[%c1_58, %c0_59] : memref<8x32xf32, #tpu.memory_space<vmem>>, vector<1x32xf32>
    tpu.vector_store %arg11[%c1_58, %c0_59], %92 {strides = array<i32>} : memref<8x32xf32, #tpu.memory_space<vmem>>, vector<1x32xf32>,
    %cst_60 = arith.constant dense<0.000000e+00> : vector<1x32xf32>
    %94 = tpu.matmul %92, %7, %cst_60 {dimension_numbers = #tpu.dot_dimension_numbers<[1], [0], [0], [1], [0, 0, 1, 1], [], []>, precision = #tpu.contract_precision<fp32>} : vector<1x32xf32>, vector<32x32xf32>, vector<1x32xf32> -> vector<1x32xf32>
    %cst_61 = arith.constant dense<0.000000e+00> : vector<1x32xf32>
    %95 = tpu.matmul %92, %9, %cst_61 {dimension_numbers = #tpu.dot_dimension_numbers<[1], [0], [0], [1], [0, 0, 1, 1], [], []>, precision = #tpu.contract_precision<fp32>} : vector<1x32xf32>, vector<32x32xf32>, vector<1x32xf32> -> vector<1x32xf32>
    %cst_62 = arith.constant dense<0.000000e+00> : vector<1x32xf32>
    %96 = tpu.matmul %92, %11, %cst_62 {dimension_numbers = #tpu.dot_dimension_numbers<[1], [0], [0], [1], [0, 0, 1, 1], [], []>, precision = #tpu.contract_precision<fp32>} : vector<1x32xf32>, vector<32x32xf32>, vector<1x32xf32> -> vector<1x32xf32>
    %97 = arith.addf %96, %18 : vector<1x32xf32>
    %98 = vector.extract_strided_slice %30 {offsets = [2, 0], sizes = [1, 32], strides = [1, 1]} : vector<8x32xf32> to vector<1x32xf32>
    %99 = arith.addf %98, %94 : vector<1x32xf32>
    %100 = arith.negf %99 : vector<1x32xf32>
    %101 = math.exp %100 : vector<1x32xf32>
    %cst_63 = arith.constant 1.000000e+00 : f32
    %102 = vector.broadcast %cst_63 : f32 to vector<1x32xf32>
    %103 = arith.addf %102, %101 : vector<1x32xf32>
    %104 = arith.divf %102, %103 : vector<1x32xf32>
    %105 = vector.extract_strided_slice %33 {offsets = [2, 0], sizes = [1, 32], strides = [1, 1]} : vector<8x32xf32> to vector<1x32xf32>
    %106 = arith.addf %105, %95 : vector<1x32xf32>
    %107 = arith.negf %106 : vector<1x32xf32>
    %108 = math.exp %107 : vector<1x32xf32>
    %cst_64 = arith.constant 1.000000e+00 : f32
    %109 = vector.broadcast %cst_64 : f32 to vector<1x32xf32>
    %110 = arith.addf %109, %108 : vector<1x32xf32>
    %111 = arith.divf %109, %110 : vector<1x32xf32>
    %112 = vector.extract_strided_slice %36 {offsets = [2, 0], sizes = [1, 32], strides = [1, 1]} : vector<8x32xf32> to vector<1x32xf32>
    %113 = arith.mulf %104, %97 : vector<1x32xf32>
    %114 = arith.addf %112, %113 : vector<1x32xf32>
    %115 = math.tanh %114 : vector<1x32xf32>
    %cst_65 = arith.constant 1.000000e+00 : f32
    %116 = vector.broadcast %cst_65 : f32 to vector<1x32xf32>
    %117 = arith.subf %116, %111 : vector<1x32xf32>
    %118 = arith.mulf %117, %115 : vector<1x32xf32>
    %119 = arith.mulf %111, %92 : vector<1x32xf32>
    %120 = arith.addf %118, %119 : vector<1x32xf32>
    %c2_66 = arith.constant 2 : index
    %c0_67 = arith.constant 0 : index
    %121 = vector.load %arg11[%c2_66, %c0_67] : memref<8x32xf32, #tpu.memory_space<vmem>>, vector<1x32xf32>
    tpu.vector_store %arg11[%c2_66, %c0_67], %120 {strides = array<i32>} : memref<8x32xf32, #tpu.memory_space<vmem>>, vector<1x32xf32>,
    %cst_68 = arith.constant dense<0.000000e+00> : vector<1x32xf32>
    %122 = tpu.matmul %120, %7, %cst_68 {dimension_numbers = #tpu.dot_dimension_numbers<[1], [0], [0], [1], [0, 0, 1, 1], [], []>, precision = #tpu.contract_precision<fp32>} : vector<1x32xf32>, vector<32x32xf32>, vector<1x32xf32> -> vector<1x32xf32>
    %cst_69 = arith.constant dense<0.000000e+00> : vector<1x32xf32>
    %123 = tpu.matmul %120, %9, %cst_69 {dimension_numbers = #tpu.dot_dimension_numbers<[1], [0], [0], [1], [0, 0, 1, 1], [], []>, precision = #tpu.contract_precision<fp32>} : vector<1x32xf32>, vector<32x32xf32>, vector<1x32xf32> -> vector<1x32xf32>
    %cst_70 = arith.constant dense<0.000000e+00> : vector<1x32xf32>
    %124 = tpu.matmul %120, %11, %cst_70 {dimension_numbers = #tpu.dot_dimension_numbers<[1], [0], [0], [1], [0, 0, 1, 1], [], []>, precision = #tpu.contract_precision<fp32>} : vector<1x32xf32>, vector<32x32xf32>, vector<1x32xf32> -> vector<1x32xf32>
    %125 = arith.addf %124, %18 : vector<1x32xf32>
    %126 = vector.extract_strided_slice %30 {offsets = [3, 0], sizes = [1, 32], strides = [1, 1]} : vector<8x32xf32> to vector<1x32xf32>
    %127 = arith.addf %126, %122 : vector<1x32xf32>
    %128 = arith.negf %127 : vector<1x32xf32>
    %129 = math.exp %128 : vector<1x32xf32>
    %cst_71 = arith.constant 1.000000e+00 : f32
    %130 = vector.broadcast %cst_71 : f32 to vector<1x32xf32>
    %131 = arith.addf %130, %129 : vector<1x32xf32>
    %132 = arith.divf %130, %131 : vector<1x32xf32>
    %133 = vector.extract_strided_slice %33 {offsets = [3, 0], sizes = [1, 32], strides = [1, 1]} : vector<8x32xf32> to vector<1x32xf32>
    %134 = arith.addf %133, %123 : vector<1x32xf32>
    %135 = arith.negf %134 : vector<1x32xf32>
    %136 = math.exp %135 : vector<1x32xf32>
    %cst_72 = arith.constant 1.000000e+00 : f32
    %137 = vector.broadcast %cst_72 : f32 to vector<1x32xf32>
    %138 = arith.addf %137, %136 : vector<1x32xf32>
    %139 = arith.divf %137, %138 : vector<1x32xf32>
    %140 = vector.extract_strided_slice %36 {offsets = [3, 0], sizes = [1, 32], strides = [1, 1]} : vector<8x32xf32> to vector<1x32xf32>
    %141 = arith.mulf %132, %125 : vector<1x32xf32>
    %142 = arith.addf %140, %141 : vector<1x32xf32>
    %143 = math.tanh %142 : vector<1x32xf32>
    %cst_73 = arith.constant 1.000000e+00 : f32
    %144 = vector.broadcast %cst_73 : f32 to vector<1x32xf32>
    %145 = arith.subf %144, %139 : vector<1x32xf32>
    %146 = arith.mulf %145, %143 : vector<1x32xf32>
    %147 = arith.mulf %139, %120 : vector<1x32xf32>
    %148 = arith.addf %146, %147 : vector<1x32xf32>
    %c3 = arith.constant 3 : index
    %c0_74 = arith.constant 0 : index
    %149 = vector.load %arg11[%c3, %c0_74] : memref<8x32xf32, #tpu.memory_space<vmem>>, vector<1x32xf32>
    tpu.vector_store %arg11[%c3, %c0_74], %148 {strides = array<i32>} : memref<8x32xf32, #tpu.memory_space<vmem>>, vector<1x32xf32>,
    %cst_75 = arith.constant dense<0.000000e+00> : vector<1x32xf32>
    %150 = tpu.matmul %148, %7, %cst_75 {dimension_numbers = #tpu.dot_dimension_numbers<[1], [0], [0], [1], [0, 0, 1, 1], [], []>, precision = #tpu.contract_precision<fp32>} : vector<1x32xf32>, vector<32x32xf32>, vector<1x32xf32> -> vector<1x32xf32>
    %cst_76 = arith.constant dense<0.000000e+00> : vector<1x32xf32>
    %151 = tpu.matmul %148, %9, %cst_76 {dimension_numbers = #tpu.dot_dimension_numbers<[1], [0], [0], [1], [0, 0, 1, 1], [], []>, precision = #tpu.contract_precision<fp32>} : vector<1x32xf32>, vector<32x32xf32>, vector<1x32xf32> -> vector<1x32xf32>
    %cst_77 = arith.constant dense<0.000000e+00> : vector<1x32xf32>
    %152 = tpu.matmul %148, %11, %cst_77 {dimension_numbers = #tpu.dot_dimension_numbers<[1], [0], [0], [1], [0, 0, 1, 1], [], []>, precision = #tpu.contract_precision<fp32>} : vector<1x32xf32>, vector<32x32xf32>, vector<1x32xf32> -> vector<1x32xf32>
    %153 = arith.addf %152, %18 : vector<1x32xf32>
    %154 = vector.extract_strided_slice %30 {offsets = [4, 0], sizes = [1, 32], strides = [1, 1]} : vector<8x32xf32> to vector<1x32xf32>
    %155 = arith.addf %154, %150 : vector<1x32xf32>
    %156 = arith.negf %155 : vector<1x32xf32>
    %157 = math.exp %156 : vector<1x32xf32>
    %cst_78 = arith.constant 1.000000e+00 : f32
    %158 = vector.broadcast %cst_78 : f32 to vector<1x32xf32>
    %159 = arith.addf %158, %157 : vector<1x32xf32>
    %160 = arith.divf %158, %159 : vector<1x32xf32>
    %161 = vector.extract_strided_slice %33 {offsets = [4, 0], sizes = [1, 32], strides = [1, 1]} : vector<8x32xf32> to vector<1x32xf32>
    %162 = arith.addf %161, %151 : vector<1x32xf32>
    %163 = arith.negf %162 : vector<1x32xf32>
    %164 = math.exp %163 : vector<1x32xf32>
    %cst_79 = arith.constant 1.000000e+00 : f32
    %165 = vector.broadcast %cst_79 : f32 to vector<1x32xf32>
    %166 = arith.addf %165, %164 : vector<1x32xf32>
    %167 = arith.divf %165, %166 : vector<1x32xf32>
    %168 = vector.extract_strided_slice %36 {offsets = [4, 0], sizes = [1, 32], strides = [1, 1]} : vector<8x32xf32> to vector<1x32xf32>
    %169 = arith.mulf %160, %153 : vector<1x32xf32>
    %170 = arith.addf %168, %169 : vector<1x32xf32>
    %171 = math.tanh %170 : vector<1x32xf32>
    %cst_80 = arith.constant 1.000000e+00 : f32
    %172 = vector.broadcast %cst_80 : f32 to vector<1x32xf32>
    %173 = arith.subf %172, %167 : vector<1x32xf32>
    %174 = arith.mulf %173, %171 : vector<1x32xf32>
    %175 = arith.mulf %167, %148 : vector<1x32xf32>
    %176 = arith.addf %174, %175 : vector<1x32xf32>
    %c4 = arith.constant 4 : index
    %c0_81 = arith.constant 0 : index
    %177 = vector.load %arg11[%c4, %c0_81] : memref<8x32xf32, #tpu.memory_space<vmem>>, vector<1x32xf32>
    tpu.vector_store %arg11[%c4, %c0_81], %176 {strides = array<i32>} : memref<8x32xf32, #tpu.memory_space<vmem>>, vector<1x32xf32>,
    %cst_82 = arith.constant dense<0.000000e+00> : vector<1x32xf32>
    %178 = tpu.matmul %176, %7, %cst_82 {dimension_numbers = #tpu.dot_dimension_numbers<[1], [0], [0], [1], [0, 0, 1, 1], [], []>, precision = #tpu.contract_precision<fp32>} : vector<1x32xf32>, vector<32x32xf32>, vector<1x32xf32> -> vector<1x32xf32>
    %cst_83 = arith.constant dense<0.000000e+00> : vector<1x32xf32>
    %179 = tpu.matmul %176, %9, %cst_83 {dimension_numbers = #tpu.dot_dimension_numbers<[1], [0], [0], [1], [0, 0, 1, 1], [], []>, precision = #tpu.contract_precision<fp32>} : vector<1x32xf32>, vector<32x32xf32>, vector<1x32xf32> -> vector<1x32xf32>
    %cst_84 = arith.constant dense<0.000000e+00> : vector<1x32xf32>
    %180 = tpu.matmul %176, %11, %cst_84 {dimension_numbers = #tpu.dot_dimension_numbers<[1], [0], [0], [1], [0, 0, 1, 1], [], []>, precision = #tpu.contract_precision<fp32>} : vector<1x32xf32>, vector<32x32xf32>, vector<1x32xf32> -> vector<1x32xf32>
    %181 = arith.addf %180, %18 : vector<1x32xf32>
    %182 = vector.extract_strided_slice %30 {offsets = [5, 0], sizes = [1, 32], strides = [1, 1]} : vector<8x32xf32> to vector<1x32xf32>
    %183 = arith.addf %182, %178 : vector<1x32xf32>
    %184 = arith.negf %183 : vector<1x32xf32>
    %185 = math.exp %184 : vector<1x32xf32>
    %cst_85 = arith.constant 1.000000e+00 : f32
    %186 = vector.broadcast %cst_85 : f32 to vector<1x32xf32>
    %187 = arith.addf %186, %185 : vector<1x32xf32>
    %188 = arith.divf %186, %187 : vector<1x32xf32>
    %189 = vector.extract_strided_slice %33 {offsets = [5, 0], sizes = [1, 32], strides = [1, 1]} : vector<8x32xf32> to vector<1x32xf32>
    %190 = arith.addf %189, %179 : vector<1x32xf32>
    %191 = arith.negf %190 : vector<1x32xf32>
    %192 = math.exp %191 : vector<1x32xf32>
    %cst_86 = arith.constant 1.000000e+00 : f32
    %193 = vector.broadcast %cst_86 : f32 to vector<1x32xf32>
    %194 = arith.addf %193, %192 : vector<1x32xf32>
    %195 = arith.divf %193, %194 : vector<1x32xf32>
    %196 = vector.extract_strided_slice %36 {offsets = [5, 0], sizes = [1, 32], strides = [1, 1]} : vector<8x32xf32> to vector<1x32xf32>
    %197 = arith.mulf %188, %181 : vector<1x32xf32>
    %198 = arith.addf %196, %197 : vector<1x32xf32>
    %199 = math.tanh %198 : vector<1x32xf32>
    %cst_87 = arith.constant 1.000000e+00 : f32
    %200 = vector.broadcast %cst_87 : f32 to vector<1x32xf32>
    %201 = arith.subf %200, %195 : vector<1x32xf32>
    %202 = arith.mulf %201, %199 : vector<1x32xf32>
    %203 = arith.mulf %195, %176 : vector<1x32xf32>
    %204 = arith.addf %202, %203 : vector<1x32xf32>
    %c5 = arith.constant 5 : index
    %c0_88 = arith.constant 0 : index
    %205 = vector.load %arg11[%c5, %c0_88] : memref<8x32xf32, #tpu.memory_space<vmem>>, vector<1x32xf32>
    tpu.vector_store %arg11[%c5, %c0_88], %204 {strides = array<i32>} : memref<8x32xf32, #tpu.memory_space<vmem>>, vector<1x32xf32>,
    %cst_89 = arith.constant dense<0.000000e+00> : vector<1x32xf32>
    %206 = tpu.matmul %204, %7, %cst_89 {dimension_numbers = #tpu.dot_dimension_numbers<[1], [0], [0], [1], [0, 0, 1, 1], [], []>, precision = #tpu.contract_precision<fp32>} : vector<1x32xf32>, vector<32x32xf32>, vector<1x32xf32> -> vector<1x32xf32>
    %cst_90 = arith.constant dense<0.000000e+00> : vector<1x32xf32>
    %207 = tpu.matmul %204, %9, %cst_90 {dimension_numbers = #tpu.dot_dimension_numbers<[1], [0], [0], [1], [0, 0, 1, 1], [], []>, precision = #tpu.contract_precision<fp32>} : vector<1x32xf32>, vector<32x32xf32>, vector<1x32xf32> -> vector<1x32xf32>
    %cst_91 = arith.constant dense<0.000000e+00> : vector<1x32xf32>
    %208 = tpu.matmul %204, %11, %cst_91 {dimension_numbers = #tpu.dot_dimension_numbers<[1], [0], [0], [1], [0, 0, 1, 1], [], []>, precision = #tpu.contract_precision<fp32>} : vector<1x32xf32>, vector<32x32xf32>, vector<1x32xf32> -> vector<1x32xf32>
    %209 = arith.addf %208, %18 : vector<1x32xf32>
    %210 = vector.extract_strided_slice %30 {offsets = [6, 0], sizes = [1, 32], strides = [1, 1]} : vector<8x32xf32> to vector<1x32xf32>
    %211 = arith.addf %210, %206 : vector<1x32xf32>
    %212 = arith.negf %211 : vector<1x32xf32>
    %213 = math.exp %212 : vector<1x32xf32>
    %cst_92 = arith.constant 1.000000e+00 : f32
    %214 = vector.broadcast %cst_92 : f32 to vector<1x32xf32>
    %215 = arith.addf %214, %213 : vector<1x32xf32>
    %216 = arith.divf %214, %215 : vector<1x32xf32>
    %217 = vector.extract_strided_slice %33 {offsets = [6, 0], sizes = [1, 32], strides = [1, 1]} : vector<8x32xf32> to vector<1x32xf32>
    %218 = arith.addf %217, %207 : vector<1x32xf32>
    %219 = arith.negf %218 : vector<1x32xf32>
    %220 = math.exp %219 : vector<1x32xf32>
    %cst_93 = arith.constant 1.000000e+00 : f32
    %221 = vector.broadcast %cst_93 : f32 to vector<1x32xf32>
    %222 = arith.addf %221, %220 : vector<1x32xf32>
    %223 = arith.divf %221, %222 : vector<1x32xf32>
    %224 = vector.extract_strided_slice %36 {offsets = [6, 0], sizes = [1, 32], strides = [1, 1]} : vector<8x32xf32> to vector<1x32xf32>
    %225 = arith.mulf %216, %209 : vector<1x32xf32>
    %226 = arith.addf %224, %225 : vector<1x32xf32>
    %227 = math.tanh %226 : vector<1x32xf32>
    %cst_94 = arith.constant 1.000000e+00 : f32
    %228 = vector.broadcast %cst_94 : f32 to vector<1x32xf32>
    %229 = arith.subf %228, %223 : vector<1x32xf32>
    %230 = arith.mulf %229, %227 : vector<1x32xf32>
    %231 = arith.mulf %223, %204 : vector<1x32xf32>
    %232 = arith.addf %230, %231 : vector<1x32xf32>
    %c6 = arith.constant 6 : index
    %c0_95 = arith.constant 0 : index
    %233 = vector.load %arg11[%c6, %c0_95] : memref<8x32xf32, #tpu.memory_space<vmem>>, vector<1x32xf32>
    tpu.vector_store %arg11[%c6, %c0_95], %232 {strides = array<i32>} : memref<8x32xf32, #tpu.memory_space<vmem>>, vector<1x32xf32>,
    %cst_96 = arith.constant dense<0.000000e+00> : vector<1x32xf32>
    %234 = tpu.matmul %232, %7, %cst_96 {dimension_numbers = #tpu.dot_dimension_numbers<[1], [0], [0], [1], [0, 0, 1, 1], [], []>, precision = #tpu.contract_precision<fp32>} : vector<1x32xf32>, vector<32x32xf32>, vector<1x32xf32> -> vector<1x32xf32>
    %cst_97 = arith.constant dense<0.000000e+00> : vector<1x32xf32>
    %235 = tpu.matmul %232, %9, %cst_97 {dimension_numbers = #tpu.dot_dimension_numbers<[1], [0], [0], [1], [0, 0, 1, 1], [], []>, precision = #tpu.contract_precision<fp32>} : vector<1x32xf32>, vector<32x32xf32>, vector<1x32xf32> -> vector<1x32xf32>
    %cst_98 = arith.constant dense<0.000000e+00> : vector<1x32xf32>
    %236 = tpu.matmul %232, %11, %cst_98 {dimension_numbers = #tpu.dot_dimension_numbers<[1], [0], [0], [1], [0, 0, 1, 1], [], []>, precision = #tpu.contract_precision<fp32>} : vector<1x32xf32>, vector<32x32xf32>, vector<1x32xf32> -> vector<1x32xf32>
    %237 = arith.addf %236, %18 : vector<1x32xf32>
    %238 = vector.extract_strided_slice %30 {offsets = [7, 0], sizes = [1, 32], strides = [1, 1]} : vector<8x32xf32> to vector<1x32xf32>
    %239 = arith.addf %238, %234 : vector<1x32xf32>
    %240 = arith.negf %239 : vector<1x32xf32>
    %241 = math.exp %240 : vector<1x32xf32>
    %cst_99 = arith.constant 1.000000e+00 : f32
    %242 = vector.broadcast %cst_99 : f32 to vector<1x32xf32>
    %243 = arith.addf %242, %241 : vector<1x32xf32>
    %244 = arith.divf %242, %243 : vector<1x32xf32>
    %245 = vector.extract_strided_slice %33 {offsets = [7, 0], sizes = [1, 32], strides = [1, 1]} : vector<8x32xf32> to vector<1x32xf32>
    %246 = arith.addf %245, %235 : vector<1x32xf32>
    %247 = arith.negf %246 : vector<1x32xf32>
    %248 = math.exp %247 : vector<1x32xf32>
    %cst_100 = arith.constant 1.000000e+00 : f32
    %249 = vector.broadcast %cst_100 : f32 to vector<1x32xf32>
    %250 = arith.addf %249, %248 : vector<1x32xf32>
    %251 = arith.divf %249, %250 : vector<1x32xf32>
    %252 = vector.extract_strided_slice %36 {offsets = [7, 0], sizes = [1, 32], strides = [1, 1]} : vector<8x32xf32> to vector<1x32xf32>
    %253 = arith.mulf %244, %237 : vector<1x32xf32>
    %254 = arith.addf %252, %253 : vector<1x32xf32>
    %255 = math.tanh %254 : vector<1x32xf32>
    %cst_101 = arith.constant 1.000000e+00 : f32
    %256 = vector.broadcast %cst_101 : f32 to vector<1x32xf32>
    %257 = arith.subf %256, %251 : vector<1x32xf32>
    %258 = arith.mulf %257, %255 : vector<1x32xf32>
    %259 = arith.mulf %251, %232 : vector<1x32xf32>
    %260 = arith.addf %258, %259 : vector<1x32xf32>
    %c7 = arith.constant 7 : index
    %c0_102 = arith.constant 0 : index
    %261 = vector.load %arg11[%c7, %c0_102] : memref<8x32xf32, #tpu.memory_space<vmem>>, vector<1x32xf32>
    tpu.vector_store %arg11[%c7, %c0_102], %260 {strides = array<i32>} : memref<8x32xf32, #tpu.memory_space<vmem>>, vector<1x32xf32>,
    %c0_103 = arith.constant 0 : index
    %c0_104 = arith.constant 0 : index
    %262 = vector.load %arg10[%c0_103, %c0_104] : memref<2x32xf32, #tpu.memory_space<vmem>>, vector<1x32xf32>
    tpu.vector_store %arg10[%c0_103, %c0_104], %260 {strides = array<i32>} : memref<2x32xf32, #tpu.memory_space<vmem>>, vector<1x32xf32>,
    %c0_105 = arith.constant 0 : index
    %c0_106 = arith.constant 0 : index
    %263 = vector.load %arg11[%c0_105, %c0_106] : memref<8x32xf32, #tpu.memory_space<vmem>>, vector<8x32xf32>
    %cst_107 = arith.constant dense<0.000000e+00> : vector<8x32xf32>
    %264 = tpu.matmul %263, %19, %cst_107 {dimension_numbers = #tpu.dot_dimension_numbers<[1], [0], [0], [1], [0, 0, 1, 1], [], []>, precision = #tpu.contract_precision<fp32>} : vector<8x32xf32>, vector<32x32xf32>, vector<8x32xf32> -> vector<8x32xf32>
    %cst_108 = arith.constant dense<0.000000e+00> : vector<8x10xf32>
    %265 = tpu.matmul %264, %27, %cst_108 {dimension_numbers = #tpu.dot_dimension_numbers<[1], [1], [0], [0], [0, 0, 1, 0], [], []>, precision = #tpu.contract_precision<fp32>} : vector<8x32xf32>, vector<10x32xf32>, vector<8x10xf32> -> vector<8x10xf32>
    %cst_109 = arith.constant dense<0xFF800000> : vector<8xf32>
    %266 = vector.multi_reduction <maximumf>, %265, %cst_109 [1] : vector<8x10xf32> to vector<8xf32>
    %267 = vector.shape_cast %266 : vector<8xf32> to vector<8x1xf32>
    %268 = vector.broadcast %267 : vector<8x1xf32> to vector<8x10xf32>
    %269 = arith.subf %265, %268 : vector<8x10xf32>
    %270 = math.exp %269 : vector<8x10xf32>
    %cst_110 = arith.constant dense<0.000000e+00> : vector<8xf32>
    %271 = vector.multi_reduction <add>, %270, %cst_110 [1] : vector<8x10xf32> to vector<8xf32>
    %272 = vector.shape_cast %271 : vector<8xf32> to vector<8x1xf32>
    %273 = tpu.reciprocal %272 {approx = true} : vector<8x1xf32> -> vector<8x1xf32>
    %274 = vector.broadcast %273 : vector<8x1xf32> to vector<8x10xf32>
    %275 = arith.mulf %270, %274 : vector<8x10xf32>
    %cst_111 = arith.constant dense<0.000000e+00> : vector<8x32xf32>
    %276 = tpu.matmul %275, %27, %cst_111 {dimension_numbers = #tpu.dot_dimension_numbers<[1], [0], [0], [1], [0, 0, 1, 1], [], []>, precision = #tpu.contract_precision<fp32>} : vector<8x10xf32>, vector<10x32xf32>, vector<8x32xf32> -> vector<8x32xf32>
    %cst_112 = arith.constant dense<0.000000e+00> : vector<8x32xf32>
    %277 = tpu.matmul %276, %21, %cst_112 {dimension_numbers = #tpu.dot_dimension_numbers<[1], [0], [0], [1], [0, 0, 1, 1], [], []>, precision = #tpu.contract_precision<fp32>} : vector<8x32xf32>, vector<32x32xf32>, vector<8x32xf32> -> vector<8x32xf32>
    %cst_113 = arith.constant dense<0.000000e+00> : vector<8x32xf32>
    %278 = tpu.matmul %263, %23, %cst_113 {dimension_numbers = #tpu.dot_dimension_numbers<[1], [0], [0], [1], [0, 0, 1, 1], [], []>, precision = #tpu.contract_precision<fp32>} : vector<8x32xf32>, vector<32x32xf32>, vector<8x32xf32> -> vector<8x32xf32>
    %279 = arith.addf %277, %278 : vector<8x32xf32>
    %280 = math.tanh %279 : vector<8x32xf32>
    %c0_114 = arith.constant 0 : index
    %c0_115 = arith.constant 0 : index
    %c0_116 = arith.constant 0 : index
    %281 = vector.load %arg9[%c0_114, %c0_115, %c0_116] : memref<2x8x32xf32, #tpu.memory_space<vmem>>, vector<1x8x32xf32>
    %282 = vector.shape_cast %281 : vector<1x8x32xf32> to vector<8x32xf32>
    %283 = vector.shape_cast %280 : vector<8x32xf32> to vector<1x8x32xf32>
    tpu.vector_store %arg9[%c0_114, %c0_115, %c0_116], %283 {strides = array<i32>} : memref<2x8x32xf32, #tpu.memory_space<vmem>>, vector<1x8x32xf32>,
    %c1_117 = arith.constant 1 : index
    %c0_118 = arith.constant 0 : index
    %c0_119 = arith.constant 0 : index
    %284 = vector.load %arg0[%c1_117, %c0_118, %c0_119] : memref<2x8x32xf32, #tpu.memory_space<vmem>>, vector<1x8x32xf32>
    %285 = vector.shape_cast %284 : vector<1x8x32xf32> to vector<8x32xf32>
    %c1_120 = arith.constant 1 : index
    %c0_121 = arith.constant 0 : index
    %c0_122 = arith.constant 0 : index
    %286 = vector.load %arg1[%c1_120, %c0_121, %c0_122] : memref<2x10x32xf32, #tpu.memory_space<vmem>>, vector<1x10x32xf32>
    %287 = vector.shape_cast %286 : vector<1x10x32xf32> to vector<10x32xf32>
    %cst_123 = arith.constant dense<0.000000e+00> : vector<8x32xf32>
    %288 = tpu.matmul %285, %1, %cst_123 {dimension_numbers = #tpu.dot_dimension_numbers<[1], [0], [0], [1], [0, 0, 1, 1], [], []>, precision = #tpu.contract_precision<fp32>} : vector<8x32xf32>, vector<32x32xf32>, vector<8x32xf32> -> vector<8x32xf32>
    %289 = vector.broadcast %13 : vector<1x32xf32> to vector<8x32xf32>
    %290 = arith.addf %288, %289 : vector<8x32xf32>
    %cst_124 = arith.constant dense<0.000000e+00> : vector<8x32xf32>
    %291 = tpu.matmul %285, %3, %cst_124 {dimension_numbers = #tpu.dot_dimension_numbers<[1], [0], [0], [1], [0, 0, 1, 1], [], []>, precision = #tpu.contract_precision<fp32>} : vector<8x32xf32>, vector<32x32xf32>, vector<8x32xf32> -> vector<8x32xf32>
    %292 = vector.broadcast %15 : vector<1x32xf32> to vector<8x32xf32>
    %293 = arith.addf %291, %292 : vector<8x32xf32>
    %cst_125 = arith.constant dense<0.000000e+00> : vector<8x32xf32>
    %294 = tpu.matmul %285, %5, %cst_125 {dimension_numbers = #tpu.dot_dimension_numbers<[1], [0], [0], [1], [0, 0, 1, 1], [], []>, precision = #tpu.contract_precision<fp32>} : vector<8x32xf32>, vector<32x32xf32>, vector<8x32xf32> -> vector<8x32xf32>
    %295 = vector.broadcast %17 : vector<1x32xf32> to vector<8x32xf32>
    %296 = arith.addf %294, %295 : vector<8x32xf32>
    %c1_126 = arith.constant 1 : index
    %c0_127 = arith.constant 0 : index
    %297 = vector.load %arg2[%c1_126, %c0_127] : memref<2x32xf32, #tpu.memory_space<vmem>>, vector<1x32xf32>
    %cst_128 = arith.constant dense<0.000000e+00> : vector<1x32xf32>
    %298 = tpu.matmul %297, %7, %cst_128 {dimension_numbers = #tpu.dot_dimension_numbers<[1], [0], [0], [1], [0, 0, 1, 1], [], []>, precision = #tpu.contract_precision<fp32>} : vector<1x32xf32>, vector<32x32xf32>, vector<1x32xf32> -> vector<1x32xf32>
    %cst_129 = arith.constant dense<0.000000e+00> : vector<1x32xf32>
    %299 = tpu.matmul %297, %9, %cst_129 {dimension_numbers = #tpu.dot_dimension_numbers<[1], [0], [0], [1], [0, 0, 1, 1], [], []>, precision = #tpu.contract_precision<fp32>} : vector<1x32xf32>, vector<32x32xf32>, vector<1x32xf32> -> vector<1x32xf32>
    %cst_130 = arith.constant dense<0.000000e+00> : vector<1x32xf32>
    %300 = tpu.matmul %297, %11, %cst_130 {dimension_numbers = #tpu.dot_dimension_numbers<[1], [0], [0], [1], [0, 0, 1, 1], [], []>, precision = #tpu.contract_precision<fp32>} : vector<1x32xf32>, vector<32x32xf32>, vector<1x32xf32> -> vector<1x32xf32>
    %301 = arith.addf %300, %18 : vector<1x32xf32>
    %302 = vector.extract_strided_slice %290 {offsets = [0, 0], sizes = [1, 32], strides = [1, 1]} : vector<8x32xf32> to vector<1x32xf32>
    %303 = arith.addf %302, %298 : vector<1x32xf32>
    %304 = arith.negf %303 : vector<1x32xf32>
    %305 = math.exp %304 : vector<1x32xf32>
    %cst_131 = arith.constant 1.000000e+00 : f32
    %306 = vector.broadcast %cst_131 : f32 to vector<1x32xf32>
    %307 = arith.addf %306, %305 : vector<1x32xf32>
    %308 = arith.divf %306, %307 : vector<1x32xf32>
    %309 = vector.extract_strided_slice %293 {offsets = [0, 0], sizes = [1, 32], strides = [1, 1]} : vector<8x32xf32> to vector<1x32xf32>
    %310 = arith.addf %309, %299 : vector<1x32xf32>
    %311 = arith.negf %310 : vector<1x32xf32>
    %312 = math.exp %311 : vector<1x32xf32>
    %cst_132 = arith.constant 1.000000e+00 : f32
    %313 = vector.broadcast %cst_132 : f32 to vector<1x32xf32>
    %314 = arith.addf %313, %312 : vector<1x32xf32>
    %315 = arith.divf %313, %314 : vector<1x32xf32>
    %316 = vector.extract_strided_slice %296 {offsets = [0, 0], sizes = [1, 32], strides = [1, 1]} : vector<8x32xf32> to vector<1x32xf32>
    %317 = arith.mulf %308, %301 : vector<1x32xf32>
    %318 = arith.addf %316, %317 : vector<1x32xf32>
    %319 = math.tanh %318 : vector<1x32xf32>
    %cst_133 = arith.constant 1.000000e+00 : f32
    %320 = vector.broadcast %cst_133 : f32 to vector<1x32xf32>
    %321 = arith.subf %320, %315 : vector<1x32xf32>
    %322 = arith.mulf %321, %319 : vector<1x32xf32>
    %323 = arith.mulf %315, %297 : vector<1x32xf32>
    %324 = arith.addf %322, %323 : vector<1x32xf32>
    %c0_134 = arith.constant 0 : index
    %c0_135 = arith.constant 0 : index
    %325 = vector.load %arg11[%c0_134, %c0_135] : memref<8x32xf32, #tpu.memory_space<vmem>>, vector<1x32xf32>
    tpu.vector_store %arg11[%c0_134, %c0_135], %324 {strides = array<i32>} : memref<8x32xf32, #tpu.memory_space<vmem>>, vector<1x32xf32>,
    %cst_136 = arith.constant dense<0.000000e+00> : vector<1x32xf32>
    %326 = tpu.matmul %324, %7, %cst_136 {dimension_numbers = #tpu.dot_dimension_numbers<[1], [0], [0], [1], [0, 0, 1, 1], [], []>, precision = #tpu.contract_precision<fp32>} : vector<1x32xf32>, vector<32x32xf32>, vector<1x32xf32> -> vector<1x32xf32>
    %cst_137 = arith.constant dense<0.000000e+00> : vector<1x32xf32>
    %327 = tpu.matmul %324, %9, %cst_137 {dimension_numbers = #tpu.dot_dimension_numbers<[1], [0], [0], [1], [0, 0, 1, 1], [], []>, precision = #tpu.contract_precision<fp32>} : vector<1x32xf32>, vector<32x32xf32>, vector<1x32xf32> -> vector<1x32xf32>
    %cst_138 = arith.constant dense<0.000000e+00> : vector<1x32xf32>
    %328 = tpu.matmul %324, %11, %cst_138 {dimension_numbers = #tpu.dot_dimension_numbers<[1], [0], [0], [1], [0, 0, 1, 1], [], []>, precision = #tpu.contract_precision<fp32>} : vector<1x32xf32>, vector<32x32xf32>, vector<1x32xf32> -> vector<1x32xf32>
    %329 = arith.addf %328, %18 : vector<1x32xf32>
    %330 = vector.extract_strided_slice %290 {offsets = [1, 0], sizes = [1, 32], strides = [1, 1]} : vector<8x32xf32> to vector<1x32xf32>
    %331 = arith.addf %330, %326 : vector<1x32xf32>
    %332 = arith.negf %331 : vector<1x32xf32>
    %333 = math.exp %332 : vector<1x32xf32>
    %cst_139 = arith.constant 1.000000e+00 : f32
    %334 = vector.broadcast %cst_139 : f32 to vector<1x32xf32>
    %335 = arith.addf %334, %333 : vector<1x32xf32>
    %336 = arith.divf %334, %335 : vector<1x32xf32>
    %337 = vector.extract_strided_slice %293 {offsets = [1, 0], sizes = [1, 32], strides = [1, 1]} : vector<8x32xf32> to vector<1x32xf32>
    %338 = arith.addf %337, %327 : vector<1x32xf32>
    %339 = arith.negf %338 : vector<1x32xf32>
    %340 = math.exp %339 : vector<1x32xf32>
    %cst_140 = arith.constant 1.000000e+00 : f32
    %341 = vector.broadcast %cst_140 : f32 to vector<1x32xf32>
    %342 = arith.addf %341, %340 : vector<1x32xf32>
    %343 = arith.divf %341, %342 : vector<1x32xf32>
    %344 = vector.extract_strided_slice %296 {offsets = [1, 0], sizes = [1, 32], strides = [1, 1]} : vector<8x32xf32> to vector<1x32xf32>
    %345 = arith.mulf %336, %329 : vector<1x32xf32>
    %346 = arith.addf %344, %345 : vector<1x32xf32>
    %347 = math.tanh %346 : vector<1x32xf32>
    %cst_141 = arith.constant 1.000000e+00 : f32
    %348 = vector.broadcast %cst_141 : f32 to vector<1x32xf32>
    %349 = arith.subf %348, %343 : vector<1x32xf32>
    %350 = arith.mulf %349, %347 : vector<1x32xf32>
    %351 = arith.mulf %343, %324 : vector<1x32xf32>
    %352 = arith.addf %350, %351 : vector<1x32xf32>
    %c1_142 = arith.constant 1 : index
    %c0_143 = arith.constant 0 : index
    %353 = vector.load %arg11[%c1_142, %c0_143] : memref<8x32xf32, #tpu.memory_space<vmem>>, vector<1x32xf32>
    tpu.vector_store %arg11[%c1_142, %c0_143], %352 {strides = array<i32>} : memref<8x32xf32, #tpu.memory_space<vmem>>, vector<1x32xf32>,
    %cst_144 = arith.constant dense<0.000000e+00> : vector<1x32xf32>
    %354 = tpu.matmul %352, %7, %cst_144 {dimension_numbers = #tpu.dot_dimension_numbers<[1], [0], [0], [1], [0, 0, 1, 1], [], []>, precision = #tpu.contract_precision<fp32>} : vector<1x32xf32>, vector<32x32xf32>, vector<1x32xf32> -> vector<1x32xf32>
    %cst_145 = arith.constant dense<0.000000e+00> : vector<1x32xf32>
    %355 = tpu.matmul %352, %9, %cst_145 {dimension_numbers = #tpu.dot_dimension_numbers<[1], [0], [0], [1], [0, 0, 1, 1], [], []>, precision = #tpu.contract_precision<fp32>} : vector<1x32xf32>, vector<32x32xf32>, vector<1x32xf32> -> vector<1x32xf32>
    %cst_146 = arith.constant dense<0.000000e+00> : vector<1x32xf32>
    %356 = tpu.matmul %352, %11, %cst_146 {dimension_numbers = #tpu.dot_dimension_numbers<[1], [0], [0], [1], [0, 0, 1, 1], [], []>, precision = #tpu.contract_precision<fp32>} : vector<1x32xf32>, vector<32x32xf32>, vector<1x32xf32> -> vector<1x32xf32>
    %357 = arith.addf %356, %18 : vector<1x32xf32>
    %358 = vector.extract_strided_slice %290 {offsets = [2, 0], sizes = [1, 32], strides = [1, 1]} : vector<8x32xf32> to vector<1x32xf32>
    %359 = arith.addf %358, %354 : vector<1x32xf32>
    %360 = arith.negf %359 : vector<1x32xf32>
    %361 = math.exp %360 : vector<1x32xf32>
    %cst_147 = arith.constant 1.000000e+00 : f32
    %362 = vector.broadcast %cst_147 : f32 to vector<1x32xf32>
    %363 = arith.addf %362, %361 : vector<1x32xf32>
    %364 = arith.divf %362, %363 : vector<1x32xf32>
    %365 = vector.extract_strided_slice %293 {offsets = [2, 0], sizes = [1, 32], strides = [1, 1]} : vector<8x32xf32> to vector<1x32xf32>
    %366 = arith.addf %365, %355 : vector<1x32xf32>
    %367 = arith.negf %366 : vector<1x32xf32>
    %368 = math.exp %367 : vector<1x32xf32>
    %cst_148 = arith.constant 1.000000e+00 : f32
    %369 = vector.broadcast %cst_148 : f32 to vector<1x32xf32>
    %370 = arith.addf %369, %368 : vector<1x32xf32>
    %371 = arith.divf %369, %370 : vector<1x32xf32>
    %372 = vector.extract_strided_slice %296 {offsets = [2, 0], sizes = [1, 32], strides = [1, 1]} : vector<8x32xf32> to vector<1x32xf32>
    %373 = arith.mulf %364, %357 : vector<1x32xf32>
    %374 = arith.addf %372, %373 : vector<1x32xf32>
    %375 = math.tanh %374 : vector<1x32xf32>
    %cst_149 = arith.constant 1.000000e+00 : f32
    %376 = vector.broadcast %cst_149 : f32 to vector<1x32xf32>
    %377 = arith.subf %376, %371 : vector<1x32xf32>
    %378 = arith.mulf %377, %375 : vector<1x32xf32>
    %379 = arith.mulf %371, %352 : vector<1x32xf32>
    %380 = arith.addf %378, %379 : vector<1x32xf32>
    %c2_150 = arith.constant 2 : index
    %c0_151 = arith.constant 0 : index
    %381 = vector.load %arg11[%c2_150, %c0_151] : memref<8x32xf32, #tpu.memory_space<vmem>>, vector<1x32xf32>
    tpu.vector_store %arg11[%c2_150, %c0_151], %380 {strides = array<i32>} : memref<8x32xf32, #tpu.memory_space<vmem>>, vector<1x32xf32>,
    %cst_152 = arith.constant dense<0.000000e+00> : vector<1x32xf32>
    %382 = tpu.matmul %380, %7, %cst_152 {dimension_numbers = #tpu.dot_dimension_numbers<[1], [0], [0], [1], [0, 0, 1, 1], [], []>, precision = #tpu.contract_precision<fp32>} : vector<1x32xf32>, vector<32x32xf32>, vector<1x32xf32> -> vector<1x32xf32>
    %cst_153 = arith.constant dense<0.000000e+00> : vector<1x32xf32>
    %383 = tpu.matmul %380, %9, %cst_153 {dimension_numbers = #tpu.dot_dimension_numbers<[1], [0], [0], [1], [0, 0, 1, 1], [], []>, precision = #tpu.contract_precision<fp32>} : vector<1x32xf32>, vector<32x32xf32>, vector<1x32xf32> -> vector<1x32xf32>
    %cst_154 = arith.constant dense<0.000000e+00> : vector<1x32xf32>
    %384 = tpu.matmul %380, %11, %cst_154 {dimension_numbers = #tpu.dot_dimension_numbers<[1], [0], [0], [1], [0, 0, 1, 1], [], []>, precision = #tpu.contract_precision<fp32>} : vector<1x32xf32>, vector<32x32xf32>, vector<1x32xf32> -> vector<1x32xf32>
    %385 = arith.addf %384, %18 : vector<1x32xf32>
    %386 = vector.extract_strided_slice %290 {offsets = [3, 0], sizes = [1, 32], strides = [1, 1]} : vector<8x32xf32> to vector<1x32xf32>
    %387 = arith.addf %386, %382 : vector<1x32xf32>
    %388 = arith.negf %387 : vector<1x32xf32>
    %389 = math.exp %388 : vector<1x32xf32>
    %cst_155 = arith.constant 1.000000e+00 : f32
    %390 = vector.broadcast %cst_155 : f32 to vector<1x32xf32>
    %391 = arith.addf %390, %389 : vector<1x32xf32>
    %392 = arith.divf %390, %391 : vector<1x32xf32>
    %393 = vector.extract_strided_slice %293 {offsets = [3, 0], sizes = [1, 32], strides = [1, 1]} : vector<8x32xf32> to vector<1x32xf32>
    %394 = arith.addf %393, %383 : vector<1x32xf32>
    %395 = arith.negf %394 : vector<1x32xf32>
    %396 = math.exp %395 : vector<1x32xf32>
    %cst_156 = arith.constant 1.000000e+00 : f32
    %397 = vector.broadcast %cst_156 : f32 to vector<1x32xf32>
    %398 = arith.addf %397, %396 : vector<1x32xf32>
    %399 = arith.divf %397, %398 : vector<1x32xf32>
    %400 = vector.extract_strided_slice %296 {offsets = [3, 0], sizes = [1, 32], strides = [1, 1]} : vector<8x32xf32> to vector<1x32xf32>
    %401 = arith.mulf %392, %385 : vector<1x32xf32>
    %402 = arith.addf %400, %401 : vector<1x32xf32>
    %403 = math.tanh %402 : vector<1x32xf32>
    %cst_157 = arith.constant 1.000000e+00 : f32
    %404 = vector.broadcast %cst_157 : f32 to vector<1x32xf32>
    %405 = arith.subf %404, %399 : vector<1x32xf32>
    %406 = arith.mulf %405, %403 : vector<1x32xf32>
    %407 = arith.mulf %399, %380 : vector<1x32xf32>
    %408 = arith.addf %406, %407 : vector<1x32xf32>
    %c3_158 = arith.constant 3 : index
    %c0_159 = arith.constant 0 : index
    %409 = vector.load %arg11[%c3_158, %c0_159] : memref<8x32xf32, #tpu.memory_space<vmem>>, vector<1x32xf32>
    tpu.vector_store %arg11[%c3_158, %c0_159], %408 {strides = array<i32>} : memref<8x32xf32, #tpu.memory_space<vmem>>, vector<1x32xf32>,
    %cst_160 = arith.constant dense<0.000000e+00> : vector<1x32xf32>
    %410 = tpu.matmul %408, %7, %cst_160 {dimension_numbers = #tpu.dot_dimension_numbers<[1], [0], [0], [1], [0, 0, 1, 1], [], []>, precision = #tpu.contract_precision<fp32>} : vector<1x32xf32>, vector<32x32xf32>, vector<1x32xf32> -> vector<1x32xf32>
    %cst_161 = arith.constant dense<0.000000e+00> : vector<1x32xf32>
    %411 = tpu.matmul %408, %9, %cst_161 {dimension_numbers = #tpu.dot_dimension_numbers<[1], [0], [0], [1], [0, 0, 1, 1], [], []>, precision = #tpu.contract_precision<fp32>} : vector<1x32xf32>, vector<32x32xf32>, vector<1x32xf32> -> vector<1x32xf32>
    %cst_162 = arith.constant dense<0.000000e+00> : vector<1x32xf32>
    %412 = tpu.matmul %408, %11, %cst_162 {dimension_numbers = #tpu.dot_dimension_numbers<[1], [0], [0], [1], [0, 0, 1, 1], [], []>, precision = #tpu.contract_precision<fp32>} : vector<1x32xf32>, vector<32x32xf32>, vector<1x32xf32> -> vector<1x32xf32>
    %413 = arith.addf %412, %18 : vector<1x32xf32>
    %414 = vector.extract_strided_slice %290 {offsets = [4, 0], sizes = [1, 32], strides = [1, 1]} : vector<8x32xf32> to vector<1x32xf32>
    %415 = arith.addf %414, %410 : vector<1x32xf32>
    %416 = arith.negf %415 : vector<1x32xf32>
    %417 = math.exp %416 : vector<1x32xf32>
    %cst_163 = arith.constant 1.000000e+00 : f32
    %418 = vector.broadcast %cst_163 : f32 to vector<1x32xf32>
    %419 = arith.addf %418, %417 : vector<1x32xf32>
    %420 = arith.divf %418, %419 : vector<1x32xf32>
    %421 = vector.extract_strided_slice %293 {offsets = [4, 0], sizes = [1, 32], strides = [1, 1]} : vector<8x32xf32> to vector<1x32xf32>
    %422 = arith.addf %421, %411 : vector<1x32xf32>
    %423 = arith.negf %422 : vector<1x32xf32>
    %424 = math.exp %423 : vector<1x32xf32>
    %cst_164 = arith.constant 1.000000e+00 : f32
    %425 = vector.broadcast %cst_164 : f32 to vector<1x32xf32>
    %426 = arith.addf %425, %424 : vector<1x32xf32>
    %427 = arith.divf %425, %426 : vector<1x32xf32>
    %428 = vector.extract_strided_slice %296 {offsets = [4, 0], sizes = [1, 32], strides = [1, 1]} : vector<8x32xf32> to vector<1x32xf32>
    %429 = arith.mulf %420, %413 : vector<1x32xf32>
    %430 = arith.addf %428, %429 : vector<1x32xf32>
    %431 = math.tanh %430 : vector<1x32xf32>
    %cst_165 = arith.constant 1.000000e+00 : f32
    %432 = vector.broadcast %cst_165 : f32 to vector<1x32xf32>
    %433 = arith.subf %432, %427 : vector<1x32xf32>
    %434 = arith.mulf %433, %431 : vector<1x32xf32>
    %435 = arith.mulf %427, %408 : vector<1x32xf32>
    %436 = arith.addf %434, %435 : vector<1x32xf32>
    %c4_166 = arith.constant 4 : index
    %c0_167 = arith.constant 0 : index
    %437 = vector.load %arg11[%c4_166, %c0_167] : memref<8x32xf32, #tpu.memory_space<vmem>>, vector<1x32xf32>
    tpu.vector_store %arg11[%c4_166, %c0_167], %436 {strides = array<i32>} : memref<8x32xf32, #tpu.memory_space<vmem>>, vector<1x32xf32>,
    %cst_168 = arith.constant dense<0.000000e+00> : vector<1x32xf32>
    %438 = tpu.matmul %436, %7, %cst_168 {dimension_numbers = #tpu.dot_dimension_numbers<[1], [0], [0], [1], [0, 0, 1, 1], [], []>, precision = #tpu.contract_precision<fp32>} : vector<1x32xf32>, vector<32x32xf32>, vector<1x32xf32> -> vector<1x32xf32>
    %cst_169 = arith.constant dense<0.000000e+00> : vector<1x32xf32>
    %439 = tpu.matmul %436, %9, %cst_169 {dimension_numbers = #tpu.dot_dimension_numbers<[1], [0], [0], [1], [0, 0, 1, 1], [], []>, precision = #tpu.contract_precision<fp32>} : vector<1x32xf32>, vector<32x32xf32>, vector<1x32xf32> -> vector<1x32xf32>
    %cst_170 = arith.constant dense<0.000000e+00> : vector<1x32xf32>
    %440 = tpu.matmul %436, %11, %cst_170 {dimension_numbers = #tpu.dot_dimension_numbers<[1], [0], [0], [1], [0, 0, 1, 1], [], []>, precision = #tpu.contract_precision<fp32>} : vector<1x32xf32>, vector<32x32xf32>, vector<1x32xf32> -> vector<1x32xf32>
    %441 = arith.addf %440, %18 : vector<1x32xf32>
    %442 = vector.extract_strided_slice %290 {offsets = [5, 0], sizes = [1, 32], strides = [1, 1]} : vector<8x32xf32> to vector<1x32xf32>
    %443 = arith.addf %442, %438 : vector<1x32xf32>
    %444 = arith.negf %443 : vector<1x32xf32>
    %445 = math.exp %444 : vector<1x32xf32>
    %cst_171 = arith.constant 1.000000e+00 : f32
    %446 = vector.broadcast %cst_171 : f32 to vector<1x32xf32>
    %447 = arith.addf %446, %445 : vector<1x32xf32>
    %448 = arith.divf %446, %447 : vector<1x32xf32>
    %449 = vector.extract_strided_slice %293 {offsets = [5, 0], sizes = [1, 32], strides = [1, 1]} : vector<8x32xf32> to vector<1x32xf32>
    %450 = arith.addf %449, %439 : vector<1x32xf32>
    %451 = arith.negf %450 : vector<1x32xf32>
    %452 = math.exp %451 : vector<1x32xf32>
    %cst_172 = arith.constant 1.000000e+00 : f32
    %453 = vector.broadcast %cst_172 : f32 to vector<1x32xf32>
    %454 = arith.addf %453, %452 : vector<1x32xf32>
    %455 = arith.divf %453, %454 : vector<1x32xf32>
    %456 = vector.extract_strided_slice %296 {offsets = [5, 0], sizes = [1, 32], strides = [1, 1]} : vector<8x32xf32> to vector<1x32xf32>
    %457 = arith.mulf %448, %441 : vector<1x32xf32>
    %458 = arith.addf %456, %457 : vector<1x32xf32>
    %459 = math.tanh %458 : vector<1x32xf32>
    %cst_173 = arith.constant 1.000000e+00 : f32
    %460 = vector.broadcast %cst_173 : f32 to vector<1x32xf32>
    %461 = arith.subf %460, %455 : vector<1x32xf32>
    %462 = arith.mulf %461, %459 : vector<1x32xf32>
    %463 = arith.mulf %455, %436 : vector<1x32xf32>
    %464 = arith.addf %462, %463 : vector<1x32xf32>
    %c5_174 = arith.constant 5 : index
    %c0_175 = arith.constant 0 : index
    %465 = vector.load %arg11[%c5_174, %c0_175] : memref<8x32xf32, #tpu.memory_space<vmem>>, vector<1x32xf32>
    tpu.vector_store %arg11[%c5_174, %c0_175], %464 {strides = array<i32>} : memref<8x32xf32, #tpu.memory_space<vmem>>, vector<1x32xf32>,
    %cst_176 = arith.constant dense<0.000000e+00> : vector<1x32xf32>
    %466 = tpu.matmul %464, %7, %cst_176 {dimension_numbers = #tpu.dot_dimension_numbers<[1], [0], [0], [1], [0, 0, 1, 1], [], []>, precision = #tpu.contract_precision<fp32>} : vector<1x32xf32>, vector<32x32xf32>, vector<1x32xf32> -> vector<1x32xf32>
    %cst_177 = arith.constant dense<0.000000e+00> : vector<1x32xf32>
    %467 = tpu.matmul %464, %9, %cst_177 {dimension_numbers = #tpu.dot_dimension_numbers<[1], [0], [0], [1], [0, 0, 1, 1], [], []>, precision = #tpu.contract_precision<fp32>} : vector<1x32xf32>, vector<32x32xf32>, vector<1x32xf32> -> vector<1x32xf32>
    %cst_178 = arith.constant dense<0.000000e+00> : vector<1x32xf32>
    %468 = tpu.matmul %464, %11, %cst_178 {dimension_numbers = #tpu.dot_dimension_numbers<[1], [0], [0], [1], [0, 0, 1, 1], [], []>, precision = #tpu.contract_precision<fp32>} : vector<1x32xf32>, vector<32x32xf32>, vector<1x32xf32> -> vector<1x32xf32>
    %469 = arith.addf %468, %18 : vector<1x32xf32>
    %470 = vector.extract_strided_slice %290 {offsets = [6, 0], sizes = [1, 32], strides = [1, 1]} : vector<8x32xf32> to vector<1x32xf32>
    %471 = arith.addf %470, %466 : vector<1x32xf32>
    %472 = arith.negf %471 : vector<1x32xf32>
    %473 = math.exp %472 : vector<1x32xf32>
    %cst_179 = arith.constant 1.000000e+00 : f32
    %474 = vector.broadcast %cst_179 : f32 to vector<1x32xf32>
    %475 = arith.addf %474, %473 : vector<1x32xf32>
    %476 = arith.divf %474, %475 : vector<1x32xf32>
    %477 = vector.extract_strided_slice %293 {offsets = [6, 0], sizes = [1, 32], strides = [1, 1]} : vector<8x32xf32> to vector<1x32xf32>
    %478 = arith.addf %477, %467 : vector<1x32xf32>
    %479 = arith.negf %478 : vector<1x32xf32>
    %480 = math.exp %479 : vector<1x32xf32>
    %cst_180 = arith.constant 1.000000e+00 : f32
    %481 = vector.broadcast %cst_180 : f32 to vector<1x32xf32>
    %482 = arith.addf %481, %480 : vector<1x32xf32>
    %483 = arith.divf %481, %482 : vector<1x32xf32>
    %484 = vector.extract_strided_slice %296 {offsets = [6, 0], sizes = [1, 32], strides = [1, 1]} : vector<8x32xf32> to vector<1x32xf32>
    %485 = arith.mulf %476, %469 : vector<1x32xf32>
    %486 = arith.addf %484, %485 : vector<1x32xf32>
    %487 = math.tanh %486 : vector<1x32xf32>
    %cst_181 = arith.constant 1.000000e+00 : f32
    %488 = vector.broadcast %cst_181 : f32 to vector<1x32xf32>
    %489 = arith.subf %488, %483 : vector<1x32xf32>
    %490 = arith.mulf %489, %487 : vector<1x32xf32>
    %491 = arith.mulf %483, %464 : vector<1x32xf32>
    %492 = arith.addf %490, %491 : vector<1x32xf32>
    %c6_182 = arith.constant 6 : index
    %c0_183 = arith.constant 0 : index
    %493 = vector.load %arg11[%c6_182, %c0_183] : memref<8x32xf32, #tpu.memory_space<vmem>>, vector<1x32xf32>
    tpu.vector_store %arg11[%c6_182, %c0_183], %492 {strides = array<i32>} : memref<8x32xf32, #tpu.memory_space<vmem>>, vector<1x32xf32>,
    %cst_184 = arith.constant dense<0.000000e+00> : vector<1x32xf32>
    %494 = tpu.matmul %492, %7, %cst_184 {dimension_numbers = #tpu.dot_dimension_numbers<[1], [0], [0], [1], [0, 0, 1, 1], [], []>, precision = #tpu.contract_precision<fp32>} : vector<1x32xf32>, vector<32x32xf32>, vector<1x32xf32> -> vector<1x32xf32>
    %cst_185 = arith.constant dense<0.000000e+00> : vector<1x32xf32>
    %495 = tpu.matmul %492, %9, %cst_185 {dimension_numbers = #tpu.dot_dimension_numbers<[1], [0], [0], [1], [0, 0, 1, 1], [], []>, precision = #tpu.contract_precision<fp32>} : vector<1x32xf32>, vector<32x32xf32>, vector<1x32xf32> -> vector<1x32xf32>
    %cst_186 = arith.constant dense<0.000000e+00> : vector<1x32xf32>
    %496 = tpu.matmul %492, %11, %cst_186 {dimension_numbers = #tpu.dot_dimension_numbers<[1], [0], [0], [1], [0, 0, 1, 1], [], []>, precision = #tpu.contract_precision<fp32>} : vector<1x32xf32>, vector<32x32xf32>, vector<1x32xf32> -> vector<1x32xf32>
    %497 = arith.addf %496, %18 : vector<1x32xf32>
    %498 = vector.extract_strided_slice %290 {offsets = [7, 0], sizes = [1, 32], strides = [1, 1]} : vector<8x32xf32> to vector<1x32xf32>
    %499 = arith.addf %498, %494 : vector<1x32xf32>
    %500 = arith.negf %499 : vector<1x32xf32>
    %501 = math.exp %500 : vector<1x32xf32>
    %cst_187 = arith.constant 1.000000e+00 : f32
    %502 = vector.broadcast %cst_187 : f32 to vector<1x32xf32>
    %503 = arith.addf %502, %501 : vector<1x32xf32>
    %504 = arith.divf %502, %503 : vector<1x32xf32>
    %505 = vector.extract_strided_slice %293 {offsets = [7, 0], sizes = [1, 32], strides = [1, 1]} : vector<8x32xf32> to vector<1x32xf32>
    %506 = arith.addf %505, %495 : vector<1x32xf32>
    %507 = arith.negf %506 : vector<1x32xf32>
    %508 = math.exp %507 : vector<1x32xf32>
    %cst_188 = arith.constant 1.000000e+00 : f32
    %509 = vector.broadcast %cst_188 : f32 to vector<1x32xf32>
    %510 = arith.addf %509, %508 : vector<1x32xf32>
    %511 = arith.divf %509, %510 : vector<1x32xf32>
    %512 = vector.extract_strided_slice %296 {offsets = [7, 0], sizes = [1, 32], strides = [1, 1]} : vector<8x32xf32> to vector<1x32xf32>
    %513 = arith.mulf %504, %497 : vector<1x32xf32>
    %514 = arith.addf %512, %513 : vector<1x32xf32>
    %515 = math.tanh %514 : vector<1x32xf32>
    %cst_189 = arith.constant 1.000000e+00 : f32
    %516 = vector.broadcast %cst_189 : f32 to vector<1x32xf32>
    %517 = arith.subf %516, %511 : vector<1x32xf32>
    %518 = arith.mulf %517, %515 : vector<1x32xf32>
    %519 = arith.mulf %511, %492 : vector<1x32xf32>
    %520 = arith.addf %518, %519 : vector<1x32xf32>
    %c7_190 = arith.constant 7 : index
    %c0_191 = arith.constant 0 : index
    %521 = vector.load %arg11[%c7_190, %c0_191] : memref<8x32xf32, #tpu.memory_space<vmem>>, vector<1x32xf32>
    tpu.vector_store %arg11[%c7_190, %c0_191], %520 {strides = array<i32>} : memref<8x32xf32, #tpu.memory_space<vmem>>, vector<1x32xf32>,
    %c1_192 = arith.constant 1 : index
    %c0_193 = arith.constant 0 : index
    %522 = vector.load %arg10[%c1_192, %c0_193] : memref<2x32xf32, #tpu.memory_space<vmem>>, vector<1x32xf32>
    tpu.vector_store %arg10[%c1_192, %c0_193], %520 {strides = array<i32>} : memref<2x32xf32, #tpu.memory_space<vmem>>, vector<1x32xf32>,
    %c0_194 = arith.constant 0 : index
    %c0_195 = arith.constant 0 : index
    %523 = vector.load %arg11[%c0_194, %c0_195] : memref<8x32xf32, #tpu.memory_space<vmem>>, vector<8x32xf32>
    %cst_196 = arith.constant dense<0.000000e+00> : vector<8x32xf32>
    %524 = tpu.matmul %523, %19, %cst_196 {dimension_numbers = #tpu.dot_dimension_numbers<[1], [0], [0], [1], [0, 0, 1, 1], [], []>, precision = #tpu.contract_precision<fp32>} : vector<8x32xf32>, vector<32x32xf32>, vector<8x32xf32> -> vector<8x32xf32>
    %cst_197 = arith.constant dense<0.000000e+00> : vector<8x10xf32>
    %525 = tpu.matmul %524, %287, %cst_197 {dimension_numbers = #tpu.dot_dimension_numbers<[1], [1], [0], [0], [0, 0, 1, 0], [], []>, precision = #tpu.contract_precision<fp32>} : vector<8x32xf32>, vector<10x32xf32>, vector<8x10xf32> -> vector<8x10xf32>
    %cst_198 = arith.constant dense<0xFF800000> : vector<8xf32>
    %526 = vector.multi_reduction <maximumf>, %525, %cst_198 [1] : vector<8x10xf32> to vector<8xf32>
    %527 = vector.shape_cast %526 : vector<8xf32> to vector<8x1xf32>
    %528 = vector.broadcast %527 : vector<8x1xf32> to vector<8x10xf32>
    %529 = arith.subf %525, %528 : vector<8x10xf32>
    %530 = math.exp %529 : vector<8x10xf32>
    %cst_199 = arith.constant dense<0.000000e+00> : vector<8xf32>
    %531 = vector.multi_reduction <add>, %530, %cst_199 [1] : vector<8x10xf32> to vector<8xf32>
    %532 = vector.shape_cast %531 : vector<8xf32> to vector<8x1xf32>
    %533 = tpu.reciprocal %532 {approx = true} : vector<8x1xf32> -> vector<8x1xf32>
    %534 = vector.broadcast %533 : vector<8x1xf32> to vector<8x10xf32>
    %535 = arith.mulf %530, %534 : vector<8x10xf32>
    %cst_200 = arith.constant dense<0.000000e+00> : vector<8x32xf32>
    %536 = tpu.matmul %535, %287, %cst_200 {dimension_numbers = #tpu.dot_dimension_numbers<[1], [0], [0], [1], [0, 0, 1, 1], [], []>, precision = #tpu.contract_precision<fp32>} : vector<8x10xf32>, vector<10x32xf32>, vector<8x32xf32> -> vector<8x32xf32>
    %cst_201 = arith.constant dense<0.000000e+00> : vector<8x32xf32>
    %537 = tpu.matmul %536, %21, %cst_201 {dimension_numbers = #tpu.dot_dimension_numbers<[1], [0], [0], [1], [0, 0, 1, 1], [], []>, precision = #tpu.contract_precision<fp32>} : vector<8x32xf32>, vector<32x32xf32>, vector<8x32xf32> -> vector<8x32xf32>
    %cst_202 = arith.constant dense<0.000000e+00> : vector<8x32xf32>
    %538 = tpu.matmul %523, %23, %cst_202 {dimension_numbers = #tpu.dot_dimension_numbers<[1], [0], [0], [1], [0, 0, 1, 1], [], []>, precision = #tpu.contract_precision<fp32>} : vector<8x32xf32>, vector<32x32xf32>, vector<8x32xf32> -> vector<8x32xf32>
    %539 = arith.addf %537, %538 : vector<8x32xf32>
    %540 = math.tanh %539 : vector<8x32xf32>
    %c1_203 = arith.constant 1 : index
    %c0_204 = arith.constant 0 : index
    %c0_205 = arith.constant 0 : index
    %541 = vector.load %arg9[%c1_203, %c0_204, %c0_205] : memref<2x8x32xf32, #tpu.memory_space<vmem>>, vector<1x8x32xf32>
    %542 = vector.shape_cast %541 : vector<1x8x32xf32> to vector<8x32xf32>
    %543 = vector.shape_cast %540 : vector<8x32xf32> to vector<1x8x32xf32>
    tpu.vector_store %arg9[%c1_203, %c0_204, %c0_205], %543 {strides = array<i32>} : memref<2x8x32xf32, #tpu.memory_space<vmem>>, vector<1x8x32xf32>,
    return
  }
}

</mosaic_0001>

<bundles_post_ra>
// kernel: attn_decoder_forward.1
= control target key start
LH: loop header
LB: loop body
LE: loop exit
PB: predicated region body
PF: predicated region fallthrough
CT: control target
= control target key end

     0   :  { %vm91_vm0 = vcmask 261120   ;;  %v43289_v3 = vmov 0.0   ;;  %vm37987_vm1 = vmmov 0   ;;  %s43214_s0 = inlined_call_operand.vmem [shape: f32[2,8,32], index: 0, kind: input, shape index: {}]   ;;  %s43215_s1 = inlined_call_operand.vmem [shape: f32[2,10,32], index: 1, kind: input, shape index: {}]   ;;  %s43216_s2 = inlined_call_operand.vmem [shape: f32[2,32], index: 2, kind: input, shape index: {}]   ;;  %s43217_s3 = inlined_call_operand.vmem [shape: f32[3,32,32], index: 3, kind: input, shape index: {}]   ;;  %s43218_s4 = inlined_call_operand.vmem [shape: f32[3,32,32], index: 4, kind: input, shape index: {}]   ;;  %s43219_s5 = inlined_call_operand.vmem [shape: f32[3,1,32], index: 5, kind: input, shape index: {}]   ;;  %s43220_s6 = inlined_call_operand.vmem [shape: f32[1,32], index: 6, kind: input, shape index: {}]   ;;  %s43221_s7 = inlined_call_operand.vmem [shape: f32[32,32], index: 7, kind: input, shape index: {}]   ;;  %s43222_s8 = inlined_call_operand.vmem [shape: f32[2,32,32], index: 8, kind: input, shape index: {}]   ;;  %s43223_s9 = inlined_call_operand.vmem [shape: f32[2,8,32], index: 9, kind: output, shape index: {0}]   ;;  %s43224_s10 = inlined_call_operand.hbm [shape: f32[2,32], index: 10, kind: output, shape index: {1}]  }
   0x1   :  { %v38_v0 = vld [vmem:[%s43217_s3 + $0x18] sm:$0xff]  ;;  %v37_v1 = vld [vmem:[%s43217_s3 + $0x10] sm:$0xff]  ;;  %v36_v2 = vld [vmem:[%s43217_s3 + $0x8] sm:$0xff]  ;;  %33651 = vmatprep.subr.mxu0 %v43289_v3  ;;  %33662 = vmatprep.subr.mxu1 %v43289_v3 }
   0x2   :  { %v38054_v4 = vand.u32 4294901760, %v38_v0  ;;  %v38056_v5 = vand.u32 4294901760, %v37_v1  ;;  %v38058_v6 = vand.u32 4294901760, %v36_v2  ;;  %v35_v7 = vld [vmem:[%s43217_s3] sm:$0xff]  ;;  %33659 = vmatprep.mubr.msk.f32.mxu0 %vm37987_vm1, %v43289_v3  ;;  %33670 = vmatprep.mubr.msk.f32.mxu1 %vm37987_vm1, %v43289_v3 }
   0x3   :  { %v82_v8 = vld [vmem:[%s43214_s0] sm:$0xff]  ;;  %v38067_v9 = vand.u32 4294901760, %v35_v7 }
   0x4   :  { %43453 = vst [vmem:[#allocation6_spill] sm:$0xff] %v38054_v4  ;;  %43454 = vst [vmem:[#allocation7_spill] sm:$0xff] %v38056_v5  ;;  %v93_v10 = vsel %vm91_vm0, %v82_v8, 0  ;;  %33652 = vmatpush3.msra.mxu0 %v38054_v4  ;;  %v38076_v11 = vsub.f32 %v38_v0, %v38054_v4  ;;  %v38081_v13 = vsub.f32 %v37_v1, %v38056_v5 }
   0x5   :  { %43455 = vst [vmem:[#allocation8_spill] sm:$0xff] %v38058_v6  ;;  %43456 = vst [vmem:[#allocation9_spill] sm:$0xff] %v38067_v9  ;;  %v38078_v12 = vand.u32 4294901760, %v93_v10  ;;  %v38084_v14 = vsub.f32 %v36_v2, %v38058_v6  ;;  %33653 = vmatprep.subr.mxu0 %v43289_v3  ;;  %v38088_v15 = vsub.f32 %v35_v7, %v38067_v9 }
   0x6   :  { %43457 = vst [vmem:[#allocation10_spill] sm:$0xff] %v38076_v11  ;;  %43458 = vst [vmem:[#allocation11_spill] sm:$0xff] %v38081_v13  ;;  %33654 = vmatpush3.msra.mxu0 %v38056_v5  ;;  %v38092_v16 = vand.u32 4294901760, %v38076_v11  ;;  %v38098_v18 = vand.u32 4294901760, %v38081_v13 }
   0x7   :  { %43459 = vst [vmem:[#allocation12_spill] sm:$0xff] %v38084_v14  ;;  %43460 = vst [vmem:[#allocation13_spill] sm:$0xff] %v38088_v15  ;;  %v38095_v17 = vsub.f32 %v93_v10, %v38078_v12  ;;  %v38101_v19 = vand.u32 4294901760, %v38084_v14  ;;  %33655 = vmatprep.subr.mxu0 %v43289_v3  ;;  %v38105_v20 = vand.u32 4294901760, %v38088_v15 }
   0x8   :  { %43461 = vst [vmem:[#allocation14_spill] sm:$0xff] %v38092_v16  ;;  %43462 = vst [vmem:[#allocation15_spill] sm:$0xff] %v38098_v18  ;;  %33656 = vmatpush3.msra.mxu0 %v38058_v6  ;;  %v202_v21 = vsub.f32 %v38076_v11, %v38092_v16  ;;  %v209_v23 = vsub.f32 %v38081_v13, %v38098_v18 }
   0x9   :  { %43463 = vst [vmem:[#allocation16_spill] sm:$0xff] %v38101_v19  ;;  %43464 = vst [vmem:[#allocation17_spill] sm:$0xff] %v38105_v20  ;;  %v38111_v22 = vand.u32 4294901760, %v38095_v17  ;;  %v216_v24 = vsub.f32 %v38084_v14, %v38101_v19 }
   0xa   :  { %16 = vsyncpa [#allocation4], 0  ;;  %33657 = vmatprep.subr.mxu0 %v43289_v3  ;;  %v38119_v25 = vand.u32 4294901760, %v202_v21  ;;  %v38123_v27 = vand.u32 4294901760, %v209_v23  ;;  %v223_v28 = vsub.f32 %v38088_v15, %v38105_v20  ;;  %v31721_v32 = vld [vmem:[%s43217_s3 + $0x38] sm:$0xff]  ;;  %v31720_v34 = vld [vmem:[%s43217_s3 + $0x30] sm:$0xff] }
   0xb   :  { %33658 = vmatpush3.msra.mxu0 %v38067_v9  ;;  %v167_v26 = vsub.f32 %v38095_v17, %v38111_v22  ;;  %v38131_v30 = vand.u32 4294901760, %v216_v24  ;;  %v38155_v33 = vand.u32 4294901760, %v31721_v32  ;;  %v31719_v35 = vld [vmem:[%s43217_s3 + $0x28] sm:$0xff]  ;;  %v38170_v36 = vand.u32 4294901760, %v31720_v34  ;;  %v31718_v37 = vld [vmem:[%s43217_s3 + $0x20] sm:$0xff]  ;;  %v31725_v56 = vld [vmem:[%s43217_s3 + $0x58] sm:$0xff] }
   0xc   :  { %43465 = vst [vmem:[#allocation18_spill] sm:$0xff] %v38119_v25  ;;  %43466 = vst [vmem:[#allocation19_spill] sm:$0xff] %v38123_v27  ;;  %33673 = vmatprep.subr.mxu0 %v43289_v3  ;;  %33663 = vmatpush3.msra.mxu1 %v38119_v25  ;;  %v38136_v31 = vand.u32 4294901760, %v223_v28  ;;  %v38182_v39 = vand.u32 4294901760, %v31719_v35  ;;  %v38189_v40 = vand.u32 4294901760, %v31718_v37  ;;  %v38281_v57 = vand.u32 4294901760, %v31725_v56 }
   0xd   :  { %v38129_v29 = vand.u32 4294901760, %v167_v26  ;;  %43467 = vst [vmem:[#allocation20_spill] sm:$0xff] %v38131_v30  ;;  %33664 = vmatprep.subr.mxu1 %v43289_v3  ;;  %43469 = vst [vmem:[#allocation22_spill] sm:$0xff] %v38155_v33  ;;  %v38178_v38 = vsub.f32 %v31721_v32, %v38155_v33  ;;  %v38192_v41 = vsub.f32 %v31720_v34, %v38170_v36  ;;  %v31724_v58 = vld [vmem:[%s43217_s3 + $0x50] sm:$0xff]  ;;  %v31723_v59 = vld [vmem:[%s43217_s3 + $0x48] sm:$0xff]  ;;  %vm3042_vm2 = vcmask 253952  }
   0xe   :  { %33665 = vmatpush3.msra.mxu1 %v38123_v27  ;;  %43468 = vst [vmem:[#allocation21_spill] sm:$0xff] %v38136_v31  ;;  %43470 = vst [vmem:[#allocation23_spill] sm:$0xff] %v38170_v36  ;;  %v38202_v43 = vsub.f32 %v31719_v35, %v38182_v39  ;;  %v38213_v45 = vsub.f32 %v31718_v37, %v38189_v40  ;;  %v38296_v60 = vand.u32 4294901760, %v31724_v58  ;;  %v31722_v61 = vld [vmem:[%s43217_s3 + $0x40] sm:$0xff]  ;;  %v38308_v63 = vand.u32 4294901760, %v31723_v59 }
   0xf   :  { %33660 = vmatmul.mubr.f32.vlgmr.msra.gmra.mxu0 %v38129_v29  ;;  %33666 = vmatprep.subr.mxu1 %v43289_v3  ;;  %43471 = vst [vmem:[#allocation24_spill] sm:$0xff] %v38178_v38  ;;  %43472 = vst [vmem:[#allocation25_spill] sm:$0xff] %v38182_v39  ;;  %v38197_v42 = vand.u32 4294901760, %v38178_v38  ;;  %v38210_v44 = vand.u32 4294901760, %v38192_v41  ;;  %v38304_v62 = vsub.f32 %v31725_v56, %v38281_v57  ;;  %v38315_v0 = vand.u32 4294901760, %v31722_v61  ;;  %v51_v56 = vld [vmem:[%s43218_s4 + $0x10] sm:$0xff] }
  0x10   :  { %33674 = vmatpush3.msra.mxu0 %v38076_v11  ;;  %33667 = vmatpush3.msra.mxu1 %v38131_v30  ;;  %43473 = vst [vmem:[#allocation26_spill] sm:$0xff] %v38189_v40  ;;  %43474 = vst [vmem:[#allocation27_spill] sm:$0xff] %v38192_v41  ;;  %v38222_v47 = vand.u32 4294901760, %v38202_v43  ;;  %v38231_v49 = vand.u32 4294901760, %v38213_v45  ;;  %v38318_v1 = vsub.f32 %v31724_v58, %v38296_v60  ;;  %v50_v58 = vld [vmem:[%s43218_s4 + $0x8] sm:$0xff]  ;;  %vm4534_vm3 = vcmask 254977  }
  0x11   :  { %33675 = vmatprep.subr.mxu0 %v43289_v3  ;;  %33668 = vmatprep.subr.mxu1 %v43289_v3  ;;  %43475 = vst [vmem:[#allocation28_spill] sm:$0xff] %v38197_v42  ;;  %43476 = vst [vmem:[#allocation29_spill] sm:$0xff] %v38202_v43  ;;  %v693_v46 = vsub.f32 %v38178_v38, %v38197_v42  ;;  %v700_v48 = vsub.f32 %v38192_v41, %v38210_v44  ;;  %v38323_v2 = vand.u32 4294901760, %v38304_v62  ;;  %vm6027_vm4 = vcmask 256002  }
  0x12   :  { %33676 = vmatpush3.msra.mxu0 %v38081_v13  ;;  %33669 = vmatpush3.msra.mxu1 %v38136_v31  ;;  %43477 = vst [vmem:[#allocation30_spill] sm:$0xff] %v38210_v44  ;;  %43478 = vst [vmem:[#allocation31_spill] sm:$0xff] %v38213_v45  ;;  %v707_v51 = vsub.f32 %v38202_v43, %v38222_v47  ;;  %v714_v53 = vsub.f32 %v38213_v45, %v38231_v49  ;;  %v38336_v8 = vand.u32 4294901760, %v38318_v1  ;;  %vm7520_vm5 = vcmask 257027  }
  0x13   :  { %33677 = vmatprep.subr.mxu0 %v43289_v3  ;;  %33671 = vmatmul.mubr.f32.vlgmr.msra.gmra.mxu1 %v38078_v12  ;;  %43479 = vst [vmem:[#allocation32_spill] sm:$0xff] %v38222_v47  ;;  %43480 = vst [vmem:[#allocation33_spill] sm:$0xff] %v38231_v49  ;;  %v38235_v50 = vand.u32 4294901760, %v693_v46  ;;  %v38246_v52 = vand.u32 4294901760, %v700_v48  ;;  %v38328_v7 = vsub.f32 %v31723_v59, %v38308_v63  ;;  %v52_v48 = vld [vmem:[%s43218_s4 + $0x18] sm:$0xff]  ;;  %vm9013_vm6 = vcmask 258052  }
  0x14   :  { %33678 = vmatpush3.msra.mxu0 %v38084_v14  ;;  %33684 = vmatprep.subr.mxu1 %v43289_v3  ;;  %v38255_v54 = vand.u32 4294901760, %v707_v51  ;;  %v38261_v55 = vand.u32 4294901760, %v714_v53  ;;  %43485 = vst [vmem:[#allocation38_spill] sm:$0xff] %v38281_v57  ;;  %43486 = vst [vmem:[#allocation39_spill] sm:$0xff] %v38296_v60  ;;  %v38339_v10 = vsub.f32 %v31722_v61, %v38315_v0  ;;  %v38414_v53 = vand.u32 4294901760, %v52_v48 }
  0x15   :  { %33679 = vmatprep.subr.mxu0 %v43289_v3  ;;  %33685 = vmatpush3.msra.mxu1 %v38054_v4  ;;  %43481 = vst [vmem:[#allocation34_spill] sm:$0xff] %v38235_v50  ;;  %43482 = vst [vmem:[#allocation35_spill] sm:$0xff] %v38246_v52  ;;  %v1184_v21 = vsub.f32 %v38304_v62, %v38323_v2  ;;  %v38348_v23 = vand.u32 4294901760, %v38328_v7  ;;  %v1191_v24 = vsub.f32 %v38318_v1, %v38336_v8  ;;  %vm10506_vm7 = vcmask 259077  }
  0x16   :  { %33680 = vmatpush3.msra.mxu0 %v38088_v15  ;;  %33681 = vmatprep.mubr.msk.f32.mxu0 %vm37987_vm1, %v43289_v3  ;;  %43483 = vst [vmem:[#allocation36_spill] sm:$0xff] %v38255_v54  ;;  %43484 = vst [vmem:[#allocation37_spill] sm:$0xff] %v38261_v55  ;;  %v38357_v26 = vand.u32 4294901760, %v38339_v10  ;;  %v38431_v61 = vand.u32 4294901760, %v51_v56  ;;  %vm11999_vm8 = vcmask 260102   ;;  %vm13492_vm9 = vcmask 261127  }
  0x17   :  { %33686 = vmatprep.subr.mxu1 %v43289_v3  ;;  %33695 = vmatprep.subr.mxu0 %v43289_v3  ;;  %43487 = vst [vmem:[#allocation40_spill] sm:$0xff] %v38304_v62  ;;  %43488 = vst [vmem:[#allocation41_spill] sm:$0xff] %v38308_v63  ;;  %v38361_v28 = vand.u32 4294901760, %v1184_v21  ;;  %v1198_v32 = vsub.f32 %v38328_v7, %v38348_v23  ;;  %v38372_v34 = vand.u32 4294901760, %v1191_v24  ;;  %v38443_v24 = vand.u32 4294901760, %v50_v58 }
  0x18   :  { %33682 = vmatmul.mubr.f32.vlgmr.msra.gmra.mxu0 %v38095_v17  ;;  %33687 = vmatpush3.msra.mxu1 %v38056_v5  ;;  %43489 = vst [vmem:[#allocation42_spill] sm:$0xff] %v38315_v0  ;;  %43490 = vst [vmem:[#allocation43_spill] sm:$0xff] %v38318_v1  ;;  %v1205_v35 = vsub.f32 %v38339_v10, %v38357_v26  ;;  %v38439_v21 = vsub.f32 %v52_v48, %v38414_v53  ;;  %vm14452_vm10 = vcmask 80896   ;;  %vm14467_vm11 = vcmask 1041408  }
  0x19   :  { %33696 = vmatpush3.msra.mxu0 %v38092_v16  ;;  %33688 = vmatprep.subr.mxu1 %v43289_v3  ;;  %43491 = vst [vmem:[#allocation44_spill] sm:$0xff] %v38323_v2  ;;  %43492 = vst [vmem:[#allocation45_spill] sm:$0xff] %v38328_v7  ;;  %v38381_v37 = vand.u32 4294901760, %v1198_v32  ;;  %v38456_v48 = vsub.f32 %v51_v56, %v38431_v61 }
  0x1a   :  { %33697 = vmatprep.subr.mxu0 %v43289_v3  ;;  %33689 = vmatpush3.msra.mxu1 %v38058_v6  ;;  %43493 = vst [vmem:[#allocation46_spill] sm:$0xff] %v38336_v8  ;;  %43494 = vst [vmem:[#allocation47_spill] sm:$0xff] %v38339_v10  ;;  %v38387_v46 = vand.u32 4294901760, %v1205_v35 }
  0x1b   :  { %33698 = vmatpush3.msra.mxu0 %v38098_v18  ;;  %33690 = vmatprep.subr.mxu1 %v43289_v3  ;;  %43495 = vst [vmem:[#allocation48_spill] sm:$0xff] %v38348_v23  ;;  %43496 = vst [vmem:[#allocation49_spill] sm:$0xff] %v38357_v26 }
  0x1c   :  { %33699 = vmatprep.subr.mxu0 %v43289_v3  ;;  %33691 = vmatpush3.msra.mxu1 %v38067_v9  ;;  %43497 = vst [vmem:[#allocation50_spill] sm:$0xff] %v38361_v28  ;;  %43498 = vst [vmem:[#allocation51_spill] sm:$0xff] %v38372_v34 }
  0x1d   :  { %33692 = vmatprep.mubr.msk.f32.mxu1 %vm37987_vm1, %v43289_v3  ;;  %33700 = vmatpush3.msra.mxu0 %v38101_v19  ;;  %43499 = vst [vmem:[#allocation52_spill] sm:$0xff] %v38381_v37  ;;  %43500 = vst [vmem:[#allocation53_spill] sm:$0xff] %v38387_v46 }
  0x1e   :  { %33693 = vmatmul.mubr.f32.vlgmr.msra.gmra.mxu1 %v38111_v22  ;;  %33701 = vmatprep.subr.mxu0 %v43289_v3 }
  0x1f   :  { %33706 = vmatprep.subr.mxu1 %v43289_v3  ;;  %33702 = vmatpush3.msra.mxu0 %v38105_v20 }
  0x20   :  { %33703 = vmatprep.mubr.msk.f32.mxu0 %vm37987_vm1, %v43289_v3  ;;  %33707 = vmatpush3.msra.mxu1 %v38054_v4 }
  0x21   :  { %33704 = vmatmul.mubr.f32.vlgmr.msra.gmra.mxu0 %v38078_v12  ;;  %33708 = vmatprep.subr.mxu1 %v43289_v3 }
  0x22   :  { %33717 = vmatprep.subr.mxu0 %v43289_v3  ;;  %33709 = vmatpush3.msra.mxu1 %v38056_v5 }
  0x23   :  { %33718 = vmatpush3.msra.mxu0 %v38155_v33  ;;  %33710 = vmatprep.subr.mxu1 %v43289_v3 }
  0x24   :  { %33719 = vmatprep.subr.mxu0 %v43289_v3  ;;  %33711 = vmatpush3.msra.mxu1 %v38058_v6 }
  0x25   :  { %33720 = vmatpush3.msra.mxu0 %v38170_v36  ;;  %33712 = vmatprep.subr.mxu1 %v43289_v3 }
  0x26   :  { %33721 = vmatprep.subr.mxu0 %v43289_v3  ;;  %33713 = vmatpush3.msra.mxu1 %v38067_v9 }
  0x27   :  { %33714 = vmatprep.mubr.msk.f32.mxu1 %vm37987_vm1, %v43289_v3  ;;  %33722 = vmatpush3.msra.mxu0 %v38182_v39 }
  0x28   :  { %33715 = vmatmul.mubr.f32.vlgmr.msra.gmra.mxu1 %v38078_v12  ;;  %33723 = vmatprep.subr.mxu0 %v43289_v3 }
  0x29   :  { %33728 = vmatprep.subr.mxu1 %v43289_v3  ;;  %33724 = vmatpush3.msra.mxu0 %v38189_v40 }
  0x2a   :  { %33729 = vmatpush3.msra.mxu1 %v38235_v50  ;;  %33725 = vmatprep.mubr.msk.f32.mxu0 %vm37987_vm1, %v43289_v3 }
  0x2b   :  { %33730 = vmatprep.subr.mxu1 %v43289_v3  ;;  %33739 = vmatprep.subr.mxu0 %v43289_v3 }
  0x2c   :  { %33726 = vmatmul.mubr.f32.vlgmr.msra.gmra.mxu0 %v38129_v29  ;;  %33731 = vmatpush3.msra.mxu1 %v38246_v52 }
  0x2d   :  { %33740 = vmatpush3.msra.mxu0 %v38178_v38  ;;  %33732 = vmatprep.subr.mxu1 %v43289_v3 }
  0x2e   :  { %33741 = vmatprep.subr.mxu0 %v43289_v3  ;;  %33733 = vmatpush3.msra.mxu1 %v38255_v54 }
  0x2f   :  { %33742 = vmatpush3.msra.mxu0 %v38192_v41  ;;  %33734 = vmatprep.subr.mxu1 %v43289_v3 }
  0x30   :  { %33743 = vmatprep.subr.mxu0 %v43289_v3  ;;  %33735 = vmatpush3.msra.mxu1 %v38261_v55  ;;  %v31732_v55 = vld [vmem:[%s43218_s4 + $0x50] sm:$0xff] }
  0x31   :  { %33736 = vmatprep.mubr.msk.f32.mxu1 %vm37987_vm1, %v43289_v3  ;;  %33744 = vmatpush3.msra.mxu0 %v38202_v43  ;;  %v38693_v54 = vand.u32 4294901760, %v31732_v55 }
  0x32   :  { %33737 = vmatmul.mubr.f32.vlgmr.msra.gmra.mxu1 %v38078_v12  ;;  %33745 = vmatprep.subr.mxu0 %v43289_v3 }
  0x33   :  { %33750 = vmatprep.subr.mxu1 %v43289_v3  ;;  %33746 = vmatpush3.msra.mxu0 %v38213_v45  ;;  %43514 = vst [vmem:[#allocation67_spill] sm:$0xff] %v38693_v54 }
  0x34   :  { %33751 = vmatpush3.msra.mxu1 %v38155_v33  ;;  %33747 = vmatprep.mubr.msk.f32.mxu0 %vm37987_vm1, %v43289_v3 }
  0x35   :  { %33752 = vmatprep.subr.mxu1 %v43289_v3  ;;  %33761 = vmatprep.subr.mxu0 %v43289_v3 }
  0x36   :  { %33748 = vmatmul.mubr.f32.vlgmr.msra.gmra.mxu0 %v38095_v17  ;;  %33753 = vmatpush3.msra.mxu1 %v38170_v36 }
  0x37   :  { %33762 = vmatpush3.msra.mxu0 %v38197_v42  ;;  %33754 = vmatprep.subr.mxu1 %v43289_v3 }
  0x38   :  { %33763 = vmatprep.subr.mxu0 %v43289_v3  ;;  %33755 = vmatpush3.msra.mxu1 %v38182_v39 }
  0x39   :  { %33764 = vmatpush3.msra.mxu0 %v38210_v44  ;;  %33756 = vmatprep.subr.mxu1 %v43289_v3 }
  0x3a   :  { %33765 = vmatprep.subr.mxu0 %v43289_v3  ;;  %33757 = vmatpush3.msra.mxu1 %v38189_v40 }
  0x3b   :  { %33758 = vmatprep.mubr.msk.f32.mxu1 %vm37987_vm1, %v43289_v3  ;;  %33766 = vmatpush3.msra.mxu0 %v38222_v47 }
  0x3c   :  { %33759 = vmatmul.mubr.f32.vlgmr.msra.gmra.mxu1 %v38111_v22  ;;  %33767 = vmatprep.subr.mxu0 %v43289_v3 }
  0x3d   :  { %33772 = vmatprep.subr.mxu1 %v43289_v3  ;;  %33768 = vmatpush3.msra.mxu0 %v38231_v49 }
  0x3e   :  { %33769 = vmatprep.mubr.msk.f32.mxu0 %vm37987_vm1, %v43289_v3  ;;  %33773 = vmatpush3.msra.mxu1 %v38155_v33 }
  0x3f   :  { %33770 = vmatmul.mubr.f32.vlgmr.msra.gmra.mxu0 %v38078_v12  ;;  %33774 = vmatprep.subr.mxu1 %v43289_v3 }
  0x40   :  { %33783 = vmatprep.subr.mxu0 %v43289_v3  ;;  %33775 = vmatpush3.msra.mxu1 %v38170_v36 }
  0x41   :  { %33784 = vmatpush3.msra.mxu0 %v38281_v57  ;;  %33776 = vmatprep.subr.mxu1 %v43289_v3 }
  0x42   :  { %33785 = vmatprep.subr.mxu0 %v43289_v3  ;;  %33777 = vmatpush3.msra.mxu1 %v38182_v39  ;;  %v31730_v39 = vld [vmem:[%s43218_s4 + $0x40] sm:$0xff] }
  0x43   :  { %33786 = vmatpush3.msra.mxu0 %v38296_v60  ;;  %33778 = vmatprep.subr.mxu1 %v43289_v3  ;;  %v38712_v50 = vand.u32 4294901760, %v31730_v39 }
  0x44   :  { %33787 = vmatprep.subr.mxu0 %v43289_v3  ;;  %33779 = vmatpush3.msra.mxu1 %v38189_v40  ;;  %v31731_v40 = vld [vmem:[%s43218_s4 + $0x48] sm:$0xff] }
  0x45   :  { %33780 = vmatprep.mubr.msk.f32.mxu1 %vm37987_vm1, %v43289_v3  ;;  %33788 = vmatpush3.msra.mxu0 %v38308_v63  ;;  %v38705_v36 = vand.u32 4294901760, %v31731_v40  ;;  %43517 = vst [vmem:[#allocation70_spill] sm:$0xff] %v38712_v50  ;;  %v38736_v19 = vsub.f32 %v31730_v39, %v38712_v50 }
  0x46   :  { %33781 = vmatmul.mubr.f32.vlgmr.msra.gmra.mxu1 %v38078_v12  ;;  %33789 = vmatprep.subr.mxu0 %v43289_v3 }
  0x47   :  { %33794 = vmatprep.subr.mxu1 %v43289_v3  ;;  %33790 = vmatpush3.msra.mxu0 %v38315_v0  ;;  %43516 = vst [vmem:[#allocation69_spill] sm:$0xff] %v38705_v36  ;;  %v38725_v20 = vsub.f32 %v31731_v40, %v38705_v36  ;;  %43522 = vst [vmem:[#allocation75_spill] sm:$0xff] %v38736_v19  ;;  %v38754_v16 = vand.u32 4294901760, %v38736_v19 }
  0x48   :  { %33795 = vmatpush3.msra.mxu1 %v38361_v28  ;;  %33791 = vmatprep.mubr.msk.f32.mxu0 %vm37987_vm1, %v43289_v3 }
  0x49   :  { %33796 = vmatprep.subr.mxu1 %v43289_v3  ;;  %33805 = vmatprep.subr.mxu0 %v43289_v3  ;;  %43520 = vst [vmem:[#allocation73_spill] sm:$0xff] %v38725_v20  ;;  %v38745_v18 = vand.u32 4294901760, %v38725_v20  ;;  %43524 = vst [vmem:[#allocation77_spill] sm:$0xff] %v38754_v16 }
  0x4a   :  { %33792 = vmatmul.mubr.f32.vlgmr.msra.gmra.mxu0 %v38129_v29  ;;  %33797 = vmatpush3.msra.mxu1 %v38372_v34  ;;  %v38398_v29 = vld [vmem:[%s43216_s2] sm:$0x1] }
  0x4b   :  { %33806 = vmatpush3.msra.mxu0 %v38304_v62  ;;  %33798 = vmatprep.subr.mxu1 %v43289_v3  ;;  %v1564_v51 = vsel %vm91_vm0, %v38398_v29, 0  ;;  %43523 = vst [vmem:[#allocation76_spill] sm:$0xff] %v38745_v18  ;;  %v2657_v14 = vsub.f32 %v38725_v20, %v38745_v18 }
  0x4c   :  { %33807 = vmatprep.subr.mxu0 %v43289_v3  ;;  %33799 = vmatpush3.msra.mxu1 %v38381_v37  ;;  %v38427_v59 = vand.u32 4294901760, %v1564_v51 }
  0x4d   :  { %33808 = vmatpush3.msra.mxu0 %v38318_v1  ;;  %33800 = vmatprep.subr.mxu1 %v43289_v3  ;;  %v38778_v11 = vand.u32 4294901760, %v2657_v14  ;;  %v31740_v14 = vld [vmem:[%s43219_s5] ss:$0 sm:$0xff] }
  0x4e   :  { %33809 = vmatprep.subr.mxu0 %v43289_v3  ;;  %33801 = vmatpush3.msra.mxu1 %v38387_v46  ;;  %v38448_v32 = vsub.f32 %v1564_v51, %v38427_v59  ;;  %v38466_v51 = vsub.f32 %v50_v58, %v38443_v24 }
  0x4f   :  { %33802 = vmatprep.mubr.msk.f32.mxu1 %vm37987_vm1, %v43289_v3  ;;  %33810 = vmatpush3.msra.mxu0 %v38328_v7  ;;  %43527 = vst [vmem:[#allocation80_spill] sm:$0xff] %v38778_v11 }
  0x50   :  { %33803 = vmatmul.mubr.f32.vlgmr.msra.gmra.mxu1 %v38078_v12  ;;  %33811 = vmatprep.subr.mxu0 %v43289_v3  ;;  %v38472_v56 = vand.u32 4294901760, %v38448_v32 }
  0x51   :  { %33816 = vmatprep.subr.mxu1 %v43289_v3  ;;  %33812 = vmatpush3.msra.mxu0 %v38339_v10 }
  0x52   :  { %33817 = vmatpush3.msra.mxu1 %v38281_v57  ;;  %33813 = vmatprep.mubr.msk.f32.mxu0 %vm37987_vm1, %v43289_v3 }
  0x53   :  { %33818 = vmatprep.subr.mxu1 %v43289_v3  ;;  %33827 = vmatprep.subr.mxu0 %v43289_v3 }
  0x54   :  { %33814 = vmatmul.mubr.f32.vlgmr.msra.gmra.mxu0 %v38095_v17  ;;  %33819 = vmatpush3.msra.mxu1 %v38296_v60  ;;  %v49_v17 = vld [vmem:[%s43218_s4] sm:$0xff] }
  0x55   :  { %33828 = vmatpush3.msra.mxu0 %v38323_v2  ;;  %33820 = vmatprep.subr.mxu1 %v43289_v3  ;;  %v38453_v35 = vand.u32 4294901760, %v49_v17 }
  0x56   :  { %33829 = vmatprep.subr.mxu0 %v43289_v3  ;;  %33821 = vmatpush3.msra.mxu1 %v38308_v63 }
  0x57   :  { %33830 = vmatpush3.msra.mxu0 %v38336_v8  ;;  %33822 = vmatprep.subr.mxu1 %v43289_v3  ;;  %v38461_v8 = vand.u32 4294901760, %v38439_v21 }
  0x58   :  { %33831 = vmatprep.subr.mxu0 %v43289_v3  ;;  %33823 = vmatpush3.msra.mxu1 %v38315_v0 }
  0x59   :  { %33824 = vmatprep.mubr.msk.f32.mxu1 %vm37987_vm1, %v43289_v3  ;;  %33832 = vmatpush3.msra.mxu0 %v38348_v23  ;;  %v38480_v23 = vsub.f32 %v49_v17, %v38453_v35  ;;  %v1673_v58 = vsub.f32 %v38439_v21, %v38461_v8  ;;  %v1638_v17 = vsub.f32 %v38448_v32, %v38472_v56 }
  0x5a   :  { %33825 = vmatmul.mubr.f32.vlgmr.msra.gmra.mxu1 %v38111_v22  ;;  %33833 = vmatprep.subr.mxu0 %v43289_v3  ;;  %v38477_v22 = vand.u32 4294901760, %v38456_v48 }
  0x5b   :  { %33838 = vmatprep.subr.mxu1 %v43289_v3  ;;  %33834 = vmatpush3.msra.mxu0 %v38357_v26  ;;  %v38489_v26 = vand.u32 4294901760, %v38466_v51  ;;  %v38500_v10 = vand.u32 4294901760, %v38480_v23  ;;  %v38504_v7 = vand.u32 4294901760, %v1673_v58  ;;  %v38513_v62 = vand.u32 4294901760, %v1638_v17  ;;  %v31728_v17 = vld [vmem:[%s43218_s4 + $0x30] sm:$0xff] }
  0x5c   :  { %33835 = vmatprep.mubr.msk.f32.mxu0 %vm37987_vm1, %v43289_v3  ;;  %33839 = vmatpush3.msra.mxu1 %v38281_v57  ;;  %v1680_v2 = vsub.f32 %v38456_v48, %v38477_v22  ;;  %v38567_v37 = vand.u32 4294901760, %v31728_v17 }
  0x5d   :  { %33836 = vmatmul.mubr.f32.vlgmr.msra.gmra.mxu0 %v38078_v12  ;;  %33840 = vmatprep.subr.mxu1 %v43289_v3  ;;  %43501 = vst [vmem:[#allocation54_spill] sm:$0xff] %v38504_v7  ;;  %v1687_v1 = vsub.f32 %v38466_v51, %v38489_v26  ;;  %v1694_v46 = vsub.f32 %v38480_v23, %v38500_v10 }
  0x5e   :  { %33849 = vmatprep.subr.mxu0 %v43289_v3  ;;  %33841 = vmatpush3.msra.mxu1 %v38296_v60  ;;  %v38517_v58 = vand.u32 4294901760, %v1680_v2 }
  0x5f   :  { %33850 = vmatpush3.msra.mxu0 %v38414_v53  ;;  %33842 = vmatprep.subr.mxu1 %v43289_v3  ;;  %v38532_v2 = vand.u32 4294901760, %v1694_v46 }
  0x60   :  { %33851 = vmatprep.subr.mxu0 %v43289_v3  ;;  %33843 = vmatpush3.msra.mxu1 %v38308_v63  ;;  %43502 = vst [vmem:[#allocation55_spill] sm:$0xff] %v38517_v58  ;;  %v31726_v63 = vld [vmem:[%s43218_s4 + $0x20] sm:$0xff] }
  0x61   :  { %33852 = vmatpush3.msra.mxu0 %v38431_v61  ;;  %33844 = vmatprep.subr.mxu1 %v43289_v3  ;;  %43504 = vst [vmem:[#allocation57_spill] sm:$0xff] %v38532_v2  ;;  %v38586_v28 = vand.u32 4294901760, %v31726_v63 }
  0x62   :  { %33853 = vmatprep.subr.mxu0 %v43289_v3  ;;  %33845 = vmatpush3.msra.mxu1 %v38315_v0  ;;  %v31727_v0 = vld [vmem:[%s43218_s4 + $0x28] sm:$0xff] }
  0x63   :  { %33846 = vmatprep.mubr.msk.f32.mxu1 %vm37987_vm1, %v43289_v3  ;;  %33854 = vmatpush3.msra.mxu0 %v38443_v24  ;;  %v38579_v60 = vand.u32 4294901760, %v31727_v0  ;;  %v38610_v47 = vsub.f32 %v31726_v63, %v38586_v28 }
  0x64   :  { %33847 = vmatmul.mubr.f32.vlgmr.msra.gmra.mxu1 %v38078_v12  ;;  %33855 = vmatprep.subr.mxu0 %v43289_v3  ;;  %v38526_v12 = vand.u32 4294901760, %v1687_v1  ;;  %v31729_v1 = vld [vmem:[%s43218_s4 + $0x38] sm:$0xff] }
  0x65   :  { %33860 = vmatprep.subr.mxu1 %v43289_v3  ;;  %33856 = vmatpush3.msra.mxu0 %v38453_v35  ;;  %v38553_v46 = vand.u32 4294901760, %v31729_v1  ;;  %v38599_v49 = vsub.f32 %v31727_v0, %v38579_v60  ;;  %43510 = vst [vmem:[#allocation63_spill] sm:$0xff] %v38610_v47  ;;  %v38628_v42 = vand.u32 4294901760, %v38610_v47 }
  0x66   :  { %33861 = vmatpush3.msra.mxu1 %v38504_v7  ;;  %33857 = vmatprep.mubr.msk.f32.mxu0 %vm37987_vm1, %v43289_v3  ;;  %43503 = vst [vmem:[#allocation56_spill] sm:$0xff] %v38526_v12 }
  0x67   :  { %33862 = vmatprep.subr.mxu1 %v43289_v3  ;;  %33871 = vmatprep.subr.mxu0 %v43289_v3  ;;  %v38575_v34 = vsub.f32 %v31729_v1, %v38553_v46  ;;  %v38589_v1 = vsub.f32 %v31728_v17, %v38567_v37  ;;  %43508 = vst [vmem:[#allocation61_spill] sm:$0xff] %v38599_v49  ;;  %v38619_v44 = vand.u32 4294901760, %v38599_v49  ;;  %43512 = vst [vmem:[#allocation65_spill] sm:$0xff] %v38628_v42 }
  0x68   :  { %33858 = vmatmul.mubr.f32.vlgmr.msra.gmra.mxu0 %v38513_v62  ;;  %33863 = vmatpush3.msra.mxu1 %v38517_v58 }
  0x69   :  { %33872 = vmatpush3.msra.mxu0 %v38439_v21  ;;  %33864 = vmatprep.subr.mxu1 %v43289_v3  ;;  %43505 = vst [vmem:[#allocation58_spill] sm:$0xff] %v38575_v34  ;;  %43506 = vst [vmem:[#allocation59_spill] sm:$0xff] %v38589_v1  ;;  %v38594_v57 = vand.u32 4294901760, %v38575_v34  ;;  %v38607_v17 = vand.u32 4294901760, %v38589_v1  ;;  %v2172_v43 = vsub.f32 %v38599_v49, %v38619_v44 }
  0x6a   :  { %33873 = vmatprep.subr.mxu0 %v43289_v3  ;;  %33865 = vmatpush3.msra.mxu1 %v38526_v12  ;;  %43511 = vst [vmem:[#allocation64_spill] sm:$0xff] %v38619_v44 }
  0x6b   :  { %33874 = vmatpush3.msra.mxu0 %v38456_v48  ;;  %33866 = vmatprep.subr.mxu1 %v43289_v3  ;;  %43507 = vst [vmem:[#allocation60_spill] sm:$0xff] %v38594_v57  ;;  %43509 = vst [vmem:[#allocation62_spill] sm:$0xff] %v38607_v17  ;;  %v2158_v0 = vsub.f32 %v38575_v34, %v38594_v57  ;;  %v2165_v63 = vsub.f32 %v38589_v1, %v38607_v17  ;;  %v38652_v38 = vand.u32 4294901760, %v2172_v43  ;;  %v31733_v43 = vld [vmem:[%s43218_s4 + $0x58] sm:$0xff] }
  0x6c   :  { %33875 = vmatprep.subr.mxu0 %v43289_v3  ;;  %33867 = vmatpush3.msra.mxu1 %v38532_v2 }
  0x6d   :  { %33868 = vmatprep.mubr.msk.f32.mxu1 %vm37987_vm1, %v43289_v3  ;;  %33876 = vmatpush3.msra.mxu0 %v38466_v51  ;;  %v38632_v45 = vand.u32 4294901760, %v2158_v0  ;;  %v38643_v41 = vand.u32 4294901760, %v2165_v63  ;;  %v2179_v0 = vsub.f32 %v38610_v47, %v38628_v42 }
  0x6e   :  { %33869 = vmatmul.mubr.f32.vlgmr.msra.gmra.mxu1 %v38427_v59  ;;  %33877 = vmatprep.subr.mxu0 %v43289_v3 }
  0x6f   :  { %33882 = vmatprep.subr.mxu1 %v43289_v3  ;;  %33878 = vmatpush3.msra.mxu0 %v38480_v23  ;;  %v38658_v63 = vand.u32 4294901760, %v2179_v0  ;;  %v38679_v0 = vand.u32 4294901760, %v31733_v43 }
  0x70   :  { %33879 = vmatprep.mubr.msk.f32.mxu0 %vm37987_vm1, %v43289_v3  ;;  %33883 = vmatpush3.msra.mxu1 %v38414_v53 }
  0x71   :  { %33880 = vmatmul.mubr.f32.vlgmr.msra.gmra.mxu0 %v38448_v32  ;;  %33884 = vmatprep.subr.mxu1 %v43289_v3  ;;  %43513 = vst [vmem:[#allocation66_spill] sm:$0xff] %v38679_v0  ;;  %v38701_v52 = vsub.f32 %v31733_v43, %v38679_v0  ;;  %v38715_v43 = vsub.f32 %v31732_v55, %v38693_v54 }
  0x72   :  { %33893 = vmatprep.subr.mxu0 %v43289_v3  ;;  %33885 = vmatpush3.msra.mxu1 %v38431_v61 }
  0x73   :  { %33894 = vmatpush3.msra.mxu0 %v38461_v8  ;;  %33886 = vmatprep.subr.mxu1 %v43289_v3  ;;  %43515 = vst [vmem:[#allocation68_spill] sm:$0xff] %v38701_v52  ;;  %43518 = vst [vmem:[#allocation71_spill] sm:$0xff] %v38715_v43  ;;  %v38720_v33 = vand.u32 4294901760, %v38701_v52  ;;  %v38733_v55 = vand.u32 4294901760, %v38715_v43 }
  0x74   :  { %33895 = vmatprep.subr.mxu0 %v43289_v3  ;;  %33887 = vmatpush3.msra.mxu1 %v38443_v24 }
  0x75   :  { %33896 = vmatpush3.msra.mxu0 %v38477_v22  ;;  %33888 = vmatprep.subr.mxu1 %v43289_v3  ;;  %43519 = vst [vmem:[#allocation72_spill] sm:$0xff] %v38720_v33  ;;  %43521 = vst [vmem:[#allocation74_spill] sm:$0xff] %v38733_v55  ;;  %v2643_v40 = vsub.f32 %v38701_v52, %v38720_v33  ;;  %v2650_v39 = vsub.f32 %v38715_v43, %v38733_v55 }
  0x76   :  { %33897 = vmatprep.subr.mxu0 %v43289_v3  ;;  %33889 = vmatpush3.msra.mxu1 %v38453_v35 }
  0x77   :  { %33890 = vmatprep.mubr.msk.f32.mxu1 %vm37987_vm1, %v43289_v3  ;;  %33898 = vmatpush3.msra.mxu0 %v38489_v26  ;;  %v38758_v15 = vand.u32 4294901760, %v2643_v40  ;;  %v38769_v13 = vand.u32 4294901760, %v2650_v39  ;;  %v2664_v40 = vsub.f32 %v38736_v19, %v38754_v16 }
  0x78   :  { %33891 = vmatmul.mubr.f32.vlgmr.msra.gmra.mxu1 %v38472_v56  ;;  %33899 = vmatprep.subr.mxu0 %v43289_v3 }
  0x79   :  { %33904 = vmatprep.subr.mxu1 %v43289_v3  ;;  %33900 = vmatpush3.msra.mxu0 %v38500_v10  ;;  %43525 = vst [vmem:[#allocation78_spill] sm:$0xff] %v38758_v15  ;;  %43526 = vst [vmem:[#allocation79_spill] sm:$0xff] %v38769_v13  ;;  %v38784_v39 = vand.u32 4294901760, %v2664_v40 }
  0x7a   :  { %33901 = vmatprep.mubr.msk.f32.mxu0 %vm37987_vm1, %v43289_v3  ;;  %33905 = vmatpush3.msra.mxu1 %v38414_v53 }
  0x7b   :  { %33902 = vmatmul.mubr.f32.vlgmr.msra.gmra.mxu0 %v38427_v59  ;;  %33906 = vmatprep.subr.mxu1 %v43289_v3  ;;  %43528 = vst [vmem:[#allocation81_spill] sm:$0xff] %v38784_v39 }
  0x7c   :  { %33915 = vmatprep.subr.mxu0 %v43289_v3  ;;  %33907 = vmatpush3.msra.mxu1 %v38431_v61 }
  0x7d   :  { %33916 = vmatpush3.msra.mxu0 %v38553_v46  ;;  %33908 = vmatprep.subr.mxu1 %v43289_v3 }
  0x7e   :  { %33917 = vmatprep.subr.mxu0 %v43289_v3  ;;  %33909 = vmatpush3.msra.mxu1 %v38443_v24 }
  0x7f   :  { %33918 = vmatpush3.msra.mxu0 %v38567_v37  ;;  %33910 = vmatprep.subr.mxu1 %v43289_v3 }
  0x80   :  { %33919 = vmatprep.subr.mxu0 %v43289_v3  ;;  %33911 = vmatpush3.msra.mxu1 %v38453_v35 }
  0x81   :  { %33912 = vmatprep.mubr.msk.f32.mxu1 %vm37987_vm1, %v43289_v3  ;;  %33920 = vmatpush3.msra.mxu0 %v38579_v60 }
  0x82   :  { %33913 = vmatmul.mubr.f32.vlgmr.msra.gmra.mxu1 %v38427_v59  ;;  %33921 = vmatprep.subr.mxu0 %v43289_v3 }
  0x83   :  { %33926 = vmatprep.subr.mxu1 %v43289_v3  ;;  %33922 = vmatpush3.msra.mxu0 %v38586_v28 }
  0x84   :  { %33927 = vmatpush3.msra.mxu1 %v38632_v45  ;;  %33923 = vmatprep.mubr.msk.f32.mxu0 %vm37987_vm1, %v43289_v3 }
  0x85   :  { %33928 = vmatprep.subr.mxu1 %v43289_v3  ;;  %33937 = vmatprep.subr.mxu0 %v43289_v3 }
  0x86   :  { %33924 = vmatmul.mubr.f32.vlgmr.msra.gmra.mxu0 %v38513_v62  ;;  %33929 = vmatpush3.msra.mxu1 %v38643_v41 }
  0x87   :  { %33938 = vmatpush3.msra.mxu0 %v38575_v34  ;;  %33930 = vmatprep.subr.mxu1 %v43289_v3 }
  0x88   :  { %33939 = vmatprep.subr.mxu0 %v43289_v3  ;;  %33931 = vmatpush3.msra.mxu1 %v38652_v38 }
  0x89   :  { %33940 = vmatpush3.msra.mxu0 %v38589_v1  ;;  %33932 = vmatprep.subr.mxu1 %v43289_v3 }
  0x8a   :  { %33941 = vmatprep.subr.mxu0 %v43289_v3  ;;  %33933 = vmatpush3.msra.mxu1 %v38658_v63 }
  0x8b   :  { %33934 = vmatprep.mubr.msk.f32.mxu1 %vm37987_vm1, %v43289_v3  ;;  %33942 = vmatpush3.msra.mxu0 %v38599_v49 }
  0x8c   :  { %33935 = vmatmul.mubr.f32.vlgmr.msra.gmra.mxu1 %v38427_v59  ;;  %33943 = vmatprep.subr.mxu0 %v43289_v3 }
  0x8d   :  { %33948 = vmatprep.subr.mxu1 %v43289_v3  ;;  %33944 = vmatpush3.msra.mxu0 %v38610_v47 }
  0x8e   :  { %33945 = vmatprep.mubr.msk.f32.mxu0 %vm37987_vm1, %v43289_v3  ;;  %33949 = vmatpush3.msra.mxu1 %v38553_v46 }
  0x8f   :  { %33946 = vmatmul.mubr.f32.vlgmr.msra.gmra.mxu0 %v38448_v32  ;;  %33950 = vmatprep.subr.mxu1 %v43289_v3 }
  0x90   :  { %33959 = vmatprep.subr.mxu0 %v43289_v3  ;;  %33951 = vmatpush3.msra.mxu1 %v38567_v37 }
  0x91   :  { %33960 = vmatpush3.msra.mxu0 %v38594_v57  ;;  %33952 = vmatprep.subr.mxu1 %v43289_v3 }
  0x92   :  { %33961 = vmatprep.subr.mxu0 %v43289_v3  ;;  %33953 = vmatpush3.msra.mxu1 %v38579_v60 }
  0x93   :  { %33962 = vmatpush3.msra.mxu0 %v38607_v17  ;;  %33954 = vmatprep.subr.mxu1 %v43289_v3 }
  0x94   :  { %33963 = vmatprep.subr.mxu0 %v43289_v3  ;;  %33955 = vmatpush3.msra.mxu1 %v38586_v28 }
  0x95   :  { %33956 = vmatprep.mubr.msk.f32.mxu1 %vm37987_vm1, %v43289_v3  ;;  %33964 = vmatpush3.msra.mxu0 %v38619_v44 }
  0x96   :  { %33957 = vmatmul.mubr.f32.vlgmr.msra.gmra.mxu1 %v38472_v56  ;;  %33965 = vmatprep.subr.mxu0 %v43289_v3 }
  0x97   :  { %33970 = vmatprep.subr.mxu1 %v43289_v3  ;;  %33966 = vmatpush3.msra.mxu0 %v38628_v42 }
  0x98   :  { %33967 = vmatprep.mubr.msk.f32.mxu0 %vm37987_vm1, %v43289_v3  ;;  %33971 = vmatpush3.msra.mxu1 %v38553_v46 }
  0x99   :  { %33968 = vmatmul.mubr.f32.vlgmr.msra.gmra.mxu0 %v38427_v59  ;;  %33972 = vmatprep.subr.mxu1 %v43289_v3 }
  0x9a   :  { %33981 = vmatprep.subr.mxu0 %v43289_v3  ;;  %33973 = vmatpush3.msra.mxu1 %v38567_v37 }
  0x9b   :  { %33982 = vmatpush3.msra.mxu0 %v38679_v0  ;;  %33974 = vmatprep.subr.mxu1 %v43289_v3 }
  0x9c   :  { %33983 = vmatprep.subr.mxu0 %v43289_v3  ;;  %33975 = vmatpush3.msra.mxu1 %v38579_v60 }
  0x9d   :  { %33984 = vmatpush3.msra.mxu0 %v38693_v54  ;;  %33976 = vmatprep.subr.mxu1 %v43289_v3 }
  0x9e   :  { %33985 = vmatprep.subr.mxu0 %v43289_v3  ;;  %33977 = vmatpush3.msra.mxu1 %v38586_v28 }
  0x9f   :  { %33978 = vmatprep.mubr.msk.f32.mxu1 %vm37987_vm1, %v43289_v3  ;;  %33986 = vmatpush3.msra.mxu0 %v38705_v36 }
  0xa0   :  { %33979 = vmatmul.mubr.f32.vlgmr.msra.gmra.mxu1 %v38427_v59  ;;  %33987 = vmatprep.subr.mxu0 %v43289_v3 }
  0xa1   :  { %33992 = vmatprep.subr.mxu1 %v43289_v3  ;;  %33988 = vmatpush3.msra.mxu0 %v38712_v50 }
  0xa2   :  { %33993 = vmatpush3.msra.mxu1 %v38758_v15  ;;  %33989 = vmatprep.mubr.msk.f32.mxu0 %vm37987_vm1, %v43289_v3 }
  0xa3   :  { %33994 = vmatprep.subr.mxu1 %v43289_v3  ;;  %34003 = vmatprep.subr.mxu0 %v43289_v3 }
  0xa4   :  { %33990 = vmatmul.mubr.f32.vlgmr.msra.gmra.mxu0 %v38513_v62  ;;  %33995 = vmatpush3.msra.mxu1 %v38769_v13 }
  0xa5   :  { %34004 = vmatpush3.msra.mxu0 %v38701_v52  ;;  %33996 = vmatprep.subr.mxu1 %v43289_v3 }
  0xa6   :  { %34005 = vmatprep.subr.mxu0 %v43289_v3  ;;  %33997 = vmatpush3.msra.mxu1 %v38778_v11 }
  0xa7   :  { %34006 = vmatpush3.msra.mxu0 %v38715_v43  ;;  %33998 = vmatprep.subr.mxu1 %v43289_v3 }
  0xa8   :  { %34007 = vmatprep.subr.mxu0 %v43289_v3  ;;  %33999 = vmatpush3.msra.mxu1 %v38784_v39 }
  0xa9   :  { %34000 = vmatprep.mubr.msk.f32.mxu1 %vm37987_vm1, %v43289_v3  ;;  %34008 = vmatpush3.msra.mxu0 %v38725_v20 }
  0xaa   :  { %34001 = vmatmul.mubr.f32.vlgmr.msra.gmra.mxu1 %v38427_v59  ;;  %34009 = vmatprep.subr.mxu0 %v43289_v3 }
  0xab   :  { %34014 = vmatprep.subr.mxu1 %v43289_v3  ;;  %34010 = vmatpush3.msra.mxu0 %v38736_v19 }
  0xac   :  { %34015 = vmatpush3.msra.mxu1 %v38679_v0  ;;  %34011 = vmatprep.mubr.msk.f32.mxu0 %vm37987_vm1, %v43289_v3 }
  0xad   :  { %34016 = vmatprep.subr.mxu1 %v43289_v3  ;;  %34025 = vmatprep.subr.mxu0 %v43289_v3 }
  0xae   :  { %34012 = vmatmul.mubr.f32.vlgmr.msra.gmra.mxu0 %v38448_v32  ;;  %34017 = vmatpush3.msra.mxu1 %v38693_v54 }
  0xaf   :  { %34026 = vmatpush3.msra.mxu0 %v38720_v33  ;;  %34018 = vmatprep.subr.mxu1 %v43289_v3 }
  0xb0   :  { %34027 = vmatprep.subr.mxu0 %v43289_v3  ;;  %34019 = vmatpush3.msra.mxu1 %v38705_v36 }
  0xb1   :  { %34028 = vmatpush3.msra.mxu0 %v38733_v55  ;;  %34020 = vmatprep.subr.mxu1 %v43289_v3 }
  0xb2   :  { %34029 = vmatprep.subr.mxu0 %v43289_v3  ;;  %34021 = vmatpush3.msra.mxu1 %v38712_v50 }
  0xb3   :  { %34022 = vmatprep.mubr.msk.f32.mxu1 %vm37987_vm1, %v43289_v3  ;;  %34030 = vmatpush3.msra.mxu0 %v38745_v18 }
  0xb4   :  { %34023 = vmatmul.mubr.f32.vlgmr.msra.gmra.mxu1 %v38472_v56  ;;  %34031 = vmatprep.subr.mxu0 %v43289_v3 }
  0xb5   :  { %34036 = vmatprep.subr.mxu1 %v43289_v3  ;;  %34032 = vmatpush3.msra.mxu0 %v38754_v16 }
  0xb6   :  { %34033 = vmatprep.mubr.msk.f32.mxu0 %vm37987_vm1, %v43289_v3  ;;  %34037 = vmatpush3.msra.mxu1 %v38679_v0 }
  0xb7   :  { %34034 = vmatmul.mubr.f32.vlgmr.msra.gmra.mxu0 %v38427_v59  ;;  %34038 = vmatprep.subr.mxu1 %v43289_v3 }
  0xb8   :  { %34044 = vmatprep.mubr.msk.f32.mxu1 %vm37987_vm1, %v43289_v3  ;;  %34039 = vmatpush3.msra.mxu1 %v38693_v54 }
  0xb9   :  { %34047 = vmatprep.subr.mxu0 %v43289_v3  ;;  %34040 = vmatprep.subr.mxu1 %v43289_v3 }
  0xba   :  { %34048 = vmatpush3.msra.mxu0 %v38414_v53  ;;  %34041 = vmatpush3.msra.mxu1 %v38705_v36 }
  0xbb   :  { %34049 = vmatprep.subr.mxu0 %v43289_v3  ;;  %34042 = vmatprep.subr.mxu1 %v43289_v3 }
  0xbc   :  { %34050 = vmatpush3.msra.mxu0 %v38431_v61  ;;  %34043 = vmatpush3.msra.mxu1 %v38712_v50 }
  0xbd   :  { %34051 = vmatprep.subr.mxu0 %v43289_v3  ;;  %34045 = vmatmul.mubr.f32.vlgmr.msra.gmra.mxu1 %v38427_v59 }
  0xbe   :  { %34058 = vmatprep.subr.mxu1 %v43289_v3  ;;  %34066 = vmatprep.mubr.msk.f32.mxu1 %vm37987_vm1, %v43289_v3 }
  0xbf   :  { %34059 = vmatpush3.msra.mxu1 %v38504_v7  ;;  %34052 = vmatpush3.msra.mxu0 %v38443_v24 }
  0xc0   :  { %34060 = vmatprep.subr.mxu1 %v43289_v3  ;;  %34053 = vmatprep.subr.mxu0 %v43289_v3 }
  0xc1   :  { %34061 = vmatpush3.msra.mxu1 %v38517_v58  ;;  %34054 = vmatpush3.msra.mxu0 %v38453_v35 }
  0xc2   :  { %34062 = vmatprep.subr.mxu1 %v43289_v3  ;;  %34055 = vmatprep.mubr.msk.f32.mxu0 %vm37987_vm1, %v43289_v3 }
  0xc3   :  { %34063 = vmatpush3.msra.mxu1 %v38526_v12  ;;  %34069 = vmatprep.subr.mxu0 %v43289_v3 }
  0xc4   :  { %34064 = vmatprep.subr.mxu1 %v43289_v3 }
  0xc5   :  { %34065 = vmatpush3.msra.mxu1 %v38532_v2 }
  0xc6   :  { %34080 = vmatprep.subr.mxu1 %v43289_v3 }
  0xcf   :  { %v170_v62 = vpop.f32.mrf.mxu0 }
  0xd0   :  { %v171_v59 = vadd.f32 %v31740_v14, %v170_v62  ;;  %v31741_v14 = vld [vmem:[%s43219_s5 + $0x1] ss:$0 sm:$0xff] }
  0xd1   :  { %v33661_v32 = vpop.f32.mrf.mxu0 }
  0xd3   :  { %v261_v56 = vpop.f32.mrf.mxu1 }
  0xd4   :  { %v262_v40 = vadd.f32 %v261_v56, %v171_v59 }
  0xd5   :  { %v33672_v9 = vpop.f32.mrf.mxu1 }
  0xd8   :  { %v341_v6 = vpop.f32.mrf.mxu0 }
  0xd9   :  { %v342_v31 = vadd.f32 %v341_v6, %v262_v40 }
  0xda   :  { %v33683_v5 = vpop.f32.mrf.mxu0 }
  0xde   :  { %v418_v4 = vpop.f32.mrf.mxu1 }
  0xdf   :  { %v419_v30 = vadd.f32 %v418_v4, %v342_v31 }
  0xe0   :  { %v33694_v27 = vpop.f32.mrf.mxu1 }
  0xe1   :  { %v501_v25 = vpop.f32.mrf.mxu0 }
  0xe2   :  { %v502_v2 = vadd.f32 %v501_v25, %v419_v30 }
  0xe3   :  { %v33705_v12 = vpop.f32.mrf.mxu0 }
  0xe8   :  { %v576_v3 = vpop.f32.mrf.mxu1 }
  0xe9   :  { %v38860_v16 = vadd.f32 %v576_v3, %v502_v2 }
  0xea   :  { %v33716_v58 = vpop.f32.mrf.mxu1 }
  0xec   :  { %v661_v62 = vpop.f32.mrf.mxu0 }
  0xed   :  { %v662_v9 = vadd.f32 %v31741_v14, %v661_v62  ;;  %v31742_v14 = vld [vmem:[%s43219_s5 + $0x2] ss:$0 sm:$0xff] }
  0xee   :  { %v33727_v59 = vpop.f32.mrf.mxu0 }
  0xf2   :  { %v752_v32 = vpop.f32.mrf.mxu1 }
  0xf3   :  { %v753_v6 = vadd.f32 %v752_v32, %v662_v9 }
  0xf4   :  { %v33738_v5 = vpop.f32.mrf.mxu1 }
  0xf6   :  { %v832_v56 = vpop.f32.mrf.mxu0 }
  0xf7   :  { %v833_v4 = vadd.f32 %v832_v56, %v753_v6 }
  0xf8   :  { %v33749_v27 = vpop.f32.mrf.mxu0 }
  0xfc   :  { %v909_v31 = vpop.f32.mrf.mxu1 }
  0xfd   :  { %v910_v25 = vadd.f32 %v909_v31, %v833_v4 }
  0xfe   :  { %v33760_v30 = vpop.f32.mrf.mxu1 }
  0xff   :  { %v992_v12 = vpop.f32.mrf.mxu0 }
 0x100   :  { %v993_v3 = vadd.f32 %v992_v12, %v910_v25 }
 0x101   :  { %v33771_v2 = vpop.f32.mrf.mxu0 }
 0x106   :  { %v1067_v58 = vpop.f32.mrf.mxu1 }
 0x107   :  { %v38865_v40 = vadd.f32 %v1067_v58, %v993_v3 }
 0x108   :  { %v33782_v18 = vpop.f32.mrf.mxu1 }
 0x10a   :  { %v1152_v62 = vpop.f32.mrf.mxu0 }
 0x10b   :  { %v1153_v9 = vadd.f32 %v31742_v14, %v1152_v62 }
 0x10c   :  { %v33793_v59 = vpop.f32.mrf.mxu0 }
 0x110   :  { %v1243_v32 = vpop.f32.mrf.mxu1 }
 0x111   :  { %v1244_v6 = vadd.f32 %v1243_v32, %v1153_v9 }
 0x112   :  { %v33804_v5 = vpop.f32.mrf.mxu1 }
 0x114   :  { %v1323_v56 = vpop.f32.mrf.mxu0 }
 0x115   :  { %v1324_v4 = vadd.f32 %v1323_v56, %v1244_v6 }
 0x116   :  { %v33815_v27 = vpop.f32.mrf.mxu0 }
 0x11a   :  { %v1400_v31 = vpop.f32.mrf.mxu1 }
 0x11b   :  { %v1401_v25 = vadd.f32 %v1400_v31, %v1324_v4 }
 0x11c   :  { %v33826_v30 = vpop.f32.mrf.mxu1 }
 0x11d   :  { %v1483_v12 = vpop.f32.mrf.mxu0 }
 0x11e   :  { %v1484_v3 = vadd.f32 %v1483_v12, %v1401_v25 }
 0x11f   :  { %v33837_v2 = vpop.f32.mrf.mxu0 }
 0x124   :  { %v1558_v18 = vpop.f32.mrf.mxu1 }
 0x125   :  { %v38870_v58 = vadd.f32 %v1558_v18, %v1484_v3 }
 0x126   :  { %v33848_v7 = vpop.f32.mrf.mxu1 }
 0x128   :  { %v1641_v55 = vpop.f32.mrf.mxu0 }
 0x12a   :  { %v33859_v33 = vpop.f32.mrf.mxu0 }
 0x12e   :  { %v1732_v59 = vpop.f32.mrf.mxu1 }
 0x12f   :  { %v1733_v30 = vadd.f32 %v1732_v59, %v1641_v55 }
 0x130   :  { %v33870_v14 = vpop.f32.mrf.mxu1 }
 0x131   :  { %v1812_v62 = vpop.f32.mrf.mxu0 }
 0x132   :  { %v1813_v12 = vadd.f32 %v1812_v62, %v1733_v30 }
 0x133   :  { %v33881_v9 = vpop.f32.mrf.mxu0 }
 0x138   :  { %v1889_v32 = vpop.f32.mrf.mxu1 }
 0x139   :  { %v1890_v3 = vadd.f32 %v1889_v32, %v1813_v12 }
 0x13a   :  { %v33892_v5 = vpop.f32.mrf.mxu1 }
 0x13b   :  { %v1972_v6 = vpop.f32.mrf.mxu0 }
 0x13c   :  { %v1973_v19 = vadd.f32 %v1972_v6, %v1890_v3 }
 0x13d   :  { %v33903_v56 = vpop.f32.mrf.mxu0 }
 0x142   :  { %v2047_v27 = vpop.f32.mrf.mxu1 }
 0x143   :  { %v2048_v20 = vadd.f32 %v2047_v27, %v1973_v19 }
 0x144   :  { %v33914_v4 = vpop.f32.mrf.mxu1 }
 0x145   :  { %v3021_v9 = vadd.f32 %v2048_v20, %v38860_v16  ;;  %v38877_v20 = vld [vmem:[%s43220_s6] sm:$0x1] }
 0x146   :  { %v2126_v31 = vpop.f32.mrf.mxu0 }
 0x147   :  { %v31743_v50 = vmul.f32 -1.442695, %v3021_v9 }
 0x148   :  { %v33925_v25 = vpop.f32.mrf.mxu0 }
 0x149   :  { %37782 = vpow2.f32 %v31743_v50 }
 0x14c   :  { %v2217_v2 = vpop.f32.mrf.mxu1 }
 0x14d   :  { %v2218_v14 = vadd.f32 %v2217_v2, %v2126_v31 }
 0x14e   :  { %v33936_v18 = vpop.f32.mrf.mxu1 }
 0x14f   :  { %v2297_v7 = vpop.f32.mrf.mxu0 }
 0x150   :  { %v2298_v52 = vadd.f32 %v2297_v7, %v2218_v14 }
 0x151   :  { %v33947_v33 = vpop.f32.mrf.mxu0 }
 0x156   :  { %v2374_v43 = vpop.f32.mrf.mxu1  ;;  %v37783_v31 = vpop.eup %37782 }
 0x157   :  { %v2375_v4 = vadd.f32 %v2374_v43, %v2298_v52  ;;  %v3025_v50 = vadd.f32 1.0, %v37783_v31 }
 0x158   :  { %v33958_v5 = vpop.f32.mrf.mxu1 }
 0x159   :  { %v2457_v56 = vpop.f32.mrf.mxu0 }
 0x15a   :  { %v2458_v55 = vadd.f32 %v2457_v56, %v2375_v4 }
 0x15b   :  { %v33969_v36 = vpop.f32.mrf.mxu0 }
 0x160   :  { %v2532_v59 = vpop.f32.mrf.mxu1 }
 0x161   :  { %v2533_v62 = vadd.f32 %v2532_v59, %v2458_v55 }
 0x162   :  { %v33980_v32 = vpop.f32.mrf.mxu1 }
 0x163   :  { %v3028_v6 = vadd.f32 %v2533_v62, %v38865_v40 }
 0x164   :  { %v2611_v30 = vpop.f32.mrf.mxu0 }
 0x165   :  { %v31744_v19 = vmul.f32 -1.442695, %v3028_v6  ;;  %v2612_v52 = vadd.f32 %v2611_v30, %v38877_v20 }
 0x166   :  { %v33991_v25 = vpop.f32.mrf.mxu0 }
 0x167   :  { %37784 = vpow2.f32 %v31744_v19 }
 0x168   :  { %37786 = vrcp.f32 %v3025_v50 }
 0x16a   :  { %v2702_v27 = vpop.f32.mrf.mxu1 }
 0x16b   :  { %v2703_v2 = vadd.f32 %v2702_v27, %v2612_v52 }
 0x16c   :  { %v34002_v12 = vpop.f32.mrf.mxu1 }
 0x16e   :  { %v2782_v36 = vpop.f32.mrf.mxu0 }
 0x16f   :  { %v2783_v7 = vadd.f32 %v2782_v36, %v2703_v2 }
 0x170   :  { %v34013_v43 = vpop.f32.mrf.mxu0 }
 0x174   :  { %v2859_v3 = vpop.f32.mrf.mxu1  ;;  %v37785_v5 = vpop.eup %37784 }
 0x175   :  { %v2860_v14 = vadd.f32 %v2859_v3, %v2783_v7  ;;  %v3032_v56 = vadd.f32 1.0, %v37785_v5  ;;  %v37787_v62 = vpop.eup %37786  ;;  %v43530_v7 = vld [vmem:[#allocation69_spill] sm:$0xff] }
 0x176   :  { %v34024_v18 = vpop.f32.mrf.mxu1  ;;  %v43534_v5 = vld [vmem:[#allocation73_spill] sm:$0xff] }
 0x177   :  { %v2942_v33 = vpop.f32.mrf.mxu0  ;;  %37788 = vrcp.f32 %v3032_v56  ;;  %v43535_v56 = vld [vmem:[#allocation75_spill] sm:$0xff] }
 0x178   :  { %v2943_v4 = vadd.f32 %v2942_v33, %v2860_v14  ;;  %v43531_v33 = vld [vmem:[#allocation70_spill] sm:$0xff]  ;;  %v43532_v14 = vld [vmem:[#allocation68_spill] sm:$0xff] }
 0x179   :  { %v34035_v9 = vpop.f32.mrf.mxu0 }
 0x17a   :  { %v43533_v9 = vld [vmem:[#allocation71_spill] sm:$0xff] }
 0x17d   :  { %v3017_v55 = vpop.f32.mrf.mxu1 }
 0x17e   :  { %v3018_v59 = vadd.f32 %v3017_v55, %v2943_v4  ;;  %v43536_v4 = vld [vmem:[#allocation72_spill] sm:$0xff]  ;;  %v43537_v55 = vld [vmem:[#allocation74_spill] sm:$0xff] }
 0x17f   :  { %v34046_v32 = vpop.f32.mrf.mxu1 }
 0x180   :  { %v3035_v6 = vmul.f32 %v37787_v62, %v3018_v59  ;;  %v43538_v59 = vld [vmem:[#allocation54_spill] sm:$0xff]  ;;  %v43539_v62 = vld [vmem:[#allocation76_spill] sm:$0xff]  ;;  %v43540_v32 = vld [vmem:[#allocation55_spill] sm:$0xff] }
 0x182   :  { %v3036_v30 = vadd.f32 %v3035_v6, %v38870_v58  ;;  %v43541_v6 = vld [vmem:[#allocation77_spill] sm:$0xff] }
 0x184   :  { %37790 = vtanh.f32 %v3036_v30  ;;  %v37789_v25 = vpop.eup %37788  ;;  %v43542_v30 = vld [vmem:[#allocation56_spill] sm:$0xff] }
 0x185   :  { %v3038_v19 = vsub.f32 1.0, %v37789_v25  ;;  %v3040_v31 = vmul.f32 %v37789_v25, %v38398_v29  ;;  %v43529_v29 = vmov 0.0   ;;  %v43543_v25 = vld [vmem:[#allocation57_spill] sm:$0xff] }
 0x191   :  { %v37791_v27 = vpop.eup %37790 }
 0x192   :  { %v3039_v12 = vmul.f32 %v37791_v27, %v3038_v19 }
 0x194   :  { %v38882_v36 = vadd.f32 %v3040_v31, %v3039_v12 }
 0x196   :  { %3043 = vst.msk [vmem:[#allocation2] sm:$0x1] %vm3042_vm2, %v38882_v36  ;;  %v3045_v50 = vsel %vm91_vm0, %v38882_v36, 0 }
 0x197   :  { %v38888_v52 = vand.u32 4294901760, %v3045_v50 }
 0x199   :  { %34067 = vmatmul.mubr.f32.vlgmr.msra.gmra.mxu1 %v38888_v52  ;;  %v38892_v43 = vsub.f32 %v3045_v50, %v38888_v52 }
 0x19a   :  { %34081 = vmatpush3.msra.mxu1 %v38414_v53  ;;  %34088 = vmatprep.mubr.msk.f32.mxu1 %vm37987_vm1, %v43529_v29 }
 0x19b   :  { %34082 = vmatprep.subr.mxu1 %v43529_v29  ;;  %v38899_v2 = vand.u32 4294901760, %v38892_v43 }
 0x19c   :  { %34083 = vmatpush3.msra.mxu1 %v38431_v61 }
 0x19d   :  { %34084 = vmatprep.subr.mxu1 %v43529_v29  ;;  %v3119_v3 = vsub.f32 %v38892_v43, %v38899_v2 }
 0x19e   :  { %34085 = vmatpush3.msra.mxu1 %v38443_v24 }
 0x19f   :  { %34086 = vmatprep.subr.mxu1 %v43529_v29  ;;  %v38907_v18 = vand.u32 4294901760, %v3119_v3 }
 0x1a0   :  { %34087 = vmatpush3.msra.mxu1 %v38453_v35 }
 0x1a1   :  { %34089 = vmatmul.mubr.f32.vlgmr.msra.gmra.mxu1 %v38899_v2  ;;  %34102 = vmatprep.subr.mxu1 %v43529_v29 }
 0x1a2   :  { %34056 = vmatmul.mubr.f32.vlgmr.msra.gmra.mxu0 %v38907_v18  ;;  %34103 = vmatpush3.msra.mxu1 %v38414_v53 }
 0x1a3   :  { %34070 = vmatpush3.msra.mxu0 %v38439_v21  ;;  %34104 = vmatprep.subr.mxu1 %v43529_v29 }
 0x1a4   :  { %34071 = vmatprep.subr.mxu0 %v43529_v29  ;;  %34105 = vmatpush3.msra.mxu1 %v38431_v61 }
 0x1a5   :  { %34072 = vmatpush3.msra.mxu0 %v38456_v48  ;;  %34106 = vmatprep.subr.mxu1 %v43529_v29 }
 0x1a6   :  { %34073 = vmatprep.subr.mxu0 %v43529_v29  ;;  %34107 = vmatpush3.msra.mxu1 %v38443_v24 }
 0x1a7   :  { %34074 = vmatpush3.msra.mxu0 %v38466_v51  ;;  %34108 = vmatprep.subr.mxu1 %v43529_v29 }
 0x1a8   :  { %34075 = vmatprep.subr.mxu0 %v43529_v29  ;;  %34077 = vmatprep.mubr.msk.f32.mxu0 %vm37987_vm1, %v43529_v29 }
 0x1a9   :  { %34076 = vmatpush3.msra.mxu0 %v38480_v23  ;;  %34109 = vmatpush3.msra.mxu1 %v38453_v35 }
 0x1aa   :  { %34110 = vmatprep.mubr.msk.f32.mxu1 %vm37987_vm1, %v43529_v29  ;;  %34078 = vmatmul.mubr.f32.vlgmr.msra.gmra.mxu0 %v38892_v43 }
 0x1ab   :  { %34091 = vmatprep.subr.mxu0 %v43529_v29  ;;  %34111 = vmatmul.mubr.f32.vlgmr.msra.gmra.mxu1 %v38888_v52 }
 0x1ac   :  { %34124 = vmatprep.subr.mxu1 %v43529_v29  ;;  %34092 = vmatpush3.msra.mxu0 %v38461_v8 }
 0x1ad   :  { %34125 = vmatpush3.msra.mxu1 %v38632_v45  ;;  %34093 = vmatprep.subr.mxu0 %v43529_v29 }
 0x1ae   :  { %34126 = vmatprep.subr.mxu1 %v43529_v29  ;;  %34094 = vmatpush3.msra.mxu0 %v38477_v22 }
 0x1af   :  { %34127 = vmatpush3.msra.mxu1 %v38643_v41  ;;  %34095 = vmatprep.subr.mxu0 %v43529_v29 }
 0x1b0   :  { %34128 = vmatprep.subr.mxu1 %v43529_v29  ;;  %34096 = vmatpush3.msra.mxu0 %v38489_v26 }
 0x1b1   :  { %34129 = vmatpush3.msra.mxu1 %v38652_v38  ;;  %34097 = vmatprep.subr.mxu0 %v43529_v29 }
 0x1b2   :  { %34130 = vmatprep.subr.mxu1 %v43529_v29  ;;  %34098 = vmatpush3.msra.mxu0 %v38500_v10 }
 0x1b3   :  { %34099 = vmatprep.mubr.msk.f32.mxu0 %vm37987_vm1, %v43529_v29  ;;  %34131 = vmatpush3.msra.mxu1 %v38658_v63 }
 0x1b4   :  { %34132 = vmatprep.mubr.msk.f32.mxu1 %vm37987_vm1, %v43529_v29  ;;  %34100 = vmatmul.mubr.f32.vlgmr.msra.gmra.mxu0 %v38888_v52 }
 0x1b5   :  { %34113 = vmatprep.subr.mxu0 %v43529_v29  ;;  %34133 = vmatmul.mubr.f32.vlgmr.msra.gmra.mxu1 %v38888_v52 }
 0x1b6   :  { %34146 = vmatprep.subr.mxu1 %v43529_v29  ;;  %34114 = vmatpush3.msra.mxu0 %v38553_v46 }
 0x1b7   :  { %34147 = vmatpush3.msra.mxu1 %v38553_v46  ;;  %34115 = vmatprep.subr.mxu0 %v43529_v29 }
 0x1b8   :  { %34148 = vmatprep.subr.mxu1 %v43529_v29  ;;  %34116 = vmatpush3.msra.mxu0 %v38567_v37 }
 0x1b9   :  { %34149 = vmatpush3.msra.mxu1 %v38567_v37  ;;  %34117 = vmatprep.subr.mxu0 %v43529_v29 }
 0x1ba   :  { %34150 = vmatprep.subr.mxu1 %v43529_v29  ;;  %34118 = vmatpush3.msra.mxu0 %v38579_v60 }
 0x1bb   :  { %34151 = vmatpush3.msra.mxu1 %v38579_v60  ;;  %34119 = vmatprep.subr.mxu0 %v43529_v29 }
 0x1bc   :  { %34152 = vmatprep.subr.mxu1 %v43529_v29  ;;  %34120 = vmatpush3.msra.mxu0 %v38586_v28 }
 0x1bd   :  { %34121 = vmatprep.mubr.msk.f32.mxu0 %vm37987_vm1, %v43529_v29  ;;  %34153 = vmatpush3.msra.mxu1 %v38586_v28 }
 0x1be   :  { %34154 = vmatprep.mubr.msk.f32.mxu1 %vm37987_vm1, %v43529_v29  ;;  %34122 = vmatmul.mubr.f32.vlgmr.msra.gmra.mxu0 %v38907_v18 }
 0x1bf   :  { %34135 = vmatprep.subr.mxu0 %v43529_v29  ;;  %34155 = vmatmul.mubr.f32.vlgmr.msra.gmra.mxu1 %v38899_v2 }
 0x1c0   :  { %34168 = vmatprep.subr.mxu1 %v43529_v29  ;;  %34136 = vmatpush3.msra.mxu0 %v38575_v34 }
 0x1c1   :  { %34169 = vmatpush3.msra.mxu1 %v38553_v46  ;;  %34137 = vmatprep.subr.mxu0 %v43529_v29 }
 0x1c2   :  { %34170 = vmatprep.subr.mxu1 %v43529_v29  ;;  %34138 = vmatpush3.msra.mxu0 %v38589_v1 }
 0x1c3   :  { %34171 = vmatpush3.msra.mxu1 %v38567_v37  ;;  %34139 = vmatprep.subr.mxu0 %v43529_v29 }
 0x1c4   :  { %34172 = vmatprep.subr.mxu1 %v43529_v29  ;;  %34140 = vmatpush3.msra.mxu0 %v38599_v49 }
 0x1c5   :  { %34173 = vmatpush3.msra.mxu1 %v38579_v60  ;;  %34141 = vmatprep.subr.mxu0 %v43529_v29 }
 0x1c6   :  { %34174 = vmatprep.subr.mxu1 %v43529_v29  ;;  %34142 = vmatpush3.msra.mxu0 %v38610_v47 }
 0x1c7   :  { %34143 = vmatprep.mubr.msk.f32.mxu0 %vm37987_vm1, %v43529_v29  ;;  %34175 = vmatpush3.msra.mxu1 %v38586_v28 }
 0x1c8   :  { %34176 = vmatprep.mubr.msk.f32.mxu1 %vm37987_vm1, %v43529_v29  ;;  %34144 = vmatmul.mubr.f32.vlgmr.msra.gmra.mxu0 %v38892_v43 }
 0x1c9   :  { %34157 = vmatprep.subr.mxu0 %v43529_v29  ;;  %34177 = vmatmul.mubr.f32.vlgmr.msra.gmra.mxu1 %v38888_v52 }
 0x1ca   :  { %34190 = vmatprep.subr.mxu1 %v43529_v29  ;;  %34158 = vmatpush3.msra.mxu0 %v38594_v57 }
 0x1cb   :  { %34191 = vmatpush3.msra.mxu1 %v38758_v15  ;;  %34159 = vmatprep.subr.mxu0 %v43529_v29 }
 0x1cc   :  { %34192 = vmatprep.subr.mxu1 %v43529_v29  ;;  %34160 = vmatpush3.msra.mxu0 %v38607_v17 }
 0x1cd   :  { %34193 = vmatpush3.msra.mxu1 %v38769_v13  ;;  %34161 = vmatprep.subr.mxu0 %v43529_v29 }
 0x1ce   :  { %34194 = vmatprep.subr.mxu1 %v43529_v29  ;;  %34162 = vmatpush3.msra.mxu0 %v38619_v44 }
 0x1cf   :  { %34195 = vmatpush3.msra.mxu1 %v38778_v11  ;;  %34163 = vmatprep.subr.mxu0 %v43529_v29 }
 0x1d0   :  { %34196 = vmatprep.subr.mxu1 %v43529_v29  ;;  %34164 = vmatpush3.msra.mxu0 %v38628_v42 }
 0x1d1   :  { %34165 = vmatprep.mubr.msk.f32.mxu0 %vm37987_vm1, %v43529_v29  ;;  %34197 = vmatpush3.msra.mxu1 %v38784_v39 }
 0x1d2   :  { %34198 = vmatprep.mubr.msk.f32.mxu1 %vm37987_vm1, %v43529_v29  ;;  %34166 = vmatmul.mubr.f32.vlgmr.msra.gmra.mxu0 %v38888_v52 }
 0x1d3   :  { %34179 = vmatprep.subr.mxu0 %v43529_v29  ;;  %34199 = vmatmul.mubr.f32.vlgmr.msra.gmra.mxu1 %v38888_v52 }
 0x1d4   :  { %34212 = vmatprep.subr.mxu1 %v43529_v29  ;;  %34180 = vmatpush3.msra.mxu0 %v38679_v0 }
 0x1d5   :  { %34213 = vmatpush3.msra.mxu1 %v38679_v0  ;;  %34181 = vmatprep.subr.mxu0 %v43529_v29 }
 0x1d6   :  { %34214 = vmatprep.subr.mxu1 %v43529_v29  ;;  %34182 = vmatpush3.msra.mxu0 %v38693_v54 }
 0x1d7   :  { %34215 = vmatpush3.msra.mxu1 %v38693_v54  ;;  %34183 = vmatprep.subr.mxu0 %v43529_v29 }
 0x1d8   :  { %34216 = vmatprep.subr.mxu1 %v43529_v29  ;;  %34184 = vmatpush3.msra.mxu0 %v43530_v7 }
 0x1d9   :  { %34217 = vmatpush3.msra.mxu1 %v43530_v7  ;;  %34185 = vmatprep.subr.mxu0 %v43529_v29 }
 0x1da   :  { %34218 = vmatprep.subr.mxu1 %v43529_v29  ;;  %34186 = vmatpush3.msra.mxu0 %v43531_v33 }
 0x1db   :  { %34187 = vmatprep.mubr.msk.f32.mxu0 %vm37987_vm1, %v43529_v29  ;;  %34219 = vmatpush3.msra.mxu1 %v43531_v33 }
 0x1dc   :  { %34220 = vmatprep.mubr.msk.f32.mxu1 %vm37987_vm1, %v43529_v29  ;;  %34188 = vmatmul.mubr.f32.vlgmr.msra.gmra.mxu0 %v38907_v18 }
 0x1dd   :  { %34201 = vmatprep.subr.mxu0 %v43529_v29  ;;  %34221 = vmatmul.mubr.f32.vlgmr.msra.gmra.mxu1 %v38899_v2 }
 0x1de   :  { %34234 = vmatprep.subr.mxu1 %v43529_v29  ;;  %34202 = vmatpush3.msra.mxu0 %v43532_v14 }
 0x1df   :  { %34235 = vmatpush3.msra.mxu1 %v38679_v0  ;;  %34203 = vmatprep.subr.mxu0 %v43529_v29 }
 0x1e0   :  { %34236 = vmatprep.subr.mxu1 %v43529_v29  ;;  %34204 = vmatpush3.msra.mxu0 %v43533_v9 }
 0x1e1   :  { %34237 = vmatpush3.msra.mxu1 %v38693_v54  ;;  %34205 = vmatprep.subr.mxu0 %v43529_v29 }
 0x1e2   :  { %34238 = vmatprep.subr.mxu1 %v43529_v29  ;;  %34206 = vmatpush3.msra.mxu0 %v43534_v5 }
 0x1e3   :  { %34239 = vmatpush3.msra.mxu1 %v43530_v7  ;;  %34207 = vmatprep.subr.mxu0 %v43529_v29 }
 0x1e4   :  { %34240 = vmatprep.subr.mxu1 %v43529_v29  ;;  %34208 = vmatpush3.msra.mxu0 %v43535_v56 }
 0x1e5   :  { %34209 = vmatprep.mubr.msk.f32.mxu0 %vm37987_vm1, %v43529_v29  ;;  %34241 = vmatpush3.msra.mxu1 %v43531_v33 }
 0x1e6   :  { %34242 = vmatprep.mubr.msk.f32.mxu1 %vm37987_vm1, %v43529_v29  ;;  %34210 = vmatmul.mubr.f32.vlgmr.msra.gmra.mxu0 %v38892_v43 }
 0x1e7   :  { %34223 = vmatprep.subr.mxu0 %v43529_v29  ;;  %34243 = vmatmul.mubr.f32.vlgmr.msra.gmra.mxu1 %v38888_v52 }
 0x1e8   :  { %34224 = vmatpush3.msra.mxu0 %v43536_v4  ;;  %34231 = vmatprep.mubr.msk.f32.mxu0 %vm37987_vm1, %v43529_v29 }
 0x1e9   :  { %34225 = vmatprep.subr.mxu0 %v43529_v29  ;;  %34256 = vmatprep.subr.mxu1 %v43529_v29 }
 0x1ea   :  { %34226 = vmatpush3.msra.mxu0 %v43537_v55  ;;  %34257 = vmatpush3.msra.mxu1 %v43538_v59 }
 0x1eb   :  { %34227 = vmatprep.subr.mxu0 %v43529_v29  ;;  %34258 = vmatprep.subr.mxu1 %v43529_v29 }
 0x1ec   :  { %34228 = vmatpush3.msra.mxu0 %v43539_v62  ;;  %34259 = vmatpush3.msra.mxu1 %v43540_v32 }
 0x1ed   :  { %34229 = vmatprep.subr.mxu0 %v43529_v29  ;;  %34260 = vmatprep.subr.mxu1 %v43529_v29 }
 0x1ee   :  { %34230 = vmatpush3.msra.mxu0 %v43541_v6  ;;  %34261 = vmatpush3.msra.mxu1 %v43542_v30 }
 0x1ef   :  { %34232 = vmatmul.mubr.f32.vlgmr.msra.gmra.mxu0 %v38888_v52  ;;  %34262 = vmatprep.subr.mxu1 %v43529_v29 }
 0x1f0   :  { %34263 = vmatpush3.msra.mxu1 %v43543_v25  ;;  %34245 = vmatprep.subr.mxu0 %v43529_v29 }
 0x1f1   :  { %34264 = vmatprep.mubr.msk.f32.mxu1 %vm37987_vm1, %v43529_v29  ;;  %34278 = vmatprep.subr.mxu1 %v43529_v29 }
 0x1f2   :  { %34246 = vmatpush3.msra.mxu0 %v38414_v53  ;;  %34253 = vmatprep.mubr.msk.f32.mxu0 %vm37987_vm1, %v43529_v29 }
 0x1f3   :  { %34247 = vmatprep.subr.mxu0 %v43529_v29 }
 0x1f4   :  { %34248 = vmatpush3.msra.mxu0 %v38431_v61 }
 0x1f5   :  { %34249 = vmatprep.subr.mxu0 %v43529_v29 }
 0x1f6   :  { %34250 = vmatpush3.msra.mxu0 %v38443_v24 }
 0x1f7   :  { %34251 = vmatprep.subr.mxu0 %v43529_v29 }
 0x1f8   :  { %34252 = vmatpush3.msra.mxu0 %v38453_v35 }
 0x1f9   :  { %34267 = vmatprep.subr.mxu0 %v43529_v29 }
 0x259   :  { %v3213_v19 = vpop.f32.mrf.mxu1 }
 0x25b   :  { %v34068_v27 = vpop.f32.mrf.mxu1 }
 0x261   :  { %v3370_v31 = vpop.f32.mrf.mxu1 }
 0x262   :  { %v3122_v12 = vpop.f32.mrf.mxu0 }
 0x263   :  { %v34090_v50 = vpop.f32.mrf.mxu1  ;;  %v3214_v62 = vadd.f32 %v3213_v19, %v3122_v12 }
 0x264   :  { %v34057_v52 = vpop.f32.mrf.mxu0 }
 0x26a   :  { %v3293_v43 = vpop.f32.mrf.mxu0 }
 0x26b   :  { %v3528_v2 = vpop.f32.mrf.mxu1  ;;  %v3294_v59 = vadd.f32 %v3293_v43, %v3214_v62 }
 0x26c   :  { %v34079_v3 = vpop.f32.mrf.mxu0 }
 0x26d   :  { %v34112_v18 = vpop.f32.mrf.mxu1  ;;  %v3371_v55 = vadd.f32 %v3370_v31, %v3294_v59 }
 0x274   :  { %v3453_v25 = vpop.f32.mrf.mxu0 }
 0x275   :  { %v3698_v30 = vpop.f32.mrf.mxu1  ;;  %v3454_v5 = vadd.f32 %v3453_v25, %v3371_v55 }
 0x276   :  { %v34101_v6 = vpop.f32.mrf.mxu0 }
 0x277   :  { %v34134_v32 = vpop.f32.mrf.mxu1  ;;  %v3529_v14 = vadd.f32 %v3528_v2, %v3454_v5 }
 0x279   :  { %v4503_v33 = vrot.slane %v3529_v14, 7 }
 0x27b   :  { %v4505_v18 = vadd.f32 %v4503_v33, %v38860_v16 }
 0x27d   :  { %v31745_v6 = vmul.f32 -1.442695, %v4505_v18 }
 0x27e   :  { %v3607_v4 = vpop.f32.mrf.mxu0 }
 0x27f   :  { %v3855_v56 = vpop.f32.mrf.mxu1  ;;  %v3699_v54 = vadd.f32 %v3698_v30, %v3607_v4  ;;  %37792 = vpow2.f32 %v31745_v6 }
 0x280   :  { %v34123_v9 = vpop.f32.mrf.mxu0 }
 0x281   :  { %v34156_v27 = vpop.f32.mrf.mxu1 }
 0x288   :  { %v3778_v50 = vpop.f32.mrf.mxu0 }
 0x289   :  { %v4013_v52 = vpop.f32.mrf.mxu1  ;;  %v3779_v0 = vadd.f32 %v3778_v50, %v3699_v54 }
 0x28a   :  { %v34145_v7 = vpop.f32.mrf.mxu0 }
 0x28b   :  { %v34178_v3 = vpop.f32.mrf.mxu1  ;;  %v3856_v32 = vadd.f32 %v3855_v56, %v3779_v0 }
 0x28c   :  { %v37793_v43 = vpop.eup %37792 }
 0x28d   :  { %v4509_v54 = vadd.f32 1.0, %v37793_v43 }
 0x292   :  { %v3938_v19 = vpop.f32.mrf.mxu0 }
 0x293   :  { %v3939_v62 = vadd.f32 %v3938_v19, %v3856_v32  ;;  %v4183_v59 = vpop.f32.mrf.mxu1 }
 0x294   :  { %v34167_v31 = vpop.f32.mrf.mxu0 }
 0x295   :  { %v4014_v55 = vadd.f32 %v4013_v52, %v3939_v62  ;;  %v34200_v9 = vpop.f32.mrf.mxu1 }
 0x297   :  { %v4513_v25 = vrot.slane %v4014_v55, 7 }
 0x299   :  { %v4515_v14 = vadd.f32 %v4513_v25, %v38865_v40 }
 0x29b   :  { %v31746_v7 = vmul.f32 -1.442695, %v4515_v14 }
 0x29c   :  { %v4092_v5 = vpop.f32.mrf.mxu0 }
 0x29d   :  { %v4340_v12 = vpop.f32.mrf.mxu1  ;;  %37794 = vpow2.f32 %v31746_v7  ;;  %v4093_v0 = vadd.f32 %v4092_v5, %v38877_v20 }
 0x29e   :  { %v34189_v4 = vpop.f32.mrf.mxu0  ;;  %37796 = vrcp.f32 %v4509_v54 }
 0x29f   :  { %v34222_v30 = vpop.f32.mrf.mxu1  ;;  %v4184_v2 = vadd.f32 %v4183_v59, %v4093_v0  ;;  %v4530_v59 = vrot.slane %v38882_v36, 7 }
 0x2a6   :  { %v4263_v33 = vpop.f32.mrf.mxu0 }
 0x2a7   :  { %v4498_v56 = vpop.f32.mrf.mxu1  ;;  %v4264_v52 = vadd.f32 %v4263_v33, %v4184_v2 }
 0x2a8   :  { %v34211_v27 = vpop.f32.mrf.mxu0 }
 0x2a9   :  { %v34244_v50 = vpop.f32.mrf.mxu1  ;;  %v4341_v3 = vadd.f32 %v4340_v12, %v4264_v52  ;;  %v43544_v27 = vld [vmem:[#allocation66_spill] sm:$0xff]  ;;  %v43546_v52 = vld [vmem:[#allocation69_spill] sm:$0xff] }
 0x2aa   :  { %v37795_v18 = vpop.eup %37794  ;;  %v43545_v50 = vld [vmem:[#allocation67_spill] sm:$0xff] }
 0x2ab   :  { %v4519_v62 = vadd.f32 1.0, %v37795_v18  ;;  %v37797_v9 = vpop.eup %37796  ;;  %v43548_v18 = vld [vmem:[#allocation68_spill] sm:$0xff] }
 0x2ad   :  { %37798 = vrcp.f32 %v4519_v62  ;;  %v43552_v62 = vld [vmem:[#allocation72_spill] sm:$0xff] }
 0x2af   :  { %v4423_v6 = vpop.f32.mrf.mxu0 }
 0x2b0   :  { %v4424_v32 = vadd.f32 %v4423_v6, %v4341_v3  ;;  %v43547_v3 = vld [vmem:[#allocation70_spill] sm:$0xff]  ;;  %v43549_v6 = vld [vmem:[#allocation71_spill] sm:$0xff] }
 0x2b1   :  { %v34233_v19 = vpop.f32.mrf.mxu0 }
 0x2b2   :  { %v4499_v31 = vadd.f32 %v4498_v56, %v4424_v32  ;;  %v43550_v32 = vld [vmem:[#allocation73_spill] sm:$0xff]  ;;  %v43551_v19 = vld [vmem:[#allocation75_spill] sm:$0xff] }
 0x2b4   :  { %v4523_v55 = vrot.slane %v4499_v31, 7  ;;  %v43553_v31 = vld [vmem:[#allocation74_spill] sm:$0xff] }
 0x2b6   :  { %v4525_v25 = vmul.f32 %v37797_v9, %v4523_v55  ;;  %v43554_v55 = vld [vmem:[#allocation54_spill] sm:$0xff]  ;;  %v43555_v9 = vld [vmem:[#allocation76_spill] sm:$0xff] }
 0x2b8   :  { %v4526_v20 = vadd.f32 %v4525_v25, %v38870_v58  ;;  %v43556_v25 = vld [vmem:[#allocation55_spill] sm:$0xff] }
 0x2ba   :  { %37800 = vtanh.f32 %v4526_v20  ;;  %v37799_v14 = vpop.eup %37798  ;;  %v43557_v20 = vld [vmem:[#allocation77_spill] sm:$0xff] }
 0x2bb   :  { %v4528_v5 = vsub.f32 1.0, %v37799_v14  ;;  %v4532_v4 = vmul.f32 %v37799_v14, %v4530_v59  ;;  %v43558_v14 = vld [vmem:[#allocation56_spill] sm:$0xff]  ;;  %v43559_v59 = vld [vmem:[#allocation57_spill] sm:$0xff] }
 0x2c7   :  { %v37801_v7 = vpop.eup %37800 }
 0x2c8   :  { %v4529_v12 = vmul.f32 %v37801_v7, %v4528_v5 }
 0x2ca   :  { %v39103_v30 = vadd.f32 %v4532_v4, %v4529_v12 }
 0x2cc   :  { %4535 = vst.msk [vmem:[#allocation2] sm:$0x2] %vm4534_vm3, %v39103_v30  ;;  %v4537_v43 = vrot.slane %v39103_v30, 1 }
 0x2ce   :  { %v4538_v54 = vsel %vm91_vm0, %v4537_v43, 0 }
 0x2cf   :  { %v39109_v0 = vand.u32 4294901760, %v4538_v54 }
 0x2d1   :  { %34265 = vmatmul.mubr.f32.vlgmr.msra.gmra.mxu1 %v39109_v0  ;;  %v39113_v36 = vsub.f32 %v4538_v54, %v39109_v0 }
 0x2d2   :  { %34279 = vmatpush3.msra.mxu1 %v38414_v53  ;;  %34286 = vmatprep.mubr.msk.f32.mxu1 %vm37987_vm1, %v43529_v29 }
 0x2d3   :  { %34280 = vmatprep.subr.mxu1 %v43529_v29  ;;  %v39120_v33 = vand.u32 4294901760, %v39113_v36 }
 0x2d4   :  { %34281 = vmatpush3.msra.mxu1 %v38431_v61 }
 0x2d5   :  { %34282 = vmatprep.subr.mxu1 %v43529_v29  ;;  %v4612_v56 = vsub.f32 %v39113_v36, %v39120_v33 }
 0x2d6   :  { %34283 = vmatpush3.msra.mxu1 %v38443_v24 }
 0x2d7   :  { %34284 = vmatprep.subr.mxu1 %v43529_v29  ;;  %v39128_v2 = vand.u32 4294901760, %v4612_v56 }
 0x2d8   :  { %34285 = vmatpush3.msra.mxu1 %v38453_v35 }
 0x2d9   :  { %34287 = vmatmul.mubr.f32.vlgmr.msra.gmra.mxu1 %v39120_v33  ;;  %34300 = vmatprep.subr.mxu1 %v43529_v29 }
 0x2da   :  { %34254 = vmatmul.mubr.f32.vlgmr.msra.gmra.mxu0 %v39128_v2  ;;  %34301 = vmatpush3.msra.mxu1 %v38414_v53 }
 0x2db   :  { %34268 = vmatpush3.msra.mxu0 %v38439_v21  ;;  %34302 = vmatprep.subr.mxu1 %v43529_v29 }
 0x2dc   :  { %34269 = vmatprep.subr.mxu0 %v43529_v29  ;;  %34303 = vmatpush3.msra.mxu1 %v38431_v61 }
 0x2dd   :  { %34270 = vmatpush3.msra.mxu0 %v38456_v48  ;;  %34304 = vmatprep.subr.mxu1 %v43529_v29 }
 0x2de   :  { %34271 = vmatprep.subr.mxu0 %v43529_v29  ;;  %34305 = vmatpush3.msra.mxu1 %v38443_v24 }
 0x2df   :  { %34272 = vmatpush3.msra.mxu0 %v38466_v51  ;;  %34306 = vmatprep.subr.mxu1 %v43529_v29 }
 0x2e0   :  { %34273 = vmatprep.subr.mxu0 %v43529_v29  ;;  %34275 = vmatprep.mubr.msk.f32.mxu0 %vm37987_vm1, %v43529_v29 }
 0x2e1   :  { %34274 = vmatpush3.msra.mxu0 %v38480_v23  ;;  %34307 = vmatpush3.msra.mxu1 %v38453_v35 }
 0x2e2   :  { %34308 = vmatprep.mubr.msk.f32.mxu1 %vm37987_vm1, %v43529_v29  ;;  %34276 = vmatmul.mubr.f32.vlgmr.msra.gmra.mxu0 %v39113_v36 }
 0x2e3   :  { %34289 = vmatprep.subr.mxu0 %v43529_v29  ;;  %34309 = vmatmul.mubr.f32.vlgmr.msra.gmra.mxu1 %v39109_v0 }
 0x2e4   :  { %34322 = vmatprep.subr.mxu1 %v43529_v29  ;;  %34290 = vmatpush3.msra.mxu0 %v38461_v8 }
 0x2e5   :  { %34323 = vmatpush3.msra.mxu1 %v38632_v45  ;;  %34291 = vmatprep.subr.mxu0 %v43529_v29 }
 0x2e6   :  { %34324 = vmatprep.subr.mxu1 %v43529_v29  ;;  %34292 = vmatpush3.msra.mxu0 %v38477_v22 }
 0x2e7   :  { %34325 = vmatpush3.msra.mxu1 %v38643_v41  ;;  %34293 = vmatprep.subr.mxu0 %v43529_v29 }
 0x2e8   :  { %34326 = vmatprep.subr.mxu1 %v43529_v29  ;;  %34294 = vmatpush3.msra.mxu0 %v38489_v26 }
 0x2e9   :  { %34327 = vmatpush3.msra.mxu1 %v38652_v38  ;;  %34295 = vmatprep.subr.mxu0 %v43529_v29 }
 0x2ea   :  { %34328 = vmatprep.subr.mxu1 %v43529_v29  ;;  %34296 = vmatpush3.msra.mxu0 %v38500_v10 }
 0x2eb   :  { %34297 = vmatprep.mubr.msk.f32.mxu0 %vm37987_vm1, %v43529_v29  ;;  %34329 = vmatpush3.msra.mxu1 %v38658_v63 }
 0x2ec   :  { %34330 = vmatprep.mubr.msk.f32.mxu1 %vm37987_vm1, %v43529_v29  ;;  %34298 = vmatmul.mubr.f32.vlgmr.msra.gmra.mxu0 %v39109_v0 }
 0x2ed   :  { %34311 = vmatprep.subr.mxu0 %v43529_v29  ;;  %34331 = vmatmul.mubr.f32.vlgmr.msra.gmra.mxu1 %v39109_v0 }
 0x2ee   :  { %34344 = vmatprep.subr.mxu1 %v43529_v29  ;;  %34312 = vmatpush3.msra.mxu0 %v38553_v46 }
 0x2ef   :  { %34345 = vmatpush3.msra.mxu1 %v38553_v46  ;;  %34313 = vmatprep.subr.mxu0 %v43529_v29 }
 0x2f0   :  { %34346 = vmatprep.subr.mxu1 %v43529_v29  ;;  %34314 = vmatpush3.msra.mxu0 %v38567_v37 }
 0x2f1   :  { %34347 = vmatpush3.msra.mxu1 %v38567_v37  ;;  %34315 = vmatprep.subr.mxu0 %v43529_v29 }
 0x2f2   :  { %34348 = vmatprep.subr.mxu1 %v43529_v29  ;;  %34316 = vmatpush3.msra.mxu0 %v38579_v60 }
 0x2f3   :  { %34349 = vmatpush3.msra.mxu1 %v38579_v60  ;;  %34317 = vmatprep.subr.mxu0 %v43529_v29 }
 0x2f4   :  { %34350 = vmatprep.subr.mxu1 %v43529_v29  ;;  %34318 = vmatpush3.msra.mxu0 %v38586_v28 }
 0x2f5   :  { %34319 = vmatprep.mubr.msk.f32.mxu0 %vm37987_vm1, %v43529_v29  ;;  %34351 = vmatpush3.msra.mxu1 %v38586_v28 }
 0x2f6   :  { %34352 = vmatprep.mubr.msk.f32.mxu1 %vm37987_vm1, %v43529_v29  ;;  %34320 = vmatmul.mubr.f32.vlgmr.msra.gmra.mxu0 %v39128_v2 }
 0x2f7   :  { %34333 = vmatprep.subr.mxu0 %v43529_v29  ;;  %34353 = vmatmul.mubr.f32.vlgmr.msra.gmra.mxu1 %v39120_v33 }
 0x2f8   :  { %34366 = vmatprep.subr.mxu1 %v43529_v29  ;;  %34334 = vmatpush3.msra.mxu0 %v38575_v34 }
 0x2f9   :  { %34367 = vmatpush3.msra.mxu1 %v38553_v46  ;;  %34335 = vmatprep.subr.mxu0 %v43529_v29 }
 0x2fa   :  { %34368 = vmatprep.subr.mxu1 %v43529_v29  ;;  %34336 = vmatpush3.msra.mxu0 %v38589_v1 }
 0x2fb   :  { %34369 = vmatpush3.msra.mxu1 %v38567_v37  ;;  %34337 = vmatprep.subr.mxu0 %v43529_v29 }
 0x2fc   :  { %34370 = vmatprep.subr.mxu1 %v43529_v29  ;;  %34338 = vmatpush3.msra.mxu0 %v38599_v49 }
 0x2fd   :  { %34371 = vmatpush3.msra.mxu1 %v38579_v60  ;;  %34339 = vmatprep.subr.mxu0 %v43529_v29 }
 0x2fe   :  { %34372 = vmatprep.subr.mxu1 %v43529_v29  ;;  %34340 = vmatpush3.msra.mxu0 %v38610_v47 }
 0x2ff   :  { %34341 = vmatprep.mubr.msk.f32.mxu0 %vm37987_vm1, %v43529_v29  ;;  %34373 = vmatpush3.msra.mxu1 %v38586_v28 }
 0x300   :  { %34374 = vmatprep.mubr.msk.f32.mxu1 %vm37987_vm1, %v43529_v29  ;;  %34342 = vmatmul.mubr.f32.vlgmr.msra.gmra.mxu0 %v39113_v36 }
 0x301   :  { %34355 = vmatprep.subr.mxu0 %v43529_v29  ;;  %34375 = vmatmul.mubr.f32.vlgmr.msra.gmra.mxu1 %v39109_v0 }
 0x302   :  { %34388 = vmatprep.subr.mxu1 %v43529_v29  ;;  %34356 = vmatpush3.msra.mxu0 %v38594_v57 }
 0x303   :  { %34389 = vmatpush3.msra.mxu1 %v38758_v15  ;;  %34357 = vmatprep.subr.mxu0 %v43529_v29 }
 0x304   :  { %34390 = vmatprep.subr.mxu1 %v43529_v29  ;;  %34358 = vmatpush3.msra.mxu0 %v38607_v17 }
 0x305   :  { %34391 = vmatpush3.msra.mxu1 %v38769_v13  ;;  %34359 = vmatprep.subr.mxu0 %v43529_v29 }
 0x306   :  { %34392 = vmatprep.subr.mxu1 %v43529_v29  ;;  %34360 = vmatpush3.msra.mxu0 %v38619_v44 }
 0x307   :  { %34393 = vmatpush3.msra.mxu1 %v38778_v11  ;;  %34361 = vmatprep.subr.mxu0 %v43529_v29 }
 0x308   :  { %34394 = vmatprep.subr.mxu1 %v43529_v29  ;;  %34362 = vmatpush3.msra.mxu0 %v38628_v42 }
 0x309   :  { %34363 = vmatprep.mubr.msk.f32.mxu0 %vm37987_vm1, %v43529_v29  ;;  %34395 = vmatpush3.msra.mxu1 %v38784_v39 }
 0x30a   :  { %34396 = vmatprep.mubr.msk.f32.mxu1 %vm37987_vm1, %v43529_v29  ;;  %34364 = vmatmul.mubr.f32.vlgmr.msra.gmra.mxu0 %v39109_v0 }
 0x30b   :  { %34377 = vmatprep.subr.mxu0 %v43529_v29  ;;  %34397 = vmatmul.mubr.f32.vlgmr.msra.gmra.mxu1 %v39109_v0 }
 0x30c   :  { %34410 = vmatprep.subr.mxu1 %v43529_v29  ;;  %34378 = vmatpush3.msra.mxu0 %v43544_v27 }
 0x30d   :  { %34411 = vmatpush3.msra.mxu1 %v43544_v27  ;;  %34379 = vmatprep.subr.mxu0 %v43529_v29 }
 0x30e   :  { %34412 = vmatprep.subr.mxu1 %v43529_v29  ;;  %34380 = vmatpush3.msra.mxu0 %v43545_v50 }
 0x30f   :  { %34413 = vmatpush3.msra.mxu1 %v43545_v50  ;;  %34381 = vmatprep.subr.mxu0 %v43529_v29 }
 0x310   :  { %34414 = vmatprep.subr.mxu1 %v43529_v29  ;;  %34382 = vmatpush3.msra.mxu0 %v43546_v52 }
 0x311   :  { %34415 = vmatpush3.msra.mxu1 %v43546_v52  ;;  %34383 = vmatprep.subr.mxu0 %v43529_v29 }
 0x312   :  { %34416 = vmatprep.subr.mxu1 %v43529_v29  ;;  %34384 = vmatpush3.msra.mxu0 %v43547_v3 }
 0x313   :  { %34385 = vmatprep.mubr.msk.f32.mxu0 %vm37987_vm1, %v43529_v29  ;;  %34417 = vmatpush3.msra.mxu1 %v43547_v3 }
 0x314   :  { %34418 = vmatprep.mubr.msk.f32.mxu1 %vm37987_vm1, %v43529_v29  ;;  %34386 = vmatmul.mubr.f32.vlgmr.msra.gmra.mxu0 %v39128_v2 }
 0x315   :  { %34399 = vmatprep.subr.mxu0 %v43529_v29  ;;  %34419 = vmatmul.mubr.f32.vlgmr.msra.gmra.mxu1 %v39120_v33 }
 0x316   :  { %34432 = vmatprep.subr.mxu1 %v43529_v29  ;;  %34400 = vmatpush3.msra.mxu0 %v43548_v18 }
 0x317   :  { %34433 = vmatpush3.msra.mxu1 %v43544_v27  ;;  %34401 = vmatprep.subr.mxu0 %v43529_v29 }
 0x318   :  { %34434 = vmatprep.subr.mxu1 %v43529_v29  ;;  %34402 = vmatpush3.msra.mxu0 %v43549_v6 }
 0x319   :  { %34435 = vmatpush3.msra.mxu1 %v43545_v50  ;;  %34403 = vmatprep.subr.mxu0 %v43529_v29 }
 0x31a   :  { %34436 = vmatprep.subr.mxu1 %v43529_v29  ;;  %34404 = vmatpush3.msra.mxu0 %v43550_v32 }
 0x31b   :  { %34437 = vmatpush3.msra.mxu1 %v43546_v52  ;;  %34405 = vmatprep.subr.mxu0 %v43529_v29 }
 0x31c   :  { %34438 = vmatprep.subr.mxu1 %v43529_v29  ;;  %34406 = vmatpush3.msra.mxu0 %v43551_v19 }
 0x31d   :  { %34407 = vmatprep.mubr.msk.f32.mxu0 %vm37987_vm1, %v43529_v29  ;;  %34439 = vmatpush3.msra.mxu1 %v43547_v3 }
 0x31e   :  { %34440 = vmatprep.mubr.msk.f32.mxu1 %vm37987_vm1, %v43529_v29  ;;  %34408 = vmatmul.mubr.f32.vlgmr.msra.gmra.mxu0 %v39113_v36 }
 0x31f   :  { %34421 = vmatprep.subr.mxu0 %v43529_v29  ;;  %34441 = vmatmul.mubr.f32.vlgmr.msra.gmra.mxu1 %v39109_v0 }
 0x320   :  { %34422 = vmatpush3.msra.mxu0 %v43552_v62  ;;  %34429 = vmatprep.mubr.msk.f32.mxu0 %vm37987_vm1, %v43529_v29 }
 0x321   :  { %34423 = vmatprep.subr.mxu0 %v43529_v29  ;;  %34454 = vmatprep.subr.mxu1 %v43529_v29 }
 0x322   :  { %34424 = vmatpush3.msra.mxu0 %v43553_v31  ;;  %34455 = vmatpush3.msra.mxu1 %v43554_v55 }
 0x323   :  { %34425 = vmatprep.subr.mxu0 %v43529_v29  ;;  %34456 = vmatprep.subr.mxu1 %v43529_v29 }
 0x324   :  { %34426 = vmatpush3.msra.mxu0 %v43555_v9  ;;  %34457 = vmatpush3.msra.mxu1 %v43556_v25 }
 0x325   :  { %34427 = vmatprep.subr.mxu0 %v43529_v29  ;;  %34458 = vmatprep.subr.mxu1 %v43529_v29 }
 0x326   :  { %34428 = vmatpush3.msra.mxu0 %v43557_v20  ;;  %34459 = vmatpush3.msra.mxu1 %v43558_v14 }
 0x327   :  { %34430 = vmatmul.mubr.f32.vlgmr.msra.gmra.mxu0 %v39109_v0  ;;  %34460 = vmatprep.subr.mxu1 %v43529_v29 }
 0x328   :  { %34461 = vmatpush3.msra.mxu1 %v43559_v59  ;;  %34443 = vmatprep.subr.mxu0 %v43529_v29 }
 0x329   :  { %34462 = vmatprep.mubr.msk.f32.mxu1 %vm37987_vm1, %v43529_v29  ;;  %34476 = vmatprep.subr.mxu1 %v43529_v29 }
 0x32a   :  { %34444 = vmatpush3.msra.mxu0 %v38414_v53  ;;  %34451 = vmatprep.mubr.msk.f32.mxu0 %vm37987_vm1, %v43529_v29 }
 0x32b   :  { %34445 = vmatprep.subr.mxu0 %v43529_v29 }
 0x32c   :  { %34446 = vmatpush3.msra.mxu0 %v38431_v61 }
 0x32d   :  { %34447 = vmatprep.subr.mxu0 %v43529_v29 }
 0x32e   :  { %34448 = vmatpush3.msra.mxu0 %v38443_v24 }
 0x32f   :  { %34449 = vmatprep.subr.mxu0 %v43529_v29 }
 0x330   :  { %34450 = vmatpush3.msra.mxu0 %v38453_v35 }
 0x331   :  { %34465 = vmatprep.subr.mxu0 %v43529_v29 }
 0x391   :  { %v4706_v5 = vpop.f32.mrf.mxu1 }
 0x393   :  { %v34266_v7 = vpop.f32.mrf.mxu1 }
 0x399   :  { %v4863_v4 = vpop.f32.mrf.mxu1 }
 0x39a   :  { %v4615_v12 = vpop.f32.mrf.mxu0 }
 0x39b   :  { %v34288_v43 = vpop.f32.mrf.mxu1  ;;  %v4707_v25 = vadd.f32 %v4706_v5, %v4615_v12 }
 0x39c   :  { %v34255_v54 = vpop.f32.mrf.mxu0 }
 0x3a2   :  { %v4786_v0 = vpop.f32.mrf.mxu0 }
 0x3a3   :  { %v5021_v36 = vpop.f32.mrf.mxu1  ;;  %v4787_v9 = vadd.f32 %v4786_v0, %v4707_v25 }
 0x3a4   :  { %v34277_v33 = vpop.f32.mrf.mxu0 }
 0x3a5   :  { %v34310_v56 = vpop.f32.mrf.mxu1  ;;  %v4864_v55 = vadd.f32 %v4863_v4, %v4787_v9 }
 0x3ac   :  { %v4946_v2 = vpop.f32.mrf.mxu0 }
 0x3ad   :  { %v5191_v59 = vpop.f32.mrf.mxu1  ;;  %v4947_v19 = vadd.f32 %v4946_v2, %v4864_v55 }
 0x3ae   :  { %v34299_v14 = vpop.f32.mrf.mxu0 }
 0x3af   :  { %v34332_v20 = vpop.f32.mrf.mxu1  ;;  %v5022_v6 = vadd.f32 %v5021_v36, %v4947_v19 }
 0x3b1   :  { %v5996_v18 = vrot.slane %v5022_v6, 6 }
 0x3b3   :  { %v5998_v56 = vadd.f32 %v5996_v18, %v38860_v16 }
 0x3b5   :  { %v31747_v14 = vmul.f32 -1.442695, %v5998_v56 }
 0x3b6   :  { %v5100_v31 = vpop.f32.mrf.mxu0 }
 0x3b7   :  { %v5348_v62 = vpop.f32.mrf.mxu1  ;;  %v5192_v52 = vadd.f32 %v5191_v59, %v5100_v31  ;;  %37802 = vpow2.f32 %v31747_v14 }
 0x3b8   :  { %v34321_v32 = vpop.f32.mrf.mxu0 }
 0x3b9   :  { %v34354_v7 = vpop.f32.mrf.mxu1 }
 0x3c0   :  { %v5271_v43 = vpop.f32.mrf.mxu0 }
 0x3c1   :  { %v5506_v54 = vpop.f32.mrf.mxu1  ;;  %v5272_v50 = vadd.f32 %v5271_v43, %v5192_v52 }
 0x3c2   :  { %v34343_v3 = vpop.f32.mrf.mxu0 }
 0x3c3   :  { %v34376_v33 = vpop.f32.mrf.mxu1  ;;  %v5349_v20 = vadd.f32 %v5348_v62, %v5272_v50  ;;  %v39324_v50 = vld [vmem:[%s43220_s6] sm:$0x1] }
 0x3c4   :  { %v37803_v36 = vpop.eup %37802 }
 0x3c5   :  { %v6002_v52 = vadd.f32 1.0, %v37803_v36 }
 0x3ca   :  { %v5431_v5 = vpop.f32.mrf.mxu0 }
 0x3cb   :  { %v5432_v25 = vadd.f32 %v5431_v5, %v5349_v20  ;;  %v5676_v9 = vpop.f32.mrf.mxu1 }
 0x3cc   :  { %v34365_v4 = vpop.f32.mrf.mxu0 }
 0x3cd   :  { %v5507_v55 = vadd.f32 %v5506_v54, %v5432_v25  ;;  %v34398_v32 = vpop.f32.mrf.mxu1 }
 0x3cf   :  { %v6006_v12 = vrot.slane %v5507_v55, 6 }
 0x3d1   :  { %v6008_v6 = vadd.f32 %v6006_v12, %v38865_v40 }
 0x3d3   :  { %v31748_v3 = vmul.f32 -1.442695, %v6008_v6 }
 0x3d4   :  { %v5585_v19 = vpop.f32.mrf.mxu0 }
 0x3d5   :  { %v5833_v0 = vpop.f32.mrf.mxu1  ;;  %37804 = vpow2.f32 %v31748_v3  ;;  %v5586_v18 = vadd.f32 %v39324_v50, %v5585_v19 }
 0x3d6   :  { %v34387_v31 = vpop.f32.mrf.mxu0  ;;  %37806 = vrcp.f32 %v6002_v52 }
 0x3d7   :  { %v34420_v59 = vpop.f32.mrf.mxu1  ;;  %v5677_v7 = vadd.f32 %v5676_v9, %v5586_v18  ;;  %v6023_v9 = vrot.slane %v39103_v30, 7 }
 0x3de   :  { %v5756_v62 = vpop.f32.mrf.mxu0 }
 0x3df   :  { %v5991_v2 = vpop.f32.mrf.mxu1  ;;  %v5757_v33 = vadd.f32 %v5756_v62, %v5677_v7 }
 0x3e0   :  { %v34409_v43 = vpop.f32.mrf.mxu0 }
 0x3e1   :  { %v34442_v54 = vpop.f32.mrf.mxu1  ;;  %v5834_v56 = vadd.f32 %v5833_v0, %v5757_v33  ;;  %v43560_v33 = vld [vmem:[#allocation67_spill] sm:$0xff] }
 0x3e2   :  { %v37805_v14 = vpop.eup %37804 }
 0x3e3   :  { %v6012_v4 = vadd.f32 1.0, %v37805_v14  ;;  %v37807_v12 = vpop.eup %37806  ;;  %v43562_v14 = vld [vmem:[#allocation70_spill] sm:$0xff] }
 0x3e5   :  { %37808 = vrcp.f32 %v6012_v4  ;;  %v43566_v4 = vld [vmem:[#allocation75_spill] sm:$0xff] }
 0x3e7   :  { %v5916_v20 = vpop.f32.mrf.mxu0 }
 0x3e8   :  { %v5917_v5 = vadd.f32 %v5916_v20, %v5834_v56  ;;  %v43561_v56 = vld [vmem:[#allocation69_spill] sm:$0xff]  ;;  %v43563_v20 = vld [vmem:[#allocation68_spill] sm:$0xff] }
 0x3e9   :  { %v34431_v25 = vpop.f32.mrf.mxu0 }
 0x3ea   :  { %v5992_v55 = vadd.f32 %v5991_v2, %v5917_v5  ;;  %v43564_v5 = vld [vmem:[#allocation71_spill] sm:$0xff]  ;;  %v43565_v25 = vld [vmem:[#allocation73_spill] sm:$0xff] }
 0x3ec   :  { %v6016_v32 = vrot.slane %v5992_v55, 6  ;;  %v43567_v55 = vld [vmem:[#allocation72_spill] sm:$0xff] }
 0x3ee   :  { %v6018_v6 = vmul.f32 %v37807_v12, %v6016_v32  ;;  %v43568_v32 = vld [vmem:[#allocation74_spill] sm:$0xff] }
 0x3ef   :  { %v43569_v12 = vld [vmem:[#allocation54_spill] sm:$0xff] }
 0x3f0   :  { %v6019_v19 = vadd.f32 %v6018_v6, %v38870_v58  ;;  %v43570_v6 = vld [vmem:[#allocation76_spill] sm:$0xff] }
 0x3f2   :  { %37810 = vtanh.f32 %v6019_v19  ;;  %v37809_v3 = vpop.eup %37808  ;;  %v43571_v19 = vld [vmem:[#allocation55_spill] sm:$0xff] }
 0x3f3   :  { %v6021_v31 = vsub.f32 1.0, %v37809_v3  ;;  %v6025_v36 = vmul.f32 %v37809_v3, %v6023_v9  ;;  %v43572_v3 = vld [vmem:[#allocation77_spill] sm:$0xff]  ;;  %v43573_v9 = vld [vmem:[#allocation56_spill] sm:$0xff] }
 0x3ff   :  { %v37811_v59 = vpop.eup %37810 }
 0x400   :  { %v6022_v0 = vmul.f32 %v37811_v59, %v6021_v31  ;;  %v43574_v31 = vld [vmem:[#allocation57_spill] sm:$0xff] }
 0x402   :  { %v39329_v52 = vadd.f32 %v6025_v36, %v6022_v0 }
 0x404   :  { %6028 = vst.msk [vmem:[#allocation2] sm:$0x4] %vm6027_vm4, %v39329_v52  ;;  %v6030_v18 = vrot.slane %v39329_v52, 2 }
 0x406   :  { %v6031_v62 = vsel %vm91_vm0, %v6030_v18, 0 }
 0x407   :  { %v39335_v2 = vand.u32 4294901760, %v6031_v62 }
 0x409   :  { %34463 = vmatmul.mubr.f32.vlgmr.msra.gmra.mxu1 %v39335_v2  ;;  %v39339_v30 = vsub.f32 %v6031_v62, %v39335_v2 }
 0x40a   :  { %34477 = vmatpush3.msra.mxu1 %v38414_v53  ;;  %34484 = vmatprep.mubr.msk.f32.mxu1 %vm37987_vm1, %v43529_v29 }
 0x40b   :  { %34478 = vmatprep.subr.mxu1 %v43529_v29  ;;  %v39346_v7 = vand.u32 4294901760, %v39339_v30 }
 0x40c   :  { %34479 = vmatpush3.msra.mxu1 %v38431_v61 }
 0x40d   :  { %34480 = vmatprep.subr.mxu1 %v43529_v29  ;;  %v6105_v43 = vsub.f32 %v39339_v30, %v39346_v7 }
 0x40e   :  { %34481 = vmatpush3.msra.mxu1 %v38443_v24 }
 0x40f   :  { %34482 = vmatprep.subr.mxu1 %v43529_v29  ;;  %v39354_v54 = vand.u32 4294901760, %v6105_v43 }
 0x410   :  { %34483 = vmatpush3.msra.mxu1 %v38453_v35 }
 0x411   :  { %34485 = vmatmul.mubr.f32.vlgmr.msra.gmra.mxu1 %v39346_v7  ;;  %34498 = vmatprep.subr.mxu1 %v43529_v29 }
 0x412   :  { %34452 = vmatmul.mubr.f32.vlgmr.msra.gmra.mxu0 %v39354_v54  ;;  %34499 = vmatpush3.msra.mxu1 %v38414_v53 }
 0x413   :  { %34466 = vmatpush3.msra.mxu0 %v38439_v21  ;;  %34500 = vmatprep.subr.mxu1 %v43529_v29 }
 0x414   :  { %34467 = vmatprep.subr.mxu0 %v43529_v29  ;;  %34501 = vmatpush3.msra.mxu1 %v38431_v61 }
 0x415   :  { %34468 = vmatpush3.msra.mxu0 %v38456_v48  ;;  %34502 = vmatprep.subr.mxu1 %v43529_v29 }
 0x416   :  { %34469 = vmatprep.subr.mxu0 %v43529_v29  ;;  %34503 = vmatpush3.msra.mxu1 %v38443_v24 }
 0x417   :  { %34470 = vmatpush3.msra.mxu0 %v38466_v51  ;;  %34504 = vmatprep.subr.mxu1 %v43529_v29 }
 0x418   :  { %34471 = vmatprep.subr.mxu0 %v43529_v29  ;;  %34473 = vmatprep.mubr.msk.f32.mxu0 %vm37987_vm1, %v43529_v29 }
 0x419   :  { %34472 = vmatpush3.msra.mxu0 %v38480_v23  ;;  %34505 = vmatpush3.msra.mxu1 %v38453_v35 }
 0x41a   :  { %34506 = vmatprep.mubr.msk.f32.mxu1 %vm37987_vm1, %v43529_v29  ;;  %34474 = vmatmul.mubr.f32.vlgmr.msra.gmra.mxu0 %v39339_v30 }
 0x41b   :  { %34487 = vmatprep.subr.mxu0 %v43529_v29  ;;  %34507 = vmatmul.mubr.f32.vlgmr.msra.gmra.mxu1 %v39335_v2 }
 0x41c   :  { %34520 = vmatprep.subr.mxu1 %v43529_v29  ;;  %34488 = vmatpush3.msra.mxu0 %v38461_v8 }
 0x41d   :  { %34521 = vmatpush3.msra.mxu1 %v38632_v45  ;;  %34489 = vmatprep.subr.mxu0 %v43529_v29 }
 0x41e   :  { %34522 = vmatprep.subr.mxu1 %v43529_v29  ;;  %34490 = vmatpush3.msra.mxu0 %v38477_v22 }
 0x41f   :  { %34523 = vmatpush3.msra.mxu1 %v38643_v41  ;;  %34491 = vmatprep.subr.mxu0 %v43529_v29 }
 0x420   :  { %34524 = vmatprep.subr.mxu1 %v43529_v29  ;;  %34492 = vmatpush3.msra.mxu0 %v38489_v26 }
 0x421   :  { %34525 = vmatpush3.msra.mxu1 %v38652_v38  ;;  %34493 = vmatprep.subr.mxu0 %v43529_v29 }
 0x422   :  { %34526 = vmatprep.subr.mxu1 %v43529_v29  ;;  %34494 = vmatpush3.msra.mxu0 %v38500_v10 }
 0x423   :  { %34495 = vmatprep.mubr.msk.f32.mxu0 %vm37987_vm1, %v43529_v29  ;;  %34527 = vmatpush3.msra.mxu1 %v38658_v63 }
 0x424   :  { %34528 = vmatprep.mubr.msk.f32.mxu1 %vm37987_vm1, %v43529_v29  ;;  %34496 = vmatmul.mubr.f32.vlgmr.msra.gmra.mxu0 %v39335_v2 }
 0x425   :  { %34509 = vmatprep.subr.mxu0 %v43529_v29  ;;  %34529 = vmatmul.mubr.f32.vlgmr.msra.gmra.mxu1 %v39335_v2 }
 0x426   :  { %34542 = vmatprep.subr.mxu1 %v43529_v29  ;;  %34510 = vmatpush3.msra.mxu0 %v38553_v46 }
 0x427   :  { %34543 = vmatpush3.msra.mxu1 %v38553_v46  ;;  %34511 = vmatprep.subr.mxu0 %v43529_v29 }
 0x428   :  { %34544 = vmatprep.subr.mxu1 %v43529_v29  ;;  %34512 = vmatpush3.msra.mxu0 %v38567_v37 }
 0x429   :  { %34545 = vmatpush3.msra.mxu1 %v38567_v37  ;;  %34513 = vmatprep.subr.mxu0 %v43529_v29 }
 0x42a   :  { %34546 = vmatprep.subr.mxu1 %v43529_v29  ;;  %34514 = vmatpush3.msra.mxu0 %v38579_v60 }
 0x42b   :  { %34547 = vmatpush3.msra.mxu1 %v38579_v60  ;;  %34515 = vmatprep.subr.mxu0 %v43529_v29 }
 0x42c   :  { %34548 = vmatprep.subr.mxu1 %v43529_v29  ;;  %34516 = vmatpush3.msra.mxu0 %v38586_v28 }
 0x42d   :  { %34517 = vmatprep.mubr.msk.f32.mxu0 %vm37987_vm1, %v43529_v29  ;;  %34549 = vmatpush3.msra.mxu1 %v38586_v28 }
 0x42e   :  { %34550 = vmatprep.mubr.msk.f32.mxu1 %vm37987_vm1, %v43529_v29  ;;  %34518 = vmatmul.mubr.f32.vlgmr.msra.gmra.mxu0 %v39354_v54 }
 0x42f   :  { %34531 = vmatprep.subr.mxu0 %v43529_v29  ;;  %34551 = vmatmul.mubr.f32.vlgmr.msra.gmra.mxu1 %v39346_v7 }
 0x430   :  { %34564 = vmatprep.subr.mxu1 %v43529_v29  ;;  %34532 = vmatpush3.msra.mxu0 %v38575_v34 }
 0x431   :  { %34565 = vmatpush3.msra.mxu1 %v38553_v46  ;;  %34533 = vmatprep.subr.mxu0 %v43529_v29 }
 0x432   :  { %34566 = vmatprep.subr.mxu1 %v43529_v29  ;;  %34534 = vmatpush3.msra.mxu0 %v38589_v1 }
 0x433   :  { %34567 = vmatpush3.msra.mxu1 %v38567_v37  ;;  %34535 = vmatprep.subr.mxu0 %v43529_v29 }
 0x434   :  { %34568 = vmatprep.subr.mxu1 %v43529_v29  ;;  %34536 = vmatpush3.msra.mxu0 %v38599_v49 }
 0x435   :  { %34569 = vmatpush3.msra.mxu1 %v38579_v60  ;;  %34537 = vmatprep.subr.mxu0 %v43529_v29 }
 0x436   :  { %34570 = vmatprep.subr.mxu1 %v43529_v29  ;;  %34538 = vmatpush3.msra.mxu0 %v38610_v47 }
 0x437   :  { %34539 = vmatprep.mubr.msk.f32.mxu0 %vm37987_vm1, %v43529_v29  ;;  %34571 = vmatpush3.msra.mxu1 %v38586_v28 }
 0x438   :  { %34572 = vmatprep.mubr.msk.f32.mxu1 %vm37987_vm1, %v43529_v29  ;;  %34540 = vmatmul.mubr.f32.vlgmr.msra.gmra.mxu0 %v39339_v30 }
 0x439   :  { %34553 = vmatprep.subr.mxu0 %v43529_v29  ;;  %34573 = vmatmul.mubr.f32.vlgmr.msra.gmra.mxu1 %v39335_v2 }
 0x43a   :  { %34586 = vmatprep.subr.mxu1 %v43529_v29  ;;  %34554 = vmatpush3.msra.mxu0 %v38594_v57 }
 0x43b   :  { %34587 = vmatpush3.msra.mxu1 %v38758_v15  ;;  %34555 = vmatprep.subr.mxu0 %v43529_v29 }
 0x43c   :  { %34588 = vmatprep.subr.mxu1 %v43529_v29  ;;  %34556 = vmatpush3.msra.mxu0 %v38607_v17 }
 0x43d   :  { %34589 = vmatpush3.msra.mxu1 %v38769_v13  ;;  %34557 = vmatprep.subr.mxu0 %v43529_v29 }
 0x43e   :  { %34590 = vmatprep.subr.mxu1 %v43529_v29  ;;  %34558 = vmatpush3.msra.mxu0 %v38619_v44 }
 0x43f   :  { %34591 = vmatpush3.msra.mxu1 %v38778_v11  ;;  %34559 = vmatprep.subr.mxu0 %v43529_v29 }
 0x440   :  { %34592 = vmatprep.subr.mxu1 %v43529_v29  ;;  %34560 = vmatpush3.msra.mxu0 %v38628_v42 }
 0x441   :  { %34561 = vmatprep.mubr.msk.f32.mxu0 %vm37987_vm1, %v43529_v29  ;;  %34593 = vmatpush3.msra.mxu1 %v38784_v39 }
 0x442   :  { %34594 = vmatprep.mubr.msk.f32.mxu1 %vm37987_vm1, %v43529_v29  ;;  %34562 = vmatmul.mubr.f32.vlgmr.msra.gmra.mxu0 %v39335_v2 }
 0x443   :  { %34575 = vmatprep.subr.mxu0 %v43529_v29  ;;  %34595 = vmatmul.mubr.f32.vlgmr.msra.gmra.mxu1 %v39335_v2 }
 0x444   :  { %34608 = vmatprep.subr.mxu1 %v43529_v29  ;;  %34576 = vmatpush3.msra.mxu0 %v43544_v27 }
 0x445   :  { %34609 = vmatpush3.msra.mxu1 %v43544_v27  ;;  %34577 = vmatprep.subr.mxu0 %v43529_v29 }
 0x446   :  { %34610 = vmatprep.subr.mxu1 %v43529_v29  ;;  %34578 = vmatpush3.msra.mxu0 %v43560_v33 }
 0x447   :  { %34611 = vmatpush3.msra.mxu1 %v43560_v33  ;;  %34579 = vmatprep.subr.mxu0 %v43529_v29 }
 0x448   :  { %34612 = vmatprep.subr.mxu1 %v43529_v29  ;;  %34580 = vmatpush3.msra.mxu0 %v43561_v56 }
 0x449   :  { %34613 = vmatpush3.msra.mxu1 %v43561_v56  ;;  %34581 = vmatprep.subr.mxu0 %v43529_v29 }
 0x44a   :  { %34614 = vmatprep.subr.mxu1 %v43529_v29  ;;  %34582 = vmatpush3.msra.mxu0 %v43562_v14 }
 0x44b   :  { %34583 = vmatprep.mubr.msk.f32.mxu0 %vm37987_vm1, %v43529_v29  ;;  %34615 = vmatpush3.msra.mxu1 %v43562_v14 }
 0x44c   :  { %34616 = vmatprep.mubr.msk.f32.mxu1 %vm37987_vm1, %v43529_v29  ;;  %34584 = vmatmul.mubr.f32.vlgmr.msra.gmra.mxu0 %v39354_v54 }
 0x44d   :  { %34597 = vmatprep.subr.mxu0 %v43529_v29  ;;  %34617 = vmatmul.mubr.f32.vlgmr.msra.gmra.mxu1 %v39346_v7 }
 0x44e   :  { %34630 = vmatprep.subr.mxu1 %v43529_v29  ;;  %34598 = vmatpush3.msra.mxu0 %v43563_v20 }
 0x44f   :  { %34631 = vmatpush3.msra.mxu1 %v43544_v27  ;;  %34599 = vmatprep.subr.mxu0 %v43529_v29 }
 0x450   :  { %34632 = vmatprep.subr.mxu1 %v43529_v29  ;;  %34600 = vmatpush3.msra.mxu0 %v43564_v5 }
 0x451   :  { %34633 = vmatpush3.msra.mxu1 %v43560_v33  ;;  %34601 = vmatprep.subr.mxu0 %v43529_v29 }
 0x452   :  { %34634 = vmatprep.subr.mxu1 %v43529_v29  ;;  %34602 = vmatpush3.msra.mxu0 %v43565_v25 }
 0x453   :  { %34635 = vmatpush3.msra.mxu1 %v43561_v56  ;;  %34603 = vmatprep.subr.mxu0 %v43529_v29 }
 0x454   :  { %34636 = vmatprep.subr.mxu1 %v43529_v29  ;;  %34604 = vmatpush3.msra.mxu0 %v43566_v4 }
 0x455   :  { %34605 = vmatprep.mubr.msk.f32.mxu0 %vm37987_vm1, %v43529_v29  ;;  %34637 = vmatpush3.msra.mxu1 %v43562_v14 }
 0x456   :  { %34638 = vmatprep.mubr.msk.f32.mxu1 %vm37987_vm1, %v43529_v29  ;;  %34606 = vmatmul.mubr.f32.vlgmr.msra.gmra.mxu0 %v39339_v30 }
 0x457   :  { %34619 = vmatprep.subr.mxu0 %v43529_v29  ;;  %34639 = vmatmul.mubr.f32.vlgmr.msra.gmra.mxu1 %v39335_v2 }
 0x458   :  { %34620 = vmatpush3.msra.mxu0 %v43567_v55  ;;  %34627 = vmatprep.mubr.msk.f32.mxu0 %vm37987_vm1, %v43529_v29 }
 0x459   :  { %34621 = vmatprep.subr.mxu0 %v43529_v29  ;;  %34652 = vmatprep.subr.mxu1 %v43529_v29 }
 0x45a   :  { %34622 = vmatpush3.msra.mxu0 %v43568_v32  ;;  %34653 = vmatpush3.msra.mxu1 %v43569_v12 }
 0x45b   :  { %34623 = vmatprep.subr.mxu0 %v43529_v29  ;;  %34654 = vmatprep.subr.mxu1 %v43529_v29 }
 0x45c   :  { %34624 = vmatpush3.msra.mxu0 %v43570_v6  ;;  %34655 = vmatpush3.msra.mxu1 %v43571_v19 }
 0x45d   :  { %34625 = vmatprep.subr.mxu0 %v43529_v29  ;;  %34656 = vmatprep.subr.mxu1 %v43529_v29 }
 0x45e   :  { %34626 = vmatpush3.msra.mxu0 %v43572_v3  ;;  %34657 = vmatpush3.msra.mxu1 %v43573_v9 }
 0x45f   :  { %34628 = vmatmul.mubr.f32.vlgmr.msra.gmra.mxu0 %v39335_v2  ;;  %34658 = vmatprep.subr.mxu1 %v43529_v29 }
 0x460   :  { %34659 = vmatpush3.msra.mxu1 %v43574_v31  ;;  %34641 = vmatprep.subr.mxu0 %v43529_v29 }
 0x461   :  { %34660 = vmatprep.mubr.msk.f32.mxu1 %vm37987_vm1, %v43529_v29  ;;  %34674 = vmatprep.subr.mxu1 %v43529_v29 }
 0x462   :  { %34642 = vmatpush3.msra.mxu0 %v38414_v53  ;;  %34649 = vmatprep.mubr.msk.f32.mxu0 %vm37987_vm1, %v43529_v29 }
 0x463   :  { %34643 = vmatprep.subr.mxu0 %v43529_v29 }
 0x464   :  { %34644 = vmatpush3.msra.mxu0 %v38431_v61 }
 0x465   :  { %34645 = vmatprep.subr.mxu0 %v43529_v29 }
 0x466   :  { %34646 = vmatpush3.msra.mxu0 %v38443_v24 }
 0x467   :  { %34647 = vmatprep.subr.mxu0 %v43529_v29 }
 0x468   :  { %34648 = vmatpush3.msra.mxu0 %v38453_v35 }
 0x469   :  { %34663 = vmatprep.subr.mxu0 %v43529_v29 }
 0x4c9   :  { %v6199_v59 = vpop.f32.mrf.mxu1 }
 0x4cb   :  { %v34464_v36 = vpop.f32.mrf.mxu1 }
 0x4d1   :  { %v6356_v0 = vpop.f32.mrf.mxu1 }
 0x4d2   :  { %v6108_v18 = vpop.f32.mrf.mxu0 }
 0x4d3   :  { %v34486_v62 = vpop.f32.mrf.mxu1  ;;  %v6200_v6 = vadd.f32 %v6199_v59, %v6108_v18 }
 0x4d4   :  { %v34453_v2 = vpop.f32.mrf.mxu0 }
 0x4da   :  { %v6279_v30 = vpop.f32.mrf.mxu0 }
 0x4db   :  { %v6514_v7 = vpop.f32.mrf.mxu1  ;;  %v6280_v12 = vadd.f32 %v6279_v30, %v6200_v6 }
 0x4dc   :  { %v34475_v43 = vpop.f32.mrf.mxu0 }
 0x4dd   :  { %v34508_v54 = vpop.f32.mrf.mxu1  ;;  %v6357_v32 = vadd.f32 %v6356_v0, %v6280_v12 }
 0x4e4   :  { %v6439_v31 = vpop.f32.mrf.mxu0 }
 0x4e5   :  { %v6684_v9 = vpop.f32.mrf.mxu1  ;;  %v6440_v25 = vadd.f32 %v6439_v31, %v6357_v32 }
 0x4e6   :  { %v34497_v3 = vpop.f32.mrf.mxu0 }
 0x4e7   :  { %v34530_v19 = vpop.f32.mrf.mxu1  ;;  %v6515_v20 = vadd.f32 %v6514_v7, %v6440_v25 }
 0x4e9   :  { %v7489_v14 = vrot.slane %v6515_v20, 5 }
 0x4eb   :  { %v7491_v54 = vadd.f32 %v7489_v14, %v38860_v16 }
 0x4ed   :  { %v31749_v3 = vmul.f32 -1.442695, %v7491_v54 }
 0x4ee   :  { %v6593_v55 = vpop.f32.mrf.mxu0 }
 0x4ef   :  { %v6841_v4 = vpop.f32.mrf.mxu1  ;;  %v6685_v33 = vadd.f32 %v6684_v9, %v6593_v55  ;;  %37812 = vpow2.f32 %v31749_v3 }
 0x4f0   :  { %v34519_v5 = vpop.f32.mrf.mxu0 }
 0x4f1   :  { %v34552_v36 = vpop.f32.mrf.mxu1 }
 0x4f8   :  { %v6764_v62 = vpop.f32.mrf.mxu0 }
 0x4f9   :  { %v6999_v2 = vpop.f32.mrf.mxu1  ;;  %v6765_v27 = vadd.f32 %v6764_v62, %v6685_v33 }
 0x4fa   :  { %v34541_v56 = vpop.f32.mrf.mxu0 }
 0x4fb   :  { %v34574_v43 = vpop.f32.mrf.mxu1  ;;  %v6842_v19 = vadd.f32 %v6841_v4, %v6765_v27 }
 0x4fc   :  { %v37813_v30 = vpop.eup %37812 }
 0x4fd   :  { %v7495_v33 = vadd.f32 1.0, %v37813_v30 }
 0x502   :  { %v6924_v59 = vpop.f32.mrf.mxu0 }
 0x503   :  { %v6925_v6 = vadd.f32 %v6924_v59, %v6842_v19  ;;  %v7169_v12 = vpop.f32.mrf.mxu1 }
 0x504   :  { %v34563_v0 = vpop.f32.mrf.mxu0 }
 0x505   :  { %v7000_v32 = vadd.f32 %v6999_v2, %v6925_v6  ;;  %v34596_v5 = vpop.f32.mrf.mxu1 }
 0x507   :  { %v7499_v31 = vrot.slane %v7000_v32, 5 }
 0x509   :  { %v7501_v20 = vadd.f32 %v7499_v31, %v38865_v40 }
 0x50b   :  { %v31750_v56 = vmul.f32 -1.442695, %v7501_v20 }
 0x50c   :  { %v7078_v25 = vpop.f32.mrf.mxu0 }
 0x50d   :  { %v7326_v18 = vpop.f32.mrf.mxu1  ;;  %37814 = vpow2.f32 %v31750_v56  ;;  %v7079_v27 = vadd.f32 %v39324_v50, %v7078_v25 }
 0x50e   :  { %v34585_v55 = vpop.f32.mrf.mxu0  ;;  %37816 = vrcp.f32 %v7495_v33 }
 0x50f   :  { %v34618_v9 = vpop.f32.mrf.mxu1  ;;  %v7170_v7 = vadd.f32 %v7169_v12, %v7079_v27  ;;  %v7516_v12 = vrot.slane %v39329_v52, 7 }
 0x516   :  { %v7249_v14 = vpop.f32.mrf.mxu0 }
 0x517   :  { %v7484_v4 = vpop.f32.mrf.mxu1  ;;  %v7250_v2 = vadd.f32 %v7249_v14, %v7170_v7 }
 0x518   :  { %v34607_v36 = vpop.f32.mrf.mxu0 }
 0x519   :  { %v34640_v62 = vpop.f32.mrf.mxu1  ;;  %v7327_v43 = vadd.f32 %v7326_v18, %v7250_v2  ;;  %v43575_v36 = vld [vmem:[#allocation66_spill] sm:$0xff]  ;;  %v43577_v2 = vld [vmem:[#allocation69_spill] sm:$0xff] }
 0x51a   :  { %v37815_v54 = vpop.eup %37814  ;;  %v43576_v62 = vld [vmem:[#allocation67_spill] sm:$0xff] }
 0x51b   :  { %v7505_v6 = vadd.f32 1.0, %v37815_v54  ;;  %v37817_v5 = vpop.eup %37816  ;;  %v43579_v54 = vld [vmem:[#allocation68_spill] sm:$0xff] }
 0x51d   :  { %37818 = vrcp.f32 %v7505_v6  ;;  %v43583_v6 = vld [vmem:[#allocation72_spill] sm:$0xff] }
 0x51f   :  { %v7409_v3 = vpop.f32.mrf.mxu0 }
 0x520   :  { %v7410_v19 = vadd.f32 %v7409_v3, %v7327_v43  ;;  %v43578_v43 = vld [vmem:[#allocation70_spill] sm:$0xff]  ;;  %v43580_v3 = vld [vmem:[#allocation71_spill] sm:$0xff] }
 0x521   :  { %v34629_v59 = vpop.f32.mrf.mxu0 }
 0x522   :  { %v7485_v0 = vadd.f32 %v7484_v4, %v7410_v19  ;;  %v43581_v19 = vld [vmem:[#allocation73_spill] sm:$0xff]  ;;  %v43582_v59 = vld [vmem:[#allocation75_spill] sm:$0xff] }
 0x524   :  { %v7509_v32 = vrot.slane %v7485_v0, 5  ;;  %v43584_v0 = vld [vmem:[#allocation74_spill] sm:$0xff] }
 0x526   :  { %v7511_v31 = vmul.f32 %v37817_v5, %v7509_v32  ;;  %v43585_v32 = vld [vmem:[#allocation54_spill] sm:$0xff]  ;;  %v43586_v5 = vld [vmem:[#allocation76_spill] sm:$0xff] }
 0x528   :  { %v7512_v50 = vadd.f32 %v7511_v31, %v38870_v58  ;;  %v43587_v31 = vld [vmem:[#allocation55_spill] sm:$0xff] }
 0x52a   :  { %37820 = vtanh.f32 %v7512_v50  ;;  %v37819_v20 = vpop.eup %37818  ;;  %v43588_v50 = vld [vmem:[#allocation77_spill] sm:$0xff] }
 0x52b   :  { %v7514_v25 = vsub.f32 1.0, %v37819_v20  ;;  %v7518_v55 = vmul.f32 %v37819_v20, %v7516_v12  ;;  %v43589_v20 = vld [vmem:[#allocation56_spill] sm:$0xff]  ;;  %v43590_v12 = vld [vmem:[#allocation57_spill] sm:$0xff] }
 0x537   :  { %v37821_v56 = vpop.eup %37820 }
 0x538   :  { %v7515_v18 = vmul.f32 %v37821_v56, %v7514_v25 }
 0x53a   :  { %v39550_v9 = vadd.f32 %v7518_v55, %v7515_v18 }
 0x53c   :  { %7521 = vst.msk [vmem:[#allocation2] sm:$0x8] %vm7520_vm5, %v39550_v9  ;;  %v7523_v30 = vrot.slane %v39550_v9, 3 }
 0x53e   :  { %v7524_v33 = vsel %vm91_vm0, %v7523_v30, 0 }
 0x53f   :  { %v39556_v27 = vand.u32 4294901760, %v7524_v33 }
 0x541   :  { %34661 = vmatmul.mubr.f32.vlgmr.msra.gmra.mxu1 %v39556_v27  ;;  %v39560_v52 = vsub.f32 %v7524_v33, %v39556_v27 }
 0x542   :  { %34675 = vmatpush3.msra.mxu1 %v38414_v53  ;;  %34682 = vmatprep.mubr.msk.f32.mxu1 %vm37987_vm1, %v43529_v29 }
 0x543   :  { %34676 = vmatprep.subr.mxu1 %v43529_v29  ;;  %v39567_v14 = vand.u32 4294901760, %v39560_v52 }
 0x544   :  { %34677 = vmatpush3.msra.mxu1 %v38431_v61 }
 0x545   :  { %34678 = vmatprep.subr.mxu1 %v43529_v29  ;;  %v7598_v4 = vsub.f32 %v39560_v52, %v39567_v14 }
 0x546   :  { %34679 = vmatpush3.msra.mxu1 %v38443_v24 }
 0x547   :  { %34680 = vmatprep.subr.mxu1 %v43529_v29  ;;  %v39575_v7 = vand.u32 4294901760, %v7598_v4 }
 0x548   :  { %34681 = vmatpush3.msra.mxu1 %v38453_v35 }
 0x549   :  { %34683 = vmatmul.mubr.f32.vlgmr.msra.gmra.mxu1 %v39567_v14  ;;  %34696 = vmatprep.subr.mxu1 %v43529_v29 }
 0x54a   :  { %34650 = vmatmul.mubr.f32.vlgmr.msra.gmra.mxu0 %v39575_v7  ;;  %34697 = vmatpush3.msra.mxu1 %v38414_v53 }
 0x54b   :  { %34664 = vmatpush3.msra.mxu0 %v38439_v21  ;;  %34698 = vmatprep.subr.mxu1 %v43529_v29 }
 0x54c   :  { %34665 = vmatprep.subr.mxu0 %v43529_v29  ;;  %34699 = vmatpush3.msra.mxu1 %v38431_v61 }
 0x54d   :  { %34666 = vmatpush3.msra.mxu0 %v38456_v48  ;;  %34700 = vmatprep.subr.mxu1 %v43529_v29 }
 0x54e   :  { %34667 = vmatprep.subr.mxu0 %v43529_v29  ;;  %34701 = vmatpush3.msra.mxu1 %v38443_v24 }
 0x54f   :  { %34668 = vmatpush3.msra.mxu0 %v38466_v51  ;;  %34702 = vmatprep.subr.mxu1 %v43529_v29 }
 0x550   :  { %34669 = vmatprep.subr.mxu0 %v43529_v29  ;;  %34671 = vmatprep.mubr.msk.f32.mxu0 %vm37987_vm1, %v43529_v29 }
 0x551   :  { %34670 = vmatpush3.msra.mxu0 %v38480_v23  ;;  %34703 = vmatpush3.msra.mxu1 %v38453_v35 }
 0x552   :  { %34704 = vmatprep.mubr.msk.f32.mxu1 %vm37987_vm1, %v43529_v29  ;;  %34672 = vmatmul.mubr.f32.vlgmr.msra.gmra.mxu0 %v39560_v52 }
 0x553   :  { %34685 = vmatprep.subr.mxu0 %v43529_v29  ;;  %34705 = vmatmul.mubr.f32.vlgmr.msra.gmra.mxu1 %v39556_v27 }
 0x554   :  { %34718 = vmatprep.subr.mxu1 %v43529_v29  ;;  %34686 = vmatpush3.msra.mxu0 %v38461_v8 }
 0x555   :  { %34719 = vmatpush3.msra.mxu1 %v38632_v45  ;;  %34687 = vmatprep.subr.mxu0 %v43529_v29 }
 0x556   :  { %34720 = vmatprep.subr.mxu1 %v43529_v29  ;;  %34688 = vmatpush3.msra.mxu0 %v38477_v22 }
 0x557   :  { %34721 = vmatpush3.msra.mxu1 %v38643_v41  ;;  %34689 = vmatprep.subr.mxu0 %v43529_v29 }
 0x558   :  { %34722 = vmatprep.subr.mxu1 %v43529_v29  ;;  %34690 = vmatpush3.msra.mxu0 %v38489_v26 }
 0x559   :  { %34723 = vmatpush3.msra.mxu1 %v38652_v38  ;;  %34691 = vmatprep.subr.mxu0 %v43529_v29 }
 0x55a   :  { %34724 = vmatprep.subr.mxu1 %v43529_v29  ;;  %34692 = vmatpush3.msra.mxu0 %v38500_v10 }
 0x55b   :  { %34693 = vmatprep.mubr.msk.f32.mxu0 %vm37987_vm1, %v43529_v29  ;;  %34725 = vmatpush3.msra.mxu1 %v38658_v63 }
 0x55c   :  { %34726 = vmatprep.mubr.msk.f32.mxu1 %vm37987_vm1, %v43529_v29  ;;  %34694 = vmatmul.mubr.f32.vlgmr.msra.gmra.mxu0 %v39556_v27 }
 0x55d   :  { %34707 = vmatprep.subr.mxu0 %v43529_v29  ;;  %34727 = vmatmul.mubr.f32.vlgmr.msra.gmra.mxu1 %v39556_v27 }
 0x55e   :  { %34740 = vmatprep.subr.mxu1 %v43529_v29  ;;  %34708 = vmatpush3.msra.mxu0 %v38553_v46 }
 0x55f   :  { %34741 = vmatpush3.msra.mxu1 %v38553_v46  ;;  %34709 = vmatprep.subr.mxu0 %v43529_v29 }
 0x560   :  { %34742 = vmatprep.subr.mxu1 %v43529_v29  ;;  %34710 = vmatpush3.msra.mxu0 %v38567_v37 }
 0x561   :  { %34743 = vmatpush3.msra.mxu1 %v38567_v37  ;;  %34711 = vmatprep.subr.mxu0 %v43529_v29 }
 0x562   :  { %34744 = vmatprep.subr.mxu1 %v43529_v29  ;;  %34712 = vmatpush3.msra.mxu0 %v38579_v60 }
 0x563   :  { %34745 = vmatpush3.msra.mxu1 %v38579_v60  ;;  %34713 = vmatprep.subr.mxu0 %v43529_v29 }
 0x564   :  { %34746 = vmatprep.subr.mxu1 %v43529_v29  ;;  %34714 = vmatpush3.msra.mxu0 %v38586_v28 }
 0x565   :  { %34715 = vmatprep.mubr.msk.f32.mxu0 %vm37987_vm1, %v43529_v29  ;;  %34747 = vmatpush3.msra.mxu1 %v38586_v28 }
 0x566   :  { %34748 = vmatprep.mubr.msk.f32.mxu1 %vm37987_vm1, %v43529_v29  ;;  %34716 = vmatmul.mubr.f32.vlgmr.msra.gmra.mxu0 %v39575_v7 }
 0x567   :  { %34729 = vmatprep.subr.mxu0 %v43529_v29  ;;  %34749 = vmatmul.mubr.f32.vlgmr.msra.gmra.mxu1 %v39567_v14 }
 0x568   :  { %34762 = vmatprep.subr.mxu1 %v43529_v29  ;;  %34730 = vmatpush3.msra.mxu0 %v38575_v34 }
 0x569   :  { %34763 = vmatpush3.msra.mxu1 %v38553_v46  ;;  %34731 = vmatprep.subr.mxu0 %v43529_v29 }
 0x56a   :  { %34764 = vmatprep.subr.mxu1 %v43529_v29  ;;  %34732 = vmatpush3.msra.mxu0 %v38589_v1 }
 0x56b   :  { %34765 = vmatpush3.msra.mxu1 %v38567_v37  ;;  %34733 = vmatprep.subr.mxu0 %v43529_v29 }
 0x56c   :  { %34766 = vmatprep.subr.mxu1 %v43529_v29  ;;  %34734 = vmatpush3.msra.mxu0 %v38599_v49 }
 0x56d   :  { %34767 = vmatpush3.msra.mxu1 %v38579_v60  ;;  %34735 = vmatprep.subr.mxu0 %v43529_v29 }
 0x56e   :  { %34768 = vmatprep.subr.mxu1 %v43529_v29  ;;  %34736 = vmatpush3.msra.mxu0 %v38610_v47 }
 0x56f   :  { %34737 = vmatprep.mubr.msk.f32.mxu0 %vm37987_vm1, %v43529_v29  ;;  %34769 = vmatpush3.msra.mxu1 %v38586_v28 }
 0x570   :  { %34770 = vmatprep.mubr.msk.f32.mxu1 %vm37987_vm1, %v43529_v29  ;;  %34738 = vmatmul.mubr.f32.vlgmr.msra.gmra.mxu0 %v39560_v52 }
 0x571   :  { %34751 = vmatprep.subr.mxu0 %v43529_v29  ;;  %34771 = vmatmul.mubr.f32.vlgmr.msra.gmra.mxu1 %v39556_v27 }
 0x572   :  { %34784 = vmatprep.subr.mxu1 %v43529_v29  ;;  %34752 = vmatpush3.msra.mxu0 %v38594_v57 }
 0x573   :  { %34785 = vmatpush3.msra.mxu1 %v38758_v15  ;;  %34753 = vmatprep.subr.mxu0 %v43529_v29 }
 0x574   :  { %34786 = vmatprep.subr.mxu1 %v43529_v29  ;;  %34754 = vmatpush3.msra.mxu0 %v38607_v17 }
 0x575   :  { %34787 = vmatpush3.msra.mxu1 %v38769_v13  ;;  %34755 = vmatprep.subr.mxu0 %v43529_v29 }
 0x576   :  { %34788 = vmatprep.subr.mxu1 %v43529_v29  ;;  %34756 = vmatpush3.msra.mxu0 %v38619_v44 }
 0x577   :  { %34789 = vmatpush3.msra.mxu1 %v38778_v11  ;;  %34757 = vmatprep.subr.mxu0 %v43529_v29 }
 0x578   :  { %34790 = vmatprep.subr.mxu1 %v43529_v29  ;;  %34758 = vmatpush3.msra.mxu0 %v38628_v42 }
 0x579   :  { %34759 = vmatprep.mubr.msk.f32.mxu0 %vm37987_vm1, %v43529_v29  ;;  %34791 = vmatpush3.msra.mxu1 %v38784_v39 }
 0x57a   :  { %34792 = vmatprep.mubr.msk.f32.mxu1 %vm37987_vm1, %v43529_v29  ;;  %34760 = vmatmul.mubr.f32.vlgmr.msra.gmra.mxu0 %v39556_v27 }
 0x57b   :  { %34773 = vmatprep.subr.mxu0 %v43529_v29  ;;  %34793 = vmatmul.mubr.f32.vlgmr.msra.gmra.mxu1 %v39556_v27 }
 0x57c   :  { %34806 = vmatprep.subr.mxu1 %v43529_v29  ;;  %34774 = vmatpush3.msra.mxu0 %v43575_v36 }
 0x57d   :  { %34807 = vmatpush3.msra.mxu1 %v43575_v36  ;;  %34775 = vmatprep.subr.mxu0 %v43529_v29 }
 0x57e   :  { %34808 = vmatprep.subr.mxu1 %v43529_v29  ;;  %34776 = vmatpush3.msra.mxu0 %v43576_v62 }
 0x57f   :  { %34809 = vmatpush3.msra.mxu1 %v43576_v62  ;;  %34777 = vmatprep.subr.mxu0 %v43529_v29 }
 0x580   :  { %34810 = vmatprep.subr.mxu1 %v43529_v29  ;;  %34778 = vmatpush3.msra.mxu0 %v43577_v2 }
 0x581   :  { %34811 = vmatpush3.msra.mxu1 %v43577_v2  ;;  %34779 = vmatprep.subr.mxu0 %v43529_v29 }
 0x582   :  { %34812 = vmatprep.subr.mxu1 %v43529_v29  ;;  %34780 = vmatpush3.msra.mxu0 %v43578_v43 }
 0x583   :  { %34781 = vmatprep.mubr.msk.f32.mxu0 %vm37987_vm1, %v43529_v29  ;;  %34813 = vmatpush3.msra.mxu1 %v43578_v43 }
 0x584   :  { %34814 = vmatprep.mubr.msk.f32.mxu1 %vm37987_vm1, %v43529_v29  ;;  %34782 = vmatmul.mubr.f32.vlgmr.msra.gmra.mxu0 %v39575_v7 }
 0x585   :  { %34795 = vmatprep.subr.mxu0 %v43529_v29  ;;  %34815 = vmatmul.mubr.f32.vlgmr.msra.gmra.mxu1 %v39567_v14 }
 0x586   :  { %34828 = vmatprep.subr.mxu1 %v43529_v29  ;;  %34796 = vmatpush3.msra.mxu0 %v43579_v54 }
 0x587   :  { %34829 = vmatpush3.msra.mxu1 %v43575_v36  ;;  %34797 = vmatprep.subr.mxu0 %v43529_v29 }
 0x588   :  { %34830 = vmatprep.subr.mxu1 %v43529_v29  ;;  %34798 = vmatpush3.msra.mxu0 %v43580_v3 }
 0x589   :  { %34831 = vmatpush3.msra.mxu1 %v43576_v62  ;;  %34799 = vmatprep.subr.mxu0 %v43529_v29 }
 0x58a   :  { %34832 = vmatprep.subr.mxu1 %v43529_v29  ;;  %34800 = vmatpush3.msra.mxu0 %v43581_v19 }
 0x58b   :  { %34833 = vmatpush3.msra.mxu1 %v43577_v2  ;;  %34801 = vmatprep.subr.mxu0 %v43529_v29 }
 0x58c   :  { %34834 = vmatprep.subr.mxu1 %v43529_v29  ;;  %34802 = vmatpush3.msra.mxu0 %v43582_v59 }
 0x58d   :  { %34803 = vmatprep.mubr.msk.f32.mxu0 %vm37987_vm1, %v43529_v29  ;;  %34835 = vmatpush3.msra.mxu1 %v43578_v43 }
 0x58e   :  { %34836 = vmatprep.mubr.msk.f32.mxu1 %vm37987_vm1, %v43529_v29  ;;  %34804 = vmatmul.mubr.f32.vlgmr.msra.gmra.mxu0 %v39560_v52 }
 0x58f   :  { %34817 = vmatprep.subr.mxu0 %v43529_v29  ;;  %34837 = vmatmul.mubr.f32.vlgmr.msra.gmra.mxu1 %v39556_v27 }
 0x590   :  { %34818 = vmatpush3.msra.mxu0 %v43583_v6  ;;  %34825 = vmatprep.mubr.msk.f32.mxu0 %vm37987_vm1, %v43529_v29 }
 0x591   :  { %34819 = vmatprep.subr.mxu0 %v43529_v29  ;;  %34850 = vmatprep.subr.mxu1 %v43529_v29 }
 0x592   :  { %34820 = vmatpush3.msra.mxu0 %v43584_v0  ;;  %34851 = vmatpush3.msra.mxu1 %v43585_v32 }
 0x593   :  { %34821 = vmatprep.subr.mxu0 %v43529_v29  ;;  %34852 = vmatprep.subr.mxu1 %v43529_v29 }
 0x594   :  { %34822 = vmatpush3.msra.mxu0 %v43586_v5  ;;  %34853 = vmatpush3.msra.mxu1 %v43587_v31 }
 0x595   :  { %34823 = vmatprep.subr.mxu0 %v43529_v29  ;;  %34854 = vmatprep.subr.mxu1 %v43529_v29 }
 0x596   :  { %34824 = vmatpush3.msra.mxu0 %v43588_v50  ;;  %34855 = vmatpush3.msra.mxu1 %v43589_v20 }
 0x597   :  { %34826 = vmatmul.mubr.f32.vlgmr.msra.gmra.mxu0 %v39556_v27  ;;  %34856 = vmatprep.subr.mxu1 %v43529_v29 }
 0x598   :  { %34857 = vmatpush3.msra.mxu1 %v43590_v12  ;;  %34839 = vmatprep.subr.mxu0 %v43529_v29 }
 0x599   :  { %34858 = vmatprep.mubr.msk.f32.mxu1 %vm37987_vm1, %v43529_v29  ;;  %34872 = vmatprep.subr.mxu1 %v43529_v29 }
 0x59a   :  { %34840 = vmatpush3.msra.mxu0 %v38414_v53  ;;  %34847 = vmatprep.mubr.msk.f32.mxu0 %vm37987_vm1, %v43529_v29 }
 0x59b   :  { %34841 = vmatprep.subr.mxu0 %v43529_v29 }
 0x59c   :  { %34842 = vmatpush3.msra.mxu0 %v38431_v61 }
 0x59d   :  { %34843 = vmatprep.subr.mxu0 %v43529_v29 }
 0x59e   :  { %34844 = vmatpush3.msra.mxu0 %v38443_v24 }
 0x59f   :  { %34845 = vmatprep.subr.mxu0 %v43529_v29 }
 0x5a0   :  { %34846 = vmatpush3.msra.mxu0 %v38453_v35 }
 0x5a1   :  { %34861 = vmatprep.subr.mxu0 %v43529_v29 }
 0x601   :  { %v7692_v25 = vpop.f32.mrf.mxu1 }
 0x603   :  { %v34662_v56 = vpop.f32.mrf.mxu1 }
 0x609   :  { %v7849_v55 = vpop.f32.mrf.mxu1 }
 0x60a   :  { %v7601_v18 = vpop.f32.mrf.mxu0 }
 0x60b   :  { %v34684_v30 = vpop.f32.mrf.mxu1  ;;  %v7693_v31 = vadd.f32 %v7692_v25, %v7601_v18 }
 0x60c   :  { %v34651_v33 = vpop.f32.mrf.mxu0 }
 0x612   :  { %v7772_v27 = vpop.f32.mrf.mxu0 }
 0x613   :  { %v8007_v52 = vpop.f32.mrf.mxu1  ;;  %v7773_v5 = vadd.f32 %v7772_v27, %v7693_v31 }
 0x614   :  { %v34673_v14 = vpop.f32.mrf.mxu0 }
 0x615   :  { %v34706_v4 = vpop.f32.mrf.mxu1  ;;  %v7850_v32 = vadd.f32 %v7849_v55, %v7773_v5 }
 0x61c   :  { %v7932_v7 = vpop.f32.mrf.mxu0 }
 0x61d   :  { %v8177_v12 = vpop.f32.mrf.mxu1  ;;  %v7933_v59 = vadd.f32 %v7932_v7, %v7850_v32 }
 0x61e   :  { %v34695_v20 = vpop.f32.mrf.mxu0 }
 0x61f   :  { %v34728_v50 = vpop.f32.mrf.mxu1  ;;  %v8008_v3 = vadd.f32 %v8007_v52, %v7933_v59 }
 0x621   :  { %v8982_v54 = vrot.slane %v8008_v3, 4 }
 0x623   :  { %v8984_v4 = vadd.f32 %v8982_v54, %v38860_v16 }
 0x625   :  { %v31751_v20 = vmul.f32 -1.442695, %v8984_v4 }
 0x626   :  { %v8086_v0 = vpop.f32.mrf.mxu0 }
 0x627   :  { %v8334_v6 = vpop.f32.mrf.mxu1  ;;  %v8178_v2 = vadd.f32 %v8177_v12, %v8086_v0  ;;  %37822 = vpow2.f32 %v31751_v20 }
 0x628   :  { %v34717_v19 = vpop.f32.mrf.mxu0 }
 0x629   :  { %v34750_v56 = vpop.f32.mrf.mxu1 }
 0x630   :  { %v8257_v30 = vpop.f32.mrf.mxu0 }
 0x631   :  { %v8492_v33 = vpop.f32.mrf.mxu1  ;;  %v8258_v62 = vadd.f32 %v8257_v30, %v8178_v2 }
 0x632   :  { %v34739_v43 = vpop.f32.mrf.mxu0 }
 0x633   :  { %v34772_v14 = vpop.f32.mrf.mxu1  ;;  %v8335_v50 = vadd.f32 %v8334_v6, %v8258_v62  ;;  %v39771_v62 = vld [vmem:[%s43220_s6] sm:$0x1] }
 0x634   :  { %v37823_v52 = vpop.eup %37822 }
 0x635   :  { %v8988_v2 = vadd.f32 1.0, %v37823_v52 }
 0x63a   :  { %v8417_v25 = vpop.f32.mrf.mxu0 }
 0x63b   :  { %v8418_v31 = vadd.f32 %v8417_v25, %v8335_v50  ;;  %v8662_v5 = vpop.f32.mrf.mxu1 }
 0x63c   :  { %v34761_v55 = vpop.f32.mrf.mxu0 }
 0x63d   :  { %v8493_v32 = vadd.f32 %v8492_v33, %v8418_v31  ;;  %v34794_v19 = vpop.f32.mrf.mxu1 }
 0x63f   :  { %v8992_v18 = vrot.slane %v8493_v32, 4 }
 0x641   :  { %v8994_v3 = vadd.f32 %v8992_v18, %v38865_v40 }
 0x643   :  { %v31752_v43 = vmul.f32 -1.442695, %v8994_v3 }
 0x644   :  { %v8571_v59 = vpop.f32.mrf.mxu0 }
 0x645   :  { %v8819_v27 = vpop.f32.mrf.mxu1  ;;  %37824 = vpow2.f32 %v31752_v43  ;;  %v8572_v54 = vadd.f32 %v39771_v62, %v8571_v59 }
 0x646   :  { %v34783_v0 = vpop.f32.mrf.mxu0  ;;  %37826 = vrcp.f32 %v8988_v2 }
 0x647   :  { %v34816_v12 = vpop.f32.mrf.mxu1  ;;  %v8663_v56 = vadd.f32 %v8662_v5, %v8572_v54  ;;  %v9009_v5 = vrot.slane %v39550_v9, 7 }
 0x64e   :  { %v8742_v6 = vpop.f32.mrf.mxu0 }
 0x64f   :  { %v8977_v7 = vpop.f32.mrf.mxu1  ;;  %v8743_v14 = vadd.f32 %v8742_v6, %v8663_v56 }
 0x650   :  { %v34805_v30 = vpop.f32.mrf.mxu0 }
 0x651   :  { %v34838_v33 = vpop.f32.mrf.mxu1  ;;  %v8820_v4 = vadd.f32 %v8819_v27, %v8743_v14  ;;  %v43591_v14 = vld [vmem:[#allocation67_spill] sm:$0xff] }
 0x652   :  { %v37825_v20 = vpop.eup %37824 }
 0x653   :  { %v8998_v55 = vadd.f32 1.0, %v37825_v20  ;;  %v37827_v18 = vpop.eup %37826  ;;  %v43593_v20 = vld [vmem:[#allocation70_spill] sm:$0xff] }
 0x655   :  { %37828 = vrcp.f32 %v8998_v55  ;;  %v43597_v55 = vld [vmem:[#allocation75_spill] sm:$0xff] }
 0x657   :  { %v8902_v50 = vpop.f32.mrf.mxu0 }
 0x658   :  { %v8903_v25 = vadd.f32 %v8902_v50, %v8820_v4  ;;  %v43592_v4 = vld [vmem:[#allocation69_spill] sm:$0xff]  ;;  %v43594_v50 = vld [vmem:[#allocation68_spill] sm:$0xff] }
 0x659   :  { %v34827_v31 = vpop.f32.mrf.mxu0 }
 0x65a   :  { %v8978_v32 = vadd.f32 %v8977_v7, %v8903_v25  ;;  %v43595_v25 = vld [vmem:[#allocation71_spill] sm:$0xff]  ;;  %v43596_v31 = vld [vmem:[#allocation73_spill] sm:$0xff] }
 0x65c   :  { %v9002_v19 = vrot.slane %v8978_v32, 4  ;;  %v43598_v32 = vld [vmem:[#allocation72_spill] sm:$0xff] }
 0x65e   :  { %v9004_v3 = vmul.f32 %v37827_v18, %v9002_v19  ;;  %v43599_v19 = vld [vmem:[#allocation74_spill] sm:$0xff] }
 0x65f   :  { %v43600_v18 = vld [vmem:[#allocation54_spill] sm:$0xff] }
 0x660   :  { %v9005_v59 = vadd.f32 %v9004_v3, %v38870_v58  ;;  %v43601_v3 = vld [vmem:[#allocation76_spill] sm:$0xff] }
 0x662   :  { %37830 = vtanh.f32 %v9005_v59  ;;  %v37829_v43 = vpop.eup %37828  ;;  %v43602_v59 = vld [vmem:[#allocation55_spill] sm:$0xff] }
 0x663   :  { %v9007_v0 = vsub.f32 1.0, %v37829_v43  ;;  %v9011_v52 = vmul.f32 %v37829_v43, %v9009_v5  ;;  %v43603_v43 = vld [vmem:[#allocation77_spill] sm:$0xff]  ;;  %v43604_v5 = vld [vmem:[#allocation56_spill] sm:$0xff] }
 0x66f   :  { %v37831_v12 = vpop.eup %37830 }
 0x670   :  { %v9008_v27 = vmul.f32 %v37831_v12, %v9007_v0  ;;  %v43605_v0 = vld [vmem:[#allocation57_spill] sm:$0xff] }
 0x672   :  { %v39776_v2 = vadd.f32 %v9011_v52, %v9008_v27 }
 0x674   :  { %9014 = vst.msk [vmem:[#allocation2] sm:$0x10] %vm9013_vm6, %v39776_v2  ;;  %v9016_v54 = vrot.slane %v39776_v2, 4 }
 0x676   :  { %v9017_v6 = vsel %vm91_vm0, %v9016_v54, 0 }
 0x677   :  { %v39782_v7 = vand.u32 4294901760, %v9017_v6 }
 0x679   :  { %34859 = vmatmul.mubr.f32.vlgmr.msra.gmra.mxu1 %v39782_v7  ;;  %v39786_v9 = vsub.f32 %v9017_v6, %v39782_v7 }
 0x67a   :  { %34873 = vmatpush3.msra.mxu1 %v38414_v53  ;;  %34880 = vmatprep.mubr.msk.f32.mxu1 %vm37987_vm1, %v43529_v29 }
 0x67b   :  { %34874 = vmatprep.subr.mxu1 %v43529_v29  ;;  %v39793_v56 = vand.u32 4294901760, %v39786_v9 }
 0x67c   :  { %34875 = vmatpush3.msra.mxu1 %v38431_v61 }
 0x67d   :  { %34876 = vmatprep.subr.mxu1 %v43529_v29  ;;  %v9091_v30 = vsub.f32 %v39786_v9, %v39793_v56 }
 0x67e   :  { %34877 = vmatpush3.msra.mxu1 %v38443_v24 }
 0x67f   :  { %34878 = vmatprep.subr.mxu1 %v43529_v29  ;;  %v39801_v33 = vand.u32 4294901760, %v9091_v30 }
 0x680   :  { %34879 = vmatpush3.msra.mxu1 %v38453_v35 }
 0x681   :  { %34881 = vmatmul.mubr.f32.vlgmr.msra.gmra.mxu1 %v39793_v56  ;;  %34894 = vmatprep.subr.mxu1 %v43529_v29 }
 0x682   :  { %34848 = vmatmul.mubr.f32.vlgmr.msra.gmra.mxu0 %v39801_v33  ;;  %34895 = vmatpush3.msra.mxu1 %v38414_v53 }
 0x683   :  { %34862 = vmatpush3.msra.mxu0 %v38439_v21  ;;  %34896 = vmatprep.subr.mxu1 %v43529_v29 }
 0x684   :  { %34863 = vmatprep.subr.mxu0 %v43529_v29  ;;  %34897 = vmatpush3.msra.mxu1 %v38431_v61 }
 0x685   :  { %34864 = vmatpush3.msra.mxu0 %v38456_v48  ;;  %34898 = vmatprep.subr.mxu1 %v43529_v29 }
 0x686   :  { %34865 = vmatprep.subr.mxu0 %v43529_v29  ;;  %34899 = vmatpush3.msra.mxu1 %v38443_v24 }
 0x687   :  { %34866 = vmatpush3.msra.mxu0 %v38466_v51  ;;  %34900 = vmatprep.subr.mxu1 %v43529_v29 }
 0x688   :  { %34867 = vmatprep.subr.mxu0 %v43529_v29  ;;  %34869 = vmatprep.mubr.msk.f32.mxu0 %vm37987_vm1, %v43529_v29 }
 0x689   :  { %34868 = vmatpush3.msra.mxu0 %v38480_v23  ;;  %34901 = vmatpush3.msra.mxu1 %v38453_v35 }
 0x68a   :  { %34902 = vmatprep.mubr.msk.f32.mxu1 %vm37987_vm1, %v43529_v29  ;;  %34870 = vmatmul.mubr.f32.vlgmr.msra.gmra.mxu0 %v39786_v9 }
 0x68b   :  { %34883 = vmatprep.subr.mxu0 %v43529_v29  ;;  %34903 = vmatmul.mubr.f32.vlgmr.msra.gmra.mxu1 %v39782_v7 }
 0x68c   :  { %34916 = vmatprep.subr.mxu1 %v43529_v29  ;;  %34884 = vmatpush3.msra.mxu0 %v38461_v8 }
 0x68d   :  { %34917 = vmatpush3.msra.mxu1 %v38632_v45  ;;  %34885 = vmatprep.subr.mxu0 %v43529_v29 }
 0x68e   :  { %34918 = vmatprep.subr.mxu1 %v43529_v29  ;;  %34886 = vmatpush3.msra.mxu0 %v38477_v22 }
 0x68f   :  { %34919 = vmatpush3.msra.mxu1 %v38643_v41  ;;  %34887 = vmatprep.subr.mxu0 %v43529_v29 }
 0x690   :  { %34920 = vmatprep.subr.mxu1 %v43529_v29  ;;  %34888 = vmatpush3.msra.mxu0 %v38489_v26 }
 0x691   :  { %34921 = vmatpush3.msra.mxu1 %v38652_v38  ;;  %34889 = vmatprep.subr.mxu0 %v43529_v29 }
 0x692   :  { %34922 = vmatprep.subr.mxu1 %v43529_v29  ;;  %34890 = vmatpush3.msra.mxu0 %v38500_v10 }
 0x693   :  { %34891 = vmatprep.mubr.msk.f32.mxu0 %vm37987_vm1, %v43529_v29  ;;  %34923 = vmatpush3.msra.mxu1 %v38658_v63 }
 0x694   :  { %34924 = vmatprep.mubr.msk.f32.mxu1 %vm37987_vm1, %v43529_v29  ;;  %34892 = vmatmul.mubr.f32.vlgmr.msra.gmra.mxu0 %v39782_v7 }
 0x695   :  { %34905 = vmatprep.subr.mxu0 %v43529_v29  ;;  %34925 = vmatmul.mubr.f32.vlgmr.msra.gmra.mxu1 %v39782_v7 }
 0x696   :  { %34938 = vmatprep.subr.mxu1 %v43529_v29  ;;  %34906 = vmatpush3.msra.mxu0 %v38553_v46 }
 0x697   :  { %34939 = vmatpush3.msra.mxu1 %v38553_v46  ;;  %34907 = vmatprep.subr.mxu0 %v43529_v29 }
 0x698   :  { %34940 = vmatprep.subr.mxu1 %v43529_v29  ;;  %34908 = vmatpush3.msra.mxu0 %v38567_v37 }
 0x699   :  { %34941 = vmatpush3.msra.mxu1 %v38567_v37  ;;  %34909 = vmatprep.subr.mxu0 %v43529_v29 }
 0x69a   :  { %34942 = vmatprep.subr.mxu1 %v43529_v29  ;;  %34910 = vmatpush3.msra.mxu0 %v38579_v60 }
 0x69b   :  { %34943 = vmatpush3.msra.mxu1 %v38579_v60  ;;  %34911 = vmatprep.subr.mxu0 %v43529_v29 }
 0x69c   :  { %34944 = vmatprep.subr.mxu1 %v43529_v29  ;;  %34912 = vmatpush3.msra.mxu0 %v38586_v28 }
 0x69d   :  { %34913 = vmatprep.mubr.msk.f32.mxu0 %vm37987_vm1, %v43529_v29  ;;  %34945 = vmatpush3.msra.mxu1 %v38586_v28 }
 0x69e   :  { %34946 = vmatprep.mubr.msk.f32.mxu1 %vm37987_vm1, %v43529_v29  ;;  %34914 = vmatmul.mubr.f32.vlgmr.msra.gmra.mxu0 %v39801_v33 }
 0x69f   :  { %34927 = vmatprep.subr.mxu0 %v43529_v29  ;;  %34947 = vmatmul.mubr.f32.vlgmr.msra.gmra.mxu1 %v39793_v56 }
 0x6a0   :  { %34960 = vmatprep.subr.mxu1 %v43529_v29  ;;  %34928 = vmatpush3.msra.mxu0 %v38575_v34 }
 0x6a1   :  { %34961 = vmatpush3.msra.mxu1 %v38553_v46  ;;  %34929 = vmatprep.subr.mxu0 %v43529_v29 }
 0x6a2   :  { %34962 = vmatprep.subr.mxu1 %v43529_v29  ;;  %34930 = vmatpush3.msra.mxu0 %v38589_v1 }
 0x6a3   :  { %34963 = vmatpush3.msra.mxu1 %v38567_v37  ;;  %34931 = vmatprep.subr.mxu0 %v43529_v29 }
 0x6a4   :  { %34964 = vmatprep.subr.mxu1 %v43529_v29  ;;  %34932 = vmatpush3.msra.mxu0 %v38599_v49 }
 0x6a5   :  { %34965 = vmatpush3.msra.mxu1 %v38579_v60  ;;  %34933 = vmatprep.subr.mxu0 %v43529_v29 }
 0x6a6   :  { %34966 = vmatprep.subr.mxu1 %v43529_v29  ;;  %34934 = vmatpush3.msra.mxu0 %v38610_v47 }
 0x6a7   :  { %34935 = vmatprep.mubr.msk.f32.mxu0 %vm37987_vm1, %v43529_v29  ;;  %34967 = vmatpush3.msra.mxu1 %v38586_v28 }
 0x6a8   :  { %34968 = vmatprep.mubr.msk.f32.mxu1 %vm37987_vm1, %v43529_v29  ;;  %34936 = vmatmul.mubr.f32.vlgmr.msra.gmra.mxu0 %v39786_v9 }
 0x6a9   :  { %34949 = vmatprep.subr.mxu0 %v43529_v29  ;;  %34969 = vmatmul.mubr.f32.vlgmr.msra.gmra.mxu1 %v39782_v7 }
 0x6aa   :  { %34982 = vmatprep.subr.mxu1 %v43529_v29  ;;  %34950 = vmatpush3.msra.mxu0 %v38594_v57 }
 0x6ab   :  { %34983 = vmatpush3.msra.mxu1 %v38758_v15  ;;  %34951 = vmatprep.subr.mxu0 %v43529_v29 }
 0x6ac   :  { %34984 = vmatprep.subr.mxu1 %v43529_v29  ;;  %34952 = vmatpush3.msra.mxu0 %v38607_v17 }
 0x6ad   :  { %34985 = vmatpush3.msra.mxu1 %v38769_v13  ;;  %34953 = vmatprep.subr.mxu0 %v43529_v29 }
 0x6ae   :  { %34986 = vmatprep.subr.mxu1 %v43529_v29  ;;  %34954 = vmatpush3.msra.mxu0 %v38619_v44 }
 0x6af   :  { %34987 = vmatpush3.msra.mxu1 %v38778_v11  ;;  %34955 = vmatprep.subr.mxu0 %v43529_v29 }
 0x6b0   :  { %34988 = vmatprep.subr.mxu1 %v43529_v29  ;;  %34956 = vmatpush3.msra.mxu0 %v38628_v42 }
 0x6b1   :  { %34957 = vmatprep.mubr.msk.f32.mxu0 %vm37987_vm1, %v43529_v29  ;;  %34989 = vmatpush3.msra.mxu1 %v38784_v39 }
 0x6b2   :  { %34990 = vmatprep.mubr.msk.f32.mxu1 %vm37987_vm1, %v43529_v29  ;;  %34958 = vmatmul.mubr.f32.vlgmr.msra.gmra.mxu0 %v39782_v7 }
 0x6b3   :  { %34971 = vmatprep.subr.mxu0 %v43529_v29  ;;  %34991 = vmatmul.mubr.f32.vlgmr.msra.gmra.mxu1 %v39782_v7 }
 0x6b4   :  { %35004 = vmatprep.subr.mxu1 %v43529_v29  ;;  %34972 = vmatpush3.msra.mxu0 %v43575_v36 }
 0x6b5   :  { %35005 = vmatpush3.msra.mxu1 %v43575_v36  ;;  %34973 = vmatprep.subr.mxu0 %v43529_v29 }
 0x6b6   :  { %35006 = vmatprep.subr.mxu1 %v43529_v29  ;;  %34974 = vmatpush3.msra.mxu0 %v43591_v14 }
 0x6b7   :  { %35007 = vmatpush3.msra.mxu1 %v43591_v14  ;;  %34975 = vmatprep.subr.mxu0 %v43529_v29 }
 0x6b8   :  { %35008 = vmatprep.subr.mxu1 %v43529_v29  ;;  %34976 = vmatpush3.msra.mxu0 %v43592_v4 }
 0x6b9   :  { %35009 = vmatpush3.msra.mxu1 %v43592_v4  ;;  %34977 = vmatprep.subr.mxu0 %v43529_v29 }
 0x6ba   :  { %35010 = vmatprep.subr.mxu1 %v43529_v29  ;;  %34978 = vmatpush3.msra.mxu0 %v43593_v20 }
 0x6bb   :  { %34979 = vmatprep.mubr.msk.f32.mxu0 %vm37987_vm1, %v43529_v29  ;;  %35011 = vmatpush3.msra.mxu1 %v43593_v20 }
 0x6bc   :  { %35012 = vmatprep.mubr.msk.f32.mxu1 %vm37987_vm1, %v43529_v29  ;;  %34980 = vmatmul.mubr.f32.vlgmr.msra.gmra.mxu0 %v39801_v33 }
 0x6bd   :  { %34993 = vmatprep.subr.mxu0 %v43529_v29  ;;  %35013 = vmatmul.mubr.f32.vlgmr.msra.gmra.mxu1 %v39793_v56 }
 0x6be   :  { %35026 = vmatprep.subr.mxu1 %v43529_v29  ;;  %34994 = vmatpush3.msra.mxu0 %v43594_v50 }
 0x6bf   :  { %35027 = vmatpush3.msra.mxu1 %v43575_v36  ;;  %34995 = vmatprep.subr.mxu0 %v43529_v29 }
 0x6c0   :  { %35028 = vmatprep.subr.mxu1 %v43529_v29  ;;  %34996 = vmatpush3.msra.mxu0 %v43595_v25 }
 0x6c1   :  { %35029 = vmatpush3.msra.mxu1 %v43591_v14  ;;  %34997 = vmatprep.subr.mxu0 %v43529_v29 }
 0x6c2   :  { %35030 = vmatprep.subr.mxu1 %v43529_v29  ;;  %34998 = vmatpush3.msra.mxu0 %v43596_v31 }
 0x6c3   :  { %35031 = vmatpush3.msra.mxu1 %v43592_v4  ;;  %34999 = vmatprep.subr.mxu0 %v43529_v29 }
 0x6c4   :  { %35032 = vmatprep.subr.mxu1 %v43529_v29  ;;  %35000 = vmatpush3.msra.mxu0 %v43597_v55 }
 0x6c5   :  { %35001 = vmatprep.mubr.msk.f32.mxu0 %vm37987_vm1, %v43529_v29  ;;  %35033 = vmatpush3.msra.mxu1 %v43593_v20 }
 0x6c6   :  { %35034 = vmatprep.mubr.msk.f32.mxu1 %vm37987_vm1, %v43529_v29  ;;  %35002 = vmatmul.mubr.f32.vlgmr.msra.gmra.mxu0 %v39786_v9 }
 0x6c7   :  { %35015 = vmatprep.subr.mxu0 %v43529_v29  ;;  %35035 = vmatmul.mubr.f32.vlgmr.msra.gmra.mxu1 %v39782_v7 }
 0x6c8   :  { %35016 = vmatpush3.msra.mxu0 %v43598_v32  ;;  %35023 = vmatprep.mubr.msk.f32.mxu0 %vm37987_vm1, %v43529_v29 }
 0x6c9   :  { %35017 = vmatprep.subr.mxu0 %v43529_v29  ;;  %35048 = vmatprep.subr.mxu1 %v43529_v29 }
 0x6ca   :  { %35018 = vmatpush3.msra.mxu0 %v43599_v19  ;;  %35049 = vmatpush3.msra.mxu1 %v43600_v18 }
 0x6cb   :  { %35019 = vmatprep.subr.mxu0 %v43529_v29  ;;  %35050 = vmatprep.subr.mxu1 %v43529_v29 }
 0x6cc   :  { %35020 = vmatpush3.msra.mxu0 %v43601_v3  ;;  %35051 = vmatpush3.msra.mxu1 %v43602_v59 }
 0x6cd   :  { %35021 = vmatprep.subr.mxu0 %v43529_v29  ;;  %35052 = vmatprep.subr.mxu1 %v43529_v29 }
 0x6ce   :  { %35022 = vmatpush3.msra.mxu0 %v43603_v43  ;;  %35053 = vmatpush3.msra.mxu1 %v43604_v5 }
 0x6cf   :  { %35024 = vmatmul.mubr.f32.vlgmr.msra.gmra.mxu0 %v39782_v7  ;;  %35054 = vmatprep.subr.mxu1 %v43529_v29 }
 0x6d0   :  { %35055 = vmatpush3.msra.mxu1 %v43605_v0  ;;  %35037 = vmatprep.subr.mxu0 %v43529_v29 }
 0x6d1   :  { %35056 = vmatprep.mubr.msk.f32.mxu1 %vm37987_vm1, %v43529_v29  ;;  %35070 = vmatprep.subr.mxu1 %v43529_v29 }
 0x6d2   :  { %35038 = vmatpush3.msra.mxu0 %v38414_v53  ;;  %35045 = vmatprep.mubr.msk.f32.mxu0 %vm37987_vm1, %v43529_v29 }
 0x6d3   :  { %35039 = vmatprep.subr.mxu0 %v43529_v29 }
 0x6d4   :  { %35040 = vmatpush3.msra.mxu0 %v38431_v61 }
 0x6d5   :  { %35041 = vmatprep.subr.mxu0 %v43529_v29 }
 0x6d6   :  { %35042 = vmatpush3.msra.mxu0 %v38443_v24 }
 0x6d7   :  { %35043 = vmatprep.subr.mxu0 %v43529_v29 }
 0x6d8   :  { %35044 = vmatpush3.msra.mxu0 %v38453_v35 }
 0x6d9   :  { %35059 = vmatprep.subr.mxu0 %v43529_v29 }
 0x739   :  { %v9185_v12 = vpop.f32.mrf.mxu1 }
 0x73b   :  { %v34860_v52 = vpop.f32.mrf.mxu1 }
 0x741   :  { %v9342_v27 = vpop.f32.mrf.mxu1 }
 0x742   :  { %v9094_v54 = vpop.f32.mrf.mxu0 }
 0x743   :  { %v34882_v6 = vpop.f32.mrf.mxu1  ;;  %v9186_v3 = vadd.f32 %v9185_v12, %v9094_v54 }
 0x744   :  { %v34849_v7 = vpop.f32.mrf.mxu0 }
 0x74a   :  { %v9265_v9 = vpop.f32.mrf.mxu0 }
 0x74b   :  { %v9500_v56 = vpop.f32.mrf.mxu1  ;;  %v9266_v18 = vadd.f32 %v9265_v9, %v9186_v3 }
 0x74c   :  { %v34871_v30 = vpop.f32.mrf.mxu0 }
 0x74d   :  { %v34904_v33 = vpop.f32.mrf.mxu1  ;;  %v9343_v19 = vadd.f32 %v9342_v27, %v9266_v18 }
 0x754   :  { %v9425_v0 = vpop.f32.mrf.mxu0 }
 0x755   :  { %v9670_v5 = vpop.f32.mrf.mxu1  ;;  %v9426_v31 = vadd.f32 %v9425_v0, %v9343_v19 }
 0x756   :  { %v34893_v43 = vpop.f32.mrf.mxu0 }
 0x757   :  { %v34926_v59 = vpop.f32.mrf.mxu1  ;;  %v9501_v50 = vadd.f32 %v9500_v56, %v9426_v31 }
 0x759   :  { %v10475_v20 = vrot.slane %v9501_v50, 3 }
 0x75b   :  { %v10477_v33 = vadd.f32 %v10475_v20, %v38860_v16 }
 0x75d   :  { %v31753_v43 = vmul.f32 -1.442695, %v10477_v33 }
 0x75e   :  { %v9579_v32 = vpop.f32.mrf.mxu0 }
 0x75f   :  { %v9827_v55 = vpop.f32.mrf.mxu1  ;;  %v9671_v14 = vadd.f32 %v9670_v5, %v9579_v32  ;;  %37832 = vpow2.f32 %v31753_v43 }
 0x760   :  { %v34915_v25 = vpop.f32.mrf.mxu0 }
 0x761   :  { %v34948_v52 = vpop.f32.mrf.mxu1 }
 0x768   :  { %v9750_v6 = vpop.f32.mrf.mxu0 }
 0x769   :  { %v9985_v7 = vpop.f32.mrf.mxu1  ;;  %v9751_v36 = vadd.f32 %v9750_v6, %v9671_v14 }
 0x76a   :  { %v34937_v4 = vpop.f32.mrf.mxu0 }
 0x76b   :  { %v34970_v30 = vpop.f32.mrf.mxu1  ;;  %v9828_v59 = vadd.f32 %v9827_v55, %v9751_v36 }
 0x76c   :  { %v37833_v9 = vpop.eup %37832 }
 0x76d   :  { %v10481_v14 = vadd.f32 1.0, %v37833_v9 }
 0x772   :  { %v9910_v12 = vpop.f32.mrf.mxu0 }
 0x773   :  { %v9911_v3 = vadd.f32 %v9910_v12, %v9828_v59  ;;  %v10155_v18 = vpop.f32.mrf.mxu1 }
 0x774   :  { %v34959_v27 = vpop.f32.mrf.mxu0 }
 0x775   :  { %v9986_v19 = vadd.f32 %v9985_v7, %v9911_v3  ;;  %v34992_v25 = vpop.f32.mrf.mxu1 }
 0x777   :  { %v10485_v0 = vrot.slane %v9986_v19, 3 }
 0x779   :  { %v10487_v50 = vadd.f32 %v10485_v0, %v38865_v40 }
 0x77b   :  { %v31754_v4 = vmul.f32 -1.442695, %v10487_v50 }
 0x77c   :  { %v10064_v31 = vpop.f32.mrf.mxu0 }
 0x77d   :  { %v10312_v54 = vpop.f32.mrf.mxu1  ;;  %37834 = vpow2.f32 %v31754_v4  ;;  %v10065_v36 = vadd.f32 %v39771_v62, %v10064_v31 }
 0x77e   :  { %v34981_v32 = vpop.f32.mrf.mxu0  ;;  %37836 = vrcp.f32 %v10481_v14 }
 0x77f   :  { %v35014_v5 = vpop.f32.mrf.mxu1  ;;  %v10156_v56 = vadd.f32 %v10155_v18, %v10065_v36  ;;  %v10502_v18 = vrot.slane %v39776_v2, 7 }
 0x786   :  { %v10235_v20 = vpop.f32.mrf.mxu0 }
 0x787   :  { %v10470_v55 = vpop.f32.mrf.mxu1  ;;  %v10236_v7 = vadd.f32 %v10235_v20, %v10156_v56 }
 0x788   :  { %v35003_v52 = vpop.f32.mrf.mxu0 }
 0x789   :  { %v35036_v6 = vpop.f32.mrf.mxu1  ;;  %v10313_v30 = vadd.f32 %v10312_v54, %v10236_v7  ;;  %v43606_v52 = vld [vmem:[#allocation66_spill] sm:$0xff]  ;;  %v43608_v7 = vld [vmem:[#allocation69_spill] sm:$0xff] }
 0x78a   :  { %v37835_v33 = vpop.eup %37834  ;;  %v43607_v6 = vld [vmem:[#allocation67_spill] sm:$0xff] }
 0x78b   :  { %v10491_v3 = vadd.f32 1.0, %v37835_v33  ;;  %v37837_v25 = vpop.eup %37836  ;;  %v43610_v33 = vld [vmem:[#allocation68_spill] sm:$0xff] }
 0x78d   :  { %37838 = vrcp.f32 %v10491_v3  ;;  %v43614_v3 = vld [vmem:[#allocation72_spill] sm:$0xff] }
 0x78f   :  { %v10395_v43 = vpop.f32.mrf.mxu0 }
 0x790   :  { %v10396_v59 = vadd.f32 %v10395_v43, %v10313_v30  ;;  %v43609_v30 = vld [vmem:[#allocation70_spill] sm:$0xff]  ;;  %v43611_v43 = vld [vmem:[#allocation71_spill] sm:$0xff] }
 0x791   :  { %v35025_v12 = vpop.f32.mrf.mxu0 }
 0x792   :  { %v10471_v27 = vadd.f32 %v10470_v55, %v10396_v59  ;;  %v43612_v59 = vld [vmem:[#allocation73_spill] sm:$0xff]  ;;  %v43613_v12 = vld [vmem:[#allocation75_spill] sm:$0xff] }
 0x794   :  { %v10495_v19 = vrot.slane %v10471_v27, 3  ;;  %v43615_v27 = vld [vmem:[#allocation74_spill] sm:$0xff] }
 0x796   :  { %v10497_v0 = vmul.f32 %v37837_v25, %v10495_v19  ;;  %v43616_v19 = vld [vmem:[#allocation54_spill] sm:$0xff]  ;;  %v43617_v25 = vld [vmem:[#allocation76_spill] sm:$0xff] }
 0x798   :  { %v10498_v62 = vadd.f32 %v10497_v0, %v38870_v58  ;;  %v43618_v0 = vld [vmem:[#allocation55_spill] sm:$0xff] }
 0x79a   :  { %37840 = vtanh.f32 %v10498_v62  ;;  %v37839_v50 = vpop.eup %37838  ;;  %v43619_v62 = vld [vmem:[#allocation77_spill] sm:$0xff] }
 0x79b   :  { %v10500_v31 = vsub.f32 1.0, %v37839_v50  ;;  %v10504_v32 = vmul.f32 %v37839_v50, %v10502_v18  ;;  %v43620_v50 = vld [vmem:[#allocation56_spill] sm:$0xff]  ;;  %v43621_v18 = vld [vmem:[#allocation57_spill] sm:$0xff] }
 0x7a7   :  { %v37841_v4 = vpop.eup %37840 }
 0x7a8   :  { %v10501_v54 = vmul.f32 %v37841_v4, %v10500_v31 }
 0x7aa   :  { %v39997_v5 = vadd.f32 %v10504_v32, %v10501_v54 }
 0x7ac   :  { %10507 = vst.msk [vmem:[#allocation2] sm:$0x20] %vm10506_vm7, %v39997_v5  ;;  %v10509_v9 = vrot.slane %v39997_v5, 5 }
 0x7ae   :  { %v10510_v14 = vsel %vm91_vm0, %v10509_v9, 0 }
 0x7af   :  { %v40003_v36 = vand.u32 4294901760, %v10510_v14 }
 0x7b1   :  { %35057 = vmatmul.mubr.f32.vlgmr.msra.gmra.mxu1 %v40003_v36  ;;  %v40007_v2 = vsub.f32 %v10510_v14, %v40003_v36 }
 0x7b2   :  { %35071 = vmatpush3.msra.mxu1 %v38414_v53  ;;  %35078 = vmatprep.mubr.msk.f32.mxu1 %vm37987_vm1, %v43529_v29 }
 0x7b3   :  { %35072 = vmatprep.subr.mxu1 %v43529_v29  ;;  %v40014_v20 = vand.u32 4294901760, %v40007_v2 }
 0x7b4   :  { %35073 = vmatpush3.msra.mxu1 %v38431_v61 }
 0x7b5   :  { %35074 = vmatprep.subr.mxu1 %v43529_v29  ;;  %v10584_v55 = vsub.f32 %v40007_v2, %v40014_v20 }
 0x7b6   :  { %35075 = vmatpush3.msra.mxu1 %v38443_v24 }
 0x7b7   :  { %35076 = vmatprep.subr.mxu1 %v43529_v29  ;;  %v40022_v56 = vand.u32 4294901760, %v10584_v55 }
 0x7b8   :  { %35077 = vmatpush3.msra.mxu1 %v38453_v35 }
 0x7b9   :  { %35079 = vmatmul.mubr.f32.vlgmr.msra.gmra.mxu1 %v40014_v20  ;;  %35092 = vmatprep.subr.mxu1 %v43529_v29 }
 0x7ba   :  { %35046 = vmatmul.mubr.f32.vlgmr.msra.gmra.mxu0 %v40022_v56  ;;  %35093 = vmatpush3.msra.mxu1 %v38414_v53 }
 0x7bb   :  { %35060 = vmatpush3.msra.mxu0 %v38439_v21  ;;  %35094 = vmatprep.subr.mxu1 %v43529_v29 }
 0x7bc   :  { %35061 = vmatprep.subr.mxu0 %v43529_v29  ;;  %35095 = vmatpush3.msra.mxu1 %v38431_v61 }
 0x7bd   :  { %35062 = vmatpush3.msra.mxu0 %v38456_v48  ;;  %35096 = vmatprep.subr.mxu1 %v43529_v29 }
 0x7be   :  { %35063 = vmatprep.subr.mxu0 %v43529_v29  ;;  %35097 = vmatpush3.msra.mxu1 %v38443_v24 }
 0x7bf   :  { %35064 = vmatpush3.msra.mxu0 %v38466_v51  ;;  %35098 = vmatprep.subr.mxu1 %v43529_v29 }
 0x7c0   :  { %35065 = vmatprep.subr.mxu0 %v43529_v29  ;;  %35067 = vmatprep.mubr.msk.f32.mxu0 %vm37987_vm1, %v43529_v29 }
 0x7c1   :  { %35066 = vmatpush3.msra.mxu0 %v38480_v23  ;;  %35099 = vmatpush3.msra.mxu1 %v38453_v35 }
 0x7c2   :  { %35100 = vmatprep.mubr.msk.f32.mxu1 %vm37987_vm1, %v43529_v29  ;;  %35068 = vmatmul.mubr.f32.vlgmr.msra.gmra.mxu0 %v40007_v2 }
 0x7c3   :  { %35081 = vmatprep.subr.mxu0 %v43529_v29  ;;  %35101 = vmatmul.mubr.f32.vlgmr.msra.gmra.mxu1 %v40003_v36 }
 0x7c4   :  { %35114 = vmatprep.subr.mxu1 %v43529_v29  ;;  %35082 = vmatpush3.msra.mxu0 %v38461_v8 }
 0x7c5   :  { %35115 = vmatpush3.msra.mxu1 %v38632_v45  ;;  %35083 = vmatprep.subr.mxu0 %v43529_v29 }
 0x7c6   :  { %35116 = vmatprep.subr.mxu1 %v43529_v29  ;;  %35084 = vmatpush3.msra.mxu0 %v38477_v22 }
 0x7c7   :  { %35117 = vmatpush3.msra.mxu1 %v38643_v41  ;;  %35085 = vmatprep.subr.mxu0 %v43529_v29 }
 0x7c8   :  { %35118 = vmatprep.subr.mxu1 %v43529_v29  ;;  %35086 = vmatpush3.msra.mxu0 %v38489_v26 }
 0x7c9   :  { %35119 = vmatpush3.msra.mxu1 %v38652_v38  ;;  %35087 = vmatprep.subr.mxu0 %v43529_v29 }
 0x7ca   :  { %35120 = vmatprep.subr.mxu1 %v43529_v29  ;;  %35088 = vmatpush3.msra.mxu0 %v38500_v10 }
 0x7cb   :  { %35089 = vmatprep.mubr.msk.f32.mxu0 %vm37987_vm1, %v43529_v29  ;;  %35121 = vmatpush3.msra.mxu1 %v38658_v63 }
 0x7cc   :  { %35122 = vmatprep.mubr.msk.f32.mxu1 %vm37987_vm1, %v43529_v29  ;;  %35090 = vmatmul.mubr.f32.vlgmr.msra.gmra.mxu0 %v40003_v36 }
 0x7cd   :  { %35103 = vmatprep.subr.mxu0 %v43529_v29  ;;  %35123 = vmatmul.mubr.f32.vlgmr.msra.gmra.mxu1 %v40003_v36 }
 0x7ce   :  { %35136 = vmatprep.subr.mxu1 %v43529_v29  ;;  %35104 = vmatpush3.msra.mxu0 %v38553_v46 }
 0x7cf   :  { %35137 = vmatpush3.msra.mxu1 %v38553_v46  ;;  %35105 = vmatprep.subr.mxu0 %v43529_v29 }
 0x7d0   :  { %35138 = vmatprep.subr.mxu1 %v43529_v29  ;;  %35106 = vmatpush3.msra.mxu0 %v38567_v37 }
 0x7d1   :  { %35139 = vmatpush3.msra.mxu1 %v38567_v37  ;;  %35107 = vmatprep.subr.mxu0 %v43529_v29 }
 0x7d2   :  { %35140 = vmatprep.subr.mxu1 %v43529_v29  ;;  %35108 = vmatpush3.msra.mxu0 %v38579_v60 }
 0x7d3   :  { %35141 = vmatpush3.msra.mxu1 %v38579_v60  ;;  %35109 = vmatprep.subr.mxu0 %v43529_v29 }
 0x7d4   :  { %35142 = vmatprep.subr.mxu1 %v43529_v29  ;;  %35110 = vmatpush3.msra.mxu0 %v38586_v28 }
 0x7d5   :  { %35111 = vmatprep.mubr.msk.f32.mxu0 %vm37987_vm1, %v43529_v29  ;;  %35143 = vmatpush3.msra.mxu1 %v38586_v28 }
 0x7d6   :  { %35144 = vmatprep.mubr.msk.f32.mxu1 %vm37987_vm1, %v43529_v29  ;;  %35112 = vmatmul.mubr.f32.vlgmr.msra.gmra.mxu0 %v40022_v56 }
 0x7d7   :  { %35125 = vmatprep.subr.mxu0 %v43529_v29  ;;  %35145 = vmatmul.mubr.f32.vlgmr.msra.gmra.mxu1 %v40014_v20 }
 0x7d8   :  { %35158 = vmatprep.subr.mxu1 %v43529_v29  ;;  %35126 = vmatpush3.msra.mxu0 %v38575_v34 }
 0x7d9   :  { %35159 = vmatpush3.msra.mxu1 %v38553_v46  ;;  %35127 = vmatprep.subr.mxu0 %v43529_v29 }
 0x7da   :  { %35160 = vmatprep.subr.mxu1 %v43529_v29  ;;  %35128 = vmatpush3.msra.mxu0 %v38589_v1 }
 0x7db   :  { %35161 = vmatpush3.msra.mxu1 %v38567_v37  ;;  %35129 = vmatprep.subr.mxu0 %v43529_v29 }
 0x7dc   :  { %35162 = vmatprep.subr.mxu1 %v43529_v29  ;;  %35130 = vmatpush3.msra.mxu0 %v38599_v49 }
 0x7dd   :  { %35163 = vmatpush3.msra.mxu1 %v38579_v60  ;;  %35131 = vmatprep.subr.mxu0 %v43529_v29 }
 0x7de   :  { %35164 = vmatprep.subr.mxu1 %v43529_v29  ;;  %35132 = vmatpush3.msra.mxu0 %v38610_v47 }
 0x7df   :  { %35133 = vmatprep.mubr.msk.f32.mxu0 %vm37987_vm1, %v43529_v29  ;;  %35165 = vmatpush3.msra.mxu1 %v38586_v28 }
 0x7e0   :  { %35166 = vmatprep.mubr.msk.f32.mxu1 %vm37987_vm1, %v43529_v29  ;;  %35134 = vmatmul.mubr.f32.vlgmr.msra.gmra.mxu0 %v40007_v2 }
 0x7e1   :  { %35147 = vmatprep.subr.mxu0 %v43529_v29  ;;  %35167 = vmatmul.mubr.f32.vlgmr.msra.gmra.mxu1 %v40003_v36 }
 0x7e2   :  { %35180 = vmatprep.subr.mxu1 %v43529_v29  ;;  %35148 = vmatpush3.msra.mxu0 %v38594_v57 }
 0x7e3   :  { %35181 = vmatpush3.msra.mxu1 %v38758_v15  ;;  %35149 = vmatprep.subr.mxu0 %v43529_v29 }
 0x7e4   :  { %35182 = vmatprep.subr.mxu1 %v43529_v29  ;;  %35150 = vmatpush3.msra.mxu0 %v38607_v17 }
 0x7e5   :  { %35183 = vmatpush3.msra.mxu1 %v38769_v13  ;;  %35151 = vmatprep.subr.mxu0 %v43529_v29 }
 0x7e6   :  { %35184 = vmatprep.subr.mxu1 %v43529_v29  ;;  %35152 = vmatpush3.msra.mxu0 %v38619_v44 }
 0x7e7   :  { %35185 = vmatpush3.msra.mxu1 %v38778_v11  ;;  %35153 = vmatprep.subr.mxu0 %v43529_v29 }
 0x7e8   :  { %35186 = vmatprep.subr.mxu1 %v43529_v29  ;;  %35154 = vmatpush3.msra.mxu0 %v38628_v42 }
 0x7e9   :  { %35155 = vmatprep.mubr.msk.f32.mxu0 %vm37987_vm1, %v43529_v29  ;;  %35187 = vmatpush3.msra.mxu1 %v38784_v39 }
 0x7ea   :  { %35188 = vmatprep.mubr.msk.f32.mxu1 %vm37987_vm1, %v43529_v29  ;;  %35156 = vmatmul.mubr.f32.vlgmr.msra.gmra.mxu0 %v40003_v36 }
 0x7eb   :  { %35169 = vmatprep.subr.mxu0 %v43529_v29  ;;  %35189 = vmatmul.mubr.f32.vlgmr.msra.gmra.mxu1 %v40003_v36 }
 0x7ec   :  { %35202 = vmatprep.subr.mxu1 %v43529_v29  ;;  %35170 = vmatpush3.msra.mxu0 %v43606_v52 }
 0x7ed   :  { %35203 = vmatpush3.msra.mxu1 %v43606_v52  ;;  %35171 = vmatprep.subr.mxu0 %v43529_v29 }
 0x7ee   :  { %35204 = vmatprep.subr.mxu1 %v43529_v29  ;;  %35172 = vmatpush3.msra.mxu0 %v43607_v6 }
 0x7ef   :  { %35205 = vmatpush3.msra.mxu1 %v43607_v6  ;;  %35173 = vmatprep.subr.mxu0 %v43529_v29 }
 0x7f0   :  { %35206 = vmatprep.subr.mxu1 %v43529_v29  ;;  %35174 = vmatpush3.msra.mxu0 %v43608_v7 }
 0x7f1   :  { %35207 = vmatpush3.msra.mxu1 %v43608_v7  ;;  %35175 = vmatprep.subr.mxu0 %v43529_v29 }
 0x7f2   :  { %35208 = vmatprep.subr.mxu1 %v43529_v29  ;;  %35176 = vmatpush3.msra.mxu0 %v43609_v30 }
 0x7f3   :  { %35177 = vmatprep.mubr.msk.f32.mxu0 %vm37987_vm1, %v43529_v29  ;;  %35209 = vmatpush3.msra.mxu1 %v43609_v30 }
 0x7f4   :  { %35210 = vmatprep.mubr.msk.f32.mxu1 %vm37987_vm1, %v43529_v29  ;;  %35178 = vmatmul.mubr.f32.vlgmr.msra.gmra.mxu0 %v40022_v56 }
 0x7f5   :  { %35191 = vmatprep.subr.mxu0 %v43529_v29  ;;  %35211 = vmatmul.mubr.f32.vlgmr.msra.gmra.mxu1 %v40014_v20 }
 0x7f6   :  { %35224 = vmatprep.subr.mxu1 %v43529_v29  ;;  %35192 = vmatpush3.msra.mxu0 %v43610_v33 }
 0x7f7   :  { %35225 = vmatpush3.msra.mxu1 %v43606_v52  ;;  %35193 = vmatprep.subr.mxu0 %v43529_v29 }
 0x7f8   :  { %35226 = vmatprep.subr.mxu1 %v43529_v29  ;;  %35194 = vmatpush3.msra.mxu0 %v43611_v43 }
 0x7f9   :  { %35227 = vmatpush3.msra.mxu1 %v43607_v6  ;;  %35195 = vmatprep.subr.mxu0 %v43529_v29 }
 0x7fa   :  { %35228 = vmatprep.subr.mxu1 %v43529_v29  ;;  %35196 = vmatpush3.msra.mxu0 %v43612_v59 }
 0x7fb   :  { %35229 = vmatpush3.msra.mxu1 %v43608_v7  ;;  %35197 = vmatprep.subr.mxu0 %v43529_v29 }
 0x7fc   :  { %35230 = vmatprep.subr.mxu1 %v43529_v29  ;;  %35198 = vmatpush3.msra.mxu0 %v43613_v12 }
 0x7fd   :  { %35199 = vmatprep.mubr.msk.f32.mxu0 %vm37987_vm1, %v43529_v29  ;;  %35231 = vmatpush3.msra.mxu1 %v43609_v30 }
 0x7fe   :  { %35232 = vmatprep.mubr.msk.f32.mxu1 %vm37987_vm1, %v43529_v29  ;;  %35200 = vmatmul.mubr.f32.vlgmr.msra.gmra.mxu0 %v40007_v2 }
 0x7ff   :  { %35213 = vmatprep.subr.mxu0 %v43529_v29  ;;  %35233 = vmatmul.mubr.f32.vlgmr.msra.gmra.mxu1 %v40003_v36 }
 0x800   :  { %35214 = vmatpush3.msra.mxu0 %v43614_v3  ;;  %35221 = vmatprep.mubr.msk.f32.mxu0 %vm37987_vm1, %v43529_v29 }
 0x801   :  { %35215 = vmatprep.subr.mxu0 %v43529_v29  ;;  %35246 = vmatprep.subr.mxu1 %v43529_v29 }
 0x802   :  { %35216 = vmatpush3.msra.mxu0 %v43615_v27  ;;  %35247 = vmatpush3.msra.mxu1 %v43616_v19 }
 0x803   :  { %35217 = vmatprep.subr.mxu0 %v43529_v29  ;;  %35248 = vmatprep.subr.mxu1 %v43529_v29 }
 0x804   :  { %35218 = vmatpush3.msra.mxu0 %v43617_v25  ;;  %35249 = vmatpush3.msra.mxu1 %v43618_v0 }
 0x805   :  { %35219 = vmatprep.subr.mxu0 %v43529_v29  ;;  %35250 = vmatprep.subr.mxu1 %v43529_v29 }
 0x806   :  { %35220 = vmatpush3.msra.mxu0 %v43619_v62  ;;  %35251 = vmatpush3.msra.mxu1 %v43620_v50 }
 0x807   :  { %35222 = vmatmul.mubr.f32.vlgmr.msra.gmra.mxu0 %v40003_v36  ;;  %35252 = vmatprep.subr.mxu1 %v43529_v29 }
 0x808   :  { %35253 = vmatpush3.msra.mxu1 %v43621_v18  ;;  %35235 = vmatprep.subr.mxu0 %v43529_v29 }
 0x809   :  { %35254 = vmatprep.mubr.msk.f32.mxu1 %vm37987_vm1, %v43529_v29  ;;  %35268 = vmatprep.subr.mxu1 %v43529_v29 }
 0x80a   :  { %35236 = vmatpush3.msra.mxu0 %v38414_v53  ;;  %35243 = vmatprep.mubr.msk.f32.mxu0 %vm37987_vm1, %v43529_v29 }
 0x80b   :  { %35237 = vmatprep.subr.mxu0 %v43529_v29 }
 0x80c   :  { %35238 = vmatpush3.msra.mxu0 %v38431_v61 }
 0x80d   :  { %35239 = vmatprep.subr.mxu0 %v43529_v29 }
 0x80e   :  { %35240 = vmatpush3.msra.mxu0 %v38443_v24 }
 0x80f   :  { %35241 = vmatprep.subr.mxu0 %v43529_v29 }
 0x810   :  { %35242 = vmatpush3.msra.mxu0 %v38453_v35 }
 0x811   :  { %35257 = vmatprep.subr.mxu0 %v43529_v29 }
 0x871   :  { %v10678_v31 = vpop.f32.mrf.mxu1 }
 0x873   :  { %v35058_v4 = vpop.f32.mrf.mxu1 }
 0x879   :  { %v10835_v32 = vpop.f32.mrf.mxu1 }
 0x87a   :  { %v10587_v54 = vpop.f32.mrf.mxu0 }
 0x87b   :  { %v35080_v9 = vpop.f32.mrf.mxu1  ;;  %v10679_v19 = vadd.f32 %v10678_v31, %v10587_v54 }
 0x87c   :  { %v35047_v14 = vpop.f32.mrf.mxu0 }
 0x882   :  { %v10758_v36 = vpop.f32.mrf.mxu0 }
 0x883   :  { %v10993_v2 = vpop.f32.mrf.mxu1  ;;  %v10759_v62 = vadd.f32 %v10758_v36, %v10679_v19 }
 0x884   :  { %v35069_v20 = vpop.f32.mrf.mxu0 }
 0x885   :  { %v35102_v55 = vpop.f32.mrf.mxu1  ;;  %v10836_v25 = vadd.f32 %v10835_v32, %v10759_v62 }
 0x88c   :  { %v10918_v56 = vpop.f32.mrf.mxu0 }
 0x88d   :  { %v11163_v18 = vpop.f32.mrf.mxu1  ;;  %v10919_v12 = vadd.f32 %v10918_v56, %v10836_v25 }
 0x88e   :  { %v35091_v50 = vpop.f32.mrf.mxu0 }
 0x88f   :  { %v35124_v0 = vpop.f32.mrf.mxu1  ;;  %v10994_v43 = vadd.f32 %v10993_v2, %v10919_v12 }
 0x891   :  { %v11968_v33 = vrot.slane %v10994_v43, 2 }
 0x893   :  { %v11970_v55 = vadd.f32 %v11968_v33, %v38860_v16 }
 0x895   :  { %v31755_v50 = vmul.f32 -1.442695, %v11970_v55 }
 0x896   :  { %v11072_v27 = vpop.f32.mrf.mxu0 }
 0x897   :  { %v11320_v3 = vpop.f32.mrf.mxu1  ;;  %v11164_v7 = vadd.f32 %v11163_v18, %v11072_v27  ;;  %37842 = vpow2.f32 %v31755_v50 }
 0x898   :  { %v35113_v59 = vpop.f32.mrf.mxu0 }
 0x899   :  { %v35146_v4 = vpop.f32.mrf.mxu1 }
 0x8a0   :  { %v11243_v9 = vpop.f32.mrf.mxu0 }
 0x8a1   :  { %v11478_v14 = vpop.f32.mrf.mxu1  ;;  %v11244_v6 = vadd.f32 %v11243_v9, %v11164_v7 }
 0x8a2   :  { %v35135_v30 = vpop.f32.mrf.mxu0 }
 0x8a3   :  { %v35168_v20 = vpop.f32.mrf.mxu1  ;;  %v11321_v0 = vadd.f32 %v11320_v3, %v11244_v6  ;;  %v40218_v6 = vld [vmem:[%s43220_s6] sm:$0x1] }
 0x8a4   :  { %v37843_v2 = vpop.eup %37842 }
 0x8a5   :  { %v11974_v7 = vadd.f32 1.0, %v37843_v2 }
 0x8aa   :  { %v11403_v31 = vpop.f32.mrf.mxu0 }
 0x8ab   :  { %v11404_v19 = vadd.f32 %v11403_v31, %v11321_v0  ;;  %v11648_v62 = vpop.f32.mrf.mxu1 }
 0x8ac   :  { %v35157_v32 = vpop.f32.mrf.mxu0 }
 0x8ad   :  { %v11479_v25 = vadd.f32 %v11478_v14, %v11404_v19  ;;  %v35190_v59 = vpop.f32.mrf.mxu1 }
 0x8af   :  { %v11978_v54 = vrot.slane %v11479_v25, 2 }
 0x8b1   :  { %v11980_v43 = vadd.f32 %v11978_v54, %v38865_v40 }
 0x8b3   :  { %v31756_v30 = vmul.f32 -1.442695, %v11980_v43 }
 0x8b4   :  { %v11557_v12 = vpop.f32.mrf.mxu0 }
 0x8b5   :  { %v11805_v36 = vpop.f32.mrf.mxu1  ;;  %37844 = vpow2.f32 %v31756_v30  ;;  %v11558_v33 = vadd.f32 %v40218_v6, %v11557_v12 }
 0x8b6   :  { %v35179_v27 = vpop.f32.mrf.mxu0  ;;  %37846 = vrcp.f32 %v11974_v7 }
 0x8b7   :  { %v35212_v18 = vpop.f32.mrf.mxu1  ;;  %v11649_v4 = vadd.f32 %v11648_v62, %v11558_v33  ;;  %v11995_v62 = vrot.slane %v39997_v5, 7 }
 0x8be   :  { %v11728_v3 = vpop.f32.mrf.mxu0 }
 0x8bf   :  { %v11963_v56 = vpop.f32.mrf.mxu1  ;;  %v11729_v20 = vadd.f32 %v11728_v3, %v11649_v4 }
 0x8c0   :  { %v35201_v9 = vpop.f32.mrf.mxu0 }
 0x8c1   :  { %v35234_v14 = vpop.f32.mrf.mxu1  ;;  %v11806_v55 = vadd.f32 %v11805_v36, %v11729_v20  ;;  %v43622_v20 = vld [vmem:[#allocation67_spill] sm:$0xff] }
 0x8c2   :  { %v37845_v50 = vpop.eup %37844 }
 0x8c3   :  { %v11984_v32 = vadd.f32 1.0, %v37845_v50  ;;  %v37847_v54 = vpop.eup %37846  ;;  %v43624_v50 = vld [vmem:[#allocation70_spill] sm:$0xff] }
 0x8c5   :  { %37848 = vrcp.f32 %v11984_v32  ;;  %v43628_v32 = vld [vmem:[#allocation75_spill] sm:$0xff] }
 0x8c7   :  { %v11888_v0 = vpop.f32.mrf.mxu0 }
 0x8c8   :  { %v11889_v31 = vadd.f32 %v11888_v0, %v11806_v55  ;;  %v43623_v55 = vld [vmem:[#allocation69_spill] sm:$0xff]  ;;  %v43625_v0 = vld [vmem:[#allocation68_spill] sm:$0xff] }
 0x8c9   :  { %v35223_v19 = vpop.f32.mrf.mxu0 }
 0x8ca   :  { %v11964_v25 = vadd.f32 %v11963_v56, %v11889_v31  ;;  %v43626_v31 = vld [vmem:[#allocation71_spill] sm:$0xff]  ;;  %v43627_v19 = vld [vmem:[#allocation73_spill] sm:$0xff] }
 0x8cc   :  { %v11988_v59 = vrot.slane %v11964_v25, 2  ;;  %v43629_v25 = vld [vmem:[#allocation72_spill] sm:$0xff] }
 0x8ce   :  { %v11990_v43 = vmul.f32 %v37847_v54, %v11988_v59  ;;  %v43630_v59 = vld [vmem:[#allocation74_spill] sm:$0xff]  ;;  %v43631_v54 = vld [vmem:[#allocation76_spill] sm:$0xff] }
 0x8d0   :  { %v11991_v12 = vadd.f32 %v11990_v43, %v38870_v58  ;;  %v43632_v43 = vld [vmem:[#allocation77_spill] sm:$0xff] }
 0x8d2   :  { %37850 = vtanh.f32 %v11991_v12  ;;  %v37849_v30 = vpop.eup %37848  ;;  %v72_v12 = vld [vmem:[%s43221_s7 + $0x18] sm:$0xff] }
 0x8d3   :  { %v11993_v27 = vsub.f32 1.0, %v37849_v30  ;;  %v11997_v2 = vmul.f32 %v37849_v30, %v11995_v62  ;;  %v40426_v30 = vand.u32 4294901760, %v72_v12  ;;  %v71_v62 = vld [vmem:[%s43221_s7 + $0x10] sm:$0xff] }
 0x8d5   :  { %43633 = vst [vmem:[#allocation82_spill] sm:$0xff] %v40426_v30 }
 0x8df   :  { %v37851_v18 = vpop.eup %37850 }
 0x8e0   :  { %v11994_v36 = vmul.f32 %v37851_v18, %v11993_v27  ;;  %v40432_v27 = vsub.f32 %v72_v12, %v40426_v30  ;;  %v40434_v18 = vand.u32 4294901760, %v71_v62 }
 0x8e2   :  { %v40223_v7 = vadd.f32 %v11997_v2, %v11994_v36  ;;  %43634 = vst [vmem:[#allocation83_spill] sm:$0xff] %v40432_v27  ;;  %43635 = vst [vmem:[#allocation84_spill] sm:$0xff] %v40434_v18  ;;  %v70_v2 = vld [vmem:[%s43221_s7 + $0x8] sm:$0xff]  ;;  %v40442_v36 = vand.u32 4294901760, %v40432_v27 }
 0x8e4   :  { %12000 = vst.msk [vmem:[#allocation2] sm:$0x40] %vm11999_vm8, %v40223_v7  ;;  %v12002_v33 = vrot.slane %v40223_v7, 6  ;;  %43636 = vst [vmem:[#allocation85_spill] sm:$0xff] %v40442_v36 }
 0x8e6   :  { %v12003_v3 = vsel %vm91_vm0, %v12002_v33, 0  ;;  %v40445_v33 = vsub.f32 %v71_v62, %v40434_v18 }
 0x8e7   :  { %v40229_v56 = vand.u32 4294901760, %v12003_v3 }
 0x8e8   :  { %43637 = vst [vmem:[#allocation86_spill] sm:$0xff] %v40445_v33 }
 0x8e9   :  { %35255 = vmatmul.mubr.f32.vlgmr.msra.gmra.mxu1 %v40229_v56  ;;  %v40233_v5 = vsub.f32 %v12003_v3, %v40229_v56  ;;  %v40447_v3 = vand.u32 4294901760, %v70_v2 }
 0x8ea   :  { %35269 = vmatpush3.msra.mxu1 %v38414_v53  ;;  %35276 = vmatprep.mubr.msk.f32.mxu1 %vm37987_vm1, %v43529_v29 }
 0x8eb   :  { %35270 = vmatprep.subr.mxu1 %v43529_v29  ;;  %v40240_v4 = vand.u32 4294901760, %v40233_v5  ;;  %43638 = vst [vmem:[#allocation87_spill] sm:$0xff] %v40447_v3 }
 0x8ec   :  { %35271 = vmatpush3.msra.mxu1 %v38431_v61 }
 0x8ed   :  { %35272 = vmatprep.subr.mxu1 %v43529_v29  ;;  %v12077_v9 = vsub.f32 %v40233_v5, %v40240_v4 }
 0x8ee   :  { %35273 = vmatpush3.msra.mxu1 %v38443_v24 }
 0x8ef   :  { %35274 = vmatprep.subr.mxu1 %v43529_v29  ;;  %v40248_v14 = vand.u32 4294901760, %v12077_v9  ;;  %v40460_v9 = vsub.f32 %v70_v2, %v40447_v3 }
 0x8f0   :  { %35275 = vmatpush3.msra.mxu1 %v38453_v35 }
 0x8f1   :  { %35277 = vmatmul.mubr.f32.vlgmr.msra.gmra.mxu1 %v40240_v4  ;;  %35290 = vmatprep.subr.mxu1 %v43529_v29  ;;  %43640 = vst [vmem:[#allocation89_spill] sm:$0xff] %v40460_v9 }
 0x8f2   :  { %35244 = vmatmul.mubr.f32.vlgmr.msra.gmra.mxu0 %v40248_v14  ;;  %35291 = vmatpush3.msra.mxu1 %v38414_v53 }
 0x8f3   :  { %35258 = vmatpush3.msra.mxu0 %v38439_v21  ;;  %35292 = vmatprep.subr.mxu1 %v43529_v29 }
 0x8f4   :  { %35259 = vmatprep.subr.mxu0 %v43529_v29  ;;  %35293 = vmatpush3.msra.mxu1 %v38431_v61 }
 0x8f5   :  { %35260 = vmatpush3.msra.mxu0 %v38456_v48  ;;  %35294 = vmatprep.subr.mxu1 %v43529_v29 }
 0x8f6   :  { %35261 = vmatprep.subr.mxu0 %v43529_v29  ;;  %35295 = vmatpush3.msra.mxu1 %v38443_v24 }
 0x8f7   :  { %35262 = vmatpush3.msra.mxu0 %v38466_v51  ;;  %35296 = vmatprep.subr.mxu1 %v43529_v29 }
 0x8f8   :  { %35263 = vmatprep.subr.mxu0 %v43529_v29  ;;  %35265 = vmatprep.mubr.msk.f32.mxu0 %vm37987_vm1, %v43529_v29 }
 0x8f9   :  { %35264 = vmatpush3.msra.mxu0 %v38480_v23  ;;  %35297 = vmatpush3.msra.mxu1 %v38453_v35 }
 0x8fa   :  { %35298 = vmatprep.mubr.msk.f32.mxu1 %vm37987_vm1, %v43529_v29  ;;  %35266 = vmatmul.mubr.f32.vlgmr.msra.gmra.mxu0 %v40233_v5 }
 0x8fb   :  { %35279 = vmatprep.subr.mxu0 %v43529_v29  ;;  %35299 = vmatmul.mubr.f32.vlgmr.msra.gmra.mxu1 %v40229_v56 }
 0x8fc   :  { %35312 = vmatprep.subr.mxu1 %v43529_v29  ;;  %35280 = vmatpush3.msra.mxu0 %v38461_v8 }
 0x8fd   :  { %35313 = vmatpush3.msra.mxu1 %v38632_v45  ;;  %35281 = vmatprep.subr.mxu0 %v43529_v29 }
 0x8fe   :  { %35314 = vmatprep.subr.mxu1 %v43529_v29  ;;  %35282 = vmatpush3.msra.mxu0 %v38477_v22 }
 0x8ff   :  { %35315 = vmatpush3.msra.mxu1 %v38643_v41  ;;  %35283 = vmatprep.subr.mxu0 %v43529_v29 }
 0x900   :  { %35316 = vmatprep.subr.mxu1 %v43529_v29  ;;  %35284 = vmatpush3.msra.mxu0 %v38489_v26 }
 0x901   :  { %35317 = vmatpush3.msra.mxu1 %v38652_v38  ;;  %35285 = vmatprep.subr.mxu0 %v43529_v29 }
 0x902   :  { %35318 = vmatprep.subr.mxu1 %v43529_v29  ;;  %35286 = vmatpush3.msra.mxu0 %v38500_v10 }
 0x903   :  { %35287 = vmatprep.mubr.msk.f32.mxu0 %vm37987_vm1, %v43529_v29  ;;  %35319 = vmatpush3.msra.mxu1 %v38658_v63 }
 0x904   :  { %35320 = vmatprep.mubr.msk.f32.mxu1 %vm37987_vm1, %v43529_v29  ;;  %35288 = vmatmul.mubr.f32.vlgmr.msra.gmra.mxu0 %v40229_v56 }
 0x905   :  { %35301 = vmatprep.subr.mxu0 %v43529_v29  ;;  %35321 = vmatmul.mubr.f32.vlgmr.msra.gmra.mxu1 %v40229_v56 }
 0x906   :  { %35334 = vmatprep.subr.mxu1 %v43529_v29  ;;  %35302 = vmatpush3.msra.mxu0 %v38553_v46 }
 0x907   :  { %35335 = vmatpush3.msra.mxu1 %v38553_v46  ;;  %35303 = vmatprep.subr.mxu0 %v43529_v29 }
 0x908   :  { %35336 = vmatprep.subr.mxu1 %v43529_v29  ;;  %35304 = vmatpush3.msra.mxu0 %v38567_v37 }
 0x909   :  { %35337 = vmatpush3.msra.mxu1 %v38567_v37  ;;  %35305 = vmatprep.subr.mxu0 %v43529_v29 }
 0x90a   :  { %35338 = vmatprep.subr.mxu1 %v43529_v29  ;;  %35306 = vmatpush3.msra.mxu0 %v38579_v60 }
 0x90b   :  { %35339 = vmatpush3.msra.mxu1 %v38579_v60  ;;  %35307 = vmatprep.subr.mxu0 %v43529_v29 }
 0x90c   :  { %35340 = vmatprep.subr.mxu1 %v43529_v29  ;;  %35308 = vmatpush3.msra.mxu0 %v38586_v28 }
 0x90d   :  { %35309 = vmatprep.mubr.msk.f32.mxu0 %vm37987_vm1, %v43529_v29  ;;  %35341 = vmatpush3.msra.mxu1 %v38586_v28 }
 0x90e   :  { %35342 = vmatprep.mubr.msk.f32.mxu1 %vm37987_vm1, %v43529_v29  ;;  %35310 = vmatmul.mubr.f32.vlgmr.msra.gmra.mxu0 %v40248_v14 }
 0x90f   :  { %35323 = vmatprep.subr.mxu0 %v43529_v29  ;;  %35343 = vmatmul.mubr.f32.vlgmr.msra.gmra.mxu1 %v40240_v4 }
 0x910   :  { %35356 = vmatprep.subr.mxu1 %v43529_v29  ;;  %35324 = vmatpush3.msra.mxu0 %v38575_v34 }
 0x911   :  { %35357 = vmatpush3.msra.mxu1 %v38553_v46  ;;  %35325 = vmatprep.subr.mxu0 %v43529_v29 }
 0x912   :  { %35358 = vmatprep.subr.mxu1 %v43529_v29  ;;  %35326 = vmatpush3.msra.mxu0 %v38589_v1 }
 0x913   :  { %35359 = vmatpush3.msra.mxu1 %v38567_v37  ;;  %35327 = vmatprep.subr.mxu0 %v43529_v29 }
 0x914   :  { %35360 = vmatprep.subr.mxu1 %v43529_v29  ;;  %35328 = vmatpush3.msra.mxu0 %v38599_v49 }
 0x915   :  { %35361 = vmatpush3.msra.mxu1 %v38579_v60  ;;  %35329 = vmatprep.subr.mxu0 %v43529_v29 }
 0x916   :  { %35362 = vmatprep.subr.mxu1 %v43529_v29  ;;  %35330 = vmatpush3.msra.mxu0 %v38610_v47 }
 0x917   :  { %35331 = vmatprep.mubr.msk.f32.mxu0 %vm37987_vm1, %v43529_v29  ;;  %35363 = vmatpush3.msra.mxu1 %v38586_v28 }
 0x918   :  { %35364 = vmatprep.mubr.msk.f32.mxu1 %vm37987_vm1, %v43529_v29  ;;  %35332 = vmatmul.mubr.f32.vlgmr.msra.gmra.mxu0 %v40233_v5 }
 0x919   :  { %35345 = vmatprep.subr.mxu0 %v43529_v29  ;;  %35365 = vmatmul.mubr.f32.vlgmr.msra.gmra.mxu1 %v40229_v56 }
 0x91a   :  { %35378 = vmatprep.subr.mxu1 %v43529_v29  ;;  %35346 = vmatpush3.msra.mxu0 %v38594_v57 }
 0x91b   :  { %35379 = vmatpush3.msra.mxu1 %v38758_v15  ;;  %35347 = vmatprep.subr.mxu0 %v43529_v29 }
 0x91c   :  { %35380 = vmatprep.subr.mxu1 %v43529_v29  ;;  %35348 = vmatpush3.msra.mxu0 %v38607_v17 }
 0x91d   :  { %35381 = vmatpush3.msra.mxu1 %v38769_v13  ;;  %35349 = vmatprep.subr.mxu0 %v43529_v29 }
 0x91e   :  { %35382 = vmatprep.subr.mxu1 %v43529_v29  ;;  %35350 = vmatpush3.msra.mxu0 %v38619_v44 }
 0x91f   :  { %35383 = vmatpush3.msra.mxu1 %v38778_v11  ;;  %35351 = vmatprep.subr.mxu0 %v43529_v29 }
 0x920   :  { %35384 = vmatprep.subr.mxu1 %v43529_v29  ;;  %35352 = vmatpush3.msra.mxu0 %v38628_v42 }
 0x921   :  { %35353 = vmatprep.mubr.msk.f32.mxu0 %vm37987_vm1, %v43529_v29  ;;  %35385 = vmatpush3.msra.mxu1 %v38784_v39 }
 0x922   :  { %35386 = vmatprep.mubr.msk.f32.mxu1 %vm37987_vm1, %v43529_v29  ;;  %35354 = vmatmul.mubr.f32.vlgmr.msra.gmra.mxu0 %v40229_v56 }
 0x923   :  { %35367 = vmatprep.subr.mxu0 %v43529_v29  ;;  %35387 = vmatmul.mubr.f32.vlgmr.msra.gmra.mxu1 %v40229_v56 }
 0x924   :  { %35400 = vmatprep.subr.mxu1 %v43529_v29  ;;  %35368 = vmatpush3.msra.mxu0 %v43606_v52 }
 0x925   :  { %35401 = vmatpush3.msra.mxu1 %v43606_v52  ;;  %35369 = vmatprep.subr.mxu0 %v43529_v29 }
 0x926   :  { %35402 = vmatprep.subr.mxu1 %v43529_v29  ;;  %35370 = vmatpush3.msra.mxu0 %v43622_v20 }
 0x927   :  { %35403 = vmatpush3.msra.mxu1 %v43622_v20  ;;  %35371 = vmatprep.subr.mxu0 %v43529_v29 }
 0x928   :  { %35404 = vmatprep.subr.mxu1 %v43529_v29  ;;  %35372 = vmatpush3.msra.mxu0 %v43623_v55 }
 0x929   :  { %35405 = vmatpush3.msra.mxu1 %v43623_v55  ;;  %35373 = vmatprep.subr.mxu0 %v43529_v29 }
 0x92a   :  { %35406 = vmatprep.subr.mxu1 %v43529_v29  ;;  %35374 = vmatpush3.msra.mxu0 %v43624_v50 }
 0x92b   :  { %35375 = vmatprep.mubr.msk.f32.mxu0 %vm37987_vm1, %v43529_v29  ;;  %35407 = vmatpush3.msra.mxu1 %v43624_v50 }
 0x92c   :  { %35408 = vmatprep.mubr.msk.f32.mxu1 %vm37987_vm1, %v43529_v29  ;;  %35376 = vmatmul.mubr.f32.vlgmr.msra.gmra.mxu0 %v40248_v14 }
 0x92d   :  { %35389 = vmatprep.subr.mxu0 %v43529_v29  ;;  %35409 = vmatmul.mubr.f32.vlgmr.msra.gmra.mxu1 %v40240_v4  ;;  %v40457_v4 = vand.u32 4294901760, %v40445_v33 }
 0x92e   :  { %35422 = vmatprep.subr.mxu1 %v43529_v29  ;;  %35390 = vmatpush3.msra.mxu0 %v43625_v0 }
 0x92f   :  { %35423 = vmatpush3.msra.mxu1 %v43606_v52  ;;  %35391 = vmatprep.subr.mxu0 %v43529_v29  ;;  %43639 = vst [vmem:[#allocation88_spill] sm:$0xff] %v40457_v4  ;;  %v13613_v62 = vsub.f32 %v40445_v33, %v40457_v4 }
 0x930   :  { %35424 = vmatprep.subr.mxu1 %v43529_v29  ;;  %35392 = vmatpush3.msra.mxu0 %v43626_v31 }
 0x931   :  { %35425 = vmatpush3.msra.mxu1 %v43622_v20  ;;  %35393 = vmatprep.subr.mxu0 %v43529_v29  ;;  %v40479_v2 = vand.u32 4294901760, %v13613_v62 }
 0x932   :  { %35426 = vmatprep.subr.mxu1 %v43529_v29  ;;  %35394 = vmatpush3.msra.mxu0 %v43627_v19 }
 0x933   :  { %35427 = vmatpush3.msra.mxu1 %v43623_v55  ;;  %35395 = vmatprep.subr.mxu0 %v43529_v29  ;;  %43645 = vst [vmem:[#allocation94_spill] sm:$0xff] %v40479_v2 }
 0x934   :  { %35428 = vmatprep.subr.mxu1 %v43529_v29  ;;  %35396 = vmatpush3.msra.mxu0 %v43628_v32 }
 0x935   :  { %35397 = vmatprep.mubr.msk.f32.mxu0 %vm37987_vm1, %v43529_v29  ;;  %35429 = vmatpush3.msra.mxu1 %v43624_v50 }
 0x936   :  { %35430 = vmatprep.mubr.msk.f32.mxu1 %vm37987_vm1, %v43529_v29  ;;  %35398 = vmatmul.mubr.f32.vlgmr.msra.gmra.mxu0 %v40233_v5  ;;  %v13606_v5 = vsub.f32 %v40432_v27, %v40442_v36 }
 0x937   :  { %35411 = vmatprep.subr.mxu0 %v43529_v29  ;;  %35431 = vmatmul.mubr.f32.vlgmr.msra.gmra.mxu1 %v40229_v56 }
 0x938   :  { %35412 = vmatpush3.msra.mxu0 %v43629_v25  ;;  %35419 = vmatprep.mubr.msk.f32.mxu0 %vm37987_vm1, %v43529_v29  ;;  %v40466_v12 = vand.u32 4294901760, %v13606_v5 }
 0x939   :  { %35413 = vmatprep.subr.mxu0 %v43529_v29  ;;  %35444 = vmatprep.subr.mxu1 %v43529_v29 }
 0x93a   :  { %35414 = vmatpush3.msra.mxu0 %v43630_v59  ;;  %35452 = vmatprep.mubr.msk.f32.mxu1 %vm37987_vm1, %v43529_v29  ;;  %43642 = vst [vmem:[#allocation91_spill] sm:$0xff] %v40466_v12 }
 0x93b   :  { %35415 = vmatprep.subr.mxu0 %v43529_v29  ;;  %35445 = vmatpush3.msra.mxu1 %v40466_v12 }
 0x93c   :  { %35416 = vmatpush3.msra.mxu0 %v43631_v54  ;;  %35446 = vmatprep.subr.mxu1 %v43529_v29 }
 0x93d   :  { %35417 = vmatprep.subr.mxu0 %v43529_v29  ;;  %35447 = vmatpush3.msra.mxu1 %v40479_v2 }
 0x93e   :  { %35418 = vmatpush3.msra.mxu0 %v43632_v43  ;;  %v40471_v43 = vand.u32 4294901760, %v40460_v9  ;;  %35448 = vmatprep.subr.mxu1 %v43529_v29 }
 0x93f   :  { %35420 = vmatmul.mubr.f32.vlgmr.msra.gmra.mxu0 %v40229_v56  ;;  %35433 = vmatprep.subr.mxu0 %v43529_v29  ;;  %v69_v56 = vld [vmem:[%s43221_s7] sm:$0xff] }
 0x940   :  { %35441 = vmatprep.mubr.msk.f32.mxu0 %vm37987_vm1, %v43529_v29  ;;  %35434 = vmatpush3.msra.mxu0 %v40426_v30  ;;  %v40462_v14 = vand.u32 4294901760, %v69_v56  ;;  %43643 = vst [vmem:[#allocation92_spill] sm:$0xff] %v40471_v43  ;;  %v13620_v5 = vsub.f32 %v40460_v9, %v40471_v43 }
 0x941   :  { %35435 = vmatprep.subr.mxu0 %v43529_v29 }
 0x942   :  { %35436 = vmatpush3.msra.mxu0 %v40434_v18  ;;  %43641 = vst [vmem:[#allocation90_spill] sm:$0xff] %v40462_v14  ;;  %v40474_v54 = vsub.f32 %v69_v56, %v40462_v14  ;;  %v40488_v56 = vand.u32 4294901760, %v13620_v5 }
 0x943   :  { %35437 = vmatprep.subr.mxu0 %v43529_v29 }
 0x944   :  { %35438 = vmatpush3.msra.mxu0 %v40447_v3  ;;  %43644 = vst [vmem:[#allocation93_spill] sm:$0xff] %v40474_v54  ;;  %v40484_v59 = vand.u32 4294901760, %v40474_v54  ;;  %43647 = vst [vmem:[#allocation96_spill] sm:$0xff] %v40488_v56  ;;  %35449 = vmatpush3.msra.mxu1 %v40488_v56 }
 0x945   :  { %35439 = vmatprep.subr.mxu0 %v43529_v29  ;;  %35450 = vmatprep.subr.mxu1 %v43529_v29 }
 0x946   :  { %35440 = vmatpush3.msra.mxu0 %v40462_v14  ;;  %43646 = vst [vmem:[#allocation95_spill] sm:$0xff] %v40484_v59  ;;  %v13627_v25 = vsub.f32 %v40474_v54, %v40484_v59 }
 0x947   :  { %35455 = vmatprep.subr.mxu0 %v43529_v29 }
 0x948   :  { %v40494_v62 = vand.u32 4294901760, %v13627_v25 }
 0x94a   :  { %43648 = vst [vmem:[#allocation97_spill] sm:$0xff] %v40494_v62  ;;  %35451 = vmatpush3.msra.mxu1 %v40494_v62 }
 0x94b   :  { %35466 = vmatprep.subr.mxu1 %v43529_v29 }
 0x9a9   :  { %v12171_v12 = vpop.f32.mrf.mxu1 }
 0x9ab   :  { %v35256_v32 = vpop.f32.mrf.mxu1 }
 0x9b1   :  { %v12328_v2 = vpop.f32.mrf.mxu1 }
 0x9b2   :  { %v12080_v5 = vpop.f32.mrf.mxu0 }
 0x9b3   :  { %v35278_v19 = vpop.f32.mrf.mxu1  ;;  %v12172_v20 = vadd.f32 %v12171_v12, %v12080_v5 }
 0x9b4   :  { %v35245_v31 = vpop.f32.mrf.mxu0 }
 0x9ba   :  { %v12251_v0 = vpop.f32.mrf.mxu0 }
 0x9bb   :  { %v12486_v39 = vpop.f32.mrf.mxu1  ;;  %v12252_v15 = vadd.f32 %v12251_v0, %v12172_v20 }
 0x9bc   :  { %v35267_v50 = vpop.f32.mrf.mxu0 }
 0x9bd   :  { %v35300_v11 = vpop.f32.mrf.mxu1  ;;  %v12329_v52 = vadd.f32 %v12328_v2, %v12252_v15 }
 0x9c4   :  { %v12411_v55 = vpop.f32.mrf.mxu0 }
 0x9c5   :  { %v12656_v56 = vpop.f32.mrf.mxu1  ;;  %v12412_v44 = vadd.f32 %v12411_v55, %v12329_v52 }
 0x9c6   :  { %v35289_v25 = vpop.f32.mrf.mxu0 }
 0x9c7   :  { %v35322_v13 = vpop.f32.mrf.mxu1  ;;  %v12487_v57 = vadd.f32 %v12486_v39, %v12412_v44 }
 0x9c9   :  { %v13461_v47 = vrot.slane %v12487_v57, 1 }
 0x9cb   :  { %v13463_v11 = vadd.f32 %v13461_v47, %v38860_v16 }
 0x9cd   :  { %v31757_v25 = vmul.f32 -1.442695, %v13463_v11 }
 0x9ce   :  { %v12565_v62 = vpop.f32.mrf.mxu0 }
 0x9cf   :  { %v12813_v42 = vpop.f32.mrf.mxu1  ;;  %v12657_v1 = vadd.f32 %v12656_v56, %v12565_v62  ;;  %37852 = vpow2.f32 %v31757_v25 }
 0x9d0   :  { %v35311_v17 = vpop.f32.mrf.mxu0 }
 0x9d1   :  { %v35344_v32 = vpop.f32.mrf.mxu1 }
 0x9d8   :  { %v12736_v19 = vpop.f32.mrf.mxu0 }
 0x9d9   :  { %v12971_v31 = vpop.f32.mrf.mxu1  ;;  %v12737_v34 = vadd.f32 %v12736_v19, %v12657_v1 }
 0x9da   :  { %v35333_v49 = vpop.f32.mrf.mxu0 }
 0x9db   :  { %v35366_v50 = vpop.f32.mrf.mxu1  ;;  %v12814_v13 = vadd.f32 %v12813_v42, %v12737_v34 }
 0x9dc   :  { %v37853_v62 = vpop.eup %37852 }
 0x9dd   :  { %v13467_v16 = vadd.f32 1.0, %v37853_v62 }
 0x9e2   :  { %v12896_v12 = vpop.f32.mrf.mxu0 }
 0x9e3   :  { %v12897_v20 = vadd.f32 %v12896_v12, %v12814_v13  ;;  %v13141_v15 = vpop.f32.mrf.mxu1 }
 0x9e4   :  { %v35355_v0 = vpop.f32.mrf.mxu0 }
 0x9e5   :  { %v12972_v52 = vadd.f32 %v12971_v31, %v12897_v20  ;;  %v35388_v17 = vpop.f32.mrf.mxu1 }
 0x9e7   :  { %v13471_v55 = vrot.slane %v12972_v52, 1 }
 0x9e9   :  { %v13473_v44 = vadd.f32 %v13471_v55, %v38865_v40 }
 0x9eb   :  { %v31758_v49 = vmul.f32 -1.442695, %v13473_v44 }
 0x9ec   :  { %v13050_v57 = vpop.f32.mrf.mxu0 }
 0x9ed   :  { %v13298_v39 = vpop.f32.mrf.mxu1  ;;  %37854 = vpow2.f32 %v31758_v49  ;;  %v13051_v42 = vadd.f32 %v40218_v6, %v13050_v57 }
 0x9ee   :  { %v35377_v2 = vpop.f32.mrf.mxu0  ;;  %37856 = vrcp.f32 %v13467_v16 }
 0x9ef   :  { %v35410_v56 = vpop.f32.mrf.mxu1  ;;  %v13142_v1 = vadd.f32 %v13141_v15, %v13051_v42  ;;  %v13488_v15 = vrot.slane %v40223_v7, 7 }
 0x9f6   :  { %v13221_v47 = vpop.f32.mrf.mxu0 }
 0x9f7   :  { %v13456_v34 = vpop.f32.mrf.mxu1  ;;  %v13222_v19 = vadd.f32 %v13221_v47, %v13142_v1  ;;  %v40572_v47 = vld [vmem:[%s43215_s1 + $0x8] sm:$0x3] }
 0x9f8   :  { %v35399_v5 = vpop.f32.mrf.mxu0 }
 0x9f9   :  { %v35432_v32 = vpop.f32.mrf.mxu1  ;;  %v13299_v31 = vadd.f32 %v13298_v39, %v13222_v19 }
 0x9fa   :  { %v37855_v50 = vpop.eup %37854  ;;  %v40579_v32 = vld [vmem:[%s43215_s1] sm:$0xff] }
 0x9fb   :  { %v13477_v13 = vadd.f32 1.0, %v37855_v50  ;;  %v37857_v0 = vpop.eup %37856  ;;  %v13988_v19 = vsel %vm91_vm0, %v40579_v32, 0 }
 0x9fc   :  { %v14025_v50 = vand.u32 4294901760, %v13988_v19 }
 0x9fd   :  { %37858 = vrcp.f32 %v13477_v13 }
 0x9ff   :  { %v13381_v40 = vpop.f32.mrf.mxu0 }
 0xa00   :  { %v13382_v11 = vadd.f32 %v13381_v40, %v13299_v31 }
 0xa01   :  { %v35421_v25 = vpop.f32.mrf.mxu0 }
 0xa02   :  { %v13457_v12 = vadd.f32 %v13456_v34, %v13382_v11  ;;  %v13991_v34 = vsel %vm91_vm0, %v40572_v47, 0  ;;  %v14107_v11 = vsub.f32 %v13988_v19, %v14025_v50 }
 0xa03   :  { %v14022_v1 = vand.u32 4294901760, %v13991_v34 }
 0xa04   :  { %v13481_v20 = vrot.slane %v13457_v12, 1  ;;  %v14108_v13 = vand.u32 4294901760, %v14107_v11 }
 0xa05   :  { %v14100_v5 = vsub.f32 %v13991_v34, %v14022_v1 }
 0xa06   :  { %v13483_v52 = vmul.f32 %v37857_v0, %v13481_v20  ;;  %v14109_v12 = vsub.f32 %v14107_v11, %v14108_v13 }
 0xa07   :  { %v14101_v31 = vand.u32 4294901760, %v14100_v5 }
 0xa08   :  { %v13484_v6 = vadd.f32 %v13483_v52, %v38870_v58  ;;  %v14110_v20 = vand.u32 4294901760, %v14109_v12 }
 0xa09   :  { %v14102_v40 = vsub.f32 %v14100_v5, %v14101_v31 }
 0xa0a   :  { %37860 = vtanh.f32 %v13484_v6  ;;  %v37859_v17 = vpop.eup %37858 }
 0xa0b   :  { %v13486_v55 = vsub.f32 1.0, %v37859_v17  ;;  %v13490_v57 = vmul.f32 %v37859_v17, %v13488_v15  ;;  %v14103_v25 = vand.u32 4294901760, %v14102_v40 }
 0xa17   :  { %v37861_v44 = vpop.eup %37860 }
 0xa18   :  { %v13487_v39 = vmul.f32 %v37861_v44, %v13486_v55 }
 0xa1a   :  { %v13491_v49 = vadd.f32 %v13490_v57, %v13487_v39 }
 0xa1c   :  { %13493 = vst.msk [vmem:[#allocation2] sm:$0x80] %vm13492_vm9, %v13491_v49  ;;  %13494 = vst.msk [vmem:[#allocation3 - $0x7] sm:$0x80] %vm13492_vm9, %v13491_v49 }
 0xa23   :  { %v13495_v2 = vld [vmem:[#allocation2] sm:$0xff] }
 0xa24   :  { %v13497_v56 = vsel %vm91_vm0, %v13495_v2, 0 }
 0xa25   :  { %v40507_v62 = vand.u32 4294901760, %v13497_v56 }
 0xa27   :  { %35453 = vmatmul.mubr.f32.vlgmr.msra.gmra.mxu1 %v40507_v62  ;;  %v40511_v58 = vsub.f32 %v13497_v56, %v40507_v62 }
 0xa28   :  { %35467 = vmatpush3.msra.mxu1 %v40426_v30  ;;  %35474 = vmatprep.mubr.msk.f32.mxu1 %vm37987_vm1, %v43529_v29 }
 0xa29   :  { %35468 = vmatprep.subr.mxu1 %v43529_v29  ;;  %v40518_v7 = vand.u32 4294901760, %v40511_v58 }
 0xa2a   :  { %35469 = vmatpush3.msra.mxu1 %v40434_v18 }
 0xa2b   :  { %35470 = vmatprep.subr.mxu1 %v43529_v29  ;;  %v13571_v16 = vsub.f32 %v40511_v58, %v40518_v7 }
 0xa2c   :  { %35471 = vmatpush3.msra.mxu1 %v40447_v3 }
 0xa2d   :  { %35472 = vmatprep.subr.mxu1 %v43529_v29  ;;  %v40526_v42 = vand.u32 4294901760, %v13571_v16 }
 0xa2e   :  { %35473 = vmatpush3.msra.mxu1 %v40462_v14 }
 0xa2f   :  { %35475 = vmatmul.mubr.f32.vlgmr.msra.gmra.mxu1 %v40518_v7  ;;  %35488 = vmatprep.subr.mxu1 %v43529_v29 }
 0xa30   :  { %35442 = vmatmul.mubr.f32.vlgmr.msra.gmra.mxu0 %v40526_v42  ;;  %35489 = vmatpush3.msra.mxu1 %v40426_v30 }
 0xa31   :  { %35456 = vmatpush3.msra.mxu0 %v40432_v27  ;;  %35490 = vmatprep.subr.mxu1 %v43529_v29 }
 0xa32   :  { %35457 = vmatprep.subr.mxu0 %v43529_v29  ;;  %35491 = vmatpush3.msra.mxu1 %v40434_v18 }
 0xa33   :  { %35458 = vmatpush3.msra.mxu0 %v40445_v33  ;;  %35492 = vmatprep.subr.mxu1 %v43529_v29 }
 0xa34   :  { %35459 = vmatprep.subr.mxu0 %v43529_v29  ;;  %35493 = vmatpush3.msra.mxu1 %v40447_v3 }
 0xa35   :  { %35460 = vmatpush3.msra.mxu0 %v40460_v9  ;;  %35494 = vmatprep.subr.mxu1 %v43529_v29 }
 0xa36   :  { %35461 = vmatprep.subr.mxu0 %v43529_v29  ;;  %35463 = vmatprep.mubr.msk.f32.mxu0 %vm37987_vm1, %v43529_v29 }
 0xa37   :  { %35462 = vmatpush3.msra.mxu0 %v40474_v54  ;;  %35495 = vmatpush3.msra.mxu1 %v40462_v14 }
 0xa38   :  { %35496 = vmatprep.mubr.msk.f32.mxu1 %vm37987_vm1, %v43529_v29  ;;  %35464 = vmatmul.mubr.f32.vlgmr.msra.gmra.mxu0 %v40511_v58 }
 0xa39   :  { %35477 = vmatprep.subr.mxu0 %v43529_v29  ;;  %35497 = vmatmul.mubr.f32.vlgmr.msra.gmra.mxu1 %v40507_v62 }
 0xa3a   :  { %35478 = vmatpush3.msra.mxu0 %v40442_v36  ;;  %35485 = vmatprep.mubr.msk.f32.mxu0 %vm37987_vm1, %v43529_v29 }
 0xa3b   :  { %35479 = vmatprep.subr.mxu0 %v43529_v29  ;;  %35506 = vmatprep.subr.mxu1 %v43529_v29 }
 0xa3c   :  { %35480 = vmatpush3.msra.mxu0 %v40457_v4  ;;  %35510 = vmatprep.mubr.msk.f32.mxu1 %vm37987_vm1, %v43529_v29 }
 0xa3d   :  { %35481 = vmatprep.subr.mxu0 %v43529_v29  ;;  %35507 = vmatpush3.xpose.msra.mxu1 %v14103_v25 }
 0xa3e   :  { %35482 = vmatpush3.msra.mxu0 %v40471_v43  ;;  %35508 = vmatprep.subr.mxu1 %v43529_v29 }
 0xa3f   :  { %35483 = vmatprep.subr.mxu0 %v43529_v29 }
 0xa40   :  { %35484 = vmatpush3.msra.mxu0 %v40484_v59 }
 0xa41   :  { %35486 = vmatmul.mubr.f32.vlgmr.msra.gmra.mxu0 %v40507_v62  ;;  %35499 = vmatprep.subr.mxu0 %v43529_v29 }
 0xa42   :  { %35503 = vmatprep.mubr.msk.f32.mxu0 %vm37987_vm1, %v43529_v29  ;;  %35500 = vmatpush3.xpose.msra.mxu0 %v14022_v1 }
 0xa43   :  { %35501 = vmatprep.subr.mxu0 %v43529_v29  ;;  %35509 = vmatpush3.xpose.msra.mxu1 %v14110_v20 }
 0xa44   :  { %35520 = vmatprep.subr.mxu1 %v43529_v29 }
 0xa46   :  { %35502 = vmatpush3.xpose.msra.mxu0 %v14025_v50 }
 0xa47   :  { %35513 = vmatprep.subr.mxu0 %v43529_v29 }
 0xae7   :  { %v13665_v0 = vpop.f32.mrf.mxu1 }
 0xae9   :  { %v35454_v52 = vpop.f32.mrf.mxu1 }
 0xaef   :  { %v13822_v6 = vpop.f32.mrf.mxu1 }
 0xaf0   :  { %v13574_v17 = vpop.f32.mrf.mxu0 }
 0xaf1   :  { %v35476_v15 = vpop.f32.mrf.mxu1  ;;  %v13666_v39 = vadd.f32 %v13665_v0, %v13574_v17 }
 0xaf2   :  { %v35443_v55 = vpop.f32.mrf.mxu0 }
 0xaf8   :  { %v13745_v44 = vpop.f32.mrf.mxu0 }
 0xaf9   :  { %v13980_v57 = vpop.f32.mrf.mxu1  ;;  %v13746_v56 = vadd.f32 %v13745_v44, %v13666_v39 }
 0xafa   :  { %v35465_v49 = vpop.f32.mrf.mxu0 }
 0xafb   :  { %v35498_v2 = vpop.f32.mrf.mxu1  ;;  %v13823_v16 = vadd.f32 %v13822_v6, %v13746_v56 }
 0xb01   :  { %v13905_v34 = vpop.f32.mrf.mxu0 }
 0xb02   :  { %v13906_v19 = vadd.f32 %v13905_v34, %v13823_v16 }
 0xb03   :  { %v35487_v40 = vpop.f32.mrf.mxu0 }
 0xb04   :  { %v13981_v25 = vadd.f32 %v13980_v57, %v13906_v19 }
 0xb06   :  { %v13985_v12 = vsel %vm91_vm0, %v13981_v25, 0 }
 0xb07   :  { %v14060_v20 = vand.u32 4294901760, %v13985_v12 }
 0xb09   :  { %v14061_v59 = vsub.f32 %v13985_v12, %v14060_v20  ;;  %35511 = vmatmul.mubr.f32.vlgmr.msra.gmra.mxu1 %v14060_v20 }
 0xb0a   :  { %35521 = vmatpush3.xpose.msra.mxu1 %v14022_v1  ;;  %35524 = vmatprep.mubr.msk.f32.mxu1 %vm37987_vm1, %v43529_v29 }
 0xb0b   :  { %v14062_v52 = vand.u32 4294901760, %v14061_v59  ;;  %35522 = vmatprep.subr.mxu1 %v43529_v29 }
 0xb0d   :  { %v14063_v0 = vsub.f32 %v14061_v59, %v14062_v52 }
 0xb0e   :  { %35523 = vmatpush3.xpose.msra.mxu1 %v14025_v50 }
 0xb0f   :  { %v14064_v17 = vand.u32 4294901760, %v14063_v0  ;;  %35534 = vmatprep.subr.mxu1 %v43529_v29  ;;  %v14502_v0 = vand.u32 4294901760, %v40579_v32 }
 0xb11   :  { %35525 = vmatmul.mubr.f32.vlgmr.msra.gmra.mxu1 %v14062_v52  ;;  %35504 = vmatmul.mubr.f32.vlgmr.msra.gmra.mxu0 %v14064_v17  ;;  %v14468_v52 = vsel %vm14467_vm11, %v40572_v47, 0 }
 0xb12   :  { %35514 = vmatpush3.xpose.msra.mxu0 %v14100_v5  ;;  %35535 = vmatpush3.xpose.msra.mxu1 %v14022_v1  ;;  %v14499_v17 = vand.u32 4294901760, %v14468_v52 }
 0xb13   :  { %35515 = vmatprep.subr.mxu0 %v43529_v29  ;;  %35536 = vmatprep.subr.mxu1 %v43529_v29 }
 0xb14   :  { %35517 = vmatprep.mubr.msk.f32.mxu0 %vm37987_vm1, %v43529_v29  ;;  %35538 = vmatprep.mubr.msk.f32.mxu1 %vm37987_vm1, %v43529_v29 }
 0xb16   :  { %35516 = vmatpush3.xpose.msra.mxu0 %v14107_v11  ;;  %35537 = vmatpush3.xpose.msra.mxu1 %v14025_v50 }
 0xb17   :  { %35527 = vmatprep.subr.mxu0 %v43529_v29  ;;  %35548 = vmatprep.subr.mxu1 %v43529_v29 }
 0xb19   :  { %35518 = vmatmul.mubr.f32.vlgmr.msra.gmra.mxu0 %v14061_v59  ;;  %35539 = vmatmul.mubr.f32.vlgmr.msra.gmra.mxu1 %v14060_v20 }
 0xb1a   :  { %35528 = vmatpush3.xpose.msra.mxu0 %v14101_v31  ;;  %35531 = vmatprep.mubr.msk.f32.mxu0 %vm37987_vm1, %v43529_v29 }
 0xb1b   :  { %35529 = vmatprep.subr.mxu0 %v43529_v29  ;;  %35552 = vmatprep.mubr.msk.f32.mxu1 %vm37987_vm1, %v43529_v29 }
 0xb1e   :  { %35530 = vmatpush3.xpose.msra.mxu0 %v14108_v13 }
 0xb1f   :  { %35541 = vmatprep.subr.mxu0 %v43529_v29 }
 0xb21   :  { %35532 = vmatmul.mubr.f32.vlgmr.msra.gmra.mxu0 %v14060_v20 }
 0xb22   :  { %35545 = vmatprep.mubr.msk.f32.mxu0 %vm37987_vm1, %v43529_v29  ;;  %35542 = vmatpush3.msra.mxu0 %v14499_v17 }
 0xb23   :  { %35543 = vmatprep.subr.mxu0 %v43529_v29 }
 0xb24   :  { %35544 = vmatpush3.msra.mxu0 %v14502_v0 }
 0xb25   :  { %35555 = vmatprep.subr.mxu0 %v43529_v29 }
 0xbc9   :  { %v14147_v1 = vpop.f32.mrf.mxu1 }
 0xbcb   :  { %v35512_v5 = vpop.f32.mrf.mxu1 }
 0xbd1   :  { %v14298_v59 = vpop.f32.mrf.mxu1  ;;  %v14066_v50 = vpop.f32.mrf.mxu0 }
 0xbd2   :  { %v14148_v55 = vadd.f32 %v14147_v1, %v14066_v50  ;;  %v40613_v1 = vsub.f32 %v14468_v52, %v14499_v17 }
 0xbd3   :  { %v35526_v31 = vpop.f32.mrf.mxu1  ;;  %v35505_v11 = vpop.f32.mrf.mxu0 }
 0xbd4   :  { %v14578_v5 = vand.u32 4294901760, %v40613_v1 }
 0xbd6   :  { %v14579_v47 = vsub.f32 %v40613_v1, %v14578_v5 }
 0xbd8   :  { %v14580_v31 = vand.u32 4294901760, %v14579_v47 }
 0xbd9   :  { %v14223_v6 = vpop.f32.mrf.mxu0  ;;  %v14448_v15 = vpop.f32.mrf.mxu1 }
 0xbda   :  { %v14224_v39 = vadd.f32 %v14223_v6, %v14148_v55  ;;  %35549 = vmatpush3.msra.mxu1 %v14580_v31  ;;  %v31738_v55 = vld [vmem:[%s43222_s8 + $0x30] sm:$0xff] }
 0xbdb   :  { %v35519_v44 = vpop.f32.mrf.mxu0  ;;  %v35540_v57 = vpop.f32.mrf.mxu1  ;;  %35550 = vmatprep.subr.mxu1 %v43529_v29 }
 0xbdc   :  { %v14299_v49 = vadd.f32 %v14298_v59, %v14224_v39  ;;  %v40618_v59 = vsub.f32 %v40579_v32, %v14502_v0  ;;  %v31737_v57 = vld [vmem:[%s43222_s8 + $0x28] sm:$0xff]  ;;  %v40641_v39 = vand.u32 4294901760, %v31738_v55 }
 0xbde   :  { %v14585_v50 = vand.u32 4294901760, %v40618_v59  ;;  %43650 = vst [vmem:[#allocation99_spill] sm:$0xff] %v40641_v39 }
 0xbe0   :  { %v14586_v11 = vsub.f32 %v40618_v59, %v14585_v50 }
 0xbe1   :  { %v14375_v13 = vpop.f32.mrf.mxu0 }
 0xbe2   :  { %v14376_v2 = vadd.f32 %v14375_v13, %v14299_v49  ;;  %v14587_v6 = vand.u32 4294901760, %v14586_v11  ;;  %v31736_v49 = vld [vmem:[%s43222_s8 + $0x20] sm:$0xff] }
 0xbe3   :  { %v35533_v56 = vpop.f32.mrf.mxu0 }
 0xbe4   :  { %v14449_v16 = vadd.f32 %v14448_v15, %v14376_v2  ;;  %35551 = vmatpush3.msra.mxu1 %v14587_v6  ;;  %v31739_v15 = vld [vmem:[%s43222_s8 + $0x38] sm:$0xff]  ;;  %v40649_v56 = vand.u32 4294901760, %v31737_v57 }
 0xbe5   :  { %35562 = vmatprep.subr.mxu1 %v43529_v29  ;;  %v40636_v44 = vand.u32 4294901760, %v31739_v15 }
 0xbe6   :  { %v14453_v34 = vsel %vm14452_vm10, %v14449_v16, -inf  ;;  %43652 = vst [vmem:[#allocation101_spill] sm:$0xff] %v40649_v56  ;;  %v40661_v52 = vsub.f32 %v31737_v57, %v40649_v56 }
 0xbe7   :  { %14454 = vmax.xlane.f32.xlu0 %v14453_v34  ;;  %43649 = vst [vmem:[#allocation98_spill] sm:$0xff] %v40636_v44  ;;  %v40647_v2 = vsub.f32 %v31739_v15, %v40636_v44  ;;  %v40652_v34 = vsub.f32 %v31738_v55, %v40641_v39 }
 0xbe8   :  { %43656 = vst [vmem:[#allocation105_spill] sm:$0xff] %v40661_v52 }
 0xbe9   :  { %43651 = vst [vmem:[#allocation100_spill] sm:$0xff] %v40647_v2  ;;  %43653 = vst [vmem:[#allocation102_spill] sm:$0xff] %v40652_v34  ;;  %v40664_v31 = vand.u32 4294901760, %v40652_v34 }
 0xbeb   :  { %43657 = vst [vmem:[#allocation106_spill] sm:$0xff] %v40664_v31  ;;  %v15043_v55 = vsub.f32 %v40652_v34, %v40664_v31 }
 0xc70   :  { %v14455_v19 = vpop.xlane.xlu0 %14454 }
 0xc71   :  { %v14456_v40 = vsub.f32 %v14449_v16, %v14455_v19  ;;  %v40654_v19 = vand.u32 4294901760, %v31736_v49 }
 0xc73   :  { %v14457_v25 = vmul.f32 1.442695, %v14456_v40  ;;  %43654 = vst [vmem:[#allocation103_spill] sm:$0xff] %v40654_v19 }
 0xc75   :  { %37862 = vpow2.f32 %v14457_v25 }
 0xc82   :  { %v37863_v12 = vpop.eup %37862 }
 0xc83   :  { %v14459_v20 = vsel %vm14452_vm10, %v37863_v12, 0.0 }
 0xc84   :  { %14460 = vadd.xlane.f32.xlu0 %v14459_v20  ;;  %v40658_v20 = vand.u32 4294901760, %v40647_v2 }
 0xc86   :  { %43655 = vst [vmem:[#allocation104_spill] sm:$0xff] %v40658_v20  ;;  %v15036_v6 = vsub.f32 %v40647_v2, %v40658_v20 }
 0xd0d   :  { %v14461_v32 = vpop.xlane.xlu0 %14460 }
 0xd0e   :  { %37864 = vrcp.f32 %v14461_v32  ;;  %v40675_v32 = vand.u32 4294901760, %v40661_v52 }
 0xd10   :  { %43659 = vst [vmem:[#allocation108_spill] sm:$0xff] %v40675_v32 }
 0xd1b   :  { %v37865_v13 = vpop.eup %37864 }
 0xd1c   :  { %v14463_v16 = vmul.f32 %v37865_v13, %v37863_v12  ;;  %v40667_v12 = vsub.f32 %v31736_v49, %v40654_v19  ;;  %v40686_v13 = vand.u32 4294901760, %v15036_v6 }
 0xd1e   :  { %v14465_v40 = vsel %vm14452_vm10, %v14463_v16, 0  ;;  %43658 = vst [vmem:[#allocation107_spill] sm:$0xff] %v40667_v12  ;;  %v40681_v57 = vand.u32 4294901760, %v40667_v12  ;;  %43661 = vst [vmem:[#allocation110_spill] sm:$0xff] %v40686_v13  ;;  %v15050_v16 = vsub.f32 %v40661_v52, %v40675_v32 }
 0xd1f   :  { %v14537_v25 = vand.u32 4294901760, %v14465_v40 }
 0xd20   :  { %43660 = vst [vmem:[#allocation109_spill] sm:$0xff] %v40681_v57 }
 0xd21   :  { %v14538_v47 = vsub.f32 %v14465_v40, %v14537_v25  ;;  %35553 = vmatmul.mubr.f32.vlgmr.msra.gmra.mxu1 %v14537_v25  ;;  %v40691_v40 = vand.u32 4294901760, %v15043_v55 }
 0xd22   :  { %35563 = vmatpush3.msra.mxu1 %v14499_v17  ;;  %35566 = vmatprep.mubr.msk.f32.mxu1 %vm37987_vm1, %v43529_v29 }
 0xd23   :  { %35564 = vmatprep.subr.mxu1 %v43529_v29  ;;  %v14539_v11 = vand.u32 4294901760, %v14538_v47  ;;  %43662 = vst [vmem:[#allocation111_spill] sm:$0xff] %v40691_v40 }
 0xd24   :  { %35565 = vmatpush3.msra.mxu1 %v14502_v0 }
 0xd25   :  { %35576 = vmatprep.subr.mxu1 %v43529_v29  ;;  %35567 = vmatmul.mubr.f32.vlgmr.msra.gmra.mxu1 %v14539_v11  ;;  %v14540_v15 = vsub.f32 %v14538_v47, %v14539_v11  ;;  %v40698_v11 = vand.u32 4294901760, %v15050_v16 }
 0xd26   :  { %35577 = vmatpush3.msra.mxu1 %v14499_v17  ;;  %35580 = vmatprep.mubr.msk.f32.mxu1 %vm37987_vm1, %v43529_v29  ;;  %v15057_v17 = vsub.f32 %v40667_v12, %v40681_v57 }
 0xd27   :  { %35578 = vmatprep.subr.mxu1 %v43529_v29  ;;  %v14541_v49 = vand.u32 4294901760, %v14540_v15  ;;  %43663 = vst [vmem:[#allocation112_spill] sm:$0xff] %v40698_v11 }
 0xd28   :  { %35579 = vmatpush3.msra.mxu1 %v14502_v0  ;;  %v40705_v0 = vand.u32 4294901760, %v15057_v17 }
 0xd29   :  { %35594 = vmatprep.subr.mxu1 %v43529_v29  ;;  %35546 = vmatmul.mubr.f32.vlgmr.msra.gmra.mxu0 %v14541_v49 }
 0xd2a   :  { %35556 = vmatpush3.msra.mxu0 %v40613_v1  ;;  %35581 = vmatmul.mubr.f32.vlgmr.msra.gmra.mxu1 %v14537_v25  ;;  %43664 = vst [vmem:[#allocation113_spill] sm:$0xff] %v40705_v0 }
 0xd2b   :  { %35595 = vmatpush3.msra.mxu1 %v40686_v13  ;;  %35557 = vmatprep.subr.mxu0 %v43529_v29 }
 0xd2c   :  { %35596 = vmatprep.subr.mxu1 %v43529_v29  ;;  %35558 = vmatpush3.msra.mxu0 %v40618_v59 }
 0xd2d   :  { %35597 = vmatpush3.msra.mxu1 %v40691_v40  ;;  %35559 = vmatprep.mubr.msk.f32.mxu0 %vm37987_vm1, %v43529_v29 }
 0xd2e   :  { %35569 = vmatprep.subr.mxu0 %v43529_v29  ;;  %35598 = vmatprep.subr.mxu1 %v43529_v29 }
 0xd2f   :  { %35560 = vmatmul.mubr.f32.vlgmr.msra.gmra.mxu0 %v14538_v47  ;;  %35599 = vmatpush3.msra.mxu1 %v40698_v11  ;;  %v73_v47 = vld [vmem:[%s43222_s8] sm:$0xff] }
 0xd30   :  { %35570 = vmatpush3.msra.mxu0 %v14578_v5  ;;  %35600 = vmatprep.subr.mxu1 %v43529_v29  ;;  %v40822_v49 = vand.u32 4294901760, %v73_v47 }
 0xd31   :  { %35571 = vmatprep.subr.mxu0 %v43529_v29  ;;  %35601 = vmatpush3.msra.mxu1 %v40705_v0 }
 0xd32   :  { %35572 = vmatpush3.msra.mxu0 %v14585_v50  ;;  %35602 = vmatprep.mubr.msk.f32.mxu1 %vm37987_vm1, %v43529_v29  ;;  %43673 = vst [vmem:[#allocation122_spill] sm:$0xff] %v40822_v49 }
 0xd33   :  { %35573 = vmatprep.mubr.msk.f32.mxu0 %vm37987_vm1, %v43529_v29  ;;  %35583 = vmatprep.subr.mxu0 %v43529_v29 }
 0xd34   :  { %35603 = vmatmul.mubr.f32.vlgmr.msra.gmra.mxu1 %v40507_v62  ;;  %35616 = vmatprep.subr.mxu1 %v43529_v29 }
 0xd35   :  { %35574 = vmatmul.mubr.f32.vlgmr.msra.gmra.mxu0 %v14537_v25  ;;  %35617 = vmatpush3.msra.mxu1 %v40636_v44 }
 0xd36   :  { %35584 = vmatpush3.msra.mxu0 %v40636_v44  ;;  %35618 = vmatprep.subr.mxu1 %v43529_v29 }
 0xd37   :  { %35585 = vmatprep.subr.mxu0 %v43529_v29  ;;  %35619 = vmatpush3.msra.mxu1 %v40641_v39 }
 0xd38   :  { %35586 = vmatpush3.msra.mxu0 %v40641_v39  ;;  %35620 = vmatprep.subr.mxu1 %v43529_v29 }
 0xd39   :  { %35587 = vmatprep.subr.mxu0 %v43529_v29  ;;  %35621 = vmatpush3.msra.mxu1 %v40649_v56 }
 0xd3a   :  { %35588 = vmatpush3.msra.mxu0 %v40649_v56  ;;  %35622 = vmatprep.subr.mxu1 %v43529_v29 }
 0xd3b   :  { %35589 = vmatprep.subr.mxu0 %v43529_v29  ;;  %35591 = vmatprep.mubr.msk.f32.mxu0 %vm37987_vm1, %v43529_v29 }
 0xd3c   :  { %35590 = vmatpush3.msra.mxu0 %v40654_v19  ;;  %35623 = vmatpush3.msra.mxu1 %v40654_v19 }
 0xd3d   :  { %35624 = vmatprep.mubr.msk.f32.mxu1 %vm37987_vm1, %v43529_v29  ;;  %35592 = vmatmul.mubr.f32.vlgmr.msra.gmra.mxu0 %v40526_v42  ;;  %v75_v42 = vld [vmem:[%s43222_s8 + $0x10] sm:$0xff] }
 0xd3e   :  { %35605 = vmatprep.subr.mxu0 %v43529_v29  ;;  %35625 = vmatmul.mubr.f32.vlgmr.msra.gmra.mxu1 %v40518_v7  ;;  %v40794_v5 = vand.u32 4294901760, %v75_v42 }
 0xd3f   :  { %35638 = vmatprep.subr.mxu1 %v43529_v29  ;;  %35606 = vmatpush3.msra.mxu0 %v40647_v2 }
 0xd40   :  { %35639 = vmatpush3.msra.mxu1 %v40636_v44  ;;  %35607 = vmatprep.subr.mxu0 %v43529_v29  ;;  %43667 = vst [vmem:[#allocation116_spill] sm:$0xff] %v40794_v5  ;;  %v40805_v50 = vsub.f32 %v75_v42, %v40794_v5  ;;  %v40834_v42 = vsub.f32 %v73_v47, %v40822_v49 }
 0xd41   :  { %35640 = vmatprep.subr.mxu1 %v43529_v29  ;;  %35608 = vmatpush3.msra.mxu0 %v40652_v34 }
 0xd42   :  { %35641 = vmatpush3.msra.mxu1 %v40641_v39  ;;  %35609 = vmatprep.subr.mxu0 %v43529_v29  ;;  %43669 = vst [vmem:[#allocation118_spill] sm:$0xff] %v40805_v50  ;;  %v40817_v15 = vand.u32 4294901760, %v40805_v50  ;;  %43676 = vst [vmem:[#allocation125_spill] sm:$0xff] %v40834_v42 }
 0xd43   :  { %35642 = vmatprep.subr.mxu1 %v43529_v29  ;;  %35610 = vmatpush3.msra.mxu0 %v40661_v52 }
 0xd44   :  { %35643 = vmatpush3.msra.mxu1 %v40649_v56  ;;  %35611 = vmatprep.subr.mxu0 %v43529_v29  ;;  %43671 = vst [vmem:[#allocation120_spill] sm:$0xff] %v40817_v15  ;;  %v15531_v17 = vsub.f32 %v40805_v50, %v40817_v15 }
 0xd45   :  { %35644 = vmatprep.subr.mxu1 %v43529_v29  ;;  %35612 = vmatpush3.msra.mxu0 %v40667_v12 }
 0xd46   :  { %35613 = vmatprep.mubr.msk.f32.mxu0 %vm37987_vm1, %v43529_v29  ;;  %35645 = vmatpush3.msra.mxu1 %v40654_v19 }
 0xd47   :  { %35646 = vmatprep.mubr.msk.f32.mxu1 %vm37987_vm1, %v43529_v29  ;;  %35614 = vmatmul.mubr.f32.vlgmr.msra.gmra.mxu0 %v40511_v58  ;;  %v76_v58 = vld [vmem:[%s43222_s8 + $0x18] sm:$0xff] }
 0xd48   :  { %35627 = vmatprep.subr.mxu0 %v43529_v29  ;;  %35647 = vmatmul.mubr.f32.vlgmr.msra.gmra.mxu1 %v40507_v62  ;;  %v40786_v7 = vand.u32 4294901760, %v76_v58 }
 0xd49   :  { %35628 = vmatpush3.msra.mxu0 %v40658_v20  ;;  %35635 = vmatprep.mubr.msk.f32.mxu0 %vm37987_vm1, %v43529_v29 }
 0xd4a   :  { %35629 = vmatprep.subr.mxu0 %v43529_v29  ;;  %35660 = vmatprep.subr.mxu1 %v43529_v29  ;;  %43665 = vst [vmem:[#allocation114_spill] sm:$0xff] %v40786_v7  ;;  %v40792_v1 = vsub.f32 %v76_v58, %v40786_v7 }
 0xd4b   :  { %35630 = vmatpush3.msra.mxu0 %v40664_v31  ;;  %35668 = vmatprep.mubr.msk.f32.mxu1 %vm37987_vm1, %v43529_v29 }
 0xd4c   :  { %35631 = vmatprep.subr.mxu0 %v43529_v29  ;;  %43666 = vst [vmem:[#allocation115_spill] sm:$0xff] %v40792_v1  ;;  %v40802_v59 = vand.u32 4294901760, %v40792_v1 }
 0xd4d   :  { %35632 = vmatpush3.msra.mxu0 %v40675_v32 }
 0xd4e   :  { %35633 = vmatprep.subr.mxu0 %v43529_v29  ;;  %43668 = vst [vmem:[#allocation117_spill] sm:$0xff] %v40802_v59  ;;  %v15524_v6 = vsub.f32 %v40792_v1, %v40802_v59 }
 0xd4f   :  { %35634 = vmatpush3.msra.mxu0 %v40681_v57  ;;  %v40844_v57 = vand.u32 4294901760, %v40834_v42 }
 0xd50   :  { %35636 = vmatmul.mubr.f32.vlgmr.msra.gmra.mxu0 %v40507_v62  ;;  %35649 = vmatprep.subr.mxu0 %v43529_v29  ;;  %v74_v62 = vld [vmem:[%s43222_s8 + $0x8] sm:$0xff]  ;;  %v40826_v16 = vand.u32 4294901760, %v15524_v6 }
 0xd51   :  { %35657 = vmatprep.mubr.msk.f32.mxu0 %vm37987_vm1, %v43529_v29  ;;  %35650 = vmatpush3.msra.mxu0 %v40786_v7  ;;  %v40807_v25 = vand.u32 4294901760, %v74_v62  ;;  %43678 = vst [vmem:[#allocation127_spill] sm:$0xff] %v40844_v57  ;;  %v15545_v32 = vsub.f32 %v40834_v42, %v40844_v57 }
 0xd52   :  { %35651 = vmatprep.subr.mxu0 %v43529_v29  ;;  %43674 = vst [vmem:[#allocation123_spill] sm:$0xff] %v40826_v16  ;;  %35661 = vmatpush3.msra.mxu1 %v40826_v16 }
 0xd53   :  { %43670 = vst [vmem:[#allocation119_spill] sm:$0xff] %v40807_v25  ;;  %35652 = vmatpush3.msra.mxu0 %v40794_v5  ;;  %v40820_v55 = vsub.f32 %v74_v62, %v40807_v25  ;;  %v40839_v62 = vand.u32 4294901760, %v15531_v17  ;;  %35662 = vmatprep.subr.mxu1 %v43529_v29  ;;  %v40854_v17 = vand.u32 4294901760, %v15545_v32 }
 0xd54   :  { %35653 = vmatprep.subr.mxu0 %v43529_v29 }
 0xd55   :  { %43672 = vst [vmem:[#allocation121_spill] sm:$0xff] %v40820_v55  ;;  %35654 = vmatpush3.msra.mxu0 %v40807_v25  ;;  %v40831_v58 = vand.u32 4294901760, %v40820_v55  ;;  %43677 = vst [vmem:[#allocation126_spill] sm:$0xff] %v40839_v62  ;;  %35663 = vmatpush3.msra.mxu1 %v40839_v62 }
 0xd56   :  { %35655 = vmatprep.subr.mxu0 %v43529_v29  ;;  %35664 = vmatprep.subr.mxu1 %v43529_v29  ;;  %43680 = vst [vmem:[#allocation129_spill] sm:$0xff] %v40854_v17 }
 0xd57   :  { %43675 = vst [vmem:[#allocation124_spill] sm:$0xff] %v40831_v58  ;;  %35656 = vmatpush3.msra.mxu0 %v40822_v49  ;;  %v15538_v6 = vsub.f32 %v40820_v55, %v40831_v58 }
 0xd58   :  { %35671 = vmatprep.subr.mxu0 %v43529_v29 }
 0xd59   :  { %v40848_v47 = vand.u32 4294901760, %v15538_v6 }
 0xd5b   :  { %43679 = vst [vmem:[#allocation128_spill] sm:$0xff] %v40848_v47  ;;  %35665 = vmatpush3.msra.mxu1 %v40848_v47 }
 0xd5c   :  { %35666 = vmatprep.subr.mxu1 %v43529_v29 }
 0xd5d   :  { %35667 = vmatpush3.msra.mxu1 %v40854_v17 }
 0xd5e   :  { %35682 = vmatprep.subr.mxu1 %v43529_v29 }
 0xde1   :  { %v14624_v16 = vpop.f32.mrf.mxu1 }
 0xde3   :  { %v35554_v31 = vpop.f32.mrf.mxu1 }
 0xde5   :  { %v14775_v62 = vpop.f32.mrf.mxu1 }
 0xde7   :  { %v35568_v6 = vpop.f32.mrf.mxu1 }
 0xde9   :  { %v14543_v20 = vpop.f32.mrf.mxu0 }
 0xdea   :  { %v14925_v12 = vpop.f32.mrf.mxu1  ;;  %v14625_v2 = vadd.f32 %v14624_v16, %v14543_v20 }
 0xdeb   :  { %v35547_v52 = vpop.f32.mrf.mxu0 }
 0xdec   :  { %v35582_v34 = vpop.f32.mrf.mxu1 }
 0xdef   :  { %v14700_v19 = vpop.f32.mrf.mxu0 }
 0xdf0   :  { %v14701_v56 = vadd.f32 %v14700_v19, %v14625_v2 }
 0xdf1   :  { %v35561_v47 = vpop.f32.mrf.mxu0 }
 0xdf2   :  { %v14776_v32 = vadd.f32 %v14775_v62, %v14701_v56 }
 0xdf4   :  { %v15095_v39 = vpop.f32.mrf.mxu1 }
 0xdf5   :  { %v14852_v44 = vpop.f32.mrf.mxu0 }
 0xdf6   :  { %v14853_v0 = vadd.f32 %v14852_v44, %v14776_v32  ;;  %v35604_v11 = vpop.f32.mrf.mxu1 }
 0xdf7   :  { %v35575_v17 = vpop.f32.mrf.mxu0 }
 0xdf8   :  { %v14926_v40 = vadd.f32 %v14925_v12, %v14853_v0 }
 0xdfa   :  { %v15415_v13 = vsel %vm91_vm0, %v14926_v40, 0 }
 0xdfb   :  { %v40860_v31 = vand.u32 4294901760, %v15415_v13 }
 0xdfd   :  { %v15487_v6 = vsub.f32 %v15415_v13, %v40860_v31  ;;  %v15004_v43 = vpop.f32.mrf.mxu0  ;;  %35669 = vmatmul.mubr.f32.vlgmr.msra.gmra.mxu1 %v40860_v31 }
 0xdfe   :  { %v15096_v34 = vadd.f32 %v15095_v39, %v15004_v43  ;;  %v15252_v20 = vpop.f32.mrf.mxu1  ;;  %35683 = vmatpush3.msra.mxu1 %v40786_v7  ;;  %35690 = vmatprep.mubr.msk.f32.mxu1 %vm37987_vm1, %v43529_v29  ;;  %v31759_v43 = vld [vmem:[%s43214_s0 + $0x8] sm:$0xff] }
 0xdff   :  { %v15488_v44 = vand.u32 4294901760, %v15487_v6  ;;  %v35593_v2 = vpop.f32.mrf.mxu0  ;;  %35684 = vmatprep.subr.mxu1 %v43529_v29  ;;  %v15910_v40 = vsel %vm91_vm0, %v31759_v43, 0  ;;  %v43685_v43 = vld [vmem:[#allocation7_spill] sm:$0xff] }
 0xe00   :  { %v35626_v56 = vpop.f32.mrf.mxu1  ;;  %35685 = vmatpush3.msra.mxu1 %v40794_v5  ;;  %v40889_v62 = vand.u32 4294901760, %v15910_v40  ;;  %v43682_v2 = vld [vmem:[#allocation19_spill] sm:$0xff] }
 0xe01   :  { %v15489_v19 = vsub.f32 %v15487_v6, %v15488_v44  ;;  %35686 = vmatprep.subr.mxu1 %v43529_v29  ;;  %v43683_v56 = vld [vmem:[#allocation20_spill] sm:$0xff] }
 0xe02   :  { %35687 = vmatpush3.msra.mxu1 %v40807_v25  ;;  %v40901_v47 = vsub.f32 %v15910_v40, %v40889_v62  ;;  %v43689_v40 = vld [vmem:[#allocation10_spill] sm:$0xff] }
 0xe03   :  { %v15490_v52 = vand.u32 4294901760, %v15489_v19  ;;  %35688 = vmatprep.subr.mxu1 %v43529_v29 }
 0xe04   :  { %35689 = vmatpush3.msra.mxu1 %v40822_v49 }
 0xe05   :  { %35691 = vmatmul.mubr.f32.vlgmr.msra.gmra.mxu1 %v15488_v44  ;;  %35704 = vmatprep.subr.mxu1 %v43529_v29 }
 0xe06   :  { %35658 = vmatmul.mubr.f32.vlgmr.msra.gmra.mxu0 %v15490_v52  ;;  %35705 = vmatpush3.msra.mxu1 %v40786_v7  ;;  %v43684_v52 = vld [vmem:[#allocation6_spill] sm:$0xff]  ;;  %v43755_v7 = vld [vmem:[#allocation76_spill] sm:$0xff] }
 0xe07   :  { %v15175_v39 = vpop.f32.mrf.mxu0  ;;  %35672 = vmatpush3.msra.mxu0 %v40792_v1  ;;  %35706 = vmatprep.subr.mxu1 %v43529_v29  ;;  %v43752_v1 = vld [vmem:[#allocation75_spill] sm:$0xff] }
 0xe08   :  { %v15176_v12 = vadd.f32 %v15175_v39, %v15096_v34  ;;  %v15410_v13 = vpop.f32.mrf.mxu1  ;;  %35673 = vmatprep.subr.mxu0 %v43529_v29  ;;  %35707 = vmatpush3.msra.mxu1 %v40794_v5  ;;  %v43686_v39 = vld [vmem:[#allocation21_spill] sm:$0xff] }
 0xe09   :  { %v35615_v11 = vpop.f32.mrf.mxu0  ;;  %35674 = vmatpush3.msra.mxu0 %v40805_v50  ;;  %35708 = vmatprep.subr.mxu1 %v43529_v29  ;;  %v43750_v50 = vld [vmem:[#allocation71_spill] sm:$0xff] }
 0xe0a   :  { %v35648_v0 = vpop.f32.mrf.mxu1  ;;  %35675 = vmatprep.subr.mxu0 %v43529_v29  ;;  %35709 = vmatpush3.msra.mxu1 %v40807_v25  ;;  %v15253_v16 = vadd.f32 %v15252_v20, %v15176_v12  ;;  %v40913_v20 = vand.u32 4294901760, %v40901_v47  ;;  %v43687_v12 = vld [vmem:[#allocation8_spill] sm:$0xff]  ;;  %v43690_v11 = vld [vmem:[#allocation11_spill] sm:$0xff] }
 0xe0b   :  { %35676 = vmatpush3.msra.mxu0 %v40820_v55  ;;  %35710 = vmatprep.subr.mxu1 %v43529_v29  ;;  %v43691_v0 = vld [vmem:[#allocation12_spill] sm:$0xff] }
 0xe0c   :  { %35677 = vmatprep.subr.mxu0 %v43529_v29  ;;  %35679 = vmatprep.mubr.msk.f32.mxu0 %vm37987_vm1, %v43529_v29  ;;  %v15984_v19 = vsub.f32 %v40901_v47, %v40913_v20  ;;  %v43749_v55 = vld [vmem:[#allocation68_spill] sm:$0xff] }
 0xe0d   :  { %35678 = vmatpush3.msra.mxu0 %v40834_v42  ;;  %35711 = vmatpush3.msra.mxu1 %v40822_v49  ;;  %v43748_v42 = vld [vmem:[#allocation81_spill] sm:$0xff]  ;;  %v43753_v25 = vld [vmem:[#allocation72_spill] sm:$0xff] }
 0xe0e   :  { %35712 = vmatprep.mubr.msk.f32.mxu1 %vm37987_vm1, %v43529_v29  ;;  %35680 = vmatmul.mubr.f32.vlgmr.msra.gmra.mxu0 %v15487_v6  ;;  %v43681_v6 = vld [vmem:[#allocation18_spill] sm:$0xff] }
 0xe0f   :  { %35693 = vmatprep.subr.mxu0 %v43529_v29  ;;  %35713 = vmatmul.mubr.f32.vlgmr.msra.gmra.mxu1 %v40860_v31 }
 0xe10   :  { %v15335_v17 = vpop.f32.mrf.mxu0  ;;  %35694 = vmatpush3.msra.mxu0 %v40802_v59  ;;  %35701 = vmatprep.mubr.msk.f32.mxu0 %vm37987_vm1, %v43529_v29  ;;  %v43747_v59 = vld [vmem:[#allocation70_spill] sm:$0xff] }
 0xe11   :  { %v15336_v32 = vadd.f32 %v15335_v17, %v15253_v16  ;;  %35695 = vmatprep.subr.mxu0 %v43529_v29  ;;  %35726 = vmatprep.subr.mxu1 %v43529_v29  ;;  %v43692_v16 = vld [vmem:[#allocation13_spill] sm:$0xff]  ;;  %v43693_v17 = vld [vmem:[#allocation14_spill] sm:$0xff] }
 0xe12   :  { %v35637_v34 = vpop.f32.mrf.mxu0  ;;  %35696 = vmatpush3.msra.mxu0 %v40817_v15  ;;  %35727 = vmatpush3.msra.mxu1 %v43681_v6  ;;  %v43696_v6 = vld [vmem:[#allocation17_spill] sm:$0xff]  ;;  %v43746_v15 = vld [vmem:[#allocation80_spill] sm:$0xff] }
 0xe13   :  { %35697 = vmatprep.subr.mxu0 %v43529_v29  ;;  %35728 = vmatprep.subr.mxu1 %v43529_v29  ;;  %v40915_v44 = vadd.f32 %v15410_v13, %v15336_v32  ;;  %v43688_v13 = vld [vmem:[#allocation9_spill] sm:$0xff]  ;;  %v43694_v32 = vld [vmem:[#allocation15_spill] sm:$0xff]  ;;  %v43695_v34 = vld [vmem:[#allocation16_spill] sm:$0xff] }
 0xe14   :  { %35698 = vmatpush3.msra.mxu0 %v40831_v58  ;;  %35729 = vmatpush3.msra.mxu1 %v43682_v2  ;;  %v43697_v2 = vld [vmem:[#allocation22_spill] sm:$0xff]  ;;  %v43745_v58 = vld [vmem:[#allocation69_spill] sm:$0xff] }
 0xe15   :  { %35699 = vmatprep.subr.mxu0 %v43529_v29  ;;  %35730 = vmatprep.subr.mxu1 %v43529_v29 }
 0xe16   :  { %35700 = vmatpush3.msra.mxu0 %v40844_v57  ;;  %35731 = vmatpush3.msra.mxu1 %v43683_v56  ;;  %v43698_v56 = vld [vmem:[#allocation34_spill] sm:$0xff]  ;;  %v43744_v57 = vld [vmem:[#allocation79_spill] sm:$0xff] }
 0xe17   :  { %35702 = vmatmul.mubr.f32.vlgmr.msra.gmra.mxu0 %v40860_v31  ;;  %35715 = vmatprep.subr.mxu0 %v43529_v29  ;;  %v40935_v31 = vand.u32 4294901760, %v15984_v19  ;;  %v43699_v19 = vld [vmem:[#allocation23_spill] sm:$0xff] }
 0xe18   :  { %35716 = vmatpush3.msra.mxu0 %v43684_v52  ;;  %35732 = vmatprep.subr.mxu1 %v43529_v29 }
 0xe19   :  { %35717 = vmatprep.subr.mxu0 %v43529_v29  ;;  %35723 = vmatprep.mubr.msk.f32.mxu0 %vm37987_vm1, %v43529_v29 }
 0xe1a   :  { %35718 = vmatpush3.msra.mxu0 %v43685_v43  ;;  %35733 = vmatpush3.msra.mxu1 %v43686_v39  ;;  %v43702_v39 = vld [vmem:[#allocation36_spill] sm:$0xff] }
 0xe1b   :  { %35719 = vmatprep.subr.mxu0 %v43529_v29  ;;  %35734 = vmatprep.mubr.msk.f32.mxu1 %vm37987_vm1, %v43529_v29 }
 0xe1c   :  { %35720 = vmatpush3.msra.mxu0 %v43687_v12  ;;  %35748 = vmatprep.subr.mxu1 %v43529_v29 }
 0xe1d   :  { %35721 = vmatprep.subr.mxu0 %v43529_v29  ;;  %35735 = vmatmul.mubr.f32.vlgmr.msra.gmra.mxu1 %v40889_v62 }
 0xe1e   :  { %35722 = vmatpush3.msra.mxu0 %v43688_v13  ;;  %35749 = vmatpush3.msra.mxu1 %v43684_v52 }
 0xe1f   :  { %35724 = vmatmul.mubr.f32.vlgmr.msra.gmra.mxu0 %v40935_v31  ;;  %35737 = vmatprep.subr.mxu0 %v43529_v29 }
 0xe20   :  { %35738 = vmatpush3.msra.mxu0 %v43689_v40  ;;  %35750 = vmatprep.subr.mxu1 %v43529_v29  ;;  %v43705_v40 = vld [vmem:[#allocation24_spill] sm:$0xff] }
 0xe21   :  { %35739 = vmatprep.subr.mxu0 %v43529_v29  ;;  %35751 = vmatpush3.msra.mxu1 %v43685_v43 }
 0xe22   :  { %35740 = vmatpush3.msra.mxu0 %v43690_v11  ;;  %35752 = vmatprep.subr.mxu1 %v43529_v29  ;;  %v43706_v11 = vld [vmem:[#allocation27_spill] sm:$0xff] }
 0xe23   :  { %35741 = vmatprep.subr.mxu0 %v43529_v29  ;;  %35753 = vmatpush3.msra.mxu1 %v43687_v12 }
 0xe24   :  { %35742 = vmatpush3.msra.mxu0 %v43691_v0  ;;  %35754 = vmatprep.subr.mxu1 %v43529_v29  ;;  %v43707_v0 = vld [vmem:[#allocation29_spill] sm:$0xff] }
 0xe25   :  { %35743 = vmatprep.subr.mxu0 %v43529_v29  ;;  %35745 = vmatprep.mubr.msk.f32.mxu0 %vm37987_vm1, %v43529_v29 }
 0xe26   :  { %35744 = vmatpush3.msra.mxu0 %v43692_v16  ;;  %35755 = vmatpush3.msra.mxu1 %v43688_v13  ;;  %v43708_v16 = vld [vmem:[#allocation31_spill] sm:$0xff] }
 0xe27   :  { %35746 = vmatmul.mubr.f32.vlgmr.msra.gmra.mxu0 %v40901_v47  ;;  %35756 = vmatprep.mubr.msk.f32.mxu1 %vm37987_vm1, %v43529_v29 }
 0xe28   :  { %35759 = vmatprep.subr.mxu0 %v43529_v29  ;;  %35770 = vmatprep.subr.mxu1 %v43529_v29 }
 0xe29   :  { %35757 = vmatmul.mubr.f32.vlgmr.msra.gmra.mxu1 %v40913_v20  ;;  %35760 = vmatpush3.msra.mxu0 %v43693_v17  ;;  %v43709_v17 = vld [vmem:[#allocation28_spill] sm:$0xff] }
 0xe2a   :  { %35771 = vmatpush3.msra.mxu1 %v43684_v52  ;;  %35761 = vmatprep.subr.mxu0 %v43529_v29  ;;  %v43700_v52 = vld [vmem:[#allocation35_spill] sm:$0xff] }
 0xe2b   :  { %35772 = vmatprep.subr.mxu1 %v43529_v29  ;;  %35762 = vmatpush3.msra.mxu0 %v43694_v32  ;;  %v43710_v32 = vld [vmem:[#allocation30_spill] sm:$0xff] }
 0xe2c   :  { %35773 = vmatpush3.msra.mxu1 %v43685_v43  ;;  %35763 = vmatprep.subr.mxu0 %v43529_v29  ;;  %v43701_v43 = vld [vmem:[#allocation25_spill] sm:$0xff] }
 0xe2d   :  { %35774 = vmatprep.subr.mxu1 %v43529_v29  ;;  %35764 = vmatpush3.msra.mxu0 %v43695_v34  ;;  %v43711_v34 = vld [vmem:[#allocation32_spill] sm:$0xff] }
 0xe2e   :  { %35775 = vmatpush3.msra.mxu1 %v43687_v12  ;;  %35765 = vmatprep.subr.mxu0 %v43529_v29  ;;  %v43703_v12 = vld [vmem:[#allocation26_spill] sm:$0xff] }
 0xe2f   :  { %35776 = vmatprep.subr.mxu1 %v43529_v29  ;;  %35766 = vmatpush3.msra.mxu0 %v43696_v6  ;;  %v43712_v6 = vld [vmem:[#allocation33_spill] sm:$0xff] }
 0xe30   :  { %35767 = vmatprep.mubr.msk.f32.mxu0 %vm37987_vm1, %v43529_v29  ;;  %35777 = vmatpush3.msra.mxu1 %v43688_v13  ;;  %v43704_v13 = vld [vmem:[#allocation37_spill] sm:$0xff] }
 0xe31   :  { %35768 = vmatmul.mubr.f32.vlgmr.msra.gmra.mxu0 %v40889_v62  ;;  %35778 = vmatprep.mubr.msk.f32.mxu1 %vm37987_vm1, %v43529_v29 }
 0xe32   :  { %35781 = vmatprep.subr.mxu0 %v43529_v29  ;;  %35792 = vmatprep.subr.mxu1 %v43529_v29 }
 0xe33   :  { %35779 = vmatmul.mubr.f32.vlgmr.msra.gmra.mxu1 %v40889_v62  ;;  %35782 = vmatpush3.msra.mxu0 %v43697_v2 }
 0xe34   :  { %35793 = vmatpush3.msra.mxu1 %v43698_v56  ;;  %35783 = vmatprep.subr.mxu0 %v43529_v29  ;;  %v43714_v56 = vld [vmem:[#allocation50_spill] sm:$0xff] }
 0xe35   :  { %35794 = vmatprep.subr.mxu1 %v43529_v29  ;;  %35784 = vmatpush3.msra.mxu0 %v43699_v19 }
 0xe36   :  { %35795 = vmatpush3.msra.mxu1 %v43700_v52  ;;  %35785 = vmatprep.subr.mxu0 %v43529_v29  ;;  %v43716_v52 = vld [vmem:[#allocation51_spill] sm:$0xff] }
 0xe37   :  { %35796 = vmatprep.subr.mxu1 %v43529_v29  ;;  %35786 = vmatpush3.msra.mxu0 %v43701_v43 }
 0xe38   :  { %35797 = vmatpush3.msra.mxu1 %v43702_v39  ;;  %35787 = vmatprep.subr.mxu0 %v43529_v29  ;;  %v43718_v39 = vld [vmem:[#allocation52_spill] sm:$0xff] }
 0xe39   :  { %35798 = vmatprep.subr.mxu1 %v43529_v29  ;;  %35788 = vmatpush3.msra.mxu0 %v43703_v12 }
 0xe3a   :  { %35789 = vmatprep.mubr.msk.f32.mxu0 %vm37987_vm1, %v43529_v29  ;;  %35799 = vmatpush3.msra.mxu1 %v43704_v13  ;;  %v43720_v13 = vld [vmem:[#allocation53_spill] sm:$0xff] }
 0xe3b   :  { %35790 = vmatmul.mubr.f32.vlgmr.msra.gmra.mxu0 %v40935_v31  ;;  %35800 = vmatprep.mubr.msk.f32.mxu1 %vm37987_vm1, %v43529_v29 }
 0xe3c   :  { %35803 = vmatprep.subr.mxu0 %v43529_v29  ;;  %35814 = vmatprep.subr.mxu1 %v43529_v29 }
 0xe3d   :  { %35801 = vmatmul.mubr.f32.vlgmr.msra.gmra.mxu1 %v40889_v62  ;;  %35804 = vmatpush3.msra.mxu0 %v43705_v40  ;;  %v43721_v40 = vld [vmem:[#allocation40_spill] sm:$0xff] }
 0xe3e   :  { %35815 = vmatpush3.msra.mxu1 %v43697_v2  ;;  %35805 = vmatprep.subr.mxu0 %v43529_v29 }
 0xe3f   :  { %35816 = vmatprep.subr.mxu1 %v43529_v29  ;;  %35806 = vmatpush3.msra.mxu0 %v43706_v11  ;;  %v43722_v11 = vld [vmem:[#allocation43_spill] sm:$0xff] }
 0xe40   :  { %35817 = vmatpush3.msra.mxu1 %v43699_v19  ;;  %35807 = vmatprep.subr.mxu0 %v43529_v29 }
 0xe41   :  { %35818 = vmatprep.subr.mxu1 %v43529_v29  ;;  %35808 = vmatpush3.msra.mxu0 %v43707_v0  ;;  %v43723_v0 = vld [vmem:[#allocation45_spill] sm:$0xff] }
 0xe42   :  { %35819 = vmatpush3.msra.mxu1 %v43701_v43  ;;  %35809 = vmatprep.subr.mxu0 %v43529_v29 }
 0xe43   :  { %35820 = vmatprep.subr.mxu1 %v43529_v29  ;;  %35810 = vmatpush3.msra.mxu0 %v43708_v16 }
 0xe44   :  { %35811 = vmatprep.mubr.msk.f32.mxu0 %vm37987_vm1, %v43529_v29  ;;  %35821 = vmatpush3.msra.mxu1 %v43703_v12 }
 0xe45   :  { %35812 = vmatmul.mubr.f32.vlgmr.msra.gmra.mxu0 %v40901_v47  ;;  %35822 = vmatprep.mubr.msk.f32.mxu1 %vm37987_vm1, %v43529_v29 }
 0xe46   :  { %35825 = vmatprep.subr.mxu0 %v43529_v29  ;;  %35836 = vmatprep.subr.mxu1 %v43529_v29 }
 0xe47   :  { %35823 = vmatmul.mubr.f32.vlgmr.msra.gmra.mxu1 %v40913_v20  ;;  %35826 = vmatpush3.msra.mxu0 %v43709_v17  ;;  %v43724_v17 = vld [vmem:[#allocation47_spill] sm:$0xff] }
 0xe48   :  { %35837 = vmatpush3.msra.mxu1 %v43697_v2  ;;  %35827 = vmatprep.subr.mxu0 %v43529_v29  ;;  %v43713_v2 = vld [vmem:[#allocation38_spill] sm:$0xff] }
 0xe49   :  { %35838 = vmatprep.subr.mxu1 %v43529_v29  ;;  %35828 = vmatpush3.msra.mxu0 %v43710_v32 }
 0xe4a   :  { %35839 = vmatpush3.msra.mxu1 %v43699_v19  ;;  %35829 = vmatprep.subr.mxu0 %v43529_v29  ;;  %v43715_v19 = vld [vmem:[#allocation39_spill] sm:$0xff] }
 0xe4b   :  { %35840 = vmatprep.subr.mxu1 %v43529_v29  ;;  %35830 = vmatpush3.msra.mxu0 %v43711_v34  ;;  %v43725_v34 = vld [vmem:[#allocation44_spill] sm:$0xff] }
 0xe4c   :  { %35841 = vmatpush3.msra.mxu1 %v43701_v43  ;;  %35831 = vmatprep.subr.mxu0 %v43529_v29  ;;  %v43717_v43 = vld [vmem:[#allocation41_spill] sm:$0xff] }
 0xe4d   :  { %35842 = vmatprep.subr.mxu1 %v43529_v29  ;;  %35832 = vmatpush3.msra.mxu0 %v43712_v6 }
 0xe4e   :  { %35833 = vmatprep.mubr.msk.f32.mxu0 %vm37987_vm1, %v43529_v29  ;;  %35843 = vmatpush3.msra.mxu1 %v43703_v12  ;;  %v43719_v12 = vld [vmem:[#allocation42_spill] sm:$0xff] }
 0xe4f   :  { %35834 = vmatmul.mubr.f32.vlgmr.msra.gmra.mxu0 %v40889_v62  ;;  %35844 = vmatprep.mubr.msk.f32.mxu1 %vm37987_vm1, %v43529_v29 }
 0xe50   :  { %35847 = vmatprep.subr.mxu0 %v43529_v29  ;;  %35858 = vmatprep.subr.mxu1 %v43529_v29 }
 0xe51   :  { %35845 = vmatmul.mubr.f32.vlgmr.msra.gmra.mxu1 %v40889_v62  ;;  %35848 = vmatpush3.msra.mxu0 %v43713_v2 }
 0xe52   :  { %35859 = vmatpush3.msra.mxu1 %v43714_v56  ;;  %35849 = vmatprep.subr.mxu0 %v43529_v29 }
 0xe53   :  { %35860 = vmatprep.subr.mxu1 %v43529_v29  ;;  %35850 = vmatpush3.msra.mxu0 %v43715_v19 }
 0xe54   :  { %35861 = vmatpush3.msra.mxu1 %v43716_v52  ;;  %35851 = vmatprep.subr.mxu0 %v43529_v29  ;;  %v43729_v52 = vld [vmem:[#allocation54_spill] sm:$0xff] }
 0xe55   :  { %35862 = vmatprep.subr.mxu1 %v43529_v29  ;;  %35852 = vmatpush3.msra.mxu0 %v43717_v43 }
 0xe56   :  { %35863 = vmatpush3.msra.mxu1 %v43718_v39  ;;  %35853 = vmatprep.subr.mxu0 %v43529_v29  ;;  %v43731_v39 = vld [vmem:[#allocation56_spill] sm:$0xff] }
 0xe57   :  { %35864 = vmatprep.subr.mxu1 %v43529_v29  ;;  %35854 = vmatpush3.msra.mxu0 %v43719_v12 }
 0xe58   :  { %35855 = vmatprep.mubr.msk.f32.mxu0 %vm37987_vm1, %v43529_v29  ;;  %35865 = vmatpush3.msra.mxu1 %v43720_v13  ;;  %v43733_v13 = vld [vmem:[#allocation58_spill] sm:$0xff] }
 0xe59   :  { %35856 = vmatmul.mubr.f32.vlgmr.msra.gmra.mxu0 %v40935_v31  ;;  %35866 = vmatprep.mubr.msk.f32.mxu1 %vm37987_vm1, %v43529_v29  ;;  %v41086_v31 = vld [vmem:[%s43216_s2 + $0x1] sm:$0x1] }
 0xe5a   :  { %35869 = vmatprep.subr.mxu0 %v43529_v29  ;;  %35880 = vmatprep.subr.mxu1 %v43529_v29  ;;  %v17369_v16 = vsel %vm91_vm0, %v41086_v31, 0 }
 0xe5b   :  { %35867 = vmatmul.mubr.f32.vlgmr.msra.gmra.mxu1 %v40889_v62  ;;  %35870 = vmatpush3.msra.mxu0 %v43721_v40  ;;  %v41104_v32 = vand.u32 4294901760, %v17369_v16  ;;  %v43734_v40 = vld [vmem:[#allocation59_spill] sm:$0xff] }
 0xe5c   :  { %35881 = vmatpush3.msra.mxu1 %v43713_v2  ;;  %35871 = vmatprep.subr.mxu0 %v43529_v29 }
 0xe5d   :  { %35882 = vmatprep.subr.mxu1 %v43529_v29  ;;  %35872 = vmatpush3.msra.mxu0 %v43722_v11  ;;  %v41115_v6 = vsub.f32 %v17369_v16, %v41104_v32  ;;  %v43735_v11 = vld [vmem:[#allocation61_spill] sm:$0xff]  ;;  %v43737_v16 = vld [vmem:[#allocation60_spill] sm:$0xff] }
 0xe5e   :  { %35883 = vmatpush3.msra.mxu1 %v43715_v19  ;;  %35873 = vmatprep.subr.mxu0 %v43529_v29 }
 0xe5f   :  { %35884 = vmatprep.subr.mxu1 %v43529_v29  ;;  %35874 = vmatpush3.msra.mxu0 %v43723_v0  ;;  %v41126_v56 = vand.u32 4294901760, %v41115_v6  ;;  %v43736_v0 = vld [vmem:[#allocation63_spill] sm:$0xff] }
 0xe60   :  { %35885 = vmatpush3.msra.mxu1 %v43717_v43  ;;  %35875 = vmatprep.subr.mxu0 %v43529_v29 }
 0xe61   :  { %35886 = vmatprep.subr.mxu1 %v43529_v29  ;;  %35876 = vmatpush3.msra.mxu0 %v43724_v17  ;;  %v43738_v17 = vld [vmem:[#allocation62_spill] sm:$0xff] }
 0xe62   :  { %35877 = vmatprep.mubr.msk.f32.mxu0 %vm37987_vm1, %v43529_v29  ;;  %35887 = vmatpush3.msra.mxu1 %v43719_v12 }
 0xe63   :  { %35878 = vmatmul.mubr.f32.vlgmr.msra.gmra.mxu0 %v40901_v47  ;;  %35888 = vmatprep.mubr.msk.f32.mxu1 %vm37987_vm1, %v43529_v29  ;;  %v43726_v47 = vld [vmem:[#allocation46_spill] sm:$0xff] }
 0xe64   :  { %35891 = vmatprep.subr.mxu0 %v43529_v29  ;;  %35902 = vmatprep.subr.mxu1 %v43529_v29 }
 0xe65   :  { %35889 = vmatmul.mubr.f32.vlgmr.msra.gmra.mxu1 %v40913_v20  ;;  %35892 = vmatpush3.msra.mxu0 %v43725_v34  ;;  %v43727_v20 = vld [vmem:[#allocation48_spill] sm:$0xff] }
 0xe66   :  { %35903 = vmatpush3.msra.mxu1 %v43713_v2  ;;  %35893 = vmatprep.subr.mxu0 %v43529_v29  ;;  %v43728_v2 = vld [vmem:[#allocation49_spill] sm:$0xff]  ;;  %v43739_v34 = vld [vmem:[#allocation64_spill] sm:$0xff] }
 0xe67   :  { %35904 = vmatprep.subr.mxu1 %v43529_v29  ;;  %35894 = vmatpush3.msra.mxu0 %v43726_v47  ;;  %v43740_v47 = vld [vmem:[#allocation65_spill] sm:$0xff] }
 0xe68   :  { %35905 = vmatpush3.msra.mxu1 %v43715_v19  ;;  %35895 = vmatprep.subr.mxu0 %v43529_v29  ;;  %v17443_v19 = vsub.f32 %v41115_v6, %v41126_v56 }
 0xe69   :  { %35906 = vmatprep.subr.mxu1 %v43529_v29  ;;  %35896 = vmatpush3.msra.mxu0 %v43727_v20  ;;  %v43741_v20 = vld [vmem:[#allocation66_spill] sm:$0xff] }
 0xe6a   :  { %35907 = vmatpush3.msra.mxu1 %v43717_v43  ;;  %35897 = vmatprep.subr.mxu0 %v43529_v29  ;;  %v43730_v43 = vld [vmem:[#allocation55_spill] sm:$0xff] }
 0xe6b   :  { %35908 = vmatprep.subr.mxu1 %v43529_v29  ;;  %35898 = vmatpush3.msra.mxu0 %v43728_v2  ;;  %v43742_v2 = vld [vmem:[#allocation78_spill] sm:$0xff] }
 0xe6c   :  { %35899 = vmatprep.mubr.msk.f32.mxu0 %vm37987_vm1, %v43529_v29  ;;  %35909 = vmatpush3.msra.mxu1 %v43719_v12  ;;  %v43732_v12 = vld [vmem:[#allocation57_spill] sm:$0xff] }
 0xe6d   :  { %35900 = vmatmul.mubr.f32.vlgmr.msra.gmra.mxu0 %v40889_v62  ;;  %35910 = vmatprep.mubr.msk.f32.mxu1 %vm37987_vm1, %v43529_v29 }
 0xe6e   :  { %35913 = vmatprep.subr.mxu0 %v43529_v29  ;;  %35924 = vmatprep.subr.mxu1 %v43529_v29 }
 0xe6f   :  { %35911 = vmatmul.mubr.f32.vlgmr.msra.gmra.mxu1 %v40889_v62  ;;  %35914 = vmatpush3.msra.mxu0 %v38414_v53  ;;  %v41148_v62 = vand.u32 4294901760, %v17443_v19  ;;  %v43743_v19 = vld [vmem:[#allocation67_spill] sm:$0xff] }
 0xe70   :  { %35925 = vmatpush3.msra.mxu1 %v43729_v52  ;;  %35915 = vmatprep.subr.mxu0 %v43529_v29 }
 0xe71   :  { %35926 = vmatprep.subr.mxu1 %v43529_v29  ;;  %35916 = vmatpush3.msra.mxu0 %v38431_v61 }
 0xe72   :  { %35927 = vmatpush3.msra.mxu1 %v43730_v43  ;;  %35917 = vmatprep.subr.mxu0 %v43529_v29 }
 0xe73   :  { %35928 = vmatprep.subr.mxu1 %v43529_v29  ;;  %35918 = vmatpush3.msra.mxu0 %v38443_v24 }
 0xe74   :  { %35929 = vmatpush3.msra.mxu1 %v43731_v39  ;;  %35919 = vmatprep.subr.mxu0 %v43529_v29 }
 0xe75   :  { %35930 = vmatprep.subr.mxu1 %v43529_v29  ;;  %35920 = vmatpush3.msra.mxu0 %v38453_v35 }
 0xe76   :  { %35921 = vmatprep.mubr.msk.f32.mxu0 %vm37987_vm1, %v43529_v29  ;;  %35931 = vmatpush3.msra.mxu1 %v43732_v12 }
 0xe77   :  { %35922 = vmatmul.mubr.f32.vlgmr.msra.gmra.mxu0 %v41148_v62  ;;  %35932 = vmatprep.mubr.msk.f32.mxu1 %vm37987_vm1, %v43529_v29 }
 0xe78   :  { %35935 = vmatprep.subr.mxu0 %v43529_v29  ;;  %35946 = vmatprep.subr.mxu1 %v43529_v29 }
 0xe79   :  { %35933 = vmatmul.mubr.f32.vlgmr.msra.gmra.mxu1 %v41104_v32  ;;  %35936 = vmatpush3.msra.mxu0 %v38439_v21 }
 0xe7a   :  { %35947 = vmatpush3.msra.mxu1 %v38414_v53  ;;  %35937 = vmatprep.subr.mxu0 %v43529_v29 }
 0xe7b   :  { %35948 = vmatprep.subr.mxu1 %v43529_v29  ;;  %35938 = vmatpush3.msra.mxu0 %v38456_v48 }
 0xe7c   :  { %35949 = vmatpush3.msra.mxu1 %v38431_v61  ;;  %35939 = vmatprep.subr.mxu0 %v43529_v29 }
 0xe7d   :  { %35950 = vmatprep.subr.mxu1 %v43529_v29  ;;  %35940 = vmatpush3.msra.mxu0 %v38466_v51 }
 0xe7e   :  { %35951 = vmatpush3.msra.mxu1 %v38443_v24  ;;  %35941 = vmatprep.subr.mxu0 %v43529_v29 }
 0xe7f   :  { %35952 = vmatprep.subr.mxu1 %v43529_v29  ;;  %35942 = vmatpush3.msra.mxu0 %v38480_v23 }
 0xe80   :  { %35943 = vmatprep.mubr.msk.f32.mxu0 %vm37987_vm1, %v43529_v29  ;;  %35953 = vmatpush3.msra.mxu1 %v38453_v35 }
 0xe81   :  { %35944 = vmatmul.mubr.f32.vlgmr.msra.gmra.mxu0 %v41115_v6  ;;  %35954 = vmatprep.mubr.msk.f32.mxu1 %vm37987_vm1, %v43529_v29 }
 0xe82   :  { %35957 = vmatprep.subr.mxu0 %v43529_v29  ;;  %35968 = vmatprep.subr.mxu1 %v43529_v29 }
 0xe83   :  { %35955 = vmatmul.mubr.f32.vlgmr.msra.gmra.mxu1 %v41126_v56  ;;  %35958 = vmatpush3.msra.mxu0 %v38461_v8 }
 0xe84   :  { %35969 = vmatpush3.msra.mxu1 %v38414_v53  ;;  %35959 = vmatprep.subr.mxu0 %v43529_v29 }
 0xe85   :  { %35970 = vmatprep.subr.mxu1 %v43529_v29  ;;  %35960 = vmatpush3.msra.mxu0 %v38477_v22 }
 0xe86   :  { %35971 = vmatpush3.msra.mxu1 %v38431_v61  ;;  %35961 = vmatprep.subr.mxu0 %v43529_v29 }
 0xe87   :  { %35972 = vmatprep.subr.mxu1 %v43529_v29  ;;  %35962 = vmatpush3.msra.mxu0 %v38489_v26 }
 0xe88   :  { %35973 = vmatpush3.msra.mxu1 %v38443_v24  ;;  %35963 = vmatprep.subr.mxu0 %v43529_v29 }
 0xe89   :  { %35974 = vmatprep.subr.mxu1 %v43529_v29  ;;  %35964 = vmatpush3.msra.mxu0 %v38500_v10 }
 0xe8a   :  { %35965 = vmatprep.mubr.msk.f32.mxu0 %vm37987_vm1, %v43529_v29  ;;  %35975 = vmatpush3.msra.mxu1 %v38453_v35 }
 0xe8b   :  { %35966 = vmatmul.mubr.f32.vlgmr.msra.gmra.mxu0 %v41104_v32  ;;  %35976 = vmatprep.mubr.msk.f32.mxu1 %vm37987_vm1, %v43529_v29 }
 0xe8c   :  { %35979 = vmatprep.subr.mxu0 %v43529_v29  ;;  %35990 = vmatprep.subr.mxu1 %v43529_v29 }
 0xe8d   :  { %35977 = vmatmul.mubr.f32.vlgmr.msra.gmra.mxu1 %v41104_v32  ;;  %35980 = vmatpush3.msra.mxu0 %v38553_v46 }
 0xe8e   :  { %35991 = vmatpush3.msra.mxu1 %v38632_v45  ;;  %35981 = vmatprep.subr.mxu0 %v43529_v29 }
 0xe8f   :  { %35992 = vmatprep.subr.mxu1 %v43529_v29  ;;  %35982 = vmatpush3.msra.mxu0 %v38567_v37 }
 0xe90   :  { %35993 = vmatpush3.msra.mxu1 %v38643_v41  ;;  %35983 = vmatprep.subr.mxu0 %v43529_v29 }
 0xe91   :  { %35994 = vmatprep.subr.mxu1 %v43529_v29  ;;  %35984 = vmatpush3.msra.mxu0 %v38579_v60 }
 0xe92   :  { %35995 = vmatpush3.msra.mxu1 %v38652_v38  ;;  %35985 = vmatprep.subr.mxu0 %v43529_v29 }
 0xe93   :  { %35996 = vmatprep.subr.mxu1 %v43529_v29  ;;  %35986 = vmatpush3.msra.mxu0 %v38586_v28 }
 0xe94   :  { %35987 = vmatprep.mubr.msk.f32.mxu0 %vm37987_vm1, %v43529_v29  ;;  %35997 = vmatpush3.msra.mxu1 %v38658_v63 }
 0xe95   :  { %35988 = vmatmul.mubr.f32.vlgmr.msra.gmra.mxu0 %v41148_v62  ;;  %35998 = vmatprep.mubr.msk.f32.mxu1 %vm37987_vm1, %v43529_v29 }
 0xe96   :  { %36001 = vmatprep.subr.mxu0 %v43529_v29  ;;  %36012 = vmatprep.subr.mxu1 %v43529_v29 }
 0xe97   :  { %35999 = vmatmul.mubr.f32.vlgmr.msra.gmra.mxu1 %v41104_v32  ;;  %36002 = vmatpush3.msra.mxu0 %v43733_v13 }
 0xe98   :  { %36013 = vmatpush3.msra.mxu1 %v38553_v46  ;;  %36003 = vmatprep.subr.mxu0 %v43529_v29 }
 0xe99   :  { %36014 = vmatprep.subr.mxu1 %v43529_v29  ;;  %36004 = vmatpush3.msra.mxu0 %v43734_v40 }
 0xe9a   :  { %36015 = vmatpush3.msra.mxu1 %v38567_v37  ;;  %36005 = vmatprep.subr.mxu0 %v43529_v29 }
 0xe9b   :  { %36016 = vmatprep.subr.mxu1 %v43529_v29  ;;  %36006 = vmatpush3.msra.mxu0 %v43735_v11 }
 0xe9c   :  { %36017 = vmatpush3.msra.mxu1 %v38579_v60  ;;  %36007 = vmatprep.subr.mxu0 %v43529_v29 }
 0xe9d   :  { %36018 = vmatprep.subr.mxu1 %v43529_v29  ;;  %36008 = vmatpush3.msra.mxu0 %v43736_v0 }
 0xe9e   :  { %36009 = vmatprep.mubr.msk.f32.mxu0 %vm37987_vm1, %v43529_v29  ;;  %36019 = vmatpush3.msra.mxu1 %v38586_v28 }
 0xe9f   :  { %36010 = vmatmul.mubr.f32.vlgmr.msra.gmra.mxu0 %v41115_v6  ;;  %36020 = vmatprep.mubr.msk.f32.mxu1 %vm37987_vm1, %v43529_v29 }
 0xea0   :  { %36023 = vmatprep.subr.mxu0 %v43529_v29  ;;  %36034 = vmatprep.subr.mxu1 %v43529_v29 }
 0xea1   :  { %36021 = vmatmul.mubr.f32.vlgmr.msra.gmra.mxu1 %v41126_v56  ;;  %36024 = vmatpush3.msra.mxu0 %v43737_v16 }
 0xea2   :  { %36035 = vmatpush3.msra.mxu1 %v38553_v46  ;;  %36025 = vmatprep.subr.mxu0 %v43529_v29 }
 0xea3   :  { %36036 = vmatprep.subr.mxu1 %v43529_v29  ;;  %36026 = vmatpush3.msra.mxu0 %v43738_v17 }
 0xea4   :  { %36037 = vmatpush3.msra.mxu1 %v38567_v37  ;;  %36027 = vmatprep.subr.mxu0 %v43529_v29 }
 0xea5   :  { %36038 = vmatprep.subr.mxu1 %v43529_v29  ;;  %36028 = vmatpush3.msra.mxu0 %v43739_v34 }
 0xea6   :  { %36039 = vmatpush3.msra.mxu1 %v38579_v60  ;;  %36029 = vmatprep.subr.mxu0 %v43529_v29 }
 0xea7   :  { %36040 = vmatprep.subr.mxu1 %v43529_v29  ;;  %36030 = vmatpush3.msra.mxu0 %v43740_v47 }
 0xea8   :  { %36031 = vmatprep.mubr.msk.f32.mxu0 %vm37987_vm1, %v43529_v29  ;;  %36041 = vmatpush3.msra.mxu1 %v38586_v28 }
 0xea9   :  { %36032 = vmatmul.mubr.f32.vlgmr.msra.gmra.mxu0 %v41104_v32  ;;  %36042 = vmatprep.mubr.msk.f32.mxu1 %vm37987_vm1, %v43529_v29 }
 0xeaa   :  { %36045 = vmatprep.subr.mxu0 %v43529_v29  ;;  %36056 = vmatprep.subr.mxu1 %v43529_v29 }
 0xeab   :  { %36043 = vmatmul.mubr.f32.vlgmr.msra.gmra.mxu1 %v41104_v32  ;;  %36046 = vmatpush3.msra.mxu0 %v43741_v20 }
 0xeac   :  { %36057 = vmatpush3.msra.mxu1 %v43742_v2  ;;  %36047 = vmatprep.subr.mxu0 %v43529_v29 }
 0xead   :  { %36058 = vmatprep.subr.mxu1 %v43529_v29  ;;  %36048 = vmatpush3.msra.mxu0 %v43743_v19 }
 0xeae   :  { %36059 = vmatpush3.msra.mxu1 %v43744_v57  ;;  %36049 = vmatprep.subr.mxu0 %v43529_v29 }
 0xeaf   :  { %36060 = vmatprep.subr.mxu1 %v43529_v29  ;;  %36050 = vmatpush3.msra.mxu0 %v43745_v58 }
 0xeb0   :  { %36061 = vmatpush3.msra.mxu1 %v43746_v15  ;;  %36051 = vmatprep.subr.mxu0 %v43529_v29 }
 0xeb1   :  { %36062 = vmatprep.subr.mxu1 %v43529_v29  ;;  %36052 = vmatpush3.msra.mxu0 %v43747_v59 }
 0xeb2   :  { %36053 = vmatprep.mubr.msk.f32.mxu0 %vm37987_vm1, %v43529_v29  ;;  %36063 = vmatpush3.msra.mxu1 %v43748_v42 }
 0xeb3   :  { %36054 = vmatmul.mubr.f32.vlgmr.msra.gmra.mxu0 %v41148_v62  ;;  %36064 = vmatprep.mubr.msk.f32.mxu1 %vm37987_vm1, %v43529_v29  ;;  %v43751_v62 = vld [vmem:[#allocation73_spill] sm:$0xff] }
 0xeb4   :  { %36067 = vmatprep.subr.mxu0 %v43529_v29  ;;  %36078 = vmatprep.subr.mxu1 %v43529_v29 }
 0xeb5   :  { %36065 = vmatmul.mubr.f32.vlgmr.msra.gmra.mxu1 %v41104_v32  ;;  %36068 = vmatpush3.msra.mxu0 %v43749_v55 }
 0xeb6   :  { %36079 = vmatpush3.msra.mxu1 %v43741_v20  ;;  %36069 = vmatprep.subr.mxu0 %v43529_v29 }
 0xeb7   :  { %36080 = vmatprep.subr.mxu1 %v43529_v29  ;;  %36070 = vmatpush3.msra.mxu0 %v43750_v50 }
 0xeb8   :  { %36081 = vmatpush3.msra.mxu1 %v43743_v19  ;;  %36071 = vmatprep.subr.mxu0 %v43529_v29 }
 0xeb9   :  { %36082 = vmatprep.subr.mxu1 %v43529_v29  ;;  %36072 = vmatpush3.msra.mxu0 %v43751_v62 }
 0xeba   :  { %36083 = vmatpush3.msra.mxu1 %v43745_v58  ;;  %36073 = vmatprep.subr.mxu0 %v43529_v29 }
 0xebb   :  { %36084 = vmatprep.subr.mxu1 %v43529_v29  ;;  %36074 = vmatpush3.msra.mxu0 %v43752_v1 }
 0xebc   :  { %36075 = vmatprep.mubr.msk.f32.mxu0 %vm37987_vm1, %v43529_v29  ;;  %36085 = vmatpush3.msra.mxu1 %v43747_v59 }
 0xebd   :  { %36076 = vmatmul.mubr.f32.vlgmr.msra.gmra.mxu0 %v41115_v6  ;;  %36086 = vmatprep.mubr.msk.f32.mxu1 %vm37987_vm1, %v43529_v29  ;;  %v15583_v49 = vpop.f32.mrf.mxu1  ;;  %v43754_v6 = vld [vmem:[#allocation74_spill] sm:$0xff] }
 0xebe   :  { %36089 = vmatprep.subr.mxu0 %v43529_v29  ;;  %36100 = vmatprep.subr.mxu1 %v43529_v29 }
 0xebf   :  { %36087 = vmatmul.mubr.f32.vlgmr.msra.gmra.mxu1 %v41126_v56  ;;  %36090 = vmatpush3.msra.mxu0 %v43753_v25  ;;  %v35670_v5 = vpop.f32.mrf.mxu1 }
 0xec0   :  { %36101 = vmatpush3.msra.mxu1 %v43741_v20  ;;  %36091 = vmatprep.subr.mxu0 %v43529_v29  ;;  %v43756_v5 = vld [vmem:[#allocation77_spill] sm:$0xff] }
 0xec1   :  { %36102 = vmatprep.subr.mxu1 %v43529_v29  ;;  %36092 = vmatpush3.msra.mxu0 %v43754_v6 }
 0xec2   :  { %36103 = vmatpush3.msra.mxu1 %v43743_v19  ;;  %36093 = vmatprep.subr.mxu0 %v43529_v29 }
 0xec3   :  { %36104 = vmatprep.subr.mxu1 %v43529_v29  ;;  %36094 = vmatpush3.msra.mxu0 %v43755_v7 }
 0xec4   :  { %36105 = vmatpush3.msra.mxu1 %v43745_v58  ;;  %36095 = vmatprep.subr.mxu0 %v43529_v29 }
 0xec5   :  { %36106 = vmatprep.subr.mxu1 %v43529_v29  ;;  %36096 = vmatpush3.msra.mxu0 %v43756_v5  ;;  %v15740_v56 = vpop.f32.mrf.mxu1 }
 0xec6   :  { %36097 = vmatprep.mubr.msk.f32.mxu0 %vm37987_vm1, %v43529_v29  ;;  %36107 = vmatpush3.msra.mxu1 %v43747_v59  ;;  %v15492_v4 = vpop.f32.mrf.mxu0 }
 0xec7   :  { %36108 = vmatprep.mubr.msk.f32.mxu1 %vm37987_vm1, %v43529_v29  ;;  %36098 = vmatmul.mubr.f32.vlgmr.msra.gmra.mxu0 %v41104_v32  ;;  %v35692_v36 = vpop.f32.mrf.mxu1 }
 0xec8   :  { %36109 = vmatmul.mubr.f32.vlgmr.msra.gmra.mxu1 %v41104_v32  ;;  %v35659_v54 = vpop.f32.mrf.mxu0  ;;  %36122 = vmatprep.subr.mxu1 %v43529_v29  ;;  %v15493_v36 = vadd.f32 %v15492_v4, %v40915_v44 }
 0xec9   :  { %36123 = vmatpush3.msra.mxu1 %v43729_v52  ;;  %36111 = vmatprep.subr.mxu0 %v43529_v29 }
 0xeca   :  { %36124 = vmatprep.subr.mxu1 %v43529_v29  ;;  %36130 = vmatprep.mubr.msk.f32.mxu1 %vm37987_vm1, %v43529_v29  ;;  %v15584_v9 = vadd.f32 %v15583_v49, %v15493_v36 }
 0xecb   :  { %36125 = vmatpush3.msra.mxu1 %v43730_v43  ;;  %36112 = vmatpush3.msra.mxu0 %v38414_v53 }
 0xecc   :  { %36126 = vmatprep.subr.mxu1 %v43529_v29  ;;  %36113 = vmatprep.subr.mxu0 %v43529_v29 }
 0xecd   :  { %36127 = vmatpush3.msra.mxu1 %v43731_v39  ;;  %36114 = vmatpush3.msra.mxu0 %v38431_v61 }
 0xece   :  { %v15663_v54 = vpop.f32.mrf.mxu0  ;;  %36128 = vmatprep.subr.mxu1 %v43529_v29  ;;  %36115 = vmatprep.subr.mxu0 %v43529_v29 }
 0xecf   :  { %v15898_v32 = vpop.f32.mrf.mxu1  ;;  %36129 = vmatpush3.msra.mxu1 %v43732_v12  ;;  %36116 = vmatpush3.msra.mxu0 %v38443_v24  ;;  %v15664_v33 = vadd.f32 %v15663_v54, %v15584_v9 }
 0xed0   :  { %v35681_v4 = vpop.f32.mrf.mxu0  ;;  %36144 = vmatprep.subr.mxu1 %v43529_v29  ;;  %36117 = vmatprep.subr.mxu0 %v43529_v29 }
 0xed1   :  { %v35714_v44 = vpop.f32.mrf.mxu1  ;;  %36118 = vmatpush3.msra.mxu0 %v38453_v35  ;;  %36119 = vmatprep.mubr.msk.f32.mxu0 %vm37987_vm1, %v43529_v29  ;;  %v15741_v27 = vadd.f32 %v15740_v56, %v15664_v33 }
 0xed2   :  { %36133 = vmatprep.subr.mxu0 %v43529_v29  ;;  %v37957_v44 = vld [vmem:[%s43219_s5] ss:$0 sm:$0xff] }
 0xed7   :  { %v15823_v14 = vpop.f32.mrf.mxu0 }
 0xed8   :  { %v15824_v3 = vadd.f32 %v15823_v14, %v15741_v27 }
 0xed9   :  { %v35703_v18 = vpop.f32.mrf.mxu0 }
 0xeda   :  { %v15899_v30 = vadd.f32 %v15898_v32, %v15824_v3 }
 0xedc   :  { %37866 = vtanh.f32 %v15899_v30 }
 0xedd   :  { %v16078_v49 = vpop.f32.mrf.mxu1 }
 0xedf   :  { %v15987_v36 = vpop.f32.mrf.mxu0  ;;  %v35736_v4 = vpop.f32.mrf.mxu1 }
 0xee0   :  { %v15988_v12 = vadd.f32 %v37957_v44, %v15987_v36 }
 0xee1   :  { %v35725_v39 = vpop.f32.mrf.mxu0 }
 0xee2   :  { %v16079_v5 = vadd.f32 %v16078_v49, %v15988_v12 }
 0xee7   :  { %v16158_v43 = vpop.f32.mrf.mxu0 }
 0xee8   :  { %v16159_v9 = vadd.f32 %v16158_v43, %v16079_v5  ;;  %v37958_v43 = vld [vmem:[%s43219_s5 + $0x1] ss:$0 sm:$0xff] }
 0xee9   :  { %v37867_v54 = vpop.eup %37866  ;;  %v16235_v7 = vpop.f32.mrf.mxu1 }
 0xeea   :  { %v35747_v33 = vpop.f32.mrf.mxu0  ;;  %15903 = vst.msk [vmem:[%s43223_s9] sm:$0xff] %vm91_vm0, %v37867_v54  ;;  %v16236_v30 = vadd.f32 %v16235_v7, %v16159_v9 }
 0xeeb   :  { %v35758_v27 = vpop.f32.mrf.mxu1 }
 0xef1   :  { %v16318_v18 = vpop.f32.mrf.mxu0 }
 0xef2   :  { %v16319_v3 = vadd.f32 %v16318_v18, %v16236_v30 }
 0xef3   :  { %v16393_v14 = vpop.f32.mrf.mxu1  ;;  %v35769_v56 = vpop.f32.mrf.mxu0 }
 0xef4   :  { %v41367_v32 = vadd.f32 %v16393_v14, %v16319_v3 }
 0xef5   :  { %v35780_v39 = vpop.f32.mrf.mxu1 }
 0xefb   :  { %v16472_v12 = vpop.f32.mrf.mxu0 }
 0xefc   :  { %v16473_v5 = vadd.f32 %v37958_v43, %v16472_v12  ;;  %v37959_v12 = vld [vmem:[%s43219_s5 + $0x2] ss:$0 sm:$0xff] }
 0xefd   :  { %v16563_v49 = vpop.f32.mrf.mxu1  ;;  %v35791_v36 = vpop.f32.mrf.mxu0 }
 0xefe   :  { %v16564_v4 = vadd.f32 %v16563_v49, %v16473_v5 }
 0xeff   :  { %v35802_v44 = vpop.f32.mrf.mxu1 }
 0xf05   :  { %v16643_v54 = vpop.f32.mrf.mxu0 }
 0xf06   :  { %v16644_v7 = vadd.f32 %v16643_v54, %v16564_v4 }
 0xf07   :  { %v16720_v9 = vpop.f32.mrf.mxu1  ;;  %v35813_v33 = vpop.f32.mrf.mxu0 }
 0xf08   :  { %v16721_v30 = vadd.f32 %v16720_v9, %v16644_v7 }
 0xf09   :  { %v35824_v27 = vpop.f32.mrf.mxu1 }
 0xf0f   :  { %v16803_v18 = vpop.f32.mrf.mxu0 }
 0xf10   :  { %v16804_v3 = vadd.f32 %v16803_v18, %v16721_v30 }
 0xf11   :  { %v16878_v14 = vpop.f32.mrf.mxu1  ;;  %v35835_v56 = vpop.f32.mrf.mxu0 }
 0xf12   :  { %v41372_v39 = vadd.f32 %v16878_v14, %v16804_v3 }
 0xf13   :  { %v35846_v52 = vpop.f32.mrf.mxu1 }
 0xf19   :  { %v16957_v6 = vpop.f32.mrf.mxu0 }
 0xf1a   :  { %v16958_v43 = vadd.f32 %v37959_v12, %v16957_v6 }
 0xf1b   :  { %v17048_v5 = vpop.f32.mrf.mxu1  ;;  %v35857_v49 = vpop.f32.mrf.mxu0 }
 0xf1c   :  { %v17049_v36 = vadd.f32 %v17048_v5, %v16958_v43 }
 0xf1d   :  { %v35868_v4 = vpop.f32.mrf.mxu1 }
 0xf23   :  { %v17128_v44 = vpop.f32.mrf.mxu0 }
 0xf24   :  { %v17129_v54 = vadd.f32 %v17128_v44, %v17049_v36 }
 0xf25   :  { %v17205_v7 = vpop.f32.mrf.mxu1  ;;  %v35879_v9 = vpop.f32.mrf.mxu0 }
 0xf26   :  { %v17206_v33 = vadd.f32 %v17205_v7, %v17129_v54 }
 0xf27   :  { %v35890_v30 = vpop.f32.mrf.mxu1 }
 0xf2d   :  { %v17288_v27 = vpop.f32.mrf.mxu0 }
 0xf2e   :  { %v17289_v18 = vadd.f32 %v17288_v27, %v17206_v33 }
 0xf2f   :  { %v17363_v3 = vpop.f32.mrf.mxu1  ;;  %v35901_v52 = vpop.f32.mrf.mxu0 }
 0xf30   :  { %v41377_v14 = vadd.f32 %v17363_v3, %v17289_v18 }
 0xf31   :  { %v35912_v56 = vpop.f32.mrf.mxu1 }
 0xf37   :  { %v17446_v25 = vpop.f32.mrf.mxu0 }
 0xf39   :  { %v17537_v1 = vpop.f32.mrf.mxu1  ;;  %v35923_v6 = vpop.f32.mrf.mxu0 }
 0xf3a   :  { %v17538_v7 = vadd.f32 %v17537_v1, %v17446_v25 }
 0xf3b   :  { %v35934_v12 = vpop.f32.mrf.mxu1 }
 0xf41   :  { %v17617_v49 = vpop.f32.mrf.mxu0 }
 0xf42   :  { %v17618_v30 = vadd.f32 %v17617_v49, %v17538_v7 }
 0xf43   :  { %v17694_v43 = vpop.f32.mrf.mxu1  ;;  %v35945_v5 = vpop.f32.mrf.mxu0 }
 0xf44   :  { %v17695_v18 = vadd.f32 %v17694_v43, %v17618_v30 }
 0xf45   :  { %v35956_v4 = vpop.f32.mrf.mxu1 }
 0xf4b   :  { %v17777_v36 = vpop.f32.mrf.mxu0 }
 0xf4c   :  { %v17778_v56 = vadd.f32 %v17777_v36, %v17695_v18 }
 0xf4d   :  { %v17852_v44 = vpop.f32.mrf.mxu1  ;;  %v35967_v9 = vpop.f32.mrf.mxu0 }
 0xf4e   :  { %v17853_v62 = vadd.f32 %v17852_v44, %v17778_v56 }
 0xf4f   :  { %v35978_v54 = vpop.f32.mrf.mxu1 }
 0xf50   :  { %v18826_v55 = vadd.f32 %v17853_v62, %v41367_v32 }
 0xf52   :  { %v31762_v58 = vmul.f32 -1.442695, %v18826_v55 }
 0xf54   :  { %37868 = vpow2.f32 %v31762_v58 }
 0xf55   :  { %v17931_v33 = vpop.f32.mrf.mxu0 }
 0xf57   :  { %v18022_v27 = vpop.f32.mrf.mxu1  ;;  %v35989_v52 = vpop.f32.mrf.mxu0 }
 0xf58   :  { %v18023_v5 = vadd.f32 %v18022_v27, %v17931_v33 }
 0xf59   :  { %v36000_v3 = vpop.f32.mrf.mxu1 }
 0xf5f   :  { %v18102_v50 = vpop.f32.mrf.mxu0 }
 0xf60   :  { %v18103_v59 = vadd.f32 %v18102_v50, %v18023_v5 }
 0xf61   :  { %v18179_v6 = vpop.f32.mrf.mxu1  ;;  %v36011_v12 = vpop.f32.mrf.mxu0 }
 0xf62   :  { %v18180_v9 = vadd.f32 %v18179_v6, %v18103_v59  ;;  %v37869_v3 = vpop.eup %37868  ;;  %v41384_v59 = vld [vmem:[%s43220_s6] sm:$0x1] }
 0xf63   :  { %v36022_v4 = vpop.f32.mrf.mxu1  ;;  %v18830_v33 = vadd.f32 1.0, %v37869_v3 }
 0xf69   :  { %v18262_v54 = vpop.f32.mrf.mxu0 }
 0xf6a   :  { %v18263_v1 = vadd.f32 %v18262_v54, %v18180_v9 }
 0xf6b   :  { %v18337_v25 = vpop.f32.mrf.mxu1  ;;  %v36033_v49 = vpop.f32.mrf.mxu0 }
 0xf6c   :  { %v18338_v7 = vadd.f32 %v18337_v25, %v18263_v1 }
 0xf6d   :  { %v36044_v43 = vpop.f32.mrf.mxu1 }
 0xf6e   :  { %v18833_v36 = vadd.f32 %v18338_v7, %v41372_v39 }
 0xf70   :  { %v31763_v30 = vmul.f32 -1.442695, %v18833_v36 }
 0xf72   :  { %37870 = vpow2.f32 %v31763_v30 }
 0xf73   :  { %v18416_v44 = vpop.f32.mrf.mxu0  ;;  %37872 = vrcp.f32 %v18830_v33 }
 0xf74   :  { %v18417_v50 = vadd.f32 %v41384_v59, %v18416_v44 }
 0xf75   :  { %v18507_v52 = vpop.f32.mrf.mxu1  ;;  %v36055_v18 = vpop.f32.mrf.mxu0 }
 0xf76   :  { %v18508_v56 = vadd.f32 %v18507_v52, %v18417_v50 }
 0xf77   :  { %v36066_v62 = vpop.f32.mrf.mxu1 }
 0xf7d   :  { %v18587_v55 = vpop.f32.mrf.mxu0 }
 0xf7e   :  { %v18588_v12 = vadd.f32 %v18587_v55, %v18508_v56 }
 0xf7f   :  { %v18664_v58 = vpop.f32.mrf.mxu1  ;;  %v36077_v27 = vpop.f32.mrf.mxu0 }
 0xf80   :  { %v37871_v5 = vpop.eup %37870  ;;  %v18665_v4 = vadd.f32 %v18664_v58, %v18588_v12  ;;  %v43757_v12 = vld [vmem:[#allocation69_spill] sm:$0xff] }
 0xf81   :  { %v36088_v6 = vpop.f32.mrf.mxu1  ;;  %v18837_v54 = vadd.f32 1.0, %v37871_v5  ;;  %v37873_v36 = vpop.eup %37872  ;;  %v43758_v5 = vld [vmem:[#allocation70_spill] sm:$0xff] }
 0xf83   :  { %37874 = vrcp.f32 %v18837_v54  ;;  %v43761_v54 = vld [vmem:[#allocation73_spill] sm:$0xff] }
 0xf87   :  { %v18747_v9 = vpop.f32.mrf.mxu0 }
 0xf88   :  { %v18748_v1 = vadd.f32 %v18747_v9, %v18665_v4  ;;  %v18822_v25 = vpop.f32.mrf.mxu1  ;;  %v43759_v4 = vld [vmem:[#allocation68_spill] sm:$0xff]  ;;  %v43760_v9 = vld [vmem:[#allocation71_spill] sm:$0xff] }
 0xf89   :  { %v36099_v49 = vpop.f32.mrf.mxu0 }
 0xf8a   :  { %v18823_v7 = vadd.f32 %v18822_v25, %v18748_v1  ;;  %v36110_v43 = vpop.f32.mrf.mxu1  ;;  %v43762_v1 = vld [vmem:[#allocation75_spill] sm:$0xff]  ;;  %v43763_v25 = vld [vmem:[#allocation72_spill] sm:$0xff]  ;;  %v43764_v49 = vld [vmem:[#allocation74_spill] sm:$0xff] }
 0xf8b   :  { %v43766_v43 = vld [vmem:[#allocation76_spill] sm:$0xff] }
 0xf8c   :  { %v18840_v30 = vmul.f32 %v37873_v36, %v18823_v7  ;;  %v43765_v7 = vld [vmem:[#allocation54_spill] sm:$0xff]  ;;  %v43767_v36 = vld [vmem:[#allocation55_spill] sm:$0xff] }
 0xf8e   :  { %v18841_v44 = vadd.f32 %v18840_v30, %v41377_v14  ;;  %v43768_v30 = vld [vmem:[#allocation77_spill] sm:$0xff] }
 0xf90   :  { %37876 = vtanh.f32 %v18841_v44  ;;  %v37875_v18 = vpop.eup %37874  ;;  %v43769_v44 = vld [vmem:[#allocation56_spill] sm:$0xff] }
 0xf91   :  { %v18843_v3 = vsub.f32 1.0, %v37875_v18  ;;  %v18845_v62 = vmul.f32 %v37875_v18, %v41086_v31  ;;  %v43770_v18 = vld [vmem:[#allocation57_spill] sm:$0xff] }
 0xf9d   :  { %v37877_v52 = vpop.eup %37876 }
 0xf9e   :  { %v18844_v33 = vmul.f32 %v37877_v52, %v18843_v3 }
 0xfa0   :  { %v41389_v50 = vadd.f32 %v18845_v62, %v18844_v33 }
 0xfa2   :  { %18847 = vst.msk [vmem:[#allocation2] sm:$0x1] %vm3042_vm2, %v41389_v50  ;;  %v18849_v55 = vsel %vm91_vm0, %v41389_v50, 0 }
 0xfa3   :  { %v41395_v58 = vand.u32 4294901760, %v18849_v55 }
 0xfa5   :  { %36131 = vmatmul.mubr.f32.vlgmr.msra.gmra.mxu1 %v41395_v58  ;;  %v41399_v27 = vsub.f32 %v18849_v55, %v41395_v58 }
 0xfa6   :  { %36145 = vmatpush3.msra.mxu1 %v38414_v53  ;;  %36152 = vmatprep.mubr.msk.f32.mxu1 %vm37987_vm1, %v43529_v29 }
 0xfa7   :  { %36146 = vmatprep.subr.mxu1 %v43529_v29  ;;  %v41406_v31 = vand.u32 4294901760, %v41399_v27 }
 0xfa8   :  { %36147 = vmatpush3.msra.mxu1 %v38431_v61 }
 0xfa9   :  { %36148 = vmatprep.subr.mxu1 %v43529_v29  ;;  %v18923_v56 = vsub.f32 %v41399_v27, %v41406_v31 }
 0xfaa   :  { %36149 = vmatpush3.msra.mxu1 %v38443_v24 }
 0xfab   :  { %36150 = vmatprep.subr.mxu1 %v43529_v29  ;;  %v41414_v6 = vand.u32 4294901760, %v18923_v56 }
 0xfac   :  { %36151 = vmatpush3.msra.mxu1 %v38453_v35 }
 0xfad   :  { %36153 = vmatmul.mubr.f32.vlgmr.msra.gmra.mxu1 %v41406_v31  ;;  %36166 = vmatprep.subr.mxu1 %v43529_v29 }
 0xfae   :  { %36120 = vmatmul.mubr.f32.vlgmr.msra.gmra.mxu0 %v41414_v6  ;;  %36167 = vmatpush3.msra.mxu1 %v38414_v53 }
 0xfaf   :  { %36134 = vmatpush3.msra.mxu0 %v38439_v21  ;;  %36168 = vmatprep.subr.mxu1 %v43529_v29 }
 0xfb0   :  { %36135 = vmatprep.subr.mxu0 %v43529_v29  ;;  %36169 = vmatpush3.msra.mxu1 %v38431_v61 }
 0xfb1   :  { %36136 = vmatpush3.msra.mxu0 %v38456_v48  ;;  %36170 = vmatprep.subr.mxu1 %v43529_v29 }
 0xfb2   :  { %36137 = vmatprep.subr.mxu0 %v43529_v29  ;;  %36171 = vmatpush3.msra.mxu1 %v38443_v24 }
 0xfb3   :  { %36138 = vmatpush3.msra.mxu0 %v38466_v51  ;;  %36172 = vmatprep.subr.mxu1 %v43529_v29 }
 0xfb4   :  { %36139 = vmatprep.subr.mxu0 %v43529_v29  ;;  %36141 = vmatprep.mubr.msk.f32.mxu0 %vm37987_vm1, %v43529_v29 }
 0xfb5   :  { %36140 = vmatpush3.msra.mxu0 %v38480_v23  ;;  %36173 = vmatpush3.msra.mxu1 %v38453_v35 }
 0xfb6   :  { %36174 = vmatprep.mubr.msk.f32.mxu1 %vm37987_vm1, %v43529_v29  ;;  %36142 = vmatmul.mubr.f32.vlgmr.msra.gmra.mxu0 %v41399_v27 }
 0xfb7   :  { %36155 = vmatprep.subr.mxu0 %v43529_v29  ;;  %36175 = vmatmul.mubr.f32.vlgmr.msra.gmra.mxu1 %v41395_v58 }
 0xfb8   :  { %36188 = vmatprep.subr.mxu1 %v43529_v29  ;;  %36156 = vmatpush3.msra.mxu0 %v38461_v8 }
 0xfb9   :  { %36189 = vmatpush3.msra.mxu1 %v38632_v45  ;;  %36157 = vmatprep.subr.mxu0 %v43529_v29 }
 0xfba   :  { %36190 = vmatprep.subr.mxu1 %v43529_v29  ;;  %36158 = vmatpush3.msra.mxu0 %v38477_v22 }
 0xfbb   :  { %36191 = vmatpush3.msra.mxu1 %v38643_v41  ;;  %36159 = vmatprep.subr.mxu0 %v43529_v29 }
 0xfbc   :  { %36192 = vmatprep.subr.mxu1 %v43529_v29  ;;  %36160 = vmatpush3.msra.mxu0 %v38489_v26 }
 0xfbd   :  { %36193 = vmatpush3.msra.mxu1 %v38652_v38  ;;  %36161 = vmatprep.subr.mxu0 %v43529_v29 }
 0xfbe   :  { %36194 = vmatprep.subr.mxu1 %v43529_v29  ;;  %36162 = vmatpush3.msra.mxu0 %v38500_v10 }
 0xfbf   :  { %36163 = vmatprep.mubr.msk.f32.mxu0 %vm37987_vm1, %v43529_v29  ;;  %36195 = vmatpush3.msra.mxu1 %v38658_v63 }
 0xfc0   :  { %36196 = vmatprep.mubr.msk.f32.mxu1 %vm37987_vm1, %v43529_v29  ;;  %36164 = vmatmul.mubr.f32.vlgmr.msra.gmra.mxu0 %v41395_v58 }
 0xfc1   :  { %36177 = vmatprep.subr.mxu0 %v43529_v29  ;;  %36197 = vmatmul.mubr.f32.vlgmr.msra.gmra.mxu1 %v41395_v58 }
 0xfc2   :  { %36210 = vmatprep.subr.mxu1 %v43529_v29  ;;  %36178 = vmatpush3.msra.mxu0 %v38553_v46 }
 0xfc3   :  { %36211 = vmatpush3.msra.mxu1 %v38553_v46  ;;  %36179 = vmatprep.subr.mxu0 %v43529_v29 }
 0xfc4   :  { %36212 = vmatprep.subr.mxu1 %v43529_v29  ;;  %36180 = vmatpush3.msra.mxu0 %v38567_v37 }
 0xfc5   :  { %36213 = vmatpush3.msra.mxu1 %v38567_v37  ;;  %36181 = vmatprep.subr.mxu0 %v43529_v29 }
 0xfc6   :  { %36214 = vmatprep.subr.mxu1 %v43529_v29  ;;  %36182 = vmatpush3.msra.mxu0 %v38579_v60 }
 0xfc7   :  { %36215 = vmatpush3.msra.mxu1 %v38579_v60  ;;  %36183 = vmatprep.subr.mxu0 %v43529_v29 }
 0xfc8   :  { %36216 = vmatprep.subr.mxu1 %v43529_v29  ;;  %36184 = vmatpush3.msra.mxu0 %v38586_v28 }
 0xfc9   :  { %36185 = vmatprep.mubr.msk.f32.mxu0 %vm37987_vm1, %v43529_v29  ;;  %36217 = vmatpush3.msra.mxu1 %v38586_v28 }
 0xfca   :  { %36218 = vmatprep.mubr.msk.f32.mxu1 %vm37987_vm1, %v43529_v29  ;;  %36186 = vmatmul.mubr.f32.vlgmr.msra.gmra.mxu0 %v41414_v6 }
 0xfcb   :  { %36199 = vmatprep.subr.mxu0 %v43529_v29  ;;  %36219 = vmatmul.mubr.f32.vlgmr.msra.gmra.mxu1 %v41406_v31 }
 0xfcc   :  { %36232 = vmatprep.subr.mxu1 %v43529_v29  ;;  %36200 = vmatpush3.msra.mxu0 %v43733_v13 }
 0xfcd   :  { %36233 = vmatpush3.msra.mxu1 %v38553_v46  ;;  %36201 = vmatprep.subr.mxu0 %v43529_v29 }
 0xfce   :  { %36234 = vmatprep.subr.mxu1 %v43529_v29  ;;  %36202 = vmatpush3.msra.mxu0 %v43734_v40 }
 0xfcf   :  { %36235 = vmatpush3.msra.mxu1 %v38567_v37  ;;  %36203 = vmatprep.subr.mxu0 %v43529_v29 }
 0xfd0   :  { %36236 = vmatprep.subr.mxu1 %v43529_v29  ;;  %36204 = vmatpush3.msra.mxu0 %v43735_v11 }
 0xfd1   :  { %36237 = vmatpush3.msra.mxu1 %v38579_v60  ;;  %36205 = vmatprep.subr.mxu0 %v43529_v29 }
 0xfd2   :  { %36238 = vmatprep.subr.mxu1 %v43529_v29  ;;  %36206 = vmatpush3.msra.mxu0 %v43736_v0 }
 0xfd3   :  { %36207 = vmatprep.mubr.msk.f32.mxu0 %vm37987_vm1, %v43529_v29  ;;  %36239 = vmatpush3.msra.mxu1 %v38586_v28 }
 0xfd4   :  { %36240 = vmatprep.mubr.msk.f32.mxu1 %vm37987_vm1, %v43529_v29  ;;  %36208 = vmatmul.mubr.f32.vlgmr.msra.gmra.mxu0 %v41399_v27 }
 0xfd5   :  { %36221 = vmatprep.subr.mxu0 %v43529_v29  ;;  %36241 = vmatmul.mubr.f32.vlgmr.msra.gmra.mxu1 %v41395_v58 }
 0xfd6   :  { %36254 = vmatprep.subr.mxu1 %v43529_v29  ;;  %36222 = vmatpush3.msra.mxu0 %v43737_v16 }
 0xfd7   :  { %36255 = vmatpush3.msra.mxu1 %v43742_v2  ;;  %36223 = vmatprep.subr.mxu0 %v43529_v29 }
 0xfd8   :  { %36256 = vmatprep.subr.mxu1 %v43529_v29  ;;  %36224 = vmatpush3.msra.mxu0 %v43738_v17 }
 0xfd9   :  { %36257 = vmatpush3.msra.mxu1 %v43744_v57  ;;  %36225 = vmatprep.subr.mxu0 %v43529_v29 }
 0xfda   :  { %36258 = vmatprep.subr.mxu1 %v43529_v29  ;;  %36226 = vmatpush3.msra.mxu0 %v43739_v34 }
 0xfdb   :  { %36259 = vmatpush3.msra.mxu1 %v43746_v15  ;;  %36227 = vmatprep.subr.mxu0 %v43529_v29 }
 0xfdc   :  { %36260 = vmatprep.subr.mxu1 %v43529_v29  ;;  %36228 = vmatpush3.msra.mxu0 %v43740_v47 }
 0xfdd   :  { %36229 = vmatprep.mubr.msk.f32.mxu0 %vm37987_vm1, %v43529_v29  ;;  %36261 = vmatpush3.msra.mxu1 %v43748_v42 }
 0xfde   :  { %36262 = vmatprep.mubr.msk.f32.mxu1 %vm37987_vm1, %v43529_v29  ;;  %36230 = vmatmul.mubr.f32.vlgmr.msra.gmra.mxu0 %v41395_v58 }
 0xfdf   :  { %36243 = vmatprep.subr.mxu0 %v43529_v29  ;;  %36263 = vmatmul.mubr.f32.vlgmr.msra.gmra.mxu1 %v41395_v58 }
 0xfe0   :  { %36276 = vmatprep.subr.mxu1 %v43529_v29  ;;  %36244 = vmatpush3.msra.mxu0 %v43741_v20 }
 0xfe1   :  { %36277 = vmatpush3.msra.mxu1 %v43741_v20  ;;  %36245 = vmatprep.subr.mxu0 %v43529_v29 }
 0xfe2   :  { %36278 = vmatprep.subr.mxu1 %v43529_v29  ;;  %36246 = vmatpush3.msra.mxu0 %v43743_v19 }
 0xfe3   :  { %36279 = vmatpush3.msra.mxu1 %v43743_v19  ;;  %36247 = vmatprep.subr.mxu0 %v43529_v29 }
 0xfe4   :  { %36280 = vmatprep.subr.mxu1 %v43529_v29  ;;  %36248 = vmatpush3.msra.mxu0 %v43757_v12 }
 0xfe5   :  { %36281 = vmatpush3.msra.mxu1 %v43757_v12  ;;  %36249 = vmatprep.subr.mxu0 %v43529_v29 }
 0xfe6   :  { %36282 = vmatprep.subr.mxu1 %v43529_v29  ;;  %36250 = vmatpush3.msra.mxu0 %v43758_v5 }
 0xfe7   :  { %36251 = vmatprep.mubr.msk.f32.mxu0 %vm37987_vm1, %v43529_v29  ;;  %36283 = vmatpush3.msra.mxu1 %v43758_v5 }
 0xfe8   :  { %36284 = vmatprep.mubr.msk.f32.mxu1 %vm37987_vm1, %v43529_v29  ;;  %36252 = vmatmul.mubr.f32.vlgmr.msra.gmra.mxu0 %v41414_v6 }
 0xfe9   :  { %36265 = vmatprep.subr.mxu0 %v43529_v29  ;;  %36285 = vmatmul.mubr.f32.vlgmr.msra.gmra.mxu1 %v41406_v31 }
 0xfea   :  { %36298 = vmatprep.subr.mxu1 %v43529_v29  ;;  %36266 = vmatpush3.msra.mxu0 %v43759_v4 }
 0xfeb   :  { %36299 = vmatpush3.msra.mxu1 %v43741_v20  ;;  %36267 = vmatprep.subr.mxu0 %v43529_v29 }
 0xfec   :  { %36300 = vmatprep.subr.mxu1 %v43529_v29  ;;  %36268 = vmatpush3.msra.mxu0 %v43760_v9 }
 0xfed   :  { %36301 = vmatpush3.msra.mxu1 %v43743_v19  ;;  %36269 = vmatprep.subr.mxu0 %v43529_v29 }
 0xfee   :  { %36302 = vmatprep.subr.mxu1 %v43529_v29  ;;  %36270 = vmatpush3.msra.mxu0 %v43761_v54 }
 0xfef   :  { %36303 = vmatpush3.msra.mxu1 %v43757_v12  ;;  %36271 = vmatprep.subr.mxu0 %v43529_v29 }
 0xff0   :  { %36304 = vmatprep.subr.mxu1 %v43529_v29  ;;  %36272 = vmatpush3.msra.mxu0 %v43762_v1 }
 0xff1   :  { %36273 = vmatprep.mubr.msk.f32.mxu0 %vm37987_vm1, %v43529_v29  ;;  %36305 = vmatpush3.msra.mxu1 %v43758_v5 }
 0xff2   :  { %36306 = vmatprep.mubr.msk.f32.mxu1 %vm37987_vm1, %v43529_v29  ;;  %36274 = vmatmul.mubr.f32.vlgmr.msra.gmra.mxu0 %v41399_v27 }
 0xff3   :  { %36287 = vmatprep.subr.mxu0 %v43529_v29  ;;  %36307 = vmatmul.mubr.f32.vlgmr.msra.gmra.mxu1 %v41395_v58 }
 0xff4   :  { %36288 = vmatpush3.msra.mxu0 %v43763_v25  ;;  %36295 = vmatprep.mubr.msk.f32.mxu0 %vm37987_vm1, %v43529_v29 }
 0xff5   :  { %36289 = vmatprep.subr.mxu0 %v43529_v29  ;;  %36320 = vmatprep.subr.mxu1 %v43529_v29 }
 0xff6   :  { %36290 = vmatpush3.msra.mxu0 %v43764_v49  ;;  %36321 = vmatpush3.msra.mxu1 %v43765_v7 }
 0xff7   :  { %36291 = vmatprep.subr.mxu0 %v43529_v29  ;;  %36322 = vmatprep.subr.mxu1 %v43529_v29 }
 0xff8   :  { %36292 = vmatpush3.msra.mxu0 %v43766_v43  ;;  %36323 = vmatpush3.msra.mxu1 %v43767_v36 }
 0xff9   :  { %36293 = vmatprep.subr.mxu0 %v43529_v29  ;;  %36324 = vmatprep.subr.mxu1 %v43529_v29 }
 0xffa   :  { %36294 = vmatpush3.msra.mxu0 %v43768_v30  ;;  %36325 = vmatpush3.msra.mxu1 %v43769_v44 }
 0xffb   :  { %36296 = vmatmul.mubr.f32.vlgmr.msra.gmra.mxu0 %v41395_v58  ;;  %36326 = vmatprep.subr.mxu1 %v43529_v29 }
 0xffc   :  { %36327 = vmatpush3.msra.mxu1 %v43770_v18  ;;  %36309 = vmatprep.subr.mxu0 %v43529_v29 }
 0xffd   :  { %36328 = vmatprep.mubr.msk.f32.mxu1 %vm37987_vm1, %v43529_v29  ;;  %36342 = vmatprep.subr.mxu1 %v43529_v29 }
 0xffe   :  { %36310 = vmatpush3.msra.mxu0 %v38414_v53  ;;  %36317 = vmatprep.mubr.msk.f32.mxu0 %vm37987_vm1, %v43529_v29 }
 0xfff   :  { %36311 = vmatprep.subr.mxu0 %v43529_v29 }
0x1000   :  { %36312 = vmatpush3.msra.mxu0 %v38431_v61 }
0x1001   :  { %36313 = vmatprep.subr.mxu0 %v43529_v29 }
0x1002   :  { %36314 = vmatpush3.msra.mxu0 %v38443_v24 }
0x1003   :  { %36315 = vmatprep.subr.mxu0 %v43529_v29 }
0x1004   :  { %36316 = vmatpush3.msra.mxu0 %v38453_v35 }
0x1005   :  { %36331 = vmatprep.subr.mxu0 %v43529_v29 }
0x1065   :  { %v19017_v3 = vpop.f32.mrf.mxu1 }
0x1067   :  { %v36132_v52 = vpop.f32.mrf.mxu1 }
0x106d   :  { %v19174_v62 = vpop.f32.mrf.mxu1 }
0x106e   :  { %v18926_v33 = vpop.f32.mrf.mxu0 }
0x106f   :  { %v36154_v55 = vpop.f32.mrf.mxu1  ;;  %v19018_v43 = vadd.f32 %v19017_v3, %v18926_v33 }
0x1070   :  { %v36121_v58 = vpop.f32.mrf.mxu0 }
0x1076   :  { %v19097_v27 = vpop.f32.mrf.mxu0 }
0x1077   :  { %v19332_v31 = vpop.f32.mrf.mxu1  ;;  %v19098_v7 = vadd.f32 %v19097_v27, %v19018_v43 }
0x1078   :  { %v36143_v56 = vpop.f32.mrf.mxu0 }
0x1079   :  { %v36176_v6 = vpop.f32.mrf.mxu1  ;;  %v19175_v49 = vadd.f32 %v19174_v62, %v19098_v7 }
0x1080   :  { %v19257_v18 = vpop.f32.mrf.mxu0 }
0x1081   :  { %v19502_v44 = vpop.f32.mrf.mxu1  ;;  %v19258_v54 = vadd.f32 %v19257_v18, %v19175_v49 }
0x1082   :  { %v36165_v30 = vpop.f32.mrf.mxu0 }
0x1083   :  { %v36198_v36 = vpop.f32.mrf.mxu1  ;;  %v19333_v4 = vadd.f32 %v19332_v31, %v19258_v54 }
0x1085   :  { %v20307_v5 = vrot.slane %v19333_v4, 7 }
0x1087   :  { %v20309_v6 = vadd.f32 %v20307_v5, %v41367_v32 }
0x1089   :  { %v31764_v30 = vmul.f32 -1.442695, %v20309_v6 }
0x108a   :  { %v19411_v25 = vpop.f32.mrf.mxu0 }
0x108b   :  { %v19659_v1 = vpop.f32.mrf.mxu1  ;;  %v19503_v19 = vadd.f32 %v19502_v44, %v19411_v25  ;;  %37878 = vpow2.f32 %v31764_v30 }
0x108c   :  { %v36187_v9 = vpop.f32.mrf.mxu0 }
0x108d   :  { %v36220_v52 = vpop.f32.mrf.mxu1 }
0x1094   :  { %v19582_v55 = vpop.f32.mrf.mxu0 }
0x1095   :  { %v19817_v58 = vpop.f32.mrf.mxu1  ;;  %v19583_v20 = vadd.f32 %v19582_v55, %v19503_v19 }
0x1096   :  { %v36209_v12 = vpop.f32.mrf.mxu0 }
0x1097   :  { %v36242_v56 = vpop.f32.mrf.mxu1  ;;  %v19660_v36 = vadd.f32 %v19659_v1, %v19583_v20 }
0x1098   :  { %v37879_v27 = vpop.eup %37878 }
0x1099   :  { %v20313_v19 = vadd.f32 1.0, %v37879_v27 }
0x109e   :  { %v19742_v3 = vpop.f32.mrf.mxu0 }
0x109f   :  { %v19743_v43 = vadd.f32 %v19742_v3, %v19660_v36  ;;  %v19987_v7 = vpop.f32.mrf.mxu1 }
0x10a0   :  { %v36231_v62 = vpop.f32.mrf.mxu0 }
0x10a1   :  { %v19818_v49 = vadd.f32 %v19817_v58, %v19743_v43  ;;  %v36264_v9 = vpop.f32.mrf.mxu1 }
0x10a3   :  { %v20317_v18 = vrot.slane %v19818_v49, 7 }
0x10a5   :  { %v20319_v4 = vadd.f32 %v20317_v18, %v41372_v39 }
0x10a7   :  { %v31765_v12 = vmul.f32 -1.442695, %v20319_v4 }
0x10a8   :  { %v19896_v54 = vpop.f32.mrf.mxu0 }
0x10a9   :  { %v20144_v33 = vpop.f32.mrf.mxu1  ;;  %37880 = vpow2.f32 %v31765_v12  ;;  %v19897_v20 = vadd.f32 %v41384_v59, %v19896_v54 }
0x10aa   :  { %v36253_v25 = vpop.f32.mrf.mxu0  ;;  %37882 = vrcp.f32 %v20313_v19 }
0x10ab   :  { %v36286_v44 = vpop.f32.mrf.mxu1  ;;  %v19988_v31 = vadd.f32 %v19987_v7, %v19897_v20  ;;  %v20334_v7 = vrot.slane %v41389_v50, 7 }
0x10b2   :  { %v20067_v5 = vpop.f32.mrf.mxu0 }
0x10b3   :  { %v20302_v1 = vpop.f32.mrf.mxu1  ;;  %v20068_v58 = vadd.f32 %v20067_v5, %v19988_v31 }
0x10b4   :  { %v36275_v52 = vpop.f32.mrf.mxu0 }
0x10b5   :  { %v36308_v55 = vpop.f32.mrf.mxu1  ;;  %v20145_v56 = vadd.f32 %v20144_v33, %v20068_v58  ;;  %v43771_v52 = vld [vmem:[#allocation66_spill] sm:$0xff]  ;;  %v43773_v58 = vld [vmem:[#allocation69_spill] sm:$0xff] }
0x10b6   :  { %v37881_v6 = vpop.eup %37880  ;;  %v43772_v55 = vld [vmem:[#allocation67_spill] sm:$0xff] }
0x10b7   :  { %v20323_v43 = vadd.f32 1.0, %v37881_v6  ;;  %v37883_v9 = vpop.eup %37882  ;;  %v43775_v6 = vld [vmem:[#allocation68_spill] sm:$0xff] }
0x10b9   :  { %37884 = vrcp.f32 %v20323_v43  ;;  %v43779_v43 = vld [vmem:[#allocation72_spill] sm:$0xff] }
0x10bb   :  { %v20227_v30 = vpop.f32.mrf.mxu0 }
0x10bc   :  { %v20228_v36 = vadd.f32 %v20227_v30, %v20145_v56  ;;  %v43774_v56 = vld [vmem:[#allocation70_spill] sm:$0xff]  ;;  %v43776_v30 = vld [vmem:[#allocation71_spill] sm:$0xff] }
0x10bd   :  { %v36297_v3 = vpop.f32.mrf.mxu0 }
0x10be   :  { %v20303_v62 = vadd.f32 %v20302_v1, %v20228_v36  ;;  %v43777_v36 = vld [vmem:[#allocation73_spill] sm:$0xff]  ;;  %v43778_v3 = vld [vmem:[#allocation75_spill] sm:$0xff] }
0x10c0   :  { %v20327_v49 = vrot.slane %v20303_v62, 7  ;;  %v43780_v62 = vld [vmem:[#allocation74_spill] sm:$0xff] }
0x10c2   :  { %v20329_v18 = vmul.f32 %v37883_v9, %v20327_v49  ;;  %v43781_v49 = vld [vmem:[#allocation54_spill] sm:$0xff]  ;;  %v43782_v9 = vld [vmem:[#allocation76_spill] sm:$0xff] }
0x10c4   :  { %v20330_v59 = vadd.f32 %v20329_v18, %v41377_v14  ;;  %v43783_v18 = vld [vmem:[#allocation55_spill] sm:$0xff] }
0x10c6   :  { %37886 = vtanh.f32 %v20330_v59  ;;  %v37885_v4 = vpop.eup %37884  ;;  %v43784_v59 = vld [vmem:[#allocation77_spill] sm:$0xff] }
0x10c7   :  { %v20332_v54 = vsub.f32 1.0, %v37885_v4  ;;  %v20336_v25 = vmul.f32 %v37885_v4, %v20334_v7  ;;  %v43785_v4 = vld [vmem:[#allocation56_spill] sm:$0xff]  ;;  %v43786_v7 = vld [vmem:[#allocation57_spill] sm:$0xff] }
0x10d3   :  { %v37887_v12 = vpop.eup %37886 }
0x10d4   :  { %v20333_v33 = vmul.f32 %v37887_v12, %v20332_v54 }
0x10d6   :  { %v41610_v44 = vadd.f32 %v20336_v25, %v20333_v33 }
0x10d8   :  { %20338 = vst.msk [vmem:[#allocation2] sm:$0x2] %vm4534_vm3, %v41610_v44  ;;  %v20340_v27 = vrot.slane %v41610_v44, 1 }
0x10da   :  { %v20341_v19 = vsel %vm91_vm0, %v20340_v27, 0 }
0x10db   :  { %v41616_v20 = vand.u32 4294901760, %v20341_v19 }
0x10dd   :  { %36329 = vmatmul.mubr.f32.vlgmr.msra.gmra.mxu1 %v41616_v20  ;;  %v41620_v5 = vsub.f32 %v20341_v19, %v41616_v20 }
0x10de   :  { %36343 = vmatpush3.msra.mxu1 %v38414_v53  ;;  %36350 = vmatprep.mubr.msk.f32.mxu1 %vm37987_vm1, %v43529_v29 }
0x10df   :  { %36344 = vmatprep.subr.mxu1 %v43529_v29  ;;  %v41627_v50 = vand.u32 4294901760, %v41620_v5 }
0x10e0   :  { %36345 = vmatpush3.msra.mxu1 %v38431_v61 }
0x10e1   :  { %36346 = vmatprep.subr.mxu1 %v43529_v29  ;;  %v20415_v1 = vsub.f32 %v41620_v5, %v41627_v50 }
0x10e2   :  { %36347 = vmatpush3.msra.mxu1 %v38443_v24 }
0x10e3   :  { %36348 = vmatprep.subr.mxu1 %v43529_v29  ;;  %v41635_v31 = vand.u32 4294901760, %v20415_v1 }
0x10e4   :  { %36349 = vmatpush3.msra.mxu1 %v38453_v35 }
0x10e5   :  { %36351 = vmatmul.mubr.f32.vlgmr.msra.gmra.mxu1 %v41627_v50  ;;  %36364 = vmatprep.subr.mxu1 %v43529_v29 }
0x10e6   :  { %36318 = vmatmul.mubr.f32.vlgmr.msra.gmra.mxu0 %v41635_v31  ;;  %36365 = vmatpush3.msra.mxu1 %v38414_v53 }
0x10e7   :  { %36332 = vmatpush3.msra.mxu0 %v38439_v21  ;;  %36366 = vmatprep.subr.mxu1 %v43529_v29 }
0x10e8   :  { %36333 = vmatprep.subr.mxu0 %v43529_v29  ;;  %36367 = vmatpush3.msra.mxu1 %v38431_v61 }
0x10e9   :  { %36334 = vmatpush3.msra.mxu0 %v38456_v48  ;;  %36368 = vmatprep.subr.mxu1 %v43529_v29 }
0x10ea   :  { %36335 = vmatprep.subr.mxu0 %v43529_v29  ;;  %36369 = vmatpush3.msra.mxu1 %v38443_v24 }
0x10eb   :  { %36336 = vmatpush3.msra.mxu0 %v38466_v51  ;;  %36370 = vmatprep.subr.mxu1 %v43529_v29 }
0x10ec   :  { %36337 = vmatprep.subr.mxu0 %v43529_v29  ;;  %36339 = vmatprep.mubr.msk.f32.mxu0 %vm37987_vm1, %v43529_v29 }
0x10ed   :  { %36338 = vmatpush3.msra.mxu0 %v38480_v23  ;;  %36371 = vmatpush3.msra.mxu1 %v38453_v35 }
0x10ee   :  { %36372 = vmatprep.mubr.msk.f32.mxu1 %vm37987_vm1, %v43529_v29  ;;  %36340 = vmatmul.mubr.f32.vlgmr.msra.gmra.mxu0 %v41620_v5 }
0x10ef   :  { %36353 = vmatprep.subr.mxu0 %v43529_v29  ;;  %36373 = vmatmul.mubr.f32.vlgmr.msra.gmra.mxu1 %v41616_v20 }
0x10f0   :  { %36386 = vmatprep.subr.mxu1 %v43529_v29  ;;  %36354 = vmatpush3.msra.mxu0 %v38461_v8 }
0x10f1   :  { %36387 = vmatpush3.msra.mxu1 %v38632_v45  ;;  %36355 = vmatprep.subr.mxu0 %v43529_v29 }
0x10f2   :  { %36388 = vmatprep.subr.mxu1 %v43529_v29  ;;  %36356 = vmatpush3.msra.mxu0 %v38477_v22 }
0x10f3   :  { %36389 = vmatpush3.msra.mxu1 %v38643_v41  ;;  %36357 = vmatprep.subr.mxu0 %v43529_v29 }
0x10f4   :  { %36390 = vmatprep.subr.mxu1 %v43529_v29  ;;  %36358 = vmatpush3.msra.mxu0 %v38489_v26 }
0x10f5   :  { %36391 = vmatpush3.msra.mxu1 %v38652_v38  ;;  %36359 = vmatprep.subr.mxu0 %v43529_v29 }
0x10f6   :  { %36392 = vmatprep.subr.mxu1 %v43529_v29  ;;  %36360 = vmatpush3.msra.mxu0 %v38500_v10 }
0x10f7   :  { %36361 = vmatprep.mubr.msk.f32.mxu0 %vm37987_vm1, %v43529_v29  ;;  %36393 = vmatpush3.msra.mxu1 %v38658_v63 }
0x10f8   :  { %36394 = vmatprep.mubr.msk.f32.mxu1 %vm37987_vm1, %v43529_v29  ;;  %36362 = vmatmul.mubr.f32.vlgmr.msra.gmra.mxu0 %v41616_v20 }
0x10f9   :  { %36375 = vmatprep.subr.mxu0 %v43529_v29  ;;  %36395 = vmatmul.mubr.f32.vlgmr.msra.gmra.mxu1 %v41616_v20 }
0x10fa   :  { %36408 = vmatprep.subr.mxu1 %v43529_v29  ;;  %36376 = vmatpush3.msra.mxu0 %v38553_v46 }
0x10fb   :  { %36409 = vmatpush3.msra.mxu1 %v38553_v46  ;;  %36377 = vmatprep.subr.mxu0 %v43529_v29 }
0x10fc   :  { %36410 = vmatprep.subr.mxu1 %v43529_v29  ;;  %36378 = vmatpush3.msra.mxu0 %v38567_v37 }
0x10fd   :  { %36411 = vmatpush3.msra.mxu1 %v38567_v37  ;;  %36379 = vmatprep.subr.mxu0 %v43529_v29 }
0x10fe   :  { %36412 = vmatprep.subr.mxu1 %v43529_v29  ;;  %36380 = vmatpush3.msra.mxu0 %v38579_v60 }
0x10ff   :  { %36413 = vmatpush3.msra.mxu1 %v38579_v60  ;;  %36381 = vmatprep.subr.mxu0 %v43529_v29 }
0x1100   :  { %36414 = vmatprep.subr.mxu1 %v43529_v29  ;;  %36382 = vmatpush3.msra.mxu0 %v38586_v28 }
0x1101   :  { %36383 = vmatprep.mubr.msk.f32.mxu0 %vm37987_vm1, %v43529_v29  ;;  %36415 = vmatpush3.msra.mxu1 %v38586_v28 }
0x1102   :  { %36416 = vmatprep.mubr.msk.f32.mxu1 %vm37987_vm1, %v43529_v29  ;;  %36384 = vmatmul.mubr.f32.vlgmr.msra.gmra.mxu0 %v41635_v31 }
0x1103   :  { %36397 = vmatprep.subr.mxu0 %v43529_v29  ;;  %36417 = vmatmul.mubr.f32.vlgmr.msra.gmra.mxu1 %v41627_v50 }
0x1104   :  { %36430 = vmatprep.subr.mxu1 %v43529_v29  ;;  %36398 = vmatpush3.msra.mxu0 %v43733_v13 }
0x1105   :  { %36431 = vmatpush3.msra.mxu1 %v38553_v46  ;;  %36399 = vmatprep.subr.mxu0 %v43529_v29 }
0x1106   :  { %36432 = vmatprep.subr.mxu1 %v43529_v29  ;;  %36400 = vmatpush3.msra.mxu0 %v43734_v40 }
0x1107   :  { %36433 = vmatpush3.msra.mxu1 %v38567_v37  ;;  %36401 = vmatprep.subr.mxu0 %v43529_v29 }
0x1108   :  { %36434 = vmatprep.subr.mxu1 %v43529_v29  ;;  %36402 = vmatpush3.msra.mxu0 %v43735_v11 }
0x1109   :  { %36435 = vmatpush3.msra.mxu1 %v38579_v60  ;;  %36403 = vmatprep.subr.mxu0 %v43529_v29 }
0x110a   :  { %36436 = vmatprep.subr.mxu1 %v43529_v29  ;;  %36404 = vmatpush3.msra.mxu0 %v43736_v0 }
0x110b   :  { %36405 = vmatprep.mubr.msk.f32.mxu0 %vm37987_vm1, %v43529_v29  ;;  %36437 = vmatpush3.msra.mxu1 %v38586_v28 }
0x110c   :  { %36438 = vmatprep.mubr.msk.f32.mxu1 %vm37987_vm1, %v43529_v29  ;;  %36406 = vmatmul.mubr.f32.vlgmr.msra.gmra.mxu0 %v41620_v5 }
0x110d   :  { %36419 = vmatprep.subr.mxu0 %v43529_v29  ;;  %36439 = vmatmul.mubr.f32.vlgmr.msra.gmra.mxu1 %v41616_v20 }
0x110e   :  { %36452 = vmatprep.subr.mxu1 %v43529_v29  ;;  %36420 = vmatpush3.msra.mxu0 %v43737_v16 }
0x110f   :  { %36453 = vmatpush3.msra.mxu1 %v43742_v2  ;;  %36421 = vmatprep.subr.mxu0 %v43529_v29 }
0x1110   :  { %36454 = vmatprep.subr.mxu1 %v43529_v29  ;;  %36422 = vmatpush3.msra.mxu0 %v43738_v17 }
0x1111   :  { %36455 = vmatpush3.msra.mxu1 %v43744_v57  ;;  %36423 = vmatprep.subr.mxu0 %v43529_v29 }
0x1112   :  { %36456 = vmatprep.subr.mxu1 %v43529_v29  ;;  %36424 = vmatpush3.msra.mxu0 %v43739_v34 }
0x1113   :  { %36457 = vmatpush3.msra.mxu1 %v43746_v15  ;;  %36425 = vmatprep.subr.mxu0 %v43529_v29 }
0x1114   :  { %36458 = vmatprep.subr.mxu1 %v43529_v29  ;;  %36426 = vmatpush3.msra.mxu0 %v43740_v47 }
0x1115   :  { %36427 = vmatprep.mubr.msk.f32.mxu0 %vm37987_vm1, %v43529_v29  ;;  %36459 = vmatpush3.msra.mxu1 %v43748_v42 }
0x1116   :  { %36460 = vmatprep.mubr.msk.f32.mxu1 %vm37987_vm1, %v43529_v29  ;;  %36428 = vmatmul.mubr.f32.vlgmr.msra.gmra.mxu0 %v41616_v20 }
0x1117   :  { %36441 = vmatprep.subr.mxu0 %v43529_v29  ;;  %36461 = vmatmul.mubr.f32.vlgmr.msra.gmra.mxu1 %v41616_v20 }
0x1118   :  { %36474 = vmatprep.subr.mxu1 %v43529_v29  ;;  %36442 = vmatpush3.msra.mxu0 %v43771_v52 }
0x1119   :  { %36475 = vmatpush3.msra.mxu1 %v43771_v52  ;;  %36443 = vmatprep.subr.mxu0 %v43529_v29 }
0x111a   :  { %36476 = vmatprep.subr.mxu1 %v43529_v29  ;;  %36444 = vmatpush3.msra.mxu0 %v43772_v55 }
0x111b   :  { %36477 = vmatpush3.msra.mxu1 %v43772_v55  ;;  %36445 = vmatprep.subr.mxu0 %v43529_v29 }
0x111c   :  { %36478 = vmatprep.subr.mxu1 %v43529_v29  ;;  %36446 = vmatpush3.msra.mxu0 %v43773_v58 }
0x111d   :  { %36479 = vmatpush3.msra.mxu1 %v43773_v58  ;;  %36447 = vmatprep.subr.mxu0 %v43529_v29 }
0x111e   :  { %36480 = vmatprep.subr.mxu1 %v43529_v29  ;;  %36448 = vmatpush3.msra.mxu0 %v43774_v56 }
0x111f   :  { %36449 = vmatprep.mubr.msk.f32.mxu0 %vm37987_vm1, %v43529_v29  ;;  %36481 = vmatpush3.msra.mxu1 %v43774_v56 }
0x1120   :  { %36482 = vmatprep.mubr.msk.f32.mxu1 %vm37987_vm1, %v43529_v29  ;;  %36450 = vmatmul.mubr.f32.vlgmr.msra.gmra.mxu0 %v41635_v31 }
0x1121   :  { %36463 = vmatprep.subr.mxu0 %v43529_v29  ;;  %36483 = vmatmul.mubr.f32.vlgmr.msra.gmra.mxu1 %v41627_v50 }
0x1122   :  { %36496 = vmatprep.subr.mxu1 %v43529_v29  ;;  %36464 = vmatpush3.msra.mxu0 %v43775_v6 }
0x1123   :  { %36497 = vmatpush3.msra.mxu1 %v43771_v52  ;;  %36465 = vmatprep.subr.mxu0 %v43529_v29 }
0x1124   :  { %36498 = vmatprep.subr.mxu1 %v43529_v29  ;;  %36466 = vmatpush3.msra.mxu0 %v43776_v30 }
0x1125   :  { %36499 = vmatpush3.msra.mxu1 %v43772_v55  ;;  %36467 = vmatprep.subr.mxu0 %v43529_v29 }
0x1126   :  { %36500 = vmatprep.subr.mxu1 %v43529_v29  ;;  %36468 = vmatpush3.msra.mxu0 %v43777_v36 }
0x1127   :  { %36501 = vmatpush3.msra.mxu1 %v43773_v58  ;;  %36469 = vmatprep.subr.mxu0 %v43529_v29 }
0x1128   :  { %36502 = vmatprep.subr.mxu1 %v43529_v29  ;;  %36470 = vmatpush3.msra.mxu0 %v43778_v3 }
0x1129   :  { %36471 = vmatprep.mubr.msk.f32.mxu0 %vm37987_vm1, %v43529_v29  ;;  %36503 = vmatpush3.msra.mxu1 %v43774_v56 }
0x112a   :  { %36504 = vmatprep.mubr.msk.f32.mxu1 %vm37987_vm1, %v43529_v29  ;;  %36472 = vmatmul.mubr.f32.vlgmr.msra.gmra.mxu0 %v41620_v5 }
0x112b   :  { %36485 = vmatprep.subr.mxu0 %v43529_v29  ;;  %36505 = vmatmul.mubr.f32.vlgmr.msra.gmra.mxu1 %v41616_v20 }
0x112c   :  { %36486 = vmatpush3.msra.mxu0 %v43779_v43  ;;  %36493 = vmatprep.mubr.msk.f32.mxu0 %vm37987_vm1, %v43529_v29 }
0x112d   :  { %36487 = vmatprep.subr.mxu0 %v43529_v29  ;;  %36518 = vmatprep.subr.mxu1 %v43529_v29 }
0x112e   :  { %36488 = vmatpush3.msra.mxu0 %v43780_v62  ;;  %36519 = vmatpush3.msra.mxu1 %v43781_v49 }
0x112f   :  { %36489 = vmatprep.subr.mxu0 %v43529_v29  ;;  %36520 = vmatprep.subr.mxu1 %v43529_v29 }
0x1130   :  { %36490 = vmatpush3.msra.mxu0 %v43782_v9  ;;  %36521 = vmatpush3.msra.mxu1 %v43783_v18 }
0x1131   :  { %36491 = vmatprep.subr.mxu0 %v43529_v29  ;;  %36522 = vmatprep.subr.mxu1 %v43529_v29 }
0x1132   :  { %36492 = vmatpush3.msra.mxu0 %v43784_v59  ;;  %36523 = vmatpush3.msra.mxu1 %v43785_v4 }
0x1133   :  { %36494 = vmatmul.mubr.f32.vlgmr.msra.gmra.mxu0 %v41616_v20  ;;  %36524 = vmatprep.subr.mxu1 %v43529_v29 }
0x1134   :  { %36525 = vmatpush3.msra.mxu1 %v43786_v7  ;;  %36507 = vmatprep.subr.mxu0 %v43529_v29 }
0x1135   :  { %36526 = vmatprep.mubr.msk.f32.mxu1 %vm37987_vm1, %v43529_v29  ;;  %36540 = vmatprep.subr.mxu1 %v43529_v29 }
0x1136   :  { %36508 = vmatpush3.msra.mxu0 %v38414_v53  ;;  %36515 = vmatprep.mubr.msk.f32.mxu0 %vm37987_vm1, %v43529_v29 }
0x1137   :  { %36509 = vmatprep.subr.mxu0 %v43529_v29 }
0x1138   :  { %36510 = vmatpush3.msra.mxu0 %v38431_v61 }
0x1139   :  { %36511 = vmatprep.subr.mxu0 %v43529_v29 }
0x113a   :  { %36512 = vmatpush3.msra.mxu0 %v38443_v24 }
0x113b   :  { %36513 = vmatprep.subr.mxu0 %v43529_v29 }
0x113c   :  { %36514 = vmatpush3.msra.mxu0 %v38453_v35 }
0x113d   :  { %36529 = vmatprep.subr.mxu0 %v43529_v29 }
0x119d   :  { %v20509_v54 = vpop.f32.mrf.mxu1 }
0x119f   :  { %v36330_v12 = vpop.f32.mrf.mxu1 }
0x11a5   :  { %v20666_v25 = vpop.f32.mrf.mxu1 }
0x11a6   :  { %v20418_v33 = vpop.f32.mrf.mxu0 }
0x11a7   :  { %v36352_v27 = vpop.f32.mrf.mxu1  ;;  %v20510_v18 = vadd.f32 %v20509_v54, %v20418_v33 }
0x11a8   :  { %v36319_v19 = vpop.f32.mrf.mxu0 }
0x11ae   :  { %v20589_v20 = vpop.f32.mrf.mxu0 }
0x11af   :  { %v20824_v5 = vpop.f32.mrf.mxu1  ;;  %v20590_v9 = vadd.f32 %v20589_v20, %v20510_v18 }
0x11b0   :  { %v36341_v50 = vpop.f32.mrf.mxu0 }
0x11b1   :  { %v36374_v1 = vpop.f32.mrf.mxu1  ;;  %v20667_v49 = vadd.f32 %v20666_v25, %v20590_v9 }
0x11b8   :  { %v20749_v31 = vpop.f32.mrf.mxu0 }
0x11b9   :  { %v20994_v7 = vpop.f32.mrf.mxu1  ;;  %v20750_v3 = vadd.f32 %v20749_v31, %v20667_v49 }
0x11ba   :  { %v36363_v4 = vpop.f32.mrf.mxu0 }
0x11bb   :  { %v36396_v59 = vpop.f32.mrf.mxu1  ;;  %v20825_v30 = vadd.f32 %v20824_v5, %v20750_v3 }
0x11bd   :  { %v21799_v6 = vrot.slane %v20825_v30, 6 }
0x11bf   :  { %v21801_v1 = vadd.f32 %v21799_v6, %v41367_v32 }
0x11c1   :  { %v31766_v4 = vmul.f32 -1.442695, %v21801_v1 }
0x11c2   :  { %v20903_v62 = vpop.f32.mrf.mxu0 }
0x11c3   :  { %v21151_v43 = vpop.f32.mrf.mxu1  ;;  %v20995_v58 = vadd.f32 %v20994_v7, %v20903_v62  ;;  %37888 = vpow2.f32 %v31766_v4 }
0x11c4   :  { %v36385_v36 = vpop.f32.mrf.mxu0 }
0x11c5   :  { %v36418_v12 = vpop.f32.mrf.mxu1 }
0x11cc   :  { %v21074_v27 = vpop.f32.mrf.mxu0 }
0x11cd   :  { %v21309_v19 = vpop.f32.mrf.mxu1  ;;  %v21075_v55 = vadd.f32 %v21074_v27, %v20995_v58 }
0x11ce   :  { %v36407_v56 = vpop.f32.mrf.mxu0 }
0x11cf   :  { %v36440_v50 = vpop.f32.mrf.mxu1  ;;  %v21152_v59 = vadd.f32 %v21151_v43, %v21075_v55  ;;  %v41831_v55 = vld [vmem:[%s43220_s6] sm:$0x1] }
0x11d0   :  { %v37889_v5 = vpop.eup %37888 }
0x11d1   :  { %v21805_v58 = vadd.f32 1.0, %v37889_v5 }
0x11d6   :  { %v21234_v54 = vpop.f32.mrf.mxu0 }
0x11d7   :  { %v21235_v18 = vadd.f32 %v21234_v54, %v21152_v59  ;;  %v21479_v9 = vpop.f32.mrf.mxu1 }
0x11d8   :  { %v36429_v25 = vpop.f32.mrf.mxu0 }
0x11d9   :  { %v21310_v49 = vadd.f32 %v21309_v19, %v21235_v18  ;;  %v36462_v36 = vpop.f32.mrf.mxu1 }
0x11db   :  { %v21809_v33 = vrot.slane %v21310_v49, 6 }
0x11dd   :  { %v21811_v30 = vadd.f32 %v21809_v33, %v41372_v39 }
0x11df   :  { %v31767_v56 = vmul.f32 -1.442695, %v21811_v30 }
0x11e0   :  { %v21388_v3 = vpop.f32.mrf.mxu0 }
0x11e1   :  { %v21636_v20 = vpop.f32.mrf.mxu1  ;;  %37890 = vpow2.f32 %v31767_v56  ;;  %v21389_v6 = vadd.f32 %v41831_v55, %v21388_v3 }
0x11e2   :  { %v36451_v62 = vpop.f32.mrf.mxu0  ;;  %37892 = vrcp.f32 %v21805_v58 }
0x11e3   :  { %v36484_v7 = vpop.f32.mrf.mxu1  ;;  %v21480_v12 = vadd.f32 %v21479_v9, %v21389_v6  ;;  %v21826_v9 = vrot.slane %v41610_v44, 7 }
0x11ea   :  { %v21559_v43 = vpop.f32.mrf.mxu0 }
0x11eb   :  { %v21794_v31 = vpop.f32.mrf.mxu1  ;;  %v21560_v50 = vadd.f32 %v21559_v43, %v21480_v12 }
0x11ec   :  { %v36473_v27 = vpop.f32.mrf.mxu0 }
0x11ed   :  { %v36506_v19 = vpop.f32.mrf.mxu1  ;;  %v21637_v1 = vadd.f32 %v21636_v20, %v21560_v50  ;;  %v43787_v50 = vld [vmem:[#allocation67_spill] sm:$0xff] }
0x11ee   :  { %v37891_v4 = vpop.eup %37890 }
0x11ef   :  { %v21815_v25 = vadd.f32 1.0, %v37891_v4  ;;  %v37893_v33 = vpop.eup %37892  ;;  %v43789_v4 = vld [vmem:[#allocation70_spill] sm:$0xff] }
0x11f1   :  { %37894 = vrcp.f32 %v21815_v25  ;;  %v43793_v25 = vld [vmem:[#allocation75_spill] sm:$0xff] }
0x11f3   :  { %v21719_v59 = vpop.f32.mrf.mxu0 }
0x11f4   :  { %v21720_v54 = vadd.f32 %v21719_v59, %v21637_v1  ;;  %v43788_v1 = vld [vmem:[#allocation69_spill] sm:$0xff]  ;;  %v43790_v59 = vld [vmem:[#allocation68_spill] sm:$0xff] }
0x11f5   :  { %v36495_v18 = vpop.f32.mrf.mxu0 }
0x11f6   :  { %v21795_v49 = vadd.f32 %v21794_v31, %v21720_v54  ;;  %v43791_v54 = vld [vmem:[#allocation71_spill] sm:$0xff]  ;;  %v43792_v18 = vld [vmem:[#allocation73_spill] sm:$0xff] }
0x11f8   :  { %v21819_v36 = vrot.slane %v21795_v49, 6  ;;  %v43794_v49 = vld [vmem:[#allocation72_spill] sm:$0xff] }
0x11fa   :  { %v21821_v30 = vmul.f32 %v37893_v33, %v21819_v36  ;;  %v43795_v36 = vld [vmem:[#allocation74_spill] sm:$0xff] }
0x11fb   :  { %v43796_v33 = vld [vmem:[#allocation54_spill] sm:$0xff] }
0x11fc   :  { %v21822_v3 = vadd.f32 %v21821_v30, %v41377_v14  ;;  %v43797_v30 = vld [vmem:[#allocation76_spill] sm:$0xff] }
0x11fe   :  { %37896 = vtanh.f32 %v21822_v3  ;;  %v37895_v56 = vpop.eup %37894  ;;  %v43798_v3 = vld [vmem:[#allocation55_spill] sm:$0xff] }
0x11ff   :  { %v21824_v62 = vsub.f32 1.0, %v37895_v56  ;;  %v21828_v5 = vmul.f32 %v37895_v56, %v21826_v9  ;;  %v43799_v56 = vld [vmem:[#allocation77_spill] sm:$0xff]  ;;  %v43800_v9 = vld [vmem:[#allocation56_spill] sm:$0xff] }
0x120b   :  { %v37897_v7 = vpop.eup %37896 }
0x120c   :  { %v21825_v20 = vmul.f32 %v37897_v7, %v21824_v62  ;;  %v43801_v62 = vld [vmem:[#allocation57_spill] sm:$0xff] }
0x120e   :  { %v41836_v58 = vadd.f32 %v21828_v5, %v21825_v20 }
0x1210   :  { %21830 = vst.msk [vmem:[#allocation2] sm:$0x4] %vm6027_vm4, %v41836_v58  ;;  %v21832_v6 = vrot.slane %v41836_v58, 2 }
0x1212   :  { %v21833_v43 = vsel %vm91_vm0, %v21832_v6, 0 }
0x1213   :  { %v41842_v31 = vand.u32 4294901760, %v21833_v43 }
0x1215   :  { %36527 = vmatmul.mubr.f32.vlgmr.msra.gmra.mxu1 %v41842_v31  ;;  %v41846_v12 = vsub.f32 %v21833_v43, %v41842_v31 }
0x1216   :  { %36541 = vmatpush3.msra.mxu1 %v38414_v53  ;;  %36548 = vmatprep.mubr.msk.f32.mxu1 %vm37987_vm1, %v43529_v29 }
0x1217   :  { %36542 = vmatprep.subr.mxu1 %v43529_v29  ;;  %v41853_v44 = vand.u32 4294901760, %v41846_v12 }
0x1218   :  { %36543 = vmatpush3.msra.mxu1 %v38431_v61 }
0x1219   :  { %36544 = vmatprep.subr.mxu1 %v43529_v29  ;;  %v21907_v27 = vsub.f32 %v41846_v12, %v41853_v44 }
0x121a   :  { %36545 = vmatpush3.msra.mxu1 %v38443_v24 }
0x121b   :  { %36546 = vmatprep.subr.mxu1 %v43529_v29  ;;  %v41861_v19 = vand.u32 4294901760, %v21907_v27 }
0x121c   :  { %36547 = vmatpush3.msra.mxu1 %v38453_v35 }
0x121d   :  { %36549 = vmatmul.mubr.f32.vlgmr.msra.gmra.mxu1 %v41853_v44  ;;  %36562 = vmatprep.subr.mxu1 %v43529_v29 }
0x121e   :  { %36516 = vmatmul.mubr.f32.vlgmr.msra.gmra.mxu0 %v41861_v19  ;;  %36563 = vmatpush3.msra.mxu1 %v38414_v53 }
0x121f   :  { %36530 = vmatpush3.msra.mxu0 %v38439_v21  ;;  %36564 = vmatprep.subr.mxu1 %v43529_v29 }
0x1220   :  { %36531 = vmatprep.subr.mxu0 %v43529_v29  ;;  %36565 = vmatpush3.msra.mxu1 %v38431_v61 }
0x1221   :  { %36532 = vmatpush3.msra.mxu0 %v38456_v48  ;;  %36566 = vmatprep.subr.mxu1 %v43529_v29 }
0x1222   :  { %36533 = vmatprep.subr.mxu0 %v43529_v29  ;;  %36567 = vmatpush3.msra.mxu1 %v38443_v24 }
0x1223   :  { %36534 = vmatpush3.msra.mxu0 %v38466_v51  ;;  %36568 = vmatprep.subr.mxu1 %v43529_v29 }
0x1224   :  { %36535 = vmatprep.subr.mxu0 %v43529_v29  ;;  %36537 = vmatprep.mubr.msk.f32.mxu0 %vm37987_vm1, %v43529_v29 }
0x1225   :  { %36536 = vmatpush3.msra.mxu0 %v38480_v23  ;;  %36569 = vmatpush3.msra.mxu1 %v38453_v35 }
0x1226   :  { %36570 = vmatprep.mubr.msk.f32.mxu1 %vm37987_vm1, %v43529_v29  ;;  %36538 = vmatmul.mubr.f32.vlgmr.msra.gmra.mxu0 %v41846_v12 }
0x1227   :  { %36551 = vmatprep.subr.mxu0 %v43529_v29  ;;  %36571 = vmatmul.mubr.f32.vlgmr.msra.gmra.mxu1 %v41842_v31 }
0x1228   :  { %36584 = vmatprep.subr.mxu1 %v43529_v29  ;;  %36552 = vmatpush3.msra.mxu0 %v38461_v8 }
0x1229   :  { %36585 = vmatpush3.msra.mxu1 %v38632_v45  ;;  %36553 = vmatprep.subr.mxu0 %v43529_v29 }
0x122a   :  { %36586 = vmatprep.subr.mxu1 %v43529_v29  ;;  %36554 = vmatpush3.msra.mxu0 %v38477_v22 }
0x122b   :  { %36587 = vmatpush3.msra.mxu1 %v38643_v41  ;;  %36555 = vmatprep.subr.mxu0 %v43529_v29 }
0x122c   :  { %36588 = vmatprep.subr.mxu1 %v43529_v29  ;;  %36556 = vmatpush3.msra.mxu0 %v38489_v26 }
0x122d   :  { %36589 = vmatpush3.msra.mxu1 %v38652_v38  ;;  %36557 = vmatprep.subr.mxu0 %v43529_v29 }
0x122e   :  { %36590 = vmatprep.subr.mxu1 %v43529_v29  ;;  %36558 = vmatpush3.msra.mxu0 %v38500_v10 }
0x122f   :  { %36559 = vmatprep.mubr.msk.f32.mxu0 %vm37987_vm1, %v43529_v29  ;;  %36591 = vmatpush3.msra.mxu1 %v38658_v63 }
0x1230   :  { %36592 = vmatprep.mubr.msk.f32.mxu1 %vm37987_vm1, %v43529_v29  ;;  %36560 = vmatmul.mubr.f32.vlgmr.msra.gmra.mxu0 %v41842_v31 }
0x1231   :  { %36573 = vmatprep.subr.mxu0 %v43529_v29  ;;  %36593 = vmatmul.mubr.f32.vlgmr.msra.gmra.mxu1 %v41842_v31 }
0x1232   :  { %36606 = vmatprep.subr.mxu1 %v43529_v29  ;;  %36574 = vmatpush3.msra.mxu0 %v38553_v46 }
0x1233   :  { %36607 = vmatpush3.msra.mxu1 %v38553_v46  ;;  %36575 = vmatprep.subr.mxu0 %v43529_v29 }
0x1234   :  { %36608 = vmatprep.subr.mxu1 %v43529_v29  ;;  %36576 = vmatpush3.msra.mxu0 %v38567_v37 }
0x1235   :  { %36609 = vmatpush3.msra.mxu1 %v38567_v37  ;;  %36577 = vmatprep.subr.mxu0 %v43529_v29 }
0x1236   :  { %36610 = vmatprep.subr.mxu1 %v43529_v29  ;;  %36578 = vmatpush3.msra.mxu0 %v38579_v60 }
0x1237   :  { %36611 = vmatpush3.msra.mxu1 %v38579_v60  ;;  %36579 = vmatprep.subr.mxu0 %v43529_v29 }
0x1238   :  { %36612 = vmatprep.subr.mxu1 %v43529_v29  ;;  %36580 = vmatpush3.msra.mxu0 %v38586_v28 }
0x1239   :  { %36581 = vmatprep.mubr.msk.f32.mxu0 %vm37987_vm1, %v43529_v29  ;;  %36613 = vmatpush3.msra.mxu1 %v38586_v28 }
0x123a   :  { %36614 = vmatprep.mubr.msk.f32.mxu1 %vm37987_vm1, %v43529_v29  ;;  %36582 = vmatmul.mubr.f32.vlgmr.msra.gmra.mxu0 %v41861_v19 }
0x123b   :  { %36595 = vmatprep.subr.mxu0 %v43529_v29  ;;  %36615 = vmatmul.mubr.f32.vlgmr.msra.gmra.mxu1 %v41853_v44 }
0x123c   :  { %36628 = vmatprep.subr.mxu1 %v43529_v29  ;;  %36596 = vmatpush3.msra.mxu0 %v43733_v13 }
0x123d   :  { %36629 = vmatpush3.msra.mxu1 %v38553_v46  ;;  %36597 = vmatprep.subr.mxu0 %v43529_v29 }
0x123e   :  { %36630 = vmatprep.subr.mxu1 %v43529_v29  ;;  %36598 = vmatpush3.msra.mxu0 %v43734_v40 }
0x123f   :  { %36631 = vmatpush3.msra.mxu1 %v38567_v37  ;;  %36599 = vmatprep.subr.mxu0 %v43529_v29 }
0x1240   :  { %36632 = vmatprep.subr.mxu1 %v43529_v29  ;;  %36600 = vmatpush3.msra.mxu0 %v43735_v11 }
0x1241   :  { %36633 = vmatpush3.msra.mxu1 %v38579_v60  ;;  %36601 = vmatprep.subr.mxu0 %v43529_v29 }
0x1242   :  { %36634 = vmatprep.subr.mxu1 %v43529_v29  ;;  %36602 = vmatpush3.msra.mxu0 %v43736_v0 }
0x1243   :  { %36603 = vmatprep.mubr.msk.f32.mxu0 %vm37987_vm1, %v43529_v29  ;;  %36635 = vmatpush3.msra.mxu1 %v38586_v28 }
0x1244   :  { %36636 = vmatprep.mubr.msk.f32.mxu1 %vm37987_vm1, %v43529_v29  ;;  %36604 = vmatmul.mubr.f32.vlgmr.msra.gmra.mxu0 %v41846_v12 }
0x1245   :  { %36617 = vmatprep.subr.mxu0 %v43529_v29  ;;  %36637 = vmatmul.mubr.f32.vlgmr.msra.gmra.mxu1 %v41842_v31 }
0x1246   :  { %36650 = vmatprep.subr.mxu1 %v43529_v29  ;;  %36618 = vmatpush3.msra.mxu0 %v43737_v16 }
0x1247   :  { %36651 = vmatpush3.msra.mxu1 %v43742_v2  ;;  %36619 = vmatprep.subr.mxu0 %v43529_v29 }
0x1248   :  { %36652 = vmatprep.subr.mxu1 %v43529_v29  ;;  %36620 = vmatpush3.msra.mxu0 %v43738_v17 }
0x1249   :  { %36653 = vmatpush3.msra.mxu1 %v43744_v57  ;;  %36621 = vmatprep.subr.mxu0 %v43529_v29 }
0x124a   :  { %36654 = vmatprep.subr.mxu1 %v43529_v29  ;;  %36622 = vmatpush3.msra.mxu0 %v43739_v34 }
0x124b   :  { %36655 = vmatpush3.msra.mxu1 %v43746_v15  ;;  %36623 = vmatprep.subr.mxu0 %v43529_v29 }
0x124c   :  { %36656 = vmatprep.subr.mxu1 %v43529_v29  ;;  %36624 = vmatpush3.msra.mxu0 %v43740_v47 }
0x124d   :  { %36625 = vmatprep.mubr.msk.f32.mxu0 %vm37987_vm1, %v43529_v29  ;;  %36657 = vmatpush3.msra.mxu1 %v43748_v42 }
0x124e   :  { %36658 = vmatprep.mubr.msk.f32.mxu1 %vm37987_vm1, %v43529_v29  ;;  %36626 = vmatmul.mubr.f32.vlgmr.msra.gmra.mxu0 %v41842_v31 }
0x124f   :  { %36639 = vmatprep.subr.mxu0 %v43529_v29  ;;  %36659 = vmatmul.mubr.f32.vlgmr.msra.gmra.mxu1 %v41842_v31 }
0x1250   :  { %36672 = vmatprep.subr.mxu1 %v43529_v29  ;;  %36640 = vmatpush3.msra.mxu0 %v43771_v52 }
0x1251   :  { %36673 = vmatpush3.msra.mxu1 %v43771_v52  ;;  %36641 = vmatprep.subr.mxu0 %v43529_v29 }
0x1252   :  { %36674 = vmatprep.subr.mxu1 %v43529_v29  ;;  %36642 = vmatpush3.msra.mxu0 %v43787_v50 }
0x1253   :  { %36675 = vmatpush3.msra.mxu1 %v43787_v50  ;;  %36643 = vmatprep.subr.mxu0 %v43529_v29 }
0x1254   :  { %36676 = vmatprep.subr.mxu1 %v43529_v29  ;;  %36644 = vmatpush3.msra.mxu0 %v43788_v1 }
0x1255   :  { %36677 = vmatpush3.msra.mxu1 %v43788_v1  ;;  %36645 = vmatprep.subr.mxu0 %v43529_v29 }
0x1256   :  { %36678 = vmatprep.subr.mxu1 %v43529_v29  ;;  %36646 = vmatpush3.msra.mxu0 %v43789_v4 }
0x1257   :  { %36647 = vmatprep.mubr.msk.f32.mxu0 %vm37987_vm1, %v43529_v29  ;;  %36679 = vmatpush3.msra.mxu1 %v43789_v4 }
0x1258   :  { %36680 = vmatprep.mubr.msk.f32.mxu1 %vm37987_vm1, %v43529_v29  ;;  %36648 = vmatmul.mubr.f32.vlgmr.msra.gmra.mxu0 %v41861_v19 }
0x1259   :  { %36661 = vmatprep.subr.mxu0 %v43529_v29  ;;  %36681 = vmatmul.mubr.f32.vlgmr.msra.gmra.mxu1 %v41853_v44 }
0x125a   :  { %36694 = vmatprep.subr.mxu1 %v43529_v29  ;;  %36662 = vmatpush3.msra.mxu0 %v43790_v59 }
0x125b   :  { %36695 = vmatpush3.msra.mxu1 %v43771_v52  ;;  %36663 = vmatprep.subr.mxu0 %v43529_v29 }
0x125c   :  { %36696 = vmatprep.subr.mxu1 %v43529_v29  ;;  %36664 = vmatpush3.msra.mxu0 %v43791_v54 }
0x125d   :  { %36697 = vmatpush3.msra.mxu1 %v43787_v50  ;;  %36665 = vmatprep.subr.mxu0 %v43529_v29 }
0x125e   :  { %36698 = vmatprep.subr.mxu1 %v43529_v29  ;;  %36666 = vmatpush3.msra.mxu0 %v43792_v18 }
0x125f   :  { %36699 = vmatpush3.msra.mxu1 %v43788_v1  ;;  %36667 = vmatprep.subr.mxu0 %v43529_v29 }
0x1260   :  { %36700 = vmatprep.subr.mxu1 %v43529_v29  ;;  %36668 = vmatpush3.msra.mxu0 %v43793_v25 }
0x1261   :  { %36669 = vmatprep.mubr.msk.f32.mxu0 %vm37987_vm1, %v43529_v29  ;;  %36701 = vmatpush3.msra.mxu1 %v43789_v4 }
0x1262   :  { %36702 = vmatprep.mubr.msk.f32.mxu1 %vm37987_vm1, %v43529_v29  ;;  %36670 = vmatmul.mubr.f32.vlgmr.msra.gmra.mxu0 %v41846_v12 }
0x1263   :  { %36683 = vmatprep.subr.mxu0 %v43529_v29  ;;  %36703 = vmatmul.mubr.f32.vlgmr.msra.gmra.mxu1 %v41842_v31 }
0x1264   :  { %36684 = vmatpush3.msra.mxu0 %v43794_v49  ;;  %36691 = vmatprep.mubr.msk.f32.mxu0 %vm37987_vm1, %v43529_v29 }
0x1265   :  { %36685 = vmatprep.subr.mxu0 %v43529_v29  ;;  %36716 = vmatprep.subr.mxu1 %v43529_v29 }
0x1266   :  { %36686 = vmatpush3.msra.mxu0 %v43795_v36  ;;  %36717 = vmatpush3.msra.mxu1 %v43796_v33 }
0x1267   :  { %36687 = vmatprep.subr.mxu0 %v43529_v29  ;;  %36718 = vmatprep.subr.mxu1 %v43529_v29 }
0x1268   :  { %36688 = vmatpush3.msra.mxu0 %v43797_v30  ;;  %36719 = vmatpush3.msra.mxu1 %v43798_v3 }
0x1269   :  { %36689 = vmatprep.subr.mxu0 %v43529_v29  ;;  %36720 = vmatprep.subr.mxu1 %v43529_v29 }
0x126a   :  { %36690 = vmatpush3.msra.mxu0 %v43799_v56  ;;  %36721 = vmatpush3.msra.mxu1 %v43800_v9 }
0x126b   :  { %36692 = vmatmul.mubr.f32.vlgmr.msra.gmra.mxu0 %v41842_v31  ;;  %36722 = vmatprep.subr.mxu1 %v43529_v29 }
0x126c   :  { %36723 = vmatpush3.msra.mxu1 %v43801_v62  ;;  %36705 = vmatprep.subr.mxu0 %v43529_v29 }
0x126d   :  { %36724 = vmatprep.mubr.msk.f32.mxu1 %vm37987_vm1, %v43529_v29  ;;  %36738 = vmatprep.subr.mxu1 %v43529_v29 }
0x126e   :  { %36706 = vmatpush3.msra.mxu0 %v38414_v53  ;;  %36713 = vmatprep.mubr.msk.f32.mxu0 %vm37987_vm1, %v43529_v29 }
0x126f   :  { %36707 = vmatprep.subr.mxu0 %v43529_v29 }
0x1270   :  { %36708 = vmatpush3.msra.mxu0 %v38431_v61 }
0x1271   :  { %36709 = vmatprep.subr.mxu0 %v43529_v29 }
0x1272   :  { %36710 = vmatpush3.msra.mxu0 %v38443_v24 }
0x1273   :  { %36711 = vmatprep.subr.mxu0 %v43529_v29 }
0x1274   :  { %36712 = vmatpush3.msra.mxu0 %v38453_v35 }
0x1275   :  { %36727 = vmatprep.subr.mxu0 %v43529_v29 }
0x12d5   :  { %v22001_v7 = vpop.f32.mrf.mxu1 }
0x12d7   :  { %v36528_v5 = vpop.f32.mrf.mxu1 }
0x12dd   :  { %v22158_v20 = vpop.f32.mrf.mxu1 }
0x12de   :  { %v21910_v6 = vpop.f32.mrf.mxu0 }
0x12df   :  { %v36550_v43 = vpop.f32.mrf.mxu1  ;;  %v22002_v30 = vadd.f32 %v22001_v7, %v21910_v6 }
0x12e0   :  { %v36517_v31 = vpop.f32.mrf.mxu0 }
0x12e6   :  { %v22081_v12 = vpop.f32.mrf.mxu0 }
0x12e7   :  { %v22316_v44 = vpop.f32.mrf.mxu1  ;;  %v22082_v33 = vadd.f32 %v22081_v12, %v22002_v30 }
0x12e8   :  { %v36539_v27 = vpop.f32.mrf.mxu0 }
0x12e9   :  { %v36572_v19 = vpop.f32.mrf.mxu1  ;;  %v22159_v36 = vadd.f32 %v22158_v20, %v22082_v33 }
0x12f0   :  { %v22241_v62 = vpop.f32.mrf.mxu0 }
0x12f1   :  { %v22486_v9 = vpop.f32.mrf.mxu1  ;;  %v22242_v18 = vadd.f32 %v22241_v62, %v22159_v36 }
0x12f2   :  { %v36561_v56 = vpop.f32.mrf.mxu0 }
0x12f3   :  { %v36594_v3 = vpop.f32.mrf.mxu1  ;;  %v22317_v59 = vadd.f32 %v22316_v44, %v22242_v18 }
0x12f5   :  { %v23291_v4 = vrot.slane %v22317_v59, 5 }
0x12f7   :  { %v23293_v19 = vadd.f32 %v23291_v4, %v41367_v32 }
0x12f9   :  { %v31768_v56 = vmul.f32 -1.442695, %v23293_v19 }
0x12fa   :  { %v22395_v49 = vpop.f32.mrf.mxu0 }
0x12fb   :  { %v22643_v25 = vpop.f32.mrf.mxu1  ;;  %v22487_v50 = vadd.f32 %v22486_v9, %v22395_v49  ;;  %37898 = vpow2.f32 %v31768_v56 }
0x12fc   :  { %v36583_v54 = vpop.f32.mrf.mxu0 }
0x12fd   :  { %v36616_v5 = vpop.f32.mrf.mxu1 }
0x1304   :  { %v22566_v43 = vpop.f32.mrf.mxu0 }
0x1305   :  { %v22801_v31 = vpop.f32.mrf.mxu1  ;;  %v22567_v52 = vadd.f32 %v22566_v43, %v22487_v50 }
0x1306   :  { %v36605_v1 = vpop.f32.mrf.mxu0 }
0x1307   :  { %v36638_v27 = vpop.f32.mrf.mxu1  ;;  %v22644_v3 = vadd.f32 %v22643_v25, %v22567_v52 }
0x1308   :  { %v37899_v12 = vpop.eup %37898 }
0x1309   :  { %v23297_v50 = vadd.f32 1.0, %v37899_v12 }
0x130e   :  { %v22726_v7 = vpop.f32.mrf.mxu0 }
0x130f   :  { %v22727_v30 = vadd.f32 %v22726_v7, %v22644_v3  ;;  %v22971_v33 = vpop.f32.mrf.mxu1 }
0x1310   :  { %v36627_v20 = vpop.f32.mrf.mxu0 }
0x1311   :  { %v22802_v36 = vadd.f32 %v22801_v31, %v22727_v30  ;;  %v36660_v54 = vpop.f32.mrf.mxu1 }
0x1313   :  { %v23301_v62 = vrot.slane %v22802_v36, 5 }
0x1315   :  { %v23303_v59 = vadd.f32 %v23301_v62, %v41372_v39 }
0x1317   :  { %v31769_v1 = vmul.f32 -1.442695, %v23303_v59 }
0x1318   :  { %v22880_v18 = vpop.f32.mrf.mxu0 }
0x1319   :  { %v23128_v6 = vpop.f32.mrf.mxu1  ;;  %37900 = vpow2.f32 %v31769_v1  ;;  %v22881_v52 = vadd.f32 %v41831_v55, %v22880_v18 }
0x131a   :  { %v36649_v49 = vpop.f32.mrf.mxu0  ;;  %37902 = vrcp.f32 %v23297_v50 }
0x131b   :  { %v36682_v9 = vpop.f32.mrf.mxu1  ;;  %v22972_v44 = vadd.f32 %v22971_v33, %v22881_v52  ;;  %v23318_v33 = vrot.slane %v41836_v58, 7 }
0x1322   :  { %v23051_v4 = vpop.f32.mrf.mxu0 }
0x1323   :  { %v23286_v25 = vpop.f32.mrf.mxu1  ;;  %v23052_v31 = vadd.f32 %v23051_v4, %v22972_v44 }
0x1324   :  { %v36671_v5 = vpop.f32.mrf.mxu0 }
0x1325   :  { %v36704_v43 = vpop.f32.mrf.mxu1  ;;  %v23129_v27 = vadd.f32 %v23128_v6, %v23052_v31  ;;  %v43802_v5 = vld [vmem:[#allocation66_spill] sm:$0xff]  ;;  %v43804_v31 = vld [vmem:[#allocation69_spill] sm:$0xff] }
0x1326   :  { %v37901_v19 = vpop.eup %37900  ;;  %v43803_v43 = vld [vmem:[#allocation67_spill] sm:$0xff] }
0x1327   :  { %v23307_v30 = vadd.f32 1.0, %v37901_v19  ;;  %v37903_v54 = vpop.eup %37902  ;;  %v43806_v19 = vld [vmem:[#allocation68_spill] sm:$0xff] }
0x1329   :  { %37904 = vrcp.f32 %v23307_v30  ;;  %v43810_v30 = vld [vmem:[#allocation72_spill] sm:$0xff] }
0x132b   :  { %v23211_v56 = vpop.f32.mrf.mxu0 }
0x132c   :  { %v23212_v3 = vadd.f32 %v23211_v56, %v23129_v27  ;;  %v43805_v27 = vld [vmem:[#allocation70_spill] sm:$0xff]  ;;  %v43807_v56 = vld [vmem:[#allocation71_spill] sm:$0xff] }
0x132d   :  { %v36693_v7 = vpop.f32.mrf.mxu0 }
0x132e   :  { %v23287_v20 = vadd.f32 %v23286_v25, %v23212_v3  ;;  %v43808_v3 = vld [vmem:[#allocation73_spill] sm:$0xff]  ;;  %v43809_v7 = vld [vmem:[#allocation75_spill] sm:$0xff] }
0x1330   :  { %v23311_v36 = vrot.slane %v23287_v20, 5  ;;  %v43811_v20 = vld [vmem:[#allocation74_spill] sm:$0xff] }
0x1332   :  { %v23313_v62 = vmul.f32 %v37903_v54, %v23311_v36  ;;  %v43812_v36 = vld [vmem:[#allocation54_spill] sm:$0xff]  ;;  %v43813_v54 = vld [vmem:[#allocation76_spill] sm:$0xff] }
0x1334   :  { %v23314_v55 = vadd.f32 %v23313_v62, %v41377_v14  ;;  %v43814_v62 = vld [vmem:[#allocation55_spill] sm:$0xff] }
0x1336   :  { %37906 = vtanh.f32 %v23314_v55  ;;  %v37905_v59 = vpop.eup %37904  ;;  %v43815_v55 = vld [vmem:[#allocation77_spill] sm:$0xff] }
0x1337   :  { %v23316_v18 = vsub.f32 1.0, %v37905_v59  ;;  %v23320_v49 = vmul.f32 %v37905_v59, %v23318_v33  ;;  %v43816_v59 = vld [vmem:[#allocation56_spill] sm:$0xff]  ;;  %v43817_v33 = vld [vmem:[#allocation57_spill] sm:$0xff] }
0x1343   :  { %v37907_v1 = vpop.eup %37906 }
0x1344   :  { %v23317_v6 = vmul.f32 %v37907_v1, %v23316_v18 }
0x1346   :  { %v42057_v9 = vadd.f32 %v23320_v49, %v23317_v6 }
0x1348   :  { %23322 = vst.msk [vmem:[#allocation2] sm:$0x8] %vm7520_vm5, %v42057_v9  ;;  %v23324_v12 = vrot.slane %v42057_v9, 3 }
0x134a   :  { %v23325_v50 = vsel %vm91_vm0, %v23324_v12, 0 }
0x134b   :  { %v42063_v52 = vand.u32 4294901760, %v23325_v50 }
0x134d   :  { %36725 = vmatmul.mubr.f32.vlgmr.msra.gmra.mxu1 %v42063_v52  ;;  %v42067_v4 = vsub.f32 %v23325_v50, %v42063_v52 }
0x134e   :  { %36739 = vmatpush3.msra.mxu1 %v38414_v53  ;;  %36746 = vmatprep.mubr.msk.f32.mxu1 %vm37987_vm1, %v43529_v29 }
0x134f   :  { %36740 = vmatprep.subr.mxu1 %v43529_v29  ;;  %v42074_v58 = vand.u32 4294901760, %v42067_v4 }
0x1350   :  { %36741 = vmatpush3.msra.mxu1 %v38431_v61 }
0x1351   :  { %36742 = vmatprep.subr.mxu1 %v43529_v29  ;;  %v23399_v25 = vsub.f32 %v42067_v4, %v42074_v58 }
0x1352   :  { %36743 = vmatpush3.msra.mxu1 %v38443_v24 }
0x1353   :  { %36744 = vmatprep.subr.mxu1 %v43529_v29  ;;  %v42082_v44 = vand.u32 4294901760, %v23399_v25 }
0x1354   :  { %36745 = vmatpush3.msra.mxu1 %v38453_v35 }
0x1355   :  { %36747 = vmatmul.mubr.f32.vlgmr.msra.gmra.mxu1 %v42074_v58  ;;  %36760 = vmatprep.subr.mxu1 %v43529_v29 }
0x1356   :  { %36714 = vmatmul.mubr.f32.vlgmr.msra.gmra.mxu0 %v42082_v44  ;;  %36761 = vmatpush3.msra.mxu1 %v38414_v53 }
0x1357   :  { %36728 = vmatpush3.msra.mxu0 %v38439_v21  ;;  %36762 = vmatprep.subr.mxu1 %v43529_v29 }
0x1358   :  { %36729 = vmatprep.subr.mxu0 %v43529_v29  ;;  %36763 = vmatpush3.msra.mxu1 %v38431_v61 }
0x1359   :  { %36730 = vmatpush3.msra.mxu0 %v38456_v48  ;;  %36764 = vmatprep.subr.mxu1 %v43529_v29 }
0x135a   :  { %36731 = vmatprep.subr.mxu0 %v43529_v29  ;;  %36765 = vmatpush3.msra.mxu1 %v38443_v24 }
0x135b   :  { %36732 = vmatpush3.msra.mxu0 %v38466_v51  ;;  %36766 = vmatprep.subr.mxu1 %v43529_v29 }
0x135c   :  { %36733 = vmatprep.subr.mxu0 %v43529_v29  ;;  %36735 = vmatprep.mubr.msk.f32.mxu0 %vm37987_vm1, %v43529_v29 }
0x135d   :  { %36734 = vmatpush3.msra.mxu0 %v38480_v23  ;;  %36767 = vmatpush3.msra.mxu1 %v38453_v35 }
0x135e   :  { %36768 = vmatprep.mubr.msk.f32.mxu1 %vm37987_vm1, %v43529_v29  ;;  %36736 = vmatmul.mubr.f32.vlgmr.msra.gmra.mxu0 %v42067_v4 }
0x135f   :  { %36749 = vmatprep.subr.mxu0 %v43529_v29  ;;  %36769 = vmatmul.mubr.f32.vlgmr.msra.gmra.mxu1 %v42063_v52 }
0x1360   :  { %36782 = vmatprep.subr.mxu1 %v43529_v29  ;;  %36750 = vmatpush3.msra.mxu0 %v38461_v8 }
0x1361   :  { %36783 = vmatpush3.msra.mxu1 %v38632_v45  ;;  %36751 = vmatprep.subr.mxu0 %v43529_v29 }
0x1362   :  { %36784 = vmatprep.subr.mxu1 %v43529_v29  ;;  %36752 = vmatpush3.msra.mxu0 %v38477_v22 }
0x1363   :  { %36785 = vmatpush3.msra.mxu1 %v38643_v41  ;;  %36753 = vmatprep.subr.mxu0 %v43529_v29 }
0x1364   :  { %36786 = vmatprep.subr.mxu1 %v43529_v29  ;;  %36754 = vmatpush3.msra.mxu0 %v38489_v26 }
0x1365   :  { %36787 = vmatpush3.msra.mxu1 %v38652_v38  ;;  %36755 = vmatprep.subr.mxu0 %v43529_v29 }
0x1366   :  { %36788 = vmatprep.subr.mxu1 %v43529_v29  ;;  %36756 = vmatpush3.msra.mxu0 %v38500_v10 }
0x1367   :  { %36757 = vmatprep.mubr.msk.f32.mxu0 %vm37987_vm1, %v43529_v29  ;;  %36789 = vmatpush3.msra.mxu1 %v38658_v63 }
0x1368   :  { %36790 = vmatprep.mubr.msk.f32.mxu1 %vm37987_vm1, %v43529_v29  ;;  %36758 = vmatmul.mubr.f32.vlgmr.msra.gmra.mxu0 %v42063_v52 }
0x1369   :  { %36771 = vmatprep.subr.mxu0 %v43529_v29  ;;  %36791 = vmatmul.mubr.f32.vlgmr.msra.gmra.mxu1 %v42063_v52 }
0x136a   :  { %36804 = vmatprep.subr.mxu1 %v43529_v29  ;;  %36772 = vmatpush3.msra.mxu0 %v38553_v46 }
0x136b   :  { %36805 = vmatpush3.msra.mxu1 %v38553_v46  ;;  %36773 = vmatprep.subr.mxu0 %v43529_v29 }
0x136c   :  { %36806 = vmatprep.subr.mxu1 %v43529_v29  ;;  %36774 = vmatpush3.msra.mxu0 %v38567_v37 }
0x136d   :  { %36807 = vmatpush3.msra.mxu1 %v38567_v37  ;;  %36775 = vmatprep.subr.mxu0 %v43529_v29 }
0x136e   :  { %36808 = vmatprep.subr.mxu1 %v43529_v29  ;;  %36776 = vmatpush3.msra.mxu0 %v38579_v60 }
0x136f   :  { %36809 = vmatpush3.msra.mxu1 %v38579_v60  ;;  %36777 = vmatprep.subr.mxu0 %v43529_v29 }
0x1370   :  { %36810 = vmatprep.subr.mxu1 %v43529_v29  ;;  %36778 = vmatpush3.msra.mxu0 %v38586_v28 }
0x1371   :  { %36779 = vmatprep.mubr.msk.f32.mxu0 %vm37987_vm1, %v43529_v29  ;;  %36811 = vmatpush3.msra.mxu1 %v38586_v28 }
0x1372   :  { %36812 = vmatprep.mubr.msk.f32.mxu1 %vm37987_vm1, %v43529_v29  ;;  %36780 = vmatmul.mubr.f32.vlgmr.msra.gmra.mxu0 %v42082_v44 }
0x1373   :  { %36793 = vmatprep.subr.mxu0 %v43529_v29  ;;  %36813 = vmatmul.mubr.f32.vlgmr.msra.gmra.mxu1 %v42074_v58 }
0x1374   :  { %36826 = vmatprep.subr.mxu1 %v43529_v29  ;;  %36794 = vmatpush3.msra.mxu0 %v43733_v13 }
0x1375   :  { %36827 = vmatpush3.msra.mxu1 %v38553_v46  ;;  %36795 = vmatprep.subr.mxu0 %v43529_v29 }
0x1376   :  { %36828 = vmatprep.subr.mxu1 %v43529_v29  ;;  %36796 = vmatpush3.msra.mxu0 %v43734_v40 }
0x1377   :  { %36829 = vmatpush3.msra.mxu1 %v38567_v37  ;;  %36797 = vmatprep.subr.mxu0 %v43529_v29 }
0x1378   :  { %36830 = vmatprep.subr.mxu1 %v43529_v29  ;;  %36798 = vmatpush3.msra.mxu0 %v43735_v11 }
0x1379   :  { %36831 = vmatpush3.msra.mxu1 %v38579_v60  ;;  %36799 = vmatprep.subr.mxu0 %v43529_v29 }
0x137a   :  { %36832 = vmatprep.subr.mxu1 %v43529_v29  ;;  %36800 = vmatpush3.msra.mxu0 %v43736_v0 }
0x137b   :  { %36801 = vmatprep.mubr.msk.f32.mxu0 %vm37987_vm1, %v43529_v29  ;;  %36833 = vmatpush3.msra.mxu1 %v38586_v28 }
0x137c   :  { %36834 = vmatprep.mubr.msk.f32.mxu1 %vm37987_vm1, %v43529_v29  ;;  %36802 = vmatmul.mubr.f32.vlgmr.msra.gmra.mxu0 %v42067_v4 }
0x137d   :  { %36815 = vmatprep.subr.mxu0 %v43529_v29  ;;  %36835 = vmatmul.mubr.f32.vlgmr.msra.gmra.mxu1 %v42063_v52 }
0x137e   :  { %36848 = vmatprep.subr.mxu1 %v43529_v29  ;;  %36816 = vmatpush3.msra.mxu0 %v43737_v16 }
0x137f   :  { %36849 = vmatpush3.msra.mxu1 %v43742_v2  ;;  %36817 = vmatprep.subr.mxu0 %v43529_v29 }
0x1380   :  { %36850 = vmatprep.subr.mxu1 %v43529_v29  ;;  %36818 = vmatpush3.msra.mxu0 %v43738_v17 }
0x1381   :  { %36851 = vmatpush3.msra.mxu1 %v43744_v57  ;;  %36819 = vmatprep.subr.mxu0 %v43529_v29 }
0x1382   :  { %36852 = vmatprep.subr.mxu1 %v43529_v29  ;;  %36820 = vmatpush3.msra.mxu0 %v43739_v34 }
0x1383   :  { %36853 = vmatpush3.msra.mxu1 %v43746_v15  ;;  %36821 = vmatprep.subr.mxu0 %v43529_v29 }
0x1384   :  { %36854 = vmatprep.subr.mxu1 %v43529_v29  ;;  %36822 = vmatpush3.msra.mxu0 %v43740_v47 }
0x1385   :  { %36823 = vmatprep.mubr.msk.f32.mxu0 %vm37987_vm1, %v43529_v29  ;;  %36855 = vmatpush3.msra.mxu1 %v43748_v42 }
0x1386   :  { %36856 = vmatprep.mubr.msk.f32.mxu1 %vm37987_vm1, %v43529_v29  ;;  %36824 = vmatmul.mubr.f32.vlgmr.msra.gmra.mxu0 %v42063_v52 }
0x1387   :  { %36837 = vmatprep.subr.mxu0 %v43529_v29  ;;  %36857 = vmatmul.mubr.f32.vlgmr.msra.gmra.mxu1 %v42063_v52 }
0x1388   :  { %36870 = vmatprep.subr.mxu1 %v43529_v29  ;;  %36838 = vmatpush3.msra.mxu0 %v43802_v5 }
0x1389   :  { %36871 = vmatpush3.msra.mxu1 %v43802_v5  ;;  %36839 = vmatprep.subr.mxu0 %v43529_v29 }
0x138a   :  { %36872 = vmatprep.subr.mxu1 %v43529_v29  ;;  %36840 = vmatpush3.msra.mxu0 %v43803_v43 }
0x138b   :  { %36873 = vmatpush3.msra.mxu1 %v43803_v43  ;;  %36841 = vmatprep.subr.mxu0 %v43529_v29 }
0x138c   :  { %36874 = vmatprep.subr.mxu1 %v43529_v29  ;;  %36842 = vmatpush3.msra.mxu0 %v43804_v31 }
0x138d   :  { %36875 = vmatpush3.msra.mxu1 %v43804_v31  ;;  %36843 = vmatprep.subr.mxu0 %v43529_v29 }
0x138e   :  { %36876 = vmatprep.subr.mxu1 %v43529_v29  ;;  %36844 = vmatpush3.msra.mxu0 %v43805_v27 }
0x138f   :  { %36845 = vmatprep.mubr.msk.f32.mxu0 %vm37987_vm1, %v43529_v29  ;;  %36877 = vmatpush3.msra.mxu1 %v43805_v27 }
0x1390   :  { %36878 = vmatprep.mubr.msk.f32.mxu1 %vm37987_vm1, %v43529_v29  ;;  %36846 = vmatmul.mubr.f32.vlgmr.msra.gmra.mxu0 %v42082_v44 }
0x1391   :  { %36859 = vmatprep.subr.mxu0 %v43529_v29  ;;  %36879 = vmatmul.mubr.f32.vlgmr.msra.gmra.mxu1 %v42074_v58 }
0x1392   :  { %36892 = vmatprep.subr.mxu1 %v43529_v29  ;;  %36860 = vmatpush3.msra.mxu0 %v43806_v19 }
0x1393   :  { %36893 = vmatpush3.msra.mxu1 %v43802_v5  ;;  %36861 = vmatprep.subr.mxu0 %v43529_v29 }
0x1394   :  { %36894 = vmatprep.subr.mxu1 %v43529_v29  ;;  %36862 = vmatpush3.msra.mxu0 %v43807_v56 }
0x1395   :  { %36895 = vmatpush3.msra.mxu1 %v43803_v43  ;;  %36863 = vmatprep.subr.mxu0 %v43529_v29 }
0x1396   :  { %36896 = vmatprep.subr.mxu1 %v43529_v29  ;;  %36864 = vmatpush3.msra.mxu0 %v43808_v3 }
0x1397   :  { %36897 = vmatpush3.msra.mxu1 %v43804_v31  ;;  %36865 = vmatprep.subr.mxu0 %v43529_v29 }
0x1398   :  { %36898 = vmatprep.subr.mxu1 %v43529_v29  ;;  %36866 = vmatpush3.msra.mxu0 %v43809_v7 }
0x1399   :  { %36867 = vmatprep.mubr.msk.f32.mxu0 %vm37987_vm1, %v43529_v29  ;;  %36899 = vmatpush3.msra.mxu1 %v43805_v27 }
0x139a   :  { %36900 = vmatprep.mubr.msk.f32.mxu1 %vm37987_vm1, %v43529_v29  ;;  %36868 = vmatmul.mubr.f32.vlgmr.msra.gmra.mxu0 %v42067_v4 }
0x139b   :  { %36881 = vmatprep.subr.mxu0 %v43529_v29  ;;  %36901 = vmatmul.mubr.f32.vlgmr.msra.gmra.mxu1 %v42063_v52 }
0x139c   :  { %36882 = vmatpush3.msra.mxu0 %v43810_v30  ;;  %36889 = vmatprep.mubr.msk.f32.mxu0 %vm37987_vm1, %v43529_v29 }
0x139d   :  { %36883 = vmatprep.subr.mxu0 %v43529_v29  ;;  %36914 = vmatprep.subr.mxu1 %v43529_v29 }
0x139e   :  { %36884 = vmatpush3.msra.mxu0 %v43811_v20  ;;  %36915 = vmatpush3.msra.mxu1 %v43812_v36 }
0x139f   :  { %36885 = vmatprep.subr.mxu0 %v43529_v29  ;;  %36916 = vmatprep.subr.mxu1 %v43529_v29 }
0x13a0   :  { %36886 = vmatpush3.msra.mxu0 %v43813_v54  ;;  %36917 = vmatpush3.msra.mxu1 %v43814_v62 }
0x13a1   :  { %36887 = vmatprep.subr.mxu0 %v43529_v29  ;;  %36918 = vmatprep.subr.mxu1 %v43529_v29 }
0x13a2   :  { %36888 = vmatpush3.msra.mxu0 %v43815_v55  ;;  %36919 = vmatpush3.msra.mxu1 %v43816_v59 }
0x13a3   :  { %36890 = vmatmul.mubr.f32.vlgmr.msra.gmra.mxu0 %v42063_v52  ;;  %36920 = vmatprep.subr.mxu1 %v43529_v29 }
0x13a4   :  { %36921 = vmatpush3.msra.mxu1 %v43817_v33  ;;  %36903 = vmatprep.subr.mxu0 %v43529_v29 }
0x13a5   :  { %36922 = vmatprep.mubr.msk.f32.mxu1 %vm37987_vm1, %v43529_v29  ;;  %36936 = vmatprep.subr.mxu1 %v43529_v29 }
0x13a6   :  { %36904 = vmatpush3.msra.mxu0 %v38414_v53  ;;  %36911 = vmatprep.mubr.msk.f32.mxu0 %vm37987_vm1, %v43529_v29 }
0x13a7   :  { %36905 = vmatprep.subr.mxu0 %v43529_v29 }
0x13a8   :  { %36906 = vmatpush3.msra.mxu0 %v38431_v61 }
0x13a9   :  { %36907 = vmatprep.subr.mxu0 %v43529_v29 }
0x13aa   :  { %36908 = vmatpush3.msra.mxu0 %v38443_v24 }
0x13ab   :  { %36909 = vmatprep.subr.mxu0 %v43529_v29 }
0x13ac   :  { %36910 = vmatpush3.msra.mxu0 %v38453_v35 }
0x13ad   :  { %36925 = vmatprep.subr.mxu0 %v43529_v29 }
0x140d   :  { %v23493_v18 = vpop.f32.mrf.mxu1 }
0x140f   :  { %v36726_v1 = vpop.f32.mrf.mxu1 }
0x1415   :  { %v23650_v49 = vpop.f32.mrf.mxu1 }
0x1416   :  { %v23402_v6 = vpop.f32.mrf.mxu0 }
0x1417   :  { %v36748_v12 = vpop.f32.mrf.mxu1  ;;  %v23494_v62 = vadd.f32 %v23493_v18, %v23402_v6 }
0x1418   :  { %v36715_v50 = vpop.f32.mrf.mxu0 }
0x141e   :  { %v23573_v52 = vpop.f32.mrf.mxu0 }
0x141f   :  { %v23808_v4 = vpop.f32.mrf.mxu1  ;;  %v23574_v54 = vadd.f32 %v23573_v52, %v23494_v62 }
0x1420   :  { %v36737_v58 = vpop.f32.mrf.mxu0 }
0x1421   :  { %v36770_v25 = vpop.f32.mrf.mxu1  ;;  %v23651_v36 = vadd.f32 %v23650_v49, %v23574_v54 }
0x1428   :  { %v23733_v44 = vpop.f32.mrf.mxu0 }
0x1429   :  { %v23978_v33 = vpop.f32.mrf.mxu1  ;;  %v23734_v7 = vadd.f32 %v23733_v44, %v23651_v36 }
0x142a   :  { %v36759_v59 = vpop.f32.mrf.mxu0 }
0x142b   :  { %v36792_v55 = vpop.f32.mrf.mxu1  ;;  %v23809_v56 = vadd.f32 %v23808_v4, %v23734_v7 }
0x142d   :  { %v24783_v19 = vrot.slane %v23809_v56, 4 }
0x142f   :  { %v24785_v25 = vadd.f32 %v24783_v19, %v41367_v32 }
0x1431   :  { %v31770_v59 = vmul.f32 -1.442695, %v24785_v25 }
0x1432   :  { %v23887_v20 = vpop.f32.mrf.mxu0 }
0x1433   :  { %v24135_v30 = vpop.f32.mrf.mxu1  ;;  %v23979_v31 = vadd.f32 %v23978_v33, %v23887_v20  ;;  %37908 = vpow2.f32 %v31770_v59 }
0x1434   :  { %v36781_v3 = vpop.f32.mrf.mxu0 }
0x1435   :  { %v36814_v1 = vpop.f32.mrf.mxu1 }
0x143c   :  { %v24058_v12 = vpop.f32.mrf.mxu0 }
0x143d   :  { %v24293_v50 = vpop.f32.mrf.mxu1  ;;  %v24059_v43 = vadd.f32 %v24058_v12, %v23979_v31 }
0x143e   :  { %v36803_v27 = vpop.f32.mrf.mxu0 }
0x143f   :  { %v36836_v58 = vpop.f32.mrf.mxu1  ;;  %v24136_v55 = vadd.f32 %v24135_v30, %v24059_v43  ;;  %v42278_v43 = vld [vmem:[%s43220_s6] sm:$0x1] }
0x1440   :  { %v37909_v4 = vpop.eup %37908 }
0x1441   :  { %v24789_v31 = vadd.f32 1.0, %v37909_v4 }
0x1446   :  { %v24218_v18 = vpop.f32.mrf.mxu0 }
0x1447   :  { %v24219_v62 = vadd.f32 %v24218_v18, %v24136_v55  ;;  %v24463_v54 = vpop.f32.mrf.mxu1 }
0x1448   :  { %v36825_v49 = vpop.f32.mrf.mxu0 }
0x1449   :  { %v24294_v36 = vadd.f32 %v24293_v50, %v24219_v62  ;;  %v36858_v3 = vpop.f32.mrf.mxu1 }
0x144b   :  { %v24793_v6 = vrot.slane %v24294_v36, 4 }
0x144d   :  { %v24795_v56 = vadd.f32 %v24793_v6, %v41372_v39 }
0x144f   :  { %v31771_v27 = vmul.f32 -1.442695, %v24795_v56 }
0x1450   :  { %v24372_v7 = vpop.f32.mrf.mxu0 }
0x1451   :  { %v24620_v52 = vpop.f32.mrf.mxu1  ;;  %37910 = vpow2.f32 %v31771_v27  ;;  %v24373_v19 = vadd.f32 %v42278_v43, %v24372_v7 }
0x1452   :  { %v36847_v20 = vpop.f32.mrf.mxu0  ;;  %37912 = vrcp.f32 %v24789_v31 }
0x1453   :  { %v36880_v33 = vpop.f32.mrf.mxu1  ;;  %v24464_v1 = vadd.f32 %v24463_v54, %v24373_v19  ;;  %v24810_v54 = vrot.slane %v42057_v9, 7 }
0x145a   :  { %v24543_v30 = vpop.f32.mrf.mxu0 }
0x145b   :  { %v24778_v44 = vpop.f32.mrf.mxu1  ;;  %v24544_v58 = vadd.f32 %v24543_v30, %v24464_v1 }
0x145c   :  { %v36869_v12 = vpop.f32.mrf.mxu0 }
0x145d   :  { %v36902_v50 = vpop.f32.mrf.mxu1  ;;  %v24621_v25 = vadd.f32 %v24620_v52, %v24544_v58  ;;  %v43818_v58 = vld [vmem:[#allocation67_spill] sm:$0xff] }
0x145e   :  { %v37911_v59 = vpop.eup %37910 }
0x145f   :  { %v24799_v49 = vadd.f32 1.0, %v37911_v59  ;;  %v37913_v6 = vpop.eup %37912  ;;  %v43820_v59 = vld [vmem:[#allocation70_spill] sm:$0xff] }
0x1461   :  { %37914 = vrcp.f32 %v24799_v49  ;;  %v43824_v49 = vld [vmem:[#allocation75_spill] sm:$0xff] }
0x1463   :  { %v24703_v55 = vpop.f32.mrf.mxu0 }
0x1464   :  { %v24704_v18 = vadd.f32 %v24703_v55, %v24621_v25  ;;  %v43819_v25 = vld [vmem:[#allocation69_spill] sm:$0xff]  ;;  %v43821_v55 = vld [vmem:[#allocation68_spill] sm:$0xff] }
0x1465   :  { %v36891_v62 = vpop.f32.mrf.mxu0 }
0x1466   :  { %v24779_v36 = vadd.f32 %v24778_v44, %v24704_v18  ;;  %v43822_v18 = vld [vmem:[#allocation71_spill] sm:$0xff]  ;;  %v43823_v62 = vld [vmem:[#allocation73_spill] sm:$0xff] }
0x1468   :  { %v24803_v3 = vrot.slane %v24779_v36, 4  ;;  %v43825_v36 = vld [vmem:[#allocation72_spill] sm:$0xff] }
0x146a   :  { %v24805_v56 = vmul.f32 %v37913_v6, %v24803_v3  ;;  %v43826_v3 = vld [vmem:[#allocation74_spill] sm:$0xff] }
0x146b   :  { %v43827_v6 = vld [vmem:[#allocation54_spill] sm:$0xff] }
0x146c   :  { %v24806_v7 = vadd.f32 %v24805_v56, %v41377_v14  ;;  %v43828_v56 = vld [vmem:[#allocation76_spill] sm:$0xff] }
0x146e   :  { %37916 = vtanh.f32 %v24806_v7  ;;  %v37915_v27 = vpop.eup %37914  ;;  %v43829_v7 = vld [vmem:[#allocation55_spill] sm:$0xff] }
0x146f   :  { %v24808_v20 = vsub.f32 1.0, %v37915_v27  ;;  %v24812_v4 = vmul.f32 %v37915_v27, %v24810_v54  ;;  %v43830_v27 = vld [vmem:[#allocation77_spill] sm:$0xff]  ;;  %v43831_v54 = vld [vmem:[#allocation56_spill] sm:$0xff] }
0x147b   :  { %v37917_v33 = vpop.eup %37916 }
0x147c   :  { %v24809_v52 = vmul.f32 %v37917_v33, %v24808_v20  ;;  %v43832_v20 = vld [vmem:[#allocation57_spill] sm:$0xff] }
0x147e   :  { %v42283_v31 = vadd.f32 %v24812_v4, %v24809_v52 }
0x1480   :  { %24814 = vst.msk [vmem:[#allocation2] sm:$0x10] %vm9013_vm6, %v42283_v31  ;;  %v24816_v19 = vrot.slane %v42283_v31, 4 }
0x1482   :  { %v24817_v30 = vsel %vm91_vm0, %v24816_v19, 0 }
0x1483   :  { %v42289_v44 = vand.u32 4294901760, %v24817_v30 }
0x1485   :  { %36923 = vmatmul.mubr.f32.vlgmr.msra.gmra.mxu1 %v42289_v44  ;;  %v42293_v1 = vsub.f32 %v24817_v30, %v42289_v44 }
0x1486   :  { %36937 = vmatpush3.msra.mxu1 %v38414_v53  ;;  %36944 = vmatprep.mubr.msk.f32.mxu1 %vm37987_vm1, %v43529_v29 }
0x1487   :  { %36938 = vmatprep.subr.mxu1 %v43529_v29  ;;  %v42300_v9 = vand.u32 4294901760, %v42293_v1 }
0x1488   :  { %36939 = vmatpush3.msra.mxu1 %v38431_v61 }
0x1489   :  { %36940 = vmatprep.subr.mxu1 %v43529_v29  ;;  %v24891_v12 = vsub.f32 %v42293_v1, %v42300_v9 }
0x148a   :  { %36941 = vmatpush3.msra.mxu1 %v38443_v24 }
0x148b   :  { %36942 = vmatprep.subr.mxu1 %v43529_v29  ;;  %v42308_v50 = vand.u32 4294901760, %v24891_v12 }
0x148c   :  { %36943 = vmatpush3.msra.mxu1 %v38453_v35 }
0x148d   :  { %36945 = vmatmul.mubr.f32.vlgmr.msra.gmra.mxu1 %v42300_v9  ;;  %36958 = vmatprep.subr.mxu1 %v43529_v29 }
0x148e   :  { %36912 = vmatmul.mubr.f32.vlgmr.msra.gmra.mxu0 %v42308_v50  ;;  %36959 = vmatpush3.msra.mxu1 %v38414_v53 }
0x148f   :  { %36926 = vmatpush3.msra.mxu0 %v38439_v21  ;;  %36960 = vmatprep.subr.mxu1 %v43529_v29 }
0x1490   :  { %36927 = vmatprep.subr.mxu0 %v43529_v29  ;;  %36961 = vmatpush3.msra.mxu1 %v38431_v61 }
0x1491   :  { %36928 = vmatpush3.msra.mxu0 %v38456_v48  ;;  %36962 = vmatprep.subr.mxu1 %v43529_v29 }
0x1492   :  { %36929 = vmatprep.subr.mxu0 %v43529_v29  ;;  %36963 = vmatpush3.msra.mxu1 %v38443_v24 }
0x1493   :  { %36930 = vmatpush3.msra.mxu0 %v38466_v51  ;;  %36964 = vmatprep.subr.mxu1 %v43529_v29 }
0x1494   :  { %36931 = vmatprep.subr.mxu0 %v43529_v29  ;;  %36933 = vmatprep.mubr.msk.f32.mxu0 %vm37987_vm1, %v43529_v29 }
0x1495   :  { %36932 = vmatpush3.msra.mxu0 %v38480_v23  ;;  %36965 = vmatpush3.msra.mxu1 %v38453_v35 }
0x1496   :  { %36966 = vmatprep.mubr.msk.f32.mxu1 %vm37987_vm1, %v43529_v29  ;;  %36934 = vmatmul.mubr.f32.vlgmr.msra.gmra.mxu0 %v42293_v1 }
0x1497   :  { %36947 = vmatprep.subr.mxu0 %v43529_v29  ;;  %36967 = vmatmul.mubr.f32.vlgmr.msra.gmra.mxu1 %v42289_v44 }
0x1498   :  { %36980 = vmatprep.subr.mxu1 %v43529_v29  ;;  %36948 = vmatpush3.msra.mxu0 %v38461_v8 }
0x1499   :  { %36981 = vmatpush3.msra.mxu1 %v38632_v45  ;;  %36949 = vmatprep.subr.mxu0 %v43529_v29 }
0x149a   :  { %36982 = vmatprep.subr.mxu1 %v43529_v29  ;;  %36950 = vmatpush3.msra.mxu0 %v38477_v22 }
0x149b   :  { %36983 = vmatpush3.msra.mxu1 %v38643_v41  ;;  %36951 = vmatprep.subr.mxu0 %v43529_v29 }
0x149c   :  { %36984 = vmatprep.subr.mxu1 %v43529_v29  ;;  %36952 = vmatpush3.msra.mxu0 %v38489_v26 }
0x149d   :  { %36985 = vmatpush3.msra.mxu1 %v38652_v38  ;;  %36953 = vmatprep.subr.mxu0 %v43529_v29 }
0x149e   :  { %36986 = vmatprep.subr.mxu1 %v43529_v29  ;;  %36954 = vmatpush3.msra.mxu0 %v38500_v10 }
0x149f   :  { %36955 = vmatprep.mubr.msk.f32.mxu0 %vm37987_vm1, %v43529_v29  ;;  %36987 = vmatpush3.msra.mxu1 %v38658_v63 }
0x14a0   :  { %36988 = vmatprep.mubr.msk.f32.mxu1 %vm37987_vm1, %v43529_v29  ;;  %36956 = vmatmul.mubr.f32.vlgmr.msra.gmra.mxu0 %v42289_v44 }
0x14a1   :  { %36969 = vmatprep.subr.mxu0 %v43529_v29  ;;  %36989 = vmatmul.mubr.f32.vlgmr.msra.gmra.mxu1 %v42289_v44 }
0x14a2   :  { %37002 = vmatprep.subr.mxu1 %v43529_v29  ;;  %36970 = vmatpush3.msra.mxu0 %v38553_v46 }
0x14a3   :  { %37003 = vmatpush3.msra.mxu1 %v38553_v46  ;;  %36971 = vmatprep.subr.mxu0 %v43529_v29 }
0x14a4   :  { %37004 = vmatprep.subr.mxu1 %v43529_v29  ;;  %36972 = vmatpush3.msra.mxu0 %v38567_v37 }
0x14a5   :  { %37005 = vmatpush3.msra.mxu1 %v38567_v37  ;;  %36973 = vmatprep.subr.mxu0 %v43529_v29 }
0x14a6   :  { %37006 = vmatprep.subr.mxu1 %v43529_v29  ;;  %36974 = vmatpush3.msra.mxu0 %v38579_v60 }
0x14a7   :  { %37007 = vmatpush3.msra.mxu1 %v38579_v60  ;;  %36975 = vmatprep.subr.mxu0 %v43529_v29 }
0x14a8   :  { %37008 = vmatprep.subr.mxu1 %v43529_v29  ;;  %36976 = vmatpush3.msra.mxu0 %v38586_v28 }
0x14a9   :  { %36977 = vmatprep.mubr.msk.f32.mxu0 %vm37987_vm1, %v43529_v29  ;;  %37009 = vmatpush3.msra.mxu1 %v38586_v28 }
0x14aa   :  { %37010 = vmatprep.mubr.msk.f32.mxu1 %vm37987_vm1, %v43529_v29  ;;  %36978 = vmatmul.mubr.f32.vlgmr.msra.gmra.mxu0 %v42308_v50 }
0x14ab   :  { %36991 = vmatprep.subr.mxu0 %v43529_v29  ;;  %37011 = vmatmul.mubr.f32.vlgmr.msra.gmra.mxu1 %v42300_v9 }
0x14ac   :  { %37024 = vmatprep.subr.mxu1 %v43529_v29  ;;  %36992 = vmatpush3.msra.mxu0 %v43733_v13 }
0x14ad   :  { %37025 = vmatpush3.msra.mxu1 %v38553_v46  ;;  %36993 = vmatprep.subr.mxu0 %v43529_v29 }
0x14ae   :  { %37026 = vmatprep.subr.mxu1 %v43529_v29  ;;  %36994 = vmatpush3.msra.mxu0 %v43734_v40 }
0x14af   :  { %37027 = vmatpush3.msra.mxu1 %v38567_v37  ;;  %36995 = vmatprep.subr.mxu0 %v43529_v29 }
0x14b0   :  { %37028 = vmatprep.subr.mxu1 %v43529_v29  ;;  %36996 = vmatpush3.msra.mxu0 %v43735_v11 }
0x14b1   :  { %37029 = vmatpush3.msra.mxu1 %v38579_v60  ;;  %36997 = vmatprep.subr.mxu0 %v43529_v29 }
0x14b2   :  { %37030 = vmatprep.subr.mxu1 %v43529_v29  ;;  %36998 = vmatpush3.msra.mxu0 %v43736_v0 }
0x14b3   :  { %36999 = vmatprep.mubr.msk.f32.mxu0 %vm37987_vm1, %v43529_v29  ;;  %37031 = vmatpush3.msra.mxu1 %v38586_v28 }
0x14b4   :  { %37032 = vmatprep.mubr.msk.f32.mxu1 %vm37987_vm1, %v43529_v29  ;;  %37000 = vmatmul.mubr.f32.vlgmr.msra.gmra.mxu0 %v42293_v1 }
0x14b5   :  { %37013 = vmatprep.subr.mxu0 %v43529_v29  ;;  %37033 = vmatmul.mubr.f32.vlgmr.msra.gmra.mxu1 %v42289_v44 }
0x14b6   :  { %37046 = vmatprep.subr.mxu1 %v43529_v29  ;;  %37014 = vmatpush3.msra.mxu0 %v43737_v16 }
0x14b7   :  { %37047 = vmatpush3.msra.mxu1 %v43742_v2  ;;  %37015 = vmatprep.subr.mxu0 %v43529_v29 }
0x14b8   :  { %37048 = vmatprep.subr.mxu1 %v43529_v29  ;;  %37016 = vmatpush3.msra.mxu0 %v43738_v17 }
0x14b9   :  { %37049 = vmatpush3.msra.mxu1 %v43744_v57  ;;  %37017 = vmatprep.subr.mxu0 %v43529_v29 }
0x14ba   :  { %37050 = vmatprep.subr.mxu1 %v43529_v29  ;;  %37018 = vmatpush3.msra.mxu0 %v43739_v34 }
0x14bb   :  { %37051 = vmatpush3.msra.mxu1 %v43746_v15  ;;  %37019 = vmatprep.subr.mxu0 %v43529_v29 }
0x14bc   :  { %37052 = vmatprep.subr.mxu1 %v43529_v29  ;;  %37020 = vmatpush3.msra.mxu0 %v43740_v47 }
0x14bd   :  { %37021 = vmatprep.mubr.msk.f32.mxu0 %vm37987_vm1, %v43529_v29  ;;  %37053 = vmatpush3.msra.mxu1 %v43748_v42 }
0x14be   :  { %37054 = vmatprep.mubr.msk.f32.mxu1 %vm37987_vm1, %v43529_v29  ;;  %37022 = vmatmul.mubr.f32.vlgmr.msra.gmra.mxu0 %v42289_v44 }
0x14bf   :  { %37035 = vmatprep.subr.mxu0 %v43529_v29  ;;  %37055 = vmatmul.mubr.f32.vlgmr.msra.gmra.mxu1 %v42289_v44 }
0x14c0   :  { %37068 = vmatprep.subr.mxu1 %v43529_v29  ;;  %37036 = vmatpush3.msra.mxu0 %v43802_v5 }
0x14c1   :  { %37069 = vmatpush3.msra.mxu1 %v43802_v5  ;;  %37037 = vmatprep.subr.mxu0 %v43529_v29 }
0x14c2   :  { %37070 = vmatprep.subr.mxu1 %v43529_v29  ;;  %37038 = vmatpush3.msra.mxu0 %v43818_v58 }
0x14c3   :  { %37071 = vmatpush3.msra.mxu1 %v43818_v58  ;;  %37039 = vmatprep.subr.mxu0 %v43529_v29 }
0x14c4   :  { %37072 = vmatprep.subr.mxu1 %v43529_v29  ;;  %37040 = vmatpush3.msra.mxu0 %v43819_v25 }
0x14c5   :  { %37073 = vmatpush3.msra.mxu1 %v43819_v25  ;;  %37041 = vmatprep.subr.mxu0 %v43529_v29 }
0x14c6   :  { %37074 = vmatprep.subr.mxu1 %v43529_v29  ;;  %37042 = vmatpush3.msra.mxu0 %v43820_v59 }
0x14c7   :  { %37043 = vmatprep.mubr.msk.f32.mxu0 %vm37987_vm1, %v43529_v29  ;;  %37075 = vmatpush3.msra.mxu1 %v43820_v59 }
0x14c8   :  { %37076 = vmatprep.mubr.msk.f32.mxu1 %vm37987_vm1, %v43529_v29  ;;  %37044 = vmatmul.mubr.f32.vlgmr.msra.gmra.mxu0 %v42308_v50 }
0x14c9   :  { %37057 = vmatprep.subr.mxu0 %v43529_v29  ;;  %37077 = vmatmul.mubr.f32.vlgmr.msra.gmra.mxu1 %v42300_v9 }
0x14ca   :  { %37090 = vmatprep.subr.mxu1 %v43529_v29  ;;  %37058 = vmatpush3.msra.mxu0 %v43821_v55 }
0x14cb   :  { %37091 = vmatpush3.msra.mxu1 %v43802_v5  ;;  %37059 = vmatprep.subr.mxu0 %v43529_v29 }
0x14cc   :  { %37092 = vmatprep.subr.mxu1 %v43529_v29  ;;  %37060 = vmatpush3.msra.mxu0 %v43822_v18 }
0x14cd   :  { %37093 = vmatpush3.msra.mxu1 %v43818_v58  ;;  %37061 = vmatprep.subr.mxu0 %v43529_v29 }
0x14ce   :  { %37094 = vmatprep.subr.mxu1 %v43529_v29  ;;  %37062 = vmatpush3.msra.mxu0 %v43823_v62 }
0x14cf   :  { %37095 = vmatpush3.msra.mxu1 %v43819_v25  ;;  %37063 = vmatprep.subr.mxu0 %v43529_v29 }
0x14d0   :  { %37096 = vmatprep.subr.mxu1 %v43529_v29  ;;  %37064 = vmatpush3.msra.mxu0 %v43824_v49 }
0x14d1   :  { %37065 = vmatprep.mubr.msk.f32.mxu0 %vm37987_vm1, %v43529_v29  ;;  %37097 = vmatpush3.msra.mxu1 %v43820_v59 }
0x14d2   :  { %37098 = vmatprep.mubr.msk.f32.mxu1 %vm37987_vm1, %v43529_v29  ;;  %37066 = vmatmul.mubr.f32.vlgmr.msra.gmra.mxu0 %v42293_v1 }
0x14d3   :  { %37079 = vmatprep.subr.mxu0 %v43529_v29  ;;  %37099 = vmatmul.mubr.f32.vlgmr.msra.gmra.mxu1 %v42289_v44 }
0x14d4   :  { %37080 = vmatpush3.msra.mxu0 %v43825_v36  ;;  %37087 = vmatprep.mubr.msk.f32.mxu0 %vm37987_vm1, %v43529_v29 }
0x14d5   :  { %37081 = vmatprep.subr.mxu0 %v43529_v29  ;;  %37112 = vmatprep.subr.mxu1 %v43529_v29 }
0x14d6   :  { %37082 = vmatpush3.msra.mxu0 %v43826_v3  ;;  %37113 = vmatpush3.msra.mxu1 %v43827_v6 }
0x14d7   :  { %37083 = vmatprep.subr.mxu0 %v43529_v29  ;;  %37114 = vmatprep.subr.mxu1 %v43529_v29 }
0x14d8   :  { %37084 = vmatpush3.msra.mxu0 %v43828_v56  ;;  %37115 = vmatpush3.msra.mxu1 %v43829_v7 }
0x14d9   :  { %37085 = vmatprep.subr.mxu0 %v43529_v29  ;;  %37116 = vmatprep.subr.mxu1 %v43529_v29 }
0x14da   :  { %37086 = vmatpush3.msra.mxu0 %v43830_v27  ;;  %37117 = vmatpush3.msra.mxu1 %v43831_v54 }
0x14db   :  { %37088 = vmatmul.mubr.f32.vlgmr.msra.gmra.mxu0 %v42289_v44  ;;  %37118 = vmatprep.subr.mxu1 %v43529_v29 }
0x14dc   :  { %37119 = vmatpush3.msra.mxu1 %v43832_v20  ;;  %37101 = vmatprep.subr.mxu0 %v43529_v29 }
0x14dd   :  { %37120 = vmatprep.mubr.msk.f32.mxu1 %vm37987_vm1, %v43529_v29  ;;  %37134 = vmatprep.subr.mxu1 %v43529_v29 }
0x14de   :  { %37102 = vmatpush3.msra.mxu0 %v38414_v53  ;;  %37109 = vmatprep.mubr.msk.f32.mxu0 %vm37987_vm1, %v43529_v29 }
0x14df   :  { %37103 = vmatprep.subr.mxu0 %v43529_v29 }
0x14e0   :  { %37104 = vmatpush3.msra.mxu0 %v38431_v61 }
0x14e1   :  { %37105 = vmatprep.subr.mxu0 %v43529_v29 }
0x14e2   :  { %37106 = vmatpush3.msra.mxu0 %v38443_v24 }
0x14e3   :  { %37107 = vmatprep.subr.mxu0 %v43529_v29 }
0x14e4   :  { %37108 = vmatpush3.msra.mxu0 %v38453_v35 }
0x14e5   :  { %37123 = vmatprep.subr.mxu0 %v43529_v29 }
0x1545   :  { %v24985_v33 = vpop.f32.mrf.mxu1 }
0x1547   :  { %v36924_v4 = vpop.f32.mrf.mxu1 }
0x154d   :  { %v25142_v52 = vpop.f32.mrf.mxu1 }
0x154e   :  { %v24894_v19 = vpop.f32.mrf.mxu0 }
0x154f   :  { %v36946_v30 = vpop.f32.mrf.mxu1  ;;  %v24986_v56 = vadd.f32 %v24985_v33, %v24894_v19 }
0x1550   :  { %v36913_v44 = vpop.f32.mrf.mxu0 }
0x1556   :  { %v25065_v1 = vpop.f32.mrf.mxu0 }
0x1557   :  { %v25300_v9 = vpop.f32.mrf.mxu1  ;;  %v25066_v6 = vadd.f32 %v25065_v1, %v24986_v56 }
0x1558   :  { %v36935_v12 = vpop.f32.mrf.mxu0 }
0x1559   :  { %v36968_v50 = vpop.f32.mrf.mxu1  ;;  %v25143_v3 = vadd.f32 %v25142_v52, %v25066_v6 }
0x1560   :  { %v25225_v20 = vpop.f32.mrf.mxu0 }
0x1561   :  { %v25470_v54 = vpop.f32.mrf.mxu1  ;;  %v25226_v62 = vadd.f32 %v25225_v20, %v25143_v3 }
0x1562   :  { %v36957_v27 = vpop.f32.mrf.mxu0 }
0x1563   :  { %v36990_v7 = vpop.f32.mrf.mxu1  ;;  %v25301_v55 = vadd.f32 %v25300_v9, %v25226_v62 }
0x1565   :  { %v26275_v59 = vrot.slane %v25301_v55, 3 }
0x1567   :  { %v26277_v50 = vadd.f32 %v26275_v59, %v41367_v32 }
0x1569   :  { %v31772_v27 = vmul.f32 -1.442695, %v26277_v50 }
0x156a   :  { %v25379_v36 = vpop.f32.mrf.mxu0 }
0x156b   :  { %v25627_v49 = vpop.f32.mrf.mxu1  ;;  %v25471_v58 = vadd.f32 %v25470_v54, %v25379_v36  ;;  %37918 = vpow2.f32 %v31772_v27 }
0x156c   :  { %v36979_v18 = vpop.f32.mrf.mxu0 }
0x156d   :  { %v37012_v4 = vpop.f32.mrf.mxu1 }
0x1574   :  { %v25550_v30 = vpop.f32.mrf.mxu0 }
0x1575   :  { %v25785_v44 = vpop.f32.mrf.mxu1  ;;  %v25551_v5 = vadd.f32 %v25550_v30, %v25471_v58 }
0x1576   :  { %v37001_v25 = vpop.f32.mrf.mxu0 }
0x1577   :  { %v37034_v12 = vpop.f32.mrf.mxu1  ;;  %v25628_v7 = vadd.f32 %v25627_v49, %v25551_v5 }
0x1578   :  { %v37919_v1 = vpop.eup %37918 }
0x1579   :  { %v26281_v58 = vadd.f32 1.0, %v37919_v1 }
0x157e   :  { %v25710_v33 = vpop.f32.mrf.mxu0 }
0x157f   :  { %v25711_v56 = vadd.f32 %v25710_v33, %v25628_v7  ;;  %v25955_v6 = vpop.f32.mrf.mxu1 }
0x1580   :  { %v37023_v52 = vpop.f32.mrf.mxu0 }
0x1581   :  { %v25786_v3 = vadd.f32 %v25785_v44, %v25711_v56  ;;  %v37056_v18 = vpop.f32.mrf.mxu1 }
0x1583   :  { %v26285_v20 = vrot.slane %v25786_v3, 3 }
0x1585   :  { %v26287_v55 = vadd.f32 %v26285_v20, %v41372_v39 }
0x1587   :  { %v31773_v25 = vmul.f32 -1.442695, %v26287_v55 }
0x1588   :  { %v25864_v62 = vpop.f32.mrf.mxu0 }
0x1589   :  { %v26112_v19 = vpop.f32.mrf.mxu1  ;;  %37920 = vpow2.f32 %v31773_v25  ;;  %v25865_v5 = vadd.f32 %v42278_v43, %v25864_v62 }
0x158a   :  { %v37045_v36 = vpop.f32.mrf.mxu0  ;;  %37922 = vrcp.f32 %v26281_v58 }
0x158b   :  { %v37078_v54 = vpop.f32.mrf.mxu1  ;;  %v25956_v9 = vadd.f32 %v25955_v6, %v25865_v5  ;;  %v26302_v6 = vrot.slane %v42283_v31, 7 }
0x1592   :  { %v26035_v59 = vpop.f32.mrf.mxu0 }
0x1593   :  { %v26270_v49 = vpop.f32.mrf.mxu1  ;;  %v26036_v44 = vadd.f32 %v26035_v59, %v25956_v9 }
0x1594   :  { %v37067_v4 = vpop.f32.mrf.mxu0 }
0x1595   :  { %v37100_v30 = vpop.f32.mrf.mxu1  ;;  %v26113_v12 = vadd.f32 %v26112_v19, %v26036_v44  ;;  %v43833_v4 = vld [vmem:[#allocation66_spill] sm:$0xff]  ;;  %v43835_v44 = vld [vmem:[#allocation69_spill] sm:$0xff] }
0x1596   :  { %v37921_v50 = vpop.eup %37920  ;;  %v43834_v30 = vld [vmem:[#allocation67_spill] sm:$0xff] }
0x1597   :  { %v26291_v56 = vadd.f32 1.0, %v37921_v50  ;;  %v37923_v18 = vpop.eup %37922  ;;  %v43837_v50 = vld [vmem:[#allocation68_spill] sm:$0xff] }
0x1599   :  { %37924 = vrcp.f32 %v26291_v56  ;;  %v43841_v56 = vld [vmem:[#allocation72_spill] sm:$0xff] }
0x159b   :  { %v26195_v27 = vpop.f32.mrf.mxu0 }
0x159c   :  { %v26196_v7 = vadd.f32 %v26195_v27, %v26113_v12  ;;  %v43836_v12 = vld [vmem:[#allocation70_spill] sm:$0xff]  ;;  %v43838_v27 = vld [vmem:[#allocation71_spill] sm:$0xff] }
0x159d   :  { %v37089_v33 = vpop.f32.mrf.mxu0 }
0x159e   :  { %v26271_v52 = vadd.f32 %v26270_v49, %v26196_v7  ;;  %v43839_v7 = vld [vmem:[#allocation73_spill] sm:$0xff]  ;;  %v43840_v33 = vld [vmem:[#allocation75_spill] sm:$0xff] }
0x15a0   :  { %v26295_v3 = vrot.slane %v26271_v52, 3  ;;  %v43842_v52 = vld [vmem:[#allocation74_spill] sm:$0xff] }
0x15a2   :  { %v26297_v20 = vmul.f32 %v37923_v18, %v26295_v3  ;;  %v43843_v3 = vld [vmem:[#allocation54_spill] sm:$0xff]  ;;  %v43844_v18 = vld [vmem:[#allocation76_spill] sm:$0xff] }
0x15a4   :  { %v26298_v43 = vadd.f32 %v26297_v20, %v41377_v14  ;;  %v43845_v20 = vld [vmem:[#allocation55_spill] sm:$0xff] }
0x15a6   :  { %37926 = vtanh.f32 %v26298_v43  ;;  %v37925_v55 = vpop.eup %37924  ;;  %v43846_v43 = vld [vmem:[#allocation77_spill] sm:$0xff] }
0x15a7   :  { %v26300_v62 = vsub.f32 1.0, %v37925_v55  ;;  %v26304_v36 = vmul.f32 %v37925_v55, %v26302_v6  ;;  %v43847_v55 = vld [vmem:[#allocation56_spill] sm:$0xff]  ;;  %v43848_v6 = vld [vmem:[#allocation57_spill] sm:$0xff] }
0x15b3   :  { %v37927_v25 = vpop.eup %37926 }
0x15b4   :  { %v26301_v19 = vmul.f32 %v37927_v25, %v26300_v62 }
0x15b6   :  { %v42504_v54 = vadd.f32 %v26304_v36, %v26301_v19 }
0x15b8   :  { %26306 = vst.msk [vmem:[#allocation2] sm:$0x20] %vm10506_vm7, %v42504_v54  ;;  %v26308_v1 = vrot.slane %v42504_v54, 5 }
0x15ba   :  { %v26309_v58 = vsel %vm91_vm0, %v26308_v1, 0 }
0x15bb   :  { %v42510_v5 = vand.u32 4294901760, %v26309_v58 }
0x15bd   :  { %37121 = vmatmul.mubr.f32.vlgmr.msra.gmra.mxu1 %v42510_v5  ;;  %v42514_v59 = vsub.f32 %v26309_v58, %v42510_v5 }
0x15be   :  { %37135 = vmatpush3.msra.mxu1 %v38414_v53  ;;  %37142 = vmatprep.mubr.msk.f32.mxu1 %vm37987_vm1, %v43529_v29 }
0x15bf   :  { %37136 = vmatprep.subr.mxu1 %v43529_v29  ;;  %v42521_v31 = vand.u32 4294901760, %v42514_v59 }
0x15c0   :  { %37137 = vmatpush3.msra.mxu1 %v38431_v61 }
0x15c1   :  { %37138 = vmatprep.subr.mxu1 %v43529_v29  ;;  %v26383_v49 = vsub.f32 %v42514_v59, %v42521_v31 }
0x15c2   :  { %37139 = vmatpush3.msra.mxu1 %v38443_v24 }
0x15c3   :  { %37140 = vmatprep.subr.mxu1 %v43529_v29  ;;  %v42529_v9 = vand.u32 4294901760, %v26383_v49 }
0x15c4   :  { %37141 = vmatpush3.msra.mxu1 %v38453_v35 }
0x15c5   :  { %37143 = vmatmul.mubr.f32.vlgmr.msra.gmra.mxu1 %v42521_v31  ;;  %37156 = vmatprep.subr.mxu1 %v43529_v29 }
0x15c6   :  { %37110 = vmatmul.mubr.f32.vlgmr.msra.gmra.mxu0 %v42529_v9  ;;  %37157 = vmatpush3.msra.mxu1 %v38414_v53 }
0x15c7   :  { %37124 = vmatpush3.msra.mxu0 %v38439_v21  ;;  %37158 = vmatprep.subr.mxu1 %v43529_v29 }
0x15c8   :  { %37125 = vmatprep.subr.mxu0 %v43529_v29  ;;  %37159 = vmatpush3.msra.mxu1 %v38431_v61 }
0x15c9   :  { %37126 = vmatpush3.msra.mxu0 %v38456_v48  ;;  %37160 = vmatprep.subr.mxu1 %v43529_v29 }
0x15ca   :  { %37127 = vmatprep.subr.mxu0 %v43529_v29  ;;  %37161 = vmatpush3.msra.mxu1 %v38443_v24 }
0x15cb   :  { %37128 = vmatpush3.msra.mxu0 %v38466_v51  ;;  %37162 = vmatprep.subr.mxu1 %v43529_v29 }
0x15cc   :  { %37129 = vmatprep.subr.mxu0 %v43529_v29  ;;  %37131 = vmatprep.mubr.msk.f32.mxu0 %vm37987_vm1, %v43529_v29 }
0x15cd   :  { %37130 = vmatpush3.msra.mxu0 %v38480_v23  ;;  %37163 = vmatpush3.msra.mxu1 %v38453_v35 }
0x15ce   :  { %37164 = vmatprep.mubr.msk.f32.mxu1 %vm37987_vm1, %v43529_v29  ;;  %37132 = vmatmul.mubr.f32.vlgmr.msra.gmra.mxu0 %v42514_v59 }
0x15cf   :  { %37145 = vmatprep.subr.mxu0 %v43529_v29  ;;  %37165 = vmatmul.mubr.f32.vlgmr.msra.gmra.mxu1 %v42510_v5 }
0x15d0   :  { %37178 = vmatprep.subr.mxu1 %v43529_v29  ;;  %37146 = vmatpush3.msra.mxu0 %v38461_v8 }
0x15d1   :  { %37179 = vmatpush3.msra.mxu1 %v38632_v45  ;;  %37147 = vmatprep.subr.mxu0 %v43529_v29 }
0x15d2   :  { %37180 = vmatprep.subr.mxu1 %v43529_v29  ;;  %37148 = vmatpush3.msra.mxu0 %v38477_v22 }
0x15d3   :  { %37181 = vmatpush3.msra.mxu1 %v38643_v41  ;;  %37149 = vmatprep.subr.mxu0 %v43529_v29 }
0x15d4   :  { %37182 = vmatprep.subr.mxu1 %v43529_v29  ;;  %37150 = vmatpush3.msra.mxu0 %v38489_v26 }
0x15d5   :  { %37183 = vmatpush3.msra.mxu1 %v38652_v38  ;;  %37151 = vmatprep.subr.mxu0 %v43529_v29 }
0x15d6   :  { %37184 = vmatprep.subr.mxu1 %v43529_v29  ;;  %37152 = vmatpush3.msra.mxu0 %v38500_v10 }
0x15d7   :  { %37153 = vmatprep.mubr.msk.f32.mxu0 %vm37987_vm1, %v43529_v29  ;;  %37185 = vmatpush3.msra.mxu1 %v38658_v63 }
0x15d8   :  { %37186 = vmatprep.mubr.msk.f32.mxu1 %vm37987_vm1, %v43529_v29  ;;  %37154 = vmatmul.mubr.f32.vlgmr.msra.gmra.mxu0 %v42510_v5 }
0x15d9   :  { %37167 = vmatprep.subr.mxu0 %v43529_v29  ;;  %37187 = vmatmul.mubr.f32.vlgmr.msra.gmra.mxu1 %v42510_v5 }
0x15da   :  { %37200 = vmatprep.subr.mxu1 %v43529_v29  ;;  %37168 = vmatpush3.msra.mxu0 %v38553_v46 }
0x15db   :  { %37201 = vmatpush3.msra.mxu1 %v38553_v46  ;;  %37169 = vmatprep.subr.mxu0 %v43529_v29 }
0x15dc   :  { %37202 = vmatprep.subr.mxu1 %v43529_v29  ;;  %37170 = vmatpush3.msra.mxu0 %v38567_v37 }
0x15dd   :  { %37203 = vmatpush3.msra.mxu1 %v38567_v37  ;;  %37171 = vmatprep.subr.mxu0 %v43529_v29 }
0x15de   :  { %37204 = vmatprep.subr.mxu1 %v43529_v29  ;;  %37172 = vmatpush3.msra.mxu0 %v38579_v60 }
0x15df   :  { %37205 = vmatpush3.msra.mxu1 %v38579_v60  ;;  %37173 = vmatprep.subr.mxu0 %v43529_v29 }
0x15e0   :  { %37206 = vmatprep.subr.mxu1 %v43529_v29  ;;  %37174 = vmatpush3.msra.mxu0 %v38586_v28 }
0x15e1   :  { %37175 = vmatprep.mubr.msk.f32.mxu0 %vm37987_vm1, %v43529_v29  ;;  %37207 = vmatpush3.msra.mxu1 %v38586_v28 }
0x15e2   :  { %37208 = vmatprep.mubr.msk.f32.mxu1 %vm37987_vm1, %v43529_v29  ;;  %37176 = vmatmul.mubr.f32.vlgmr.msra.gmra.mxu0 %v42529_v9 }
0x15e3   :  { %37189 = vmatprep.subr.mxu0 %v43529_v29  ;;  %37209 = vmatmul.mubr.f32.vlgmr.msra.gmra.mxu1 %v42521_v31 }
0x15e4   :  { %37222 = vmatprep.subr.mxu1 %v43529_v29  ;;  %37190 = vmatpush3.msra.mxu0 %v43733_v13 }
0x15e5   :  { %37223 = vmatpush3.msra.mxu1 %v38553_v46  ;;  %37191 = vmatprep.subr.mxu0 %v43529_v29 }
0x15e6   :  { %37224 = vmatprep.subr.mxu1 %v43529_v29  ;;  %37192 = vmatpush3.msra.mxu0 %v43734_v40 }
0x15e7   :  { %37225 = vmatpush3.msra.mxu1 %v38567_v37  ;;  %37193 = vmatprep.subr.mxu0 %v43529_v29 }
0x15e8   :  { %37226 = vmatprep.subr.mxu1 %v43529_v29  ;;  %37194 = vmatpush3.msra.mxu0 %v43735_v11 }
0x15e9   :  { %37227 = vmatpush3.msra.mxu1 %v38579_v60  ;;  %37195 = vmatprep.subr.mxu0 %v43529_v29 }
0x15ea   :  { %37228 = vmatprep.subr.mxu1 %v43529_v29  ;;  %37196 = vmatpush3.msra.mxu0 %v43736_v0 }
0x15eb   :  { %37197 = vmatprep.mubr.msk.f32.mxu0 %vm37987_vm1, %v43529_v29  ;;  %37229 = vmatpush3.msra.mxu1 %v38586_v28 }
0x15ec   :  { %37230 = vmatprep.mubr.msk.f32.mxu1 %vm37987_vm1, %v43529_v29  ;;  %37198 = vmatmul.mubr.f32.vlgmr.msra.gmra.mxu0 %v42514_v59 }
0x15ed   :  { %37211 = vmatprep.subr.mxu0 %v43529_v29  ;;  %37231 = vmatmul.mubr.f32.vlgmr.msra.gmra.mxu1 %v42510_v5 }
0x15ee   :  { %37244 = vmatprep.subr.mxu1 %v43529_v29  ;;  %37212 = vmatpush3.msra.mxu0 %v43737_v16 }
0x15ef   :  { %37245 = vmatpush3.msra.mxu1 %v43742_v2  ;;  %37213 = vmatprep.subr.mxu0 %v43529_v29 }
0x15f0   :  { %37246 = vmatprep.subr.mxu1 %v43529_v29  ;;  %37214 = vmatpush3.msra.mxu0 %v43738_v17 }
0x15f1   :  { %37247 = vmatpush3.msra.mxu1 %v43744_v57  ;;  %37215 = vmatprep.subr.mxu0 %v43529_v29 }
0x15f2   :  { %37248 = vmatprep.subr.mxu1 %v43529_v29  ;;  %37216 = vmatpush3.msra.mxu0 %v43739_v34 }
0x15f3   :  { %37249 = vmatpush3.msra.mxu1 %v43746_v15  ;;  %37217 = vmatprep.subr.mxu0 %v43529_v29 }
0x15f4   :  { %37250 = vmatprep.subr.mxu1 %v43529_v29  ;;  %37218 = vmatpush3.msra.mxu0 %v43740_v47 }
0x15f5   :  { %37219 = vmatprep.mubr.msk.f32.mxu0 %vm37987_vm1, %v43529_v29  ;;  %37251 = vmatpush3.msra.mxu1 %v43748_v42 }
0x15f6   :  { %37252 = vmatprep.mubr.msk.f32.mxu1 %vm37987_vm1, %v43529_v29  ;;  %37220 = vmatmul.mubr.f32.vlgmr.msra.gmra.mxu0 %v42510_v5 }
0x15f7   :  { %37233 = vmatprep.subr.mxu0 %v43529_v29  ;;  %37253 = vmatmul.mubr.f32.vlgmr.msra.gmra.mxu1 %v42510_v5 }
0x15f8   :  { %37266 = vmatprep.subr.mxu1 %v43529_v29  ;;  %37234 = vmatpush3.msra.mxu0 %v43833_v4 }
0x15f9   :  { %37267 = vmatpush3.msra.mxu1 %v43833_v4  ;;  %37235 = vmatprep.subr.mxu0 %v43529_v29 }
0x15fa   :  { %37268 = vmatprep.subr.mxu1 %v43529_v29  ;;  %37236 = vmatpush3.msra.mxu0 %v43834_v30 }
0x15fb   :  { %37269 = vmatpush3.msra.mxu1 %v43834_v30  ;;  %37237 = vmatprep.subr.mxu0 %v43529_v29 }
0x15fc   :  { %37270 = vmatprep.subr.mxu1 %v43529_v29  ;;  %37238 = vmatpush3.msra.mxu0 %v43835_v44 }
0x15fd   :  { %37271 = vmatpush3.msra.mxu1 %v43835_v44  ;;  %37239 = vmatprep.subr.mxu0 %v43529_v29 }
0x15fe   :  { %37272 = vmatprep.subr.mxu1 %v43529_v29  ;;  %37240 = vmatpush3.msra.mxu0 %v43836_v12 }
0x15ff   :  { %37241 = vmatprep.mubr.msk.f32.mxu0 %vm37987_vm1, %v43529_v29  ;;  %37273 = vmatpush3.msra.mxu1 %v43836_v12 }
0x1600   :  { %37274 = vmatprep.mubr.msk.f32.mxu1 %vm37987_vm1, %v43529_v29  ;;  %37242 = vmatmul.mubr.f32.vlgmr.msra.gmra.mxu0 %v42529_v9 }
0x1601   :  { %37255 = vmatprep.subr.mxu0 %v43529_v29  ;;  %37275 = vmatmul.mubr.f32.vlgmr.msra.gmra.mxu1 %v42521_v31 }
0x1602   :  { %37288 = vmatprep.subr.mxu1 %v43529_v29  ;;  %37256 = vmatpush3.msra.mxu0 %v43837_v50 }
0x1603   :  { %37289 = vmatpush3.msra.mxu1 %v43833_v4  ;;  %37257 = vmatprep.subr.mxu0 %v43529_v29 }
0x1604   :  { %37290 = vmatprep.subr.mxu1 %v43529_v29  ;;  %37258 = vmatpush3.msra.mxu0 %v43838_v27 }
0x1605   :  { %37291 = vmatpush3.msra.mxu1 %v43834_v30  ;;  %37259 = vmatprep.subr.mxu0 %v43529_v29 }
0x1606   :  { %37292 = vmatprep.subr.mxu1 %v43529_v29  ;;  %37260 = vmatpush3.msra.mxu0 %v43839_v7 }
0x1607   :  { %37293 = vmatpush3.msra.mxu1 %v43835_v44  ;;  %37261 = vmatprep.subr.mxu0 %v43529_v29 }
0x1608   :  { %37294 = vmatprep.subr.mxu1 %v43529_v29  ;;  %37262 = vmatpush3.msra.mxu0 %v43840_v33 }
0x1609   :  { %37263 = vmatprep.mubr.msk.f32.mxu0 %vm37987_vm1, %v43529_v29  ;;  %37295 = vmatpush3.msra.mxu1 %v43836_v12 }
0x160a   :  { %37296 = vmatprep.mubr.msk.f32.mxu1 %vm37987_vm1, %v43529_v29  ;;  %37264 = vmatmul.mubr.f32.vlgmr.msra.gmra.mxu0 %v42514_v59 }
0x160b   :  { %37277 = vmatprep.subr.mxu0 %v43529_v29  ;;  %37297 = vmatmul.mubr.f32.vlgmr.msra.gmra.mxu1 %v42510_v5 }
0x160c   :  { %37278 = vmatpush3.msra.mxu0 %v43841_v56  ;;  %37285 = vmatprep.mubr.msk.f32.mxu0 %vm37987_vm1, %v43529_v29 }
0x160d   :  { %37279 = vmatprep.subr.mxu0 %v43529_v29  ;;  %37310 = vmatprep.subr.mxu1 %v43529_v29 }
0x160e   :  { %37280 = vmatpush3.msra.mxu0 %v43842_v52  ;;  %37311 = vmatpush3.msra.mxu1 %v43843_v3 }
0x160f   :  { %37281 = vmatprep.subr.mxu0 %v43529_v29  ;;  %37312 = vmatprep.subr.mxu1 %v43529_v29 }
0x1610   :  { %37282 = vmatpush3.msra.mxu0 %v43844_v18  ;;  %37313 = vmatpush3.msra.mxu1 %v43845_v20 }
0x1611   :  { %37283 = vmatprep.subr.mxu0 %v43529_v29  ;;  %37314 = vmatprep.subr.mxu1 %v43529_v29 }
0x1612   :  { %37284 = vmatpush3.msra.mxu0 %v43846_v43  ;;  %37315 = vmatpush3.msra.mxu1 %v43847_v55 }
0x1613   :  { %37286 = vmatmul.mubr.f32.vlgmr.msra.gmra.mxu0 %v42510_v5  ;;  %37316 = vmatprep.subr.mxu1 %v43529_v29 }
0x1614   :  { %37317 = vmatpush3.msra.mxu1 %v43848_v6  ;;  %37299 = vmatprep.subr.mxu0 %v43529_v29 }
0x1615   :  { %37318 = vmatprep.mubr.msk.f32.mxu1 %vm37987_vm1, %v43529_v29  ;;  %37332 = vmatprep.subr.mxu1 %v43529_v29 }
0x1616   :  { %37300 = vmatpush3.msra.mxu0 %v38414_v53  ;;  %37307 = vmatprep.mubr.msk.f32.mxu0 %vm37987_vm1, %v43529_v29 }
0x1617   :  { %37301 = vmatprep.subr.mxu0 %v43529_v29 }
0x1618   :  { %37302 = vmatpush3.msra.mxu0 %v38431_v61 }
0x1619   :  { %37303 = vmatprep.subr.mxu0 %v43529_v29 }
0x161a   :  { %37304 = vmatpush3.msra.mxu0 %v38443_v24 }
0x161b   :  { %37305 = vmatprep.subr.mxu0 %v43529_v29 }
0x161c   :  { %37306 = vmatpush3.msra.mxu0 %v38453_v35 }
0x161d   :  { %37321 = vmatprep.subr.mxu0 %v43529_v29 }
0x167d   :  { %v26477_v62 = vpop.f32.mrf.mxu1 }
0x167f   :  { %v37122_v25 = vpop.f32.mrf.mxu1 }
0x1685   :  { %v26634_v36 = vpop.f32.mrf.mxu1 }
0x1686   :  { %v26386_v19 = vpop.f32.mrf.mxu0 }
0x1687   :  { %v37144_v1 = vpop.f32.mrf.mxu1  ;;  %v26478_v6 = vadd.f32 %v26477_v62, %v26386_v19 }
0x1688   :  { %v37111_v58 = vpop.f32.mrf.mxu0 }
0x168e   :  { %v26557_v5 = vpop.f32.mrf.mxu0 }
0x168f   :  { %v26792_v59 = vpop.f32.mrf.mxu1  ;;  %v26558_v43 = vadd.f32 %v26557_v5, %v26478_v6 }
0x1690   :  { %v37133_v31 = vpop.f32.mrf.mxu0 }
0x1691   :  { %v37166_v49 = vpop.f32.mrf.mxu1  ;;  %v26635_v18 = vadd.f32 %v26634_v36, %v26558_v43 }
0x1698   :  { %v26717_v9 = vpop.f32.mrf.mxu0 }
0x1699   :  { %v26962_v3 = vpop.f32.mrf.mxu1  ;;  %v26718_v33 = vadd.f32 %v26717_v9, %v26635_v18 }
0x169a   :  { %v37155_v20 = vpop.f32.mrf.mxu0 }
0x169b   :  { %v37188_v55 = vpop.f32.mrf.mxu1  ;;  %v26793_v27 = vadd.f32 %v26792_v59, %v26718_v33 }
0x169d   :  { %v27767_v50 = vrot.slane %v26793_v27, 2 }
0x169f   :  { %v27769_v49 = vadd.f32 %v27767_v50, %v41367_v32 }
0x16a1   :  { %v31774_v20 = vmul.f32 -1.442695, %v27769_v49 }
0x16a2   :  { %v26871_v52 = vpop.f32.mrf.mxu0 }
0x16a3   :  { %v27119_v56 = vpop.f32.mrf.mxu1  ;;  %v26963_v44 = vadd.f32 %v26962_v3, %v26871_v52  ;;  %37928 = vpow2.f32 %v31774_v20 }
0x16a4   :  { %v37177_v7 = vpop.f32.mrf.mxu0 }
0x16a5   :  { %v37210_v25 = vpop.f32.mrf.mxu1 }
0x16ac   :  { %v27042_v1 = vpop.f32.mrf.mxu0 }
0x16ad   :  { %v27277_v58 = vpop.f32.mrf.mxu1  ;;  %v27043_v30 = vadd.f32 %v27042_v1, %v26963_v44 }
0x16ae   :  { %v37199_v12 = vpop.f32.mrf.mxu0 }
0x16af   :  { %v37232_v31 = vpop.f32.mrf.mxu1  ;;  %v27120_v55 = vadd.f32 %v27119_v56, %v27043_v30  ;;  %v42725_v30 = vld [vmem:[%s43220_s6] sm:$0x1] }
0x16b0   :  { %v37929_v3 = vpop.eup %37928 }
0x16b1   :  { %v27773_v44 = vadd.f32 1.0, %v37929_v3 }
0x16b6   :  { %v27202_v62 = vpop.f32.mrf.mxu0 }
0x16b7   :  { %v27203_v19 = vadd.f32 %v27202_v62, %v27120_v55  ;;  %v27447_v43 = vpop.f32.mrf.mxu1 }
0x16b8   :  { %v37221_v36 = vpop.f32.mrf.mxu0 }
0x16b9   :  { %v27278_v18 = vadd.f32 %v27277_v58, %v27203_v19  ;;  %v37254_v7 = vpop.f32.mrf.mxu1 }
0x16bb   :  { %v27777_v5 = vrot.slane %v27278_v18, 2 }
0x16bd   :  { %v27779_v27 = vadd.f32 %v27777_v5, %v41372_v39 }
0x16bf   :  { %v31775_v12 = vmul.f32 -1.442695, %v27779_v27 }
0x16c0   :  { %v27356_v33 = vpop.f32.mrf.mxu0 }
0x16c1   :  { %v27604_v59 = vpop.f32.mrf.mxu1  ;;  %37930 = vpow2.f32 %v31775_v12  ;;  %v27357_v50 = vadd.f32 %v42725_v30, %v27356_v33 }
0x16c2   :  { %v37243_v52 = vpop.f32.mrf.mxu0  ;;  %37932 = vrcp.f32 %v27773_v44 }
0x16c3   :  { %v37276_v9 = vpop.f32.mrf.mxu1  ;;  %v27448_v25 = vadd.f32 %v27447_v43, %v27357_v50  ;;  %v27794_v43 = vrot.slane %v42504_v54, 7 }
0x16ca   :  { %v27527_v56 = vpop.f32.mrf.mxu0 }
0x16cb   :  { %v27762_v6 = vpop.f32.mrf.mxu1  ;;  %v27528_v31 = vadd.f32 %v27527_v56, %v27448_v25 }
0x16cc   :  { %v37265_v1 = vpop.f32.mrf.mxu0 }
0x16cd   :  { %v37298_v58 = vpop.f32.mrf.mxu1  ;;  %v27605_v49 = vadd.f32 %v27604_v59, %v27528_v31 }
0x16ce   :  { %v37931_v20 = vpop.eup %37930 }
0x16cf   :  { %v27783_v36 = vadd.f32 1.0, %v37931_v20  ;;  %v37933_v5 = vpop.eup %37932 }
0x16d1   :  { %37934 = vrcp.f32 %v27783_v36 }
0x16d3   :  { %v27687_v55 = vpop.f32.mrf.mxu0 }
0x16d4   :  { %v27688_v62 = vadd.f32 %v27687_v55, %v27605_v49 }
0x16d5   :  { %v37287_v19 = vpop.f32.mrf.mxu0 }
0x16d6   :  { %v27763_v18 = vadd.f32 %v27762_v6, %v27688_v62 }
0x16d8   :  { %v27787_v7 = vrot.slane %v27763_v18, 2 }
0x16da   :  { %v27789_v27 = vmul.f32 %v37933_v5, %v27787_v7 }
0x16dc   :  { %v27790_v33 = vadd.f32 %v27789_v27, %v41377_v14 }
0x16de   :  { %37936 = vtanh.f32 %v27790_v33  ;;  %v37935_v12 = vpop.eup %37934 }
0x16df   :  { %v27792_v52 = vsub.f32 1.0, %v37935_v12  ;;  %v27796_v3 = vmul.f32 %v37935_v12, %v27794_v43 }
0x16eb   :  { %v37937_v9 = vpop.eup %37936 }
0x16ec   :  { %v27793_v59 = vmul.f32 %v37937_v9, %v27792_v52 }
0x16ee   :  { %v42730_v44 = vadd.f32 %v27796_v3, %v27793_v59 }
0x16f0   :  { %27798 = vst.msk [vmem:[#allocation2] sm:$0x40] %vm11999_vm8, %v42730_v44  ;;  %v27800_v50 = vrot.slane %v42730_v44, 6 }
0x16f2   :  { %v27801_v56 = vsel %vm91_vm0, %v27800_v50, 0 }
0x16f3   :  { %v42736_v6 = vand.u32 4294901760, %v27801_v56 }
0x16f5   :  { %37319 = vmatmul.mubr.f32.vlgmr.msra.gmra.mxu1 %v42736_v6  ;;  %v42740_v25 = vsub.f32 %v27801_v56, %v42736_v6 }
0x16f6   :  { %37333 = vmatpush3.msra.mxu1 %v38414_v53  ;;  %37340 = vmatprep.mubr.msk.f32.mxu1 %vm37987_vm1, %v43529_v29 }
0x16f7   :  { %37334 = vmatprep.subr.mxu1 %v43529_v29  ;;  %v42747_v54 = vand.u32 4294901760, %v42740_v25 }
0x16f8   :  { %37335 = vmatpush3.msra.mxu1 %v38431_v61 }
0x16f9   :  { %37336 = vmatprep.subr.mxu1 %v43529_v29  ;;  %v27875_v1 = vsub.f32 %v42740_v25, %v42747_v54 }
0x16fa   :  { %37337 = vmatpush3.msra.mxu1 %v38443_v24 }
0x16fb   :  { %37338 = vmatprep.subr.mxu1 %v43529_v29  ;;  %v42755_v58 = vand.u32 4294901760, %v27875_v1 }
0x16fc   :  { %37339 = vmatpush3.msra.mxu1 %v38453_v35 }
0x16fd   :  { %37341 = vmatmul.mubr.f32.vlgmr.msra.gmra.mxu1 %v42747_v54  ;;  %37354 = vmatprep.subr.mxu1 %v43529_v29 }
0x16fe   :  { %37308 = vmatmul.mubr.f32.vlgmr.msra.gmra.mxu0 %v42755_v58  ;;  %37355 = vmatpush3.msra.mxu1 %v38414_v53  ;;  %v43859_v53 = vld [vmem:[#allocation76_spill] sm:$0xff] }
0x16ff   :  { %37322 = vmatpush3.msra.mxu0 %v38439_v21  ;;  %37356 = vmatprep.subr.mxu1 %v43529_v29  ;;  %v43861_v21 = vld [vmem:[#allocation77_spill] sm:$0xff] }
0x1700   :  { %37323 = vmatprep.subr.mxu0 %v43529_v29  ;;  %37357 = vmatpush3.msra.mxu1 %v38431_v61  ;;  %v43860_v61 = vld [vmem:[#allocation94_spill] sm:$0xff] }
0x1701   :  { %37324 = vmatpush3.msra.mxu0 %v38456_v48  ;;  %37358 = vmatprep.subr.mxu1 %v43529_v29  ;;  %v43864_v48 = vld [vmem:[#allocation82_spill] sm:$0xff] }
0x1702   :  { %37325 = vmatprep.subr.mxu0 %v43529_v29  ;;  %37359 = vmatpush3.msra.mxu1 %v38443_v24  ;;  %v43862_v24 = vld [vmem:[#allocation96_spill] sm:$0xff] }
0x1703   :  { %37326 = vmatpush3.msra.mxu0 %v38466_v51  ;;  %37360 = vmatprep.subr.mxu1 %v43529_v29  ;;  %v43865_v51 = vld [vmem:[#allocation84_spill] sm:$0xff] }
0x1704   :  { %37327 = vmatprep.subr.mxu0 %v43529_v29  ;;  %37329 = vmatprep.mubr.msk.f32.mxu0 %vm37987_vm1, %v43529_v29 }
0x1705   :  { %37328 = vmatpush3.msra.mxu0 %v38480_v23  ;;  %37361 = vmatpush3.msra.mxu1 %v38453_v35  ;;  %v43855_v23 = vld [vmem:[#allocation75_spill] sm:$0xff]  ;;  %v43863_v35 = vld [vmem:[#allocation97_spill] sm:$0xff] }
0x1706   :  { %37362 = vmatprep.mubr.msk.f32.mxu1 %vm37987_vm1, %v43529_v29  ;;  %37330 = vmatmul.mubr.f32.vlgmr.msra.gmra.mxu0 %v42740_v25 }
0x1707   :  { %37343 = vmatprep.subr.mxu0 %v43529_v29  ;;  %37363 = vmatmul.mubr.f32.vlgmr.msra.gmra.mxu1 %v42736_v6 }
0x1708   :  { %37376 = vmatprep.subr.mxu1 %v43529_v29  ;;  %37344 = vmatpush3.msra.mxu0 %v38461_v8  ;;  %v43853_v8 = vld [vmem:[#allocation71_spill] sm:$0xff] }
0x1709   :  { %37377 = vmatpush3.msra.mxu1 %v38632_v45  ;;  %37345 = vmatprep.subr.mxu0 %v43529_v29  ;;  %v43851_v45 = vld [vmem:[#allocation70_spill] sm:$0xff] }
0x170a   :  { %37378 = vmatprep.subr.mxu1 %v43529_v29  ;;  %37346 = vmatpush3.msra.mxu0 %v38477_v22  ;;  %v43866_v22 = vld [vmem:[#allocation87_spill] sm:$0xff] }
0x170b   :  { %37379 = vmatpush3.msra.mxu1 %v38643_v41  ;;  %37347 = vmatprep.subr.mxu0 %v43529_v29  ;;  %v43850_v41 = vld [vmem:[#allocation69_spill] sm:$0xff] }
0x170c   :  { %37380 = vmatprep.subr.mxu1 %v43529_v29  ;;  %37348 = vmatpush3.msra.mxu0 %v38489_v26  ;;  %v43856_v26 = vld [vmem:[#allocation72_spill] sm:$0xff] }
0x170d   :  { %37381 = vmatpush3.msra.mxu1 %v38652_v38  ;;  %37349 = vmatprep.subr.mxu0 %v43529_v29  ;;  %v43849_v38 = vld [vmem:[#allocation67_spill] sm:$0xff] }
0x170e   :  { %37382 = vmatprep.subr.mxu1 %v43529_v29  ;;  %37350 = vmatpush3.msra.mxu0 %v38500_v10  ;;  %v43854_v10 = vld [vmem:[#allocation73_spill] sm:$0xff] }
0x170f   :  { %37351 = vmatprep.mubr.msk.f32.mxu0 %vm37987_vm1, %v43529_v29  ;;  %37383 = vmatpush3.msra.mxu1 %v38658_v63 }
0x1710   :  { %37384 = vmatprep.mubr.msk.f32.mxu1 %vm37987_vm1, %v43529_v29  ;;  %37352 = vmatmul.mubr.f32.vlgmr.msra.gmra.mxu0 %v42736_v6 }
0x1711   :  { %37365 = vmatprep.subr.mxu0 %v43529_v29  ;;  %37385 = vmatmul.mubr.f32.vlgmr.msra.gmra.mxu1 %v42736_v6 }
0x1712   :  { %37398 = vmatprep.subr.mxu1 %v43529_v29  ;;  %37366 = vmatpush3.msra.mxu0 %v38553_v46 }
0x1713   :  { %37399 = vmatpush3.msra.mxu1 %v38553_v46  ;;  %37367 = vmatprep.subr.mxu0 %v43529_v29 }
0x1714   :  { %37400 = vmatprep.subr.mxu1 %v43529_v29  ;;  %37368 = vmatpush3.msra.mxu0 %v38567_v37 }
0x1715   :  { %37401 = vmatpush3.msra.mxu1 %v38567_v37  ;;  %37369 = vmatprep.subr.mxu0 %v43529_v29 }
0x1716   :  { %37402 = vmatprep.subr.mxu1 %v43529_v29  ;;  %37370 = vmatpush3.msra.mxu0 %v38579_v60 }
0x1717   :  { %37403 = vmatpush3.msra.mxu1 %v38579_v60  ;;  %37371 = vmatprep.subr.mxu0 %v43529_v29 }
0x1718   :  { %37404 = vmatprep.subr.mxu1 %v43529_v29  ;;  %37372 = vmatpush3.msra.mxu0 %v38586_v28 }
0x1719   :  { %37373 = vmatprep.mubr.msk.f32.mxu0 %vm37987_vm1, %v43529_v29  ;;  %37405 = vmatpush3.msra.mxu1 %v38586_v28 }
0x171a   :  { %37406 = vmatprep.mubr.msk.f32.mxu1 %vm37987_vm1, %v43529_v29  ;;  %37374 = vmatmul.mubr.f32.vlgmr.msra.gmra.mxu0 %v42755_v58 }
0x171b   :  { %37387 = vmatprep.subr.mxu0 %v43529_v29  ;;  %37407 = vmatmul.mubr.f32.vlgmr.msra.gmra.mxu1 %v42747_v54 }
0x171c   :  { %37420 = vmatprep.subr.mxu1 %v43529_v29  ;;  %37388 = vmatpush3.msra.mxu0 %v43733_v13 }
0x171d   :  { %37421 = vmatpush3.msra.mxu1 %v38553_v46  ;;  %37389 = vmatprep.subr.mxu0 %v43529_v29  ;;  %v43867_v46 = vld [vmem:[#allocation90_spill] sm:$0xff] }
0x171e   :  { %37422 = vmatprep.subr.mxu1 %v43529_v29  ;;  %37390 = vmatpush3.msra.mxu0 %v43734_v40 }
0x171f   :  { %37423 = vmatpush3.msra.mxu1 %v38567_v37  ;;  %37391 = vmatprep.subr.mxu0 %v43529_v29  ;;  %v43858_v37 = vld [vmem:[#allocation91_spill] sm:$0xff] }
0x1720   :  { %37424 = vmatprep.subr.mxu1 %v43529_v29  ;;  %37392 = vmatpush3.msra.mxu0 %v43735_v11 }
0x1721   :  { %37425 = vmatpush3.msra.mxu1 %v38579_v60  ;;  %37393 = vmatprep.subr.mxu0 %v43529_v29  ;;  %v43852_v60 = vld [vmem:[#allocation68_spill] sm:$0xff] }
0x1722   :  { %37426 = vmatprep.subr.mxu1 %v43529_v29  ;;  %37394 = vmatpush3.msra.mxu0 %v43736_v0 }
0x1723   :  { %37395 = vmatprep.mubr.msk.f32.mxu0 %vm37987_vm1, %v43529_v29  ;;  %37427 = vmatpush3.msra.mxu1 %v38586_v28  ;;  %v43857_v28 = vld [vmem:[#allocation74_spill] sm:$0xff] }
0x1724   :  { %37428 = vmatprep.mubr.msk.f32.mxu1 %vm37987_vm1, %v43529_v29  ;;  %37396 = vmatmul.mubr.f32.vlgmr.msra.gmra.mxu0 %v42740_v25 }
0x1725   :  { %37409 = vmatprep.subr.mxu0 %v43529_v29  ;;  %37429 = vmatmul.mubr.f32.vlgmr.msra.gmra.mxu1 %v42736_v6 }
0x1726   :  { %37442 = vmatprep.subr.mxu1 %v43529_v29  ;;  %37410 = vmatpush3.msra.mxu0 %v43737_v16 }
0x1727   :  { %37443 = vmatpush3.msra.mxu1 %v43742_v2  ;;  %37411 = vmatprep.subr.mxu0 %v43529_v29 }
0x1728   :  { %37444 = vmatprep.subr.mxu1 %v43529_v29  ;;  %37412 = vmatpush3.msra.mxu0 %v43738_v17 }
0x1729   :  { %37445 = vmatpush3.msra.mxu1 %v43744_v57  ;;  %37413 = vmatprep.subr.mxu0 %v43529_v29 }
0x172a   :  { %37446 = vmatprep.subr.mxu1 %v43529_v29  ;;  %37414 = vmatpush3.msra.mxu0 %v43739_v34 }
0x172b   :  { %37447 = vmatpush3.msra.mxu1 %v43746_v15  ;;  %37415 = vmatprep.subr.mxu0 %v43529_v29 }
0x172c   :  { %37448 = vmatprep.subr.mxu1 %v43529_v29  ;;  %37416 = vmatpush3.msra.mxu0 %v43740_v47 }
0x172d   :  { %37417 = vmatprep.mubr.msk.f32.mxu0 %vm37987_vm1, %v43529_v29  ;;  %37449 = vmatpush3.msra.mxu1 %v43748_v42 }
0x172e   :  { %37450 = vmatprep.mubr.msk.f32.mxu1 %vm37987_vm1, %v43529_v29  ;;  %37418 = vmatmul.mubr.f32.vlgmr.msra.gmra.mxu0 %v42736_v6 }
0x172f   :  { %37431 = vmatprep.subr.mxu0 %v43529_v29  ;;  %37451 = vmatmul.mubr.f32.vlgmr.msra.gmra.mxu1 %v42736_v6 }
0x1730   :  { %37464 = vmatprep.subr.mxu1 %v43529_v29  ;;  %37432 = vmatpush3.msra.mxu0 %v43833_v4 }
0x1731   :  { %37465 = vmatpush3.msra.mxu1 %v43833_v4  ;;  %37433 = vmatprep.subr.mxu0 %v43529_v29 }
0x1732   :  { %37466 = vmatprep.subr.mxu1 %v43529_v29  ;;  %37434 = vmatpush3.msra.mxu0 %v43849_v38 }
0x1733   :  { %37467 = vmatpush3.msra.mxu1 %v43849_v38  ;;  %37435 = vmatprep.subr.mxu0 %v43529_v29 }
0x1734   :  { %37468 = vmatprep.subr.mxu1 %v43529_v29  ;;  %37436 = vmatpush3.msra.mxu0 %v43850_v41 }
0x1735   :  { %37469 = vmatpush3.msra.mxu1 %v43850_v41  ;;  %37437 = vmatprep.subr.mxu0 %v43529_v29 }
0x1736   :  { %37470 = vmatprep.subr.mxu1 %v43529_v29  ;;  %37438 = vmatpush3.msra.mxu0 %v43851_v45 }
0x1737   :  { %37439 = vmatprep.mubr.msk.f32.mxu0 %vm37987_vm1, %v43529_v29  ;;  %37471 = vmatpush3.msra.mxu1 %v43851_v45 }
0x1738   :  { %37472 = vmatprep.mubr.msk.f32.mxu1 %vm37987_vm1, %v43529_v29  ;;  %37440 = vmatmul.mubr.f32.vlgmr.msra.gmra.mxu0 %v42755_v58 }
0x1739   :  { %37453 = vmatprep.subr.mxu0 %v43529_v29  ;;  %37473 = vmatmul.mubr.f32.vlgmr.msra.gmra.mxu1 %v42747_v54 }
0x173a   :  { %37486 = vmatprep.subr.mxu1 %v43529_v29  ;;  %37454 = vmatpush3.msra.mxu0 %v43852_v60 }
0x173b   :  { %37487 = vmatpush3.msra.mxu1 %v43833_v4  ;;  %37455 = vmatprep.subr.mxu0 %v43529_v29 }
0x173c   :  { %37488 = vmatprep.subr.mxu1 %v43529_v29  ;;  %37456 = vmatpush3.msra.mxu0 %v43853_v8 }
0x173d   :  { %37489 = vmatpush3.msra.mxu1 %v43849_v38  ;;  %37457 = vmatprep.subr.mxu0 %v43529_v29 }
0x173e   :  { %37490 = vmatprep.subr.mxu1 %v43529_v29  ;;  %37458 = vmatpush3.msra.mxu0 %v43854_v10 }
0x173f   :  { %37491 = vmatpush3.msra.mxu1 %v43850_v41  ;;  %37459 = vmatprep.subr.mxu0 %v43529_v29 }
0x1740   :  { %37492 = vmatprep.subr.mxu1 %v43529_v29  ;;  %37460 = vmatpush3.msra.mxu0 %v43855_v23 }
0x1741   :  { %37461 = vmatprep.mubr.msk.f32.mxu0 %vm37987_vm1, %v43529_v29  ;;  %37493 = vmatpush3.msra.mxu1 %v43851_v45 }
0x1742   :  { %37494 = vmatprep.mubr.msk.f32.mxu1 %vm37987_vm1, %v43529_v29  ;;  %37462 = vmatmul.mubr.f32.vlgmr.msra.gmra.mxu0 %v42740_v25 }
0x1743   :  { %37475 = vmatprep.subr.mxu0 %v43529_v29  ;;  %37495 = vmatmul.mubr.f32.vlgmr.msra.gmra.mxu1 %v42736_v6 }
0x1744   :  { %37476 = vmatpush3.msra.mxu0 %v43856_v26  ;;  %37483 = vmatprep.mubr.msk.f32.mxu0 %vm37987_vm1, %v43529_v29 }
0x1745   :  { %37477 = vmatprep.subr.mxu0 %v43529_v29  ;;  %37508 = vmatprep.subr.mxu1 %v43529_v29 }
0x1746   :  { %37478 = vmatpush3.msra.mxu0 %v43857_v28  ;;  %37509 = vmatpush3.msra.mxu1 %v43858_v37 }
0x1747   :  { %37479 = vmatprep.subr.mxu0 %v43529_v29  ;;  %37510 = vmatprep.subr.mxu1 %v43529_v29 }
0x1748   :  { %37480 = vmatpush3.msra.mxu0 %v43859_v53  ;;  %37511 = vmatpush3.msra.mxu1 %v43860_v61 }
0x1749   :  { %37481 = vmatprep.subr.mxu0 %v43529_v29  ;;  %37512 = vmatprep.subr.mxu1 %v43529_v29 }
0x174a   :  { %37482 = vmatpush3.msra.mxu0 %v43861_v21  ;;  %37513 = vmatpush3.msra.mxu1 %v43862_v24 }
0x174b   :  { %37484 = vmatmul.mubr.f32.vlgmr.msra.gmra.mxu0 %v42736_v6  ;;  %37514 = vmatprep.subr.mxu1 %v43529_v29 }
0x174c   :  { %37515 = vmatpush3.msra.mxu1 %v43863_v35  ;;  %37497 = vmatprep.subr.mxu0 %v43529_v29 }
0x174d   :  { %37516 = vmatprep.mubr.msk.f32.mxu1 %vm37987_vm1, %v43529_v29  ;;  %37530 = vmatprep.subr.mxu1 %v43529_v29 }
0x174e   :  { %37498 = vmatpush3.msra.mxu0 %v43864_v48  ;;  %37505 = vmatprep.mubr.msk.f32.mxu0 %vm37987_vm1, %v43529_v29 }
0x174f   :  { %37499 = vmatprep.subr.mxu0 %v43529_v29 }
0x1750   :  { %37500 = vmatpush3.msra.mxu0 %v43865_v51 }
0x1751   :  { %37501 = vmatprep.subr.mxu0 %v43529_v29 }
0x1752   :  { %37502 = vmatpush3.msra.mxu0 %v43866_v22 }
0x1753   :  { %37503 = vmatprep.subr.mxu0 %v43529_v29 }
0x1754   :  { %37504 = vmatpush3.msra.mxu0 %v43867_v46 }
0x1755   :  { %37519 = vmatprep.subr.mxu0 %v43529_v29 }
0x17b5   :  { %v27969_v63 = vpop.f32.mrf.mxu1 }
0x17b7   :  { %v37320_v57 = vpop.f32.mrf.mxu1 }
0x17bd   :  { %v28126_v15 = vpop.f32.mrf.mxu1 }
0x17be   :  { %v27878_v42 = vpop.f32.mrf.mxu0 }
0x17bf   :  { %v37342_v13 = vpop.f32.mrf.mxu1  ;;  %v27970_v31 = vadd.f32 %v27969_v63, %v27878_v42 }
0x17c0   :  { %v37309_v40 = vpop.f32.mrf.mxu0 }
0x17c6   :  { %v28049_v11 = vpop.f32.mrf.mxu0 }
0x17c7   :  { %v28284_v0 = vpop.f32.mrf.mxu1  ;;  %v28050_v49 = vadd.f32 %v28049_v11, %v27970_v31 }
0x17c8   :  { %v37331_v16 = vpop.f32.mrf.mxu0 }
0x17c9   :  { %v37364_v17 = vpop.f32.mrf.mxu1  ;;  %v28127_v20 = vadd.f32 %v28126_v15, %v28050_v49 }
0x17d0   :  { %v28209_v34 = vpop.f32.mrf.mxu0 }
0x17d1   :  { %v28454_v47 = vpop.f32.mrf.mxu1  ;;  %v28210_v19 = vadd.f32 %v28209_v34, %v28127_v20  ;;  %v29286_v34 = vrot.slane %v42730_v44, 7 }
0x17d2   :  { %v37353_v2 = vpop.f32.mrf.mxu0 }
0x17d3   :  { %v37386_v4 = vpop.f32.mrf.mxu1  ;;  %v28285_v7 = vadd.f32 %v28284_v0, %v28210_v19 }
0x17d5   :  { %v29259_v5 = vrot.slane %v28285_v7, 1  ;;  %v43869_v7 = vld [vmem:[#allocation86_spill] sm:$0xff] }
0x17d7   :  { %v29261_v9 = vadd.f32 %v29259_v5, %v41367_v32  ;;  %v43870_v5 = vld [vmem:[#allocation89_spill] sm:$0xff] }
0x17d9   :  { %v31776_v59 = vmul.f32 -1.442695, %v29261_v9  ;;  %v43026_v9 = vld [vmem:[%s43215_s1 + $0x10] sm:$0xff] }
0x17da   :  { %v28363_v55 = vpop.f32.mrf.mxu0 }
0x17db   :  { %v28611_v62 = vpop.f32.mrf.mxu1  ;;  %v28455_v43 = vadd.f32 %v28454_v47, %v28363_v55  ;;  %37938 = vpow2.f32 %v31776_v59 }
0x17dc   :  { %v37375_v36 = vpop.f32.mrf.mxu0 }
0x17dd   :  { %v37408_v18 = vpop.f32.mrf.mxu1 }
0x17de   :  { %v43868_v18 = vld [vmem:[#allocation83_spill] sm:$0xff] }
0x17e4   :  { %v28534_v27 = vpop.f32.mrf.mxu0 }
0x17e5   :  { %v28769_v33 = vpop.f32.mrf.mxu1  ;;  %v28535_v3 = vadd.f32 %v28534_v27, %v28455_v43  ;;  %v43875_v27 = vld [vmem:[#allocation95_spill] sm:$0xff] }
0x17e6   :  { %v37397_v12 = vpop.f32.mrf.mxu0 }
0x17e7   :  { %v37430_v52 = vpop.f32.mrf.mxu1  ;;  %v28612_v50 = vadd.f32 %v28611_v62, %v28535_v3  ;;  %v29785_v3 = vsel %vm91_vm0, %v43026_v9, 0 }
0x17e8   :  { %v37939_v26 = vpop.eup %37938 }
0x17e9   :  { %v29265_v32 = vadd.f32 1.0, %v37939_v26 }
0x17ee   :  { %v28694_v56 = vpop.f32.mrf.mxu0 }
0x17ef   :  { %v28695_v6 = vadd.f32 %v28694_v56, %v28612_v50  ;;  %v28939_v25 = vpop.f32.mrf.mxu1  ;;  %v29822_v50 = vand.u32 4294901760, %v29785_v3 }
0x17f0   :  { %v37419_v54 = vpop.f32.mrf.mxu0 }
0x17f1   :  { %v28770_v1 = vadd.f32 %v28769_v33, %v28695_v6  ;;  %v37452_v58 = vpop.f32.mrf.mxu1  ;;  %v43019_v33 = vld [vmem:[%s43215_s1 + $0x18] sm:$0x3]  ;;  %v29904_v6 = vsub.f32 %v29785_v3, %v29822_v50  ;;  %s37988_s1 = smov [#allocation3]  }
0x17f2   :  { %v29788_v12 = vsel %vm91_vm0, %v43019_v33, 0  ;;  %s31708_s17 = sshll.u32 %s37988_s1, 4  ;;  %s31709_s17 = int_to_ptr.vmem [resolvable:$true] %s31708_s17 }
0x17f3   :  { %v29269_v38 = vrot.slane %v28770_v1, 1  ;;  %v29819_v43 = vand.u32 4294901760, %v29788_v12  ;;  %v29905_v54 = vand.u32 4294901760, %v29904_v6  ;;  %s37964_s18 = scalar_lea.vmem %s31709_s17, 32  ;;  %p37969_p1 = scmp.lt.s32.totalorder %s31709_s17, %s31709_s17 }
0x17f4   :  { %p37965_p0 = scmp.ne.s32.totalorder %s31709_s17, %s37964_s18  ;;  %p37970_p2 = scmp.lt.s32.totalorder %s37964_s18, %s37964_s18 }
0x17f5   :  { %v29271_v41 = vadd.f32 %v29269_v38, %v41372_v39  ;;  %v29897_v52 = vsub.f32 %v29788_v12, %v29819_v43  ;;  %v29906_v1 = vsub.f32 %v29904_v6, %v29905_v54 }
0x17f6   :  { %p37971_p3 = por %p37970_p2, %p37969_p1 }
0x17f7   :  { %v31777_v8 = vmul.f32 -1.442695, %v29271_v41  ;;  %v29898_v59 = vand.u32 4294901760, %v29897_v52  ;;  %v29907_v58 = vand.u32 4294901760, %v29906_v1 }
0x17f8   :  { %v28848_v45 = vpop.f32.mrf.mxu0  ;;  %p37972_p4 = pnand %p37971_p3, %p37965_p0 }
0x17f9   :  { %v29096_v60 = vpop.f32.mrf.mxu1  ;;  %37940 = vpow2.f32 %v31777_v8  ;;  %v28849_v28 = vadd.f32 %v42725_v30, %v28848_v45  ;;  %v29899_v56 = vsub.f32 %v29897_v52, %v29898_v59 }
0x17fa   :  { %v37441_v10 = vpop.f32.mrf.mxu0  ;;  %37942 = vrcp.f32 %v29265_v32 }
0x17fb   :  { %v37474_v23 = vpop.f32.mrf.mxu1  ;;  %v28940_v61 = vadd.f32 %v28939_v25, %v28849_v28  ;;  %v29900_v25 = vand.u32 4294901760, %v29899_v56 }
0x1802   :  { %v29019_v37 = vpop.f32.mrf.mxu0 }
0x1803   :  { %v29254_v53 = vpop.f32.mrf.mxu1  ;;  %v29020_v35 = vadd.f32 %v29019_v37, %v28940_v61 }
0x1804   :  { %v37463_v21 = vpop.f32.mrf.mxu0 }
0x1805   :  { %v37496_v24 = vpop.f32.mrf.mxu1  ;;  %v29097_v63 = vadd.f32 %v29096_v60, %v29020_v35 }
0x1806   :  { %v37941_v57 = vpop.eup %37940 }
0x1807   :  { %v29275_v13 = vadd.f32 1.0, %v37941_v57  ;;  %v37943_v0 = vpop.eup %37942 }
0x1809   :  { %37944 = vrcp.f32 %v29275_v13 }
0x180b   :  { %v29179_v39 = vpop.f32.mrf.mxu0 }
0x180c   :  { %v29180_v15 = vadd.f32 %v29179_v39, %v29097_v63 }
0x180d   :  { %v37485_v42 = vpop.f32.mrf.mxu0 }
0x180e   :  { %v29255_v40 = vadd.f32 %v29254_v53, %v29180_v15 }
0x1810   :  { %v29279_v11 = vrot.slane %v29255_v40, 1 }
0x1812   :  { %v29281_v16 = vmul.f32 %v37943_v0, %v29279_v11 }
0x1814   :  { %v29282_v30 = vadd.f32 %v29281_v16, %v41377_v14 }
0x1816   :  { %37946 = vtanh.f32 %v29282_v30  ;;  %v37945_v17 = vpop.eup %37944 }
0x1817   :  { %v29284_v47 = vsub.f32 1.0, %v37945_v17  ;;  %v29288_v4 = vmul.f32 %v37945_v17, %v29286_v34 }
0x1823   :  { %v37947_v2 = vpop.eup %37946 }
0x1824   :  { %v29285_v31 = vmul.f32 %v37947_v2, %v29284_v47 }
0x1826   :  { %v29289_v49 = vadd.f32 %v29288_v4, %v29285_v31 }
0x1828   :  { %29290 = vst.msk [vmem:[#allocation2] sm:$0x80] %vm13492_vm9, %v29289_v49  ;;  %29291 = vst.msk [vmem:[#allocation3 - $0x6] sm:$0x80] %vm13492_vm9, %v29289_v49 }
0x182f   :  { %v29292_v20 = vld [vmem:[#allocation2] sm:$0xff] }
0x1830   :  { %v29294_v55 = vsel %vm91_vm0, %v29292_v20, 0 }
0x1831   :  { %v42954_v62 = vand.u32 4294901760, %v29294_v55 }
0x1833   :  { %37517 = vmatmul.mubr.f32.vlgmr.msra.gmra.mxu1 %v42954_v62  ;;  %v42958_v14 = vsub.f32 %v29294_v55, %v42954_v62 }
0x1834   :  { %37531 = vmatpush3.msra.mxu1 %v43864_v48  ;;  %37538 = vmatprep.mubr.msk.f32.mxu1 %vm37987_vm1, %v43529_v29 }
0x1835   :  { %37532 = vmatprep.subr.mxu1 %v43529_v29  ;;  %v42965_v44 = vand.u32 4294901760, %v42958_v14 }
0x1836   :  { %37533 = vmatpush3.msra.mxu1 %v43865_v51 }
0x1837   :  { %37534 = vmatprep.subr.mxu1 %v43529_v29  ;;  %v29368_v19 = vsub.f32 %v42958_v14, %v42965_v44 }
0x1838   :  { %37535 = vmatpush3.msra.mxu1 %v43866_v22 }
0x1839   :  { %37536 = vmatprep.subr.mxu1 %v43529_v29  ;;  %v42973_v36 = vand.u32 4294901760, %v29368_v19 }
0x183a   :  { %37537 = vmatpush3.msra.mxu1 %v43867_v46 }
0x183b   :  { %37539 = vmatmul.mubr.f32.vlgmr.msra.gmra.mxu1 %v42965_v44  ;;  %37552 = vmatprep.subr.mxu1 %v43529_v29 }
0x183c   :  { %37506 = vmatmul.mubr.f32.vlgmr.msra.gmra.mxu0 %v42973_v36  ;;  %37553 = vmatpush3.msra.mxu1 %v43864_v48  ;;  %v43871_v48 = vld [vmem:[#allocation93_spill] sm:$0xff] }
0x183d   :  { %37520 = vmatpush3.msra.mxu0 %v43868_v18  ;;  %37554 = vmatprep.subr.mxu1 %v43529_v29 }
0x183e   :  { %37521 = vmatprep.subr.mxu0 %v43529_v29  ;;  %37555 = vmatpush3.msra.mxu1 %v43865_v51  ;;  %v43872_v51 = vld [vmem:[#allocation85_spill] sm:$0xff] }
0x183f   :  { %37522 = vmatpush3.msra.mxu0 %v43869_v7  ;;  %37556 = vmatprep.subr.mxu1 %v43529_v29 }
0x1840   :  { %37523 = vmatprep.subr.mxu0 %v43529_v29  ;;  %37557 = vmatpush3.msra.mxu1 %v43866_v22  ;;  %v43873_v22 = vld [vmem:[#allocation88_spill] sm:$0xff] }
0x1841   :  { %37524 = vmatpush3.msra.mxu0 %v43870_v5  ;;  %37558 = vmatprep.subr.mxu1 %v43529_v29 }
0x1842   :  { %37525 = vmatprep.subr.mxu0 %v43529_v29  ;;  %37527 = vmatprep.mubr.msk.f32.mxu0 %vm37987_vm1, %v43529_v29 }
0x1843   :  { %37526 = vmatpush3.msra.mxu0 %v43871_v48  ;;  %37559 = vmatpush3.msra.mxu1 %v43867_v46  ;;  %v43874_v46 = vld [vmem:[#allocation92_spill] sm:$0xff] }
0x1844   :  { %37560 = vmatprep.mubr.msk.f32.mxu1 %vm37987_vm1, %v43529_v29  ;;  %37528 = vmatmul.mubr.f32.vlgmr.msra.gmra.mxu0 %v42958_v14 }
0x1845   :  { %37541 = vmatprep.subr.mxu0 %v43529_v29  ;;  %37561 = vmatmul.mubr.f32.vlgmr.msra.gmra.mxu1 %v42954_v62 }
0x1846   :  { %37542 = vmatpush3.msra.mxu0 %v43872_v51  ;;  %37549 = vmatprep.mubr.msk.f32.mxu0 %vm37987_vm1, %v43529_v29 }
0x1847   :  { %37543 = vmatprep.subr.mxu0 %v43529_v29  ;;  %37570 = vmatprep.subr.mxu1 %v43529_v29 }
0x1848   :  { %37544 = vmatpush3.msra.mxu0 %v43873_v22  ;;  %37574 = vmatprep.mubr.msk.f32.mxu1 %vm37987_vm1, %v43529_v29 }
0x1849   :  { %37545 = vmatprep.subr.mxu0 %v43529_v29  ;;  %37571 = vmatpush3.xpose.msra.mxu1 %v29900_v25 }
0x184a   :  { %37546 = vmatpush3.msra.mxu0 %v43874_v46  ;;  %37572 = vmatprep.subr.mxu1 %v43529_v29 }
0x184b   :  { %37547 = vmatprep.subr.mxu0 %v43529_v29 }
0x184c   :  { %37548 = vmatpush3.msra.mxu0 %v43875_v27 }
0x184d   :  { %37550 = vmatmul.mubr.f32.vlgmr.msra.gmra.mxu0 %v42954_v62  ;;  %37563 = vmatprep.subr.mxu0 %v43529_v29 }
0x184e   :  { %37567 = vmatprep.mubr.msk.f32.mxu0 %vm37987_vm1, %v43529_v29  ;;  %37564 = vmatpush3.xpose.msra.mxu0 %v29819_v43 }
0x184f   :  { %37565 = vmatprep.subr.mxu0 %v43529_v29  ;;  %37573 = vmatpush3.xpose.msra.mxu1 %v29907_v58 }
0x1850   :  { %37584 = vmatprep.subr.mxu1 %v43529_v29 }
0x1852   :  { %37566 = vmatpush3.xpose.msra.mxu0 %v29822_v50 }
0x1853   :  { %37577 = vmatprep.subr.mxu0 %v43529_v29 }
0x18f3   :  { %v29462_v38 = vpop.f32.mrf.mxu1 }
0x18f5   :  { %v37518_v41 = vpop.f32.mrf.mxu1 }
0x18fb   :  { %v29619_v45 = vpop.f32.mrf.mxu1 }
0x18fc   :  { %v29371_v60 = vpop.f32.mrf.mxu0 }
0x18fd   :  { %v37540_v8 = vpop.f32.mrf.mxu1  ;;  %v29463_v32 = vadd.f32 %v29462_v38, %v29371_v60 }
0x18fe   :  { %v37507_v10 = vpop.f32.mrf.mxu0 }
0x1904   :  { %v29542_v23 = vpop.f32.mrf.mxu0 }
0x1905   :  { %v29777_v26 = vpop.f32.mrf.mxu1  ;;  %v29543_v53 = vadd.f32 %v29542_v23, %v29463_v32  ;;  %v43877_v32 = vld [vmem:[#allocation111_spill] sm:$0xff] }
0x1906   :  { %v37529_v28 = vpop.f32.mrf.mxu0 }
0x1907   :  { %v37562_v37 = vpop.f32.mrf.mxu1  ;;  %v29620_v61 = vadd.f32 %v29619_v45, %v29543_v53  ;;  %v43878_v28 = vld [vmem:[#allocation112_spill] sm:$0xff]  ;;  %v43880_v53 = vld [vmem:[#allocation98_spill] sm:$0xff] }
0x1908   :  { %v43879_v37 = vld [vmem:[#allocation113_spill] sm:$0xff] }
0x190d   :  { %v29702_v21 = vpop.f32.mrf.mxu0 }
0x190e   :  { %v29703_v24 = vadd.f32 %v29702_v21, %v29620_v61  ;;  %v43881_v61 = vld [vmem:[#allocation99_spill] sm:$0xff]  ;;  %v43882_v21 = vld [vmem:[#allocation101_spill] sm:$0xff] }
0x190f   :  { %v37551_v35 = vpop.f32.mrf.mxu0 }
0x1910   :  { %v29778_v63 = vadd.f32 %v29777_v26, %v29703_v24  ;;  %v43876_v26 = vld [vmem:[#allocation110_spill] sm:$0xff]  ;;  %v43883_v24 = vld [vmem:[#allocation103_spill] sm:$0xff]  ;;  %v43884_v35 = vld [vmem:[#allocation100_spill] sm:$0xff] }
0x1912   :  { %v29782_v57 = vsel %vm91_vm0, %v29778_v63, 0  ;;  %v43885_v63 = vld [vmem:[#allocation102_spill] sm:$0xff] }
0x1913   :  { %v29857_v39 = vand.u32 4294901760, %v29782_v57 }
0x1915   :  { %v29858_v15 = vsub.f32 %v29782_v57, %v29857_v39  ;;  %37575 = vmatmul.mubr.f32.vlgmr.msra.gmra.mxu1 %v29857_v39  ;;  %v43888_v57 = vld [vmem:[#allocation104_spill] sm:$0xff] }
0x1916   :  { %37585 = vmatpush3.xpose.msra.mxu1 %v29819_v43  ;;  %37588 = vmatprep.mubr.msk.f32.mxu1 %vm37987_vm1, %v43529_v29 }
0x1917   :  { %v29859_v42 = vand.u32 4294901760, %v29858_v15  ;;  %37586 = vmatprep.subr.mxu1 %v43529_v29 }
0x1919   :  { %v29860_v13 = vsub.f32 %v29858_v15, %v29859_v42 }
0x191a   :  { %37587 = vmatpush3.xpose.msra.mxu1 %v29822_v50 }
0x191b   :  { %v29861_v40 = vand.u32 4294901760, %v29860_v13  ;;  %37598 = vmatprep.subr.mxu1 %v43529_v29  ;;  %v43893_v13 = vld [vmem:[#allocation109_spill] sm:$0xff] }
0x191d   :  { %37589 = vmatmul.mubr.f32.vlgmr.msra.gmra.mxu1 %v29859_v42  ;;  %37568 = vmatmul.mubr.f32.vlgmr.msra.gmra.mxu0 %v29861_v40  ;;  %v43892_v42 = vld [vmem:[#allocation126_spill] sm:$0xff]  ;;  %v43894_v40 = vld [vmem:[#allocation128_spill] sm:$0xff] }
0x191e   :  { %37578 = vmatpush3.xpose.msra.mxu0 %v29897_v52  ;;  %37599 = vmatpush3.xpose.msra.mxu1 %v29819_v43  ;;  %v30263_v43 = vsel %vm14467_vm11, %v43019_v33, 0  ;;  %v30297_v52 = vand.u32 4294901760, %v43026_v9 }
0x191f   :  { %37579 = vmatprep.subr.mxu0 %v43529_v29  ;;  %37600 = vmatprep.subr.mxu1 %v43529_v29  ;;  %v30294_v3 = vand.u32 4294901760, %v30263_v43 }
0x1920   :  { %37581 = vmatprep.mubr.msk.f32.mxu0 %vm37987_vm1, %v43529_v29  ;;  %37602 = vmatprep.mubr.msk.f32.mxu1 %vm37987_vm1, %v43529_v29  ;;  %v30379_v56 = vsub.f32 %v43026_v9, %v30297_v52 }
0x1922   :  { %37580 = vmatpush3.xpose.msra.mxu0 %v29904_v6  ;;  %37601 = vmatpush3.xpose.msra.mxu1 %v29822_v50  ;;  %v30380_v25 = vand.u32 4294901760, %v30379_v56 }
0x1923   :  { %37591 = vmatprep.subr.mxu0 %v43529_v29  ;;  %37612 = vmatprep.subr.mxu1 %v43529_v29 }
0x1924   :  { %v30381_v1 = vsub.f32 %v30379_v56, %v30380_v25 }
0x1925   :  { %37582 = vmatmul.mubr.f32.vlgmr.msra.gmra.mxu0 %v29858_v15  ;;  %37603 = vmatmul.mubr.f32.vlgmr.msra.gmra.mxu1 %v29857_v39  ;;  %v43890_v15 = vld [vmem:[#allocation123_spill] sm:$0xff] }
0x1926   :  { %37592 = vmatpush3.xpose.msra.mxu0 %v29898_v59  ;;  %37595 = vmatprep.mubr.msk.f32.mxu0 %vm37987_vm1, %v43529_v29  ;;  %v30372_v59 = vsub.f32 %v30263_v43, %v30294_v3  ;;  %v30382_v58 = vand.u32 4294901760, %v30381_v1 }
0x1927   :  { %37593 = vmatprep.subr.mxu0 %v43529_v29  ;;  %37616 = vmatprep.mubr.msk.f32.mxu1 %vm37987_vm1, %v43529_v29 }
0x1928   :  { %v30373_v50 = vand.u32 4294901760, %v30372_v59 }
0x192a   :  { %37594 = vmatpush3.xpose.msra.mxu0 %v29905_v54  ;;  %v30374_v6 = vsub.f32 %v30372_v59, %v30373_v50 }
0x192b   :  { %37605 = vmatprep.subr.mxu0 %v43529_v29 }
0x192c   :  { %v30375_v54 = vand.u32 4294901760, %v30374_v6 }
0x192d   :  { %37596 = vmatmul.mubr.f32.vlgmr.msra.gmra.mxu0 %v29857_v39  ;;  %v43889_v39 = vld [vmem:[#allocation106_spill] sm:$0xff] }
0x192e   :  { %37609 = vmatprep.mubr.msk.f32.mxu0 %vm37987_vm1, %v43529_v29  ;;  %37606 = vmatpush3.msra.mxu0 %v30294_v3 }
0x192f   :  { %37607 = vmatprep.subr.mxu0 %v43529_v29  ;;  %37613 = vmatpush3.msra.mxu1 %v30375_v54 }
0x1930   :  { %37608 = vmatpush3.msra.mxu0 %v30297_v52  ;;  %37614 = vmatprep.subr.mxu1 %v43529_v29 }
0x1931   :  { %37619 = vmatprep.subr.mxu0 %v43529_v29  ;;  %37615 = vmatpush3.msra.mxu1 %v30382_v58 }
0x1932   :  { %37626 = vmatprep.subr.mxu1 %v43529_v29 }
0x19d5   :  { %v29944_v11 = vpop.f32.mrf.mxu1 }
0x19d7   :  { %v37576_v0 = vpop.f32.mrf.mxu1 }
0x19d8   :  { %v43896_v0 = vld [vmem:[#allocation114_spill] sm:$0xff] }
0x19dd   :  { %v30095_v16 = vpop.f32.mrf.mxu1  ;;  %v29863_v30 = vpop.f32.mrf.mxu0 }
0x19de   :  { %v29945_v4 = vadd.f32 %v29944_v11, %v29863_v30  ;;  %v43895_v11 = vld [vmem:[#allocation129_spill] sm:$0xff]  ;;  %v43899_v30 = vld [vmem:[#allocation122_spill] sm:$0xff] }
0x19df   :  { %v37590_v17 = vpop.f32.mrf.mxu1  ;;  %v37569_v34 = vpop.f32.mrf.mxu0 }
0x19e5   :  { %v30020_v47 = vpop.f32.mrf.mxu0  ;;  %v30245_v2 = vpop.f32.mrf.mxu1 }
0x19e6   :  { %v30021_v20 = vadd.f32 %v30020_v47, %v29945_v4 }
0x19e7   :  { %v37583_v31 = vpop.f32.mrf.mxu0  ;;  %v37604_v49 = vpop.f32.mrf.mxu1 }
0x19e8   :  { %v30096_v55 = vadd.f32 %v30095_v16, %v30021_v20  ;;  %v43897_v16 = vld [vmem:[#allocation116_spill] sm:$0xff] }
0x19ed   :  { %v30172_v19 = vpop.f32.mrf.mxu0 }
0x19ee   :  { %v30173_v18 = vadd.f32 %v30172_v19, %v30096_v55 }
0x19ef   :  { %v37597_v7 = vpop.f32.mrf.mxu0 }
0x19f0   :  { %v30246_v5 = vadd.f32 %v30245_v2, %v30173_v18 }
0x19f2   :  { %v30249_v48 = vsel %vm14452_vm10, %v30246_v5, -inf }
0x19f3   :  { %30250 = vmax.xlane.f32.xlu1 %v30249_v48 }
0x1a7c   :  { %v30251_v51 = vpop.xlane.xlu1 %30250 }
0x1a7d   :  { %v30252_v22 = vsub.f32 %v30246_v5, %v30251_v51 }
0x1a7f   :  { %v30253_v46 = vmul.f32 1.442695, %v30252_v22 }
0x1a81   :  { %37948 = vpow2.f32 %v30253_v46 }
0x1a8e   :  { %v37949_v27 = vpop.eup %37948 }
0x1a8f   :  { %v30255_v12 = vsel %vm14452_vm10, %v37949_v27, 0.0 }
0x1a90   :  { %30256 = vadd.xlane.f32.xlu1 %v30255_v12 }
0x1b19   :  { %v30257_v33 = vpop.xlane.xlu1 %30256 }
0x1b1a   :  { %37950 = vrcp.f32 %v30257_v33 }
0x1b27   :  { %v37951_v38 = vpop.eup %37950 }
0x1b28   :  { %v30259_v41 = vmul.f32 %v37951_v38, %v37949_v27  ;;  %v43900_v38 = vld [vmem:[#allocation115_spill] sm:$0xff] }
0x1b2a   :  { %v30261_v9 = vsel %vm14452_vm10, %v30259_v41, 0 }
0x1b2b   :  { %v30332_v45 = vand.u32 4294901760, %v30261_v9 }
0x1b2d   :  { %v30333_v60 = vsub.f32 %v30261_v9, %v30332_v45  ;;  %37617 = vmatmul.mubr.f32.vlgmr.msra.gmra.mxu1 %v30332_v45 }
0x1b2e   :  { %37627 = vmatpush3.msra.mxu1 %v30294_v3  ;;  %37630 = vmatprep.mubr.msk.f32.mxu1 %vm37987_vm1, %v43529_v29 }
0x1b2f   :  { %37628 = vmatprep.subr.mxu1 %v43529_v29  ;;  %v30334_v8 = vand.u32 4294901760, %v30333_v60 }
0x1b30   :  { %37629 = vmatpush3.msra.mxu1 %v30297_v52 }
0x1b31   :  { %37640 = vmatprep.subr.mxu1 %v43529_v29  ;;  %37631 = vmatmul.mubr.f32.vlgmr.msra.gmra.mxu1 %v30334_v8  ;;  %v30335_v10 = vsub.f32 %v30333_v60, %v30334_v8 }
0x1b32   :  { %37641 = vmatpush3.msra.mxu1 %v30294_v3  ;;  %37644 = vmatprep.mubr.msk.f32.mxu1 %vm37987_vm1, %v43529_v29 }
0x1b33   :  { %37642 = vmatprep.subr.mxu1 %v43529_v29  ;;  %v30336_v23 = vand.u32 4294901760, %v30335_v10 }
0x1b34   :  { %37643 = vmatpush3.msra.mxu1 %v30297_v52 }
0x1b35   :  { %37658 = vmatprep.subr.mxu1 %v43529_v29  ;;  %37610 = vmatmul.mubr.f32.vlgmr.msra.gmra.mxu0 %v30336_v23  ;;  %v43902_v23 = vld [vmem:[#allocation121_spill] sm:$0xff] }
0x1b36   :  { %37620 = vmatpush3.msra.mxu0 %v30372_v59  ;;  %37645 = vmatmul.mubr.f32.vlgmr.msra.gmra.mxu1 %v30332_v45 }
0x1b37   :  { %37659 = vmatpush3.msra.mxu1 %v43876_v26  ;;  %37621 = vmatprep.subr.mxu0 %v43529_v29  ;;  %v43903_v26 = vld [vmem:[#allocation125_spill] sm:$0xff] }
0x1b38   :  { %37660 = vmatprep.subr.mxu1 %v43529_v29  ;;  %37622 = vmatpush3.msra.mxu0 %v30379_v56 }
0x1b39   :  { %37661 = vmatpush3.msra.mxu1 %v43877_v32  ;;  %37623 = vmatprep.mubr.msk.f32.mxu0 %vm37987_vm1, %v43529_v29 }
0x1b3a   :  { %37633 = vmatprep.subr.mxu0 %v43529_v29  ;;  %37662 = vmatprep.subr.mxu1 %v43529_v29 }
0x1b3b   :  { %37624 = vmatmul.mubr.f32.vlgmr.msra.gmra.mxu0 %v30333_v60  ;;  %37663 = vmatpush3.msra.mxu1 %v43878_v28  ;;  %v43901_v60 = vld [vmem:[#allocation118_spill] sm:$0xff]  ;;  %v43904_v28 = vld [vmem:[#allocation117_spill] sm:$0xff] }
0x1b3c   :  { %37634 = vmatpush3.msra.mxu0 %v30373_v50  ;;  %37664 = vmatprep.subr.mxu1 %v43529_v29 }
0x1b3d   :  { %37635 = vmatprep.subr.mxu0 %v43529_v29  ;;  %37665 = vmatpush3.msra.mxu1 %v43879_v37 }
0x1b3e   :  { %37636 = vmatpush3.msra.mxu0 %v30380_v25  ;;  %37666 = vmatprep.mubr.msk.f32.mxu1 %vm37987_vm1, %v43529_v29 }
0x1b3f   :  { %37637 = vmatprep.mubr.msk.f32.mxu0 %vm37987_vm1, %v43529_v29  ;;  %37647 = vmatprep.subr.mxu0 %v43529_v29 }
0x1b40   :  { %37667 = vmatmul.mubr.f32.vlgmr.msra.gmra.mxu1 %v42954_v62  ;;  %37680 = vmatprep.subr.mxu1 %v43529_v29 }
0x1b41   :  { %37638 = vmatmul.mubr.f32.vlgmr.msra.gmra.mxu0 %v30332_v45  ;;  %37681 = vmatpush3.msra.mxu1 %v43880_v53 }
0x1b42   :  { %37648 = vmatpush3.msra.mxu0 %v43880_v53  ;;  %37682 = vmatprep.subr.mxu1 %v43529_v29 }
0x1b43   :  { %37649 = vmatprep.subr.mxu0 %v43529_v29  ;;  %37683 = vmatpush3.msra.mxu1 %v43881_v61 }
0x1b44   :  { %37650 = vmatpush3.msra.mxu0 %v43881_v61  ;;  %37684 = vmatprep.subr.mxu1 %v43529_v29 }
0x1b45   :  { %37651 = vmatprep.subr.mxu0 %v43529_v29  ;;  %37685 = vmatpush3.msra.mxu1 %v43882_v21 }
0x1b46   :  { %37652 = vmatpush3.msra.mxu0 %v43882_v21  ;;  %37686 = vmatprep.subr.mxu1 %v43529_v29 }
0x1b47   :  { %37653 = vmatprep.subr.mxu0 %v43529_v29  ;;  %37655 = vmatprep.mubr.msk.f32.mxu0 %vm37987_vm1, %v43529_v29 }
0x1b48   :  { %37654 = vmatpush3.msra.mxu0 %v43883_v24  ;;  %37687 = vmatpush3.msra.mxu1 %v43883_v24 }
0x1b49   :  { %37688 = vmatprep.mubr.msk.f32.mxu1 %vm37987_vm1, %v43529_v29  ;;  %37656 = vmatmul.mubr.f32.vlgmr.msra.gmra.mxu0 %v42973_v36  ;;  %v43886_v36 = vld [vmem:[#allocation105_spill] sm:$0xff] }
0x1b4a   :  { %37669 = vmatprep.subr.mxu0 %v43529_v29  ;;  %37689 = vmatmul.mubr.f32.vlgmr.msra.gmra.mxu1 %v42965_v44  ;;  %v43887_v44 = vld [vmem:[#allocation107_spill] sm:$0xff] }
0x1b4b   :  { %37702 = vmatprep.subr.mxu1 %v43529_v29  ;;  %37670 = vmatpush3.msra.mxu0 %v43884_v35  ;;  %v43907_v35 = vld [vmem:[#allocation127_spill] sm:$0xff] }
0x1b4c   :  { %37703 = vmatpush3.msra.mxu1 %v43880_v53  ;;  %37671 = vmatprep.subr.mxu0 %v43529_v29 }
0x1b4d   :  { %37704 = vmatprep.subr.mxu1 %v43529_v29  ;;  %37672 = vmatpush3.msra.mxu0 %v43885_v63 }
0x1b4e   :  { %37705 = vmatpush3.msra.mxu1 %v43881_v61  ;;  %37673 = vmatprep.subr.mxu0 %v43529_v29  ;;  %v43905_v61 = vld [vmem:[#allocation120_spill] sm:$0xff] }
0x1b4f   :  { %37706 = vmatprep.subr.mxu1 %v43529_v29  ;;  %37674 = vmatpush3.msra.mxu0 %v43886_v36 }
0x1b50   :  { %37707 = vmatpush3.msra.mxu1 %v43882_v21  ;;  %37675 = vmatprep.subr.mxu0 %v43529_v29 }
0x1b51   :  { %37708 = vmatprep.subr.mxu1 %v43529_v29  ;;  %37676 = vmatpush3.msra.mxu0 %v43887_v44 }
0x1b52   :  { %37677 = vmatprep.mubr.msk.f32.mxu0 %vm37987_vm1, %v43529_v29  ;;  %37709 = vmatpush3.msra.mxu1 %v43883_v24  ;;  %v43906_v24 = vld [vmem:[#allocation124_spill] sm:$0xff] }
0x1b53   :  { %37710 = vmatprep.mubr.msk.f32.mxu1 %vm37987_vm1, %v43529_v29  ;;  %37678 = vmatmul.mubr.f32.vlgmr.msra.gmra.mxu0 %v42958_v14  ;;  %v43891_v14 = vld [vmem:[#allocation108_spill] sm:$0xff] }
0x1b54   :  { %37691 = vmatprep.subr.mxu0 %v43529_v29  ;;  %37711 = vmatmul.mubr.f32.vlgmr.msra.gmra.mxu1 %v42954_v62 }
0x1b55   :  { %37692 = vmatpush3.msra.mxu0 %v43888_v57  ;;  %37699 = vmatprep.mubr.msk.f32.mxu0 %vm37987_vm1, %v43529_v29 }
0x1b56   :  { %37693 = vmatprep.subr.mxu0 %v43529_v29  ;;  %37724 = vmatprep.subr.mxu1 %v43529_v29 }
0x1b57   :  { %37694 = vmatpush3.msra.mxu0 %v43889_v39  ;;  %37725 = vmatpush3.msra.mxu1 %v43890_v15 }
0x1b58   :  { %37695 = vmatprep.subr.mxu0 %v43529_v29  ;;  %37726 = vmatprep.subr.mxu1 %v43529_v29 }
0x1b59   :  { %37696 = vmatpush3.msra.mxu0 %v43891_v14  ;;  %37727 = vmatpush3.msra.mxu1 %v43892_v42 }
0x1b5a   :  { %37697 = vmatprep.subr.mxu0 %v43529_v29  ;;  %37728 = vmatprep.subr.mxu1 %v43529_v29 }
0x1b5b   :  { %37698 = vmatpush3.msra.mxu0 %v43893_v13  ;;  %37729 = vmatpush3.msra.mxu1 %v43894_v40 }
0x1b5c   :  { %37700 = vmatmul.mubr.f32.vlgmr.msra.gmra.mxu0 %v42954_v62  ;;  %37730 = vmatprep.subr.mxu1 %v43529_v29  ;;  %v43898_v62 = vld [vmem:[#allocation119_spill] sm:$0xff] }
0x1b5d   :  { %37731 = vmatpush3.msra.mxu1 %v43895_v11  ;;  %37713 = vmatprep.subr.mxu0 %v43529_v29 }
0x1b5e   :  { %37732 = vmatprep.mubr.msk.f32.mxu1 %vm37987_vm1, %v43529_v29  ;;  %37746 = vmatprep.subr.mxu1 %v43529_v29 }
0x1b5f   :  { %37714 = vmatpush3.msra.mxu0 %v43896_v0  ;;  %37721 = vmatprep.mubr.msk.f32.mxu0 %vm37987_vm1, %v43529_v29 }
0x1b60   :  { %37715 = vmatprep.subr.mxu0 %v43529_v29 }
0x1b61   :  { %37716 = vmatpush3.msra.mxu0 %v43897_v16 }
0x1b62   :  { %37717 = vmatprep.subr.mxu0 %v43529_v29 }
0x1b63   :  { %37718 = vmatpush3.msra.mxu0 %v43898_v62 }
0x1b64   :  { %37719 = vmatprep.subr.mxu0 %v43529_v29 }
0x1b65   :  { %37720 = vmatpush3.msra.mxu0 %v43899_v30 }
0x1b66   :  { %37735 = vmatprep.subr.mxu0 %v43529_v29 }
0x1bed   :  { %v30419_v17 = vpop.f32.mrf.mxu1 }
0x1bef   :  { %v37618_v34 = vpop.f32.mrf.mxu1 }
0x1bf1   :  { %v30570_v47 = vpop.f32.mrf.mxu1 }
0x1bf3   :  { %v37632_v2 = vpop.f32.mrf.mxu1 }
0x1bf5   :  { %v30338_v4 = vpop.f32.mrf.mxu0 }
0x1bf6   :  { %v30720_v31 = vpop.f32.mrf.mxu1  ;;  %v30420_v55 = vadd.f32 %v30419_v17, %v30338_v4 }
0x1bf7   :  { %v37611_v49 = vpop.f32.mrf.mxu0 }
0x1bf8   :  { %v37646_v20 = vpop.f32.mrf.mxu1 }
0x1bfb   :  { %v30495_v19 = vpop.f32.mrf.mxu0 }
0x1bfc   :  { %v30496_v18 = vadd.f32 %v30495_v19, %v30420_v55 }
0x1bfd   :  { %v37625_v7 = vpop.f32.mrf.mxu0 }
0x1bfe   :  { %v30571_v5 = vadd.f32 %v30570_v47, %v30496_v18 }
0x1c00   :  { %v30890_v48 = vpop.f32.mrf.mxu1 }
0x1c01   :  { %v30647_v51 = vpop.f32.mrf.mxu0 }
0x1c02   :  { %v30648_v22 = vadd.f32 %v30647_v51, %v30571_v5  ;;  %v37668_v46 = vpop.f32.mrf.mxu1 }
0x1c03   :  { %v37639_v27 = vpop.f32.mrf.mxu0 }
0x1c04   :  { %v30721_v12 = vadd.f32 %v30720_v31, %v30648_v22 }
0x1c06   :  { %v31210_v43 = vsel %vm91_vm0, %v30721_v12, 0 }
0x1c07   :  { %v31281_v52 = vand.u32 4294901760, %v31210_v43 }
0x1c09   :  { %v31282_v3 = vsub.f32 %v31210_v43, %v31281_v52  ;;  %v30799_v59 = vpop.f32.mrf.mxu0  ;;  %37733 = vmatmul.mubr.f32.vlgmr.msra.gmra.mxu1 %v31281_v52 }
0x1c0a   :  { %v30891_v50 = vadd.f32 %v30890_v48, %v30799_v59  ;;  %v31047_v56 = vpop.f32.mrf.mxu1  ;;  %37747 = vmatpush3.msra.mxu1 %v43896_v0  ;;  %37754 = vmatprep.mubr.msk.f32.mxu1 %vm37987_vm1, %v43529_v29 }
0x1c0b   :  { %v31283_v6 = vand.u32 4294901760, %v31282_v3  ;;  %v37657_v25 = vpop.f32.mrf.mxu0  ;;  %37748 = vmatprep.subr.mxu1 %v43529_v29 }
0x1c0c   :  { %v37690_v54 = vpop.f32.mrf.mxu1  ;;  %37749 = vmatpush3.msra.mxu1 %v43897_v16 }
0x1c0d   :  { %v31284_v1 = vsub.f32 %v31282_v3, %v31283_v6  ;;  %37750 = vmatprep.subr.mxu1 %v43529_v29 }
0x1c0e   :  { %37751 = vmatpush3.msra.mxu1 %v43898_v62 }
0x1c0f   :  { %v31285_v58 = vand.u32 4294901760, %v31284_v1  ;;  %37752 = vmatprep.subr.mxu1 %v43529_v29 }
0x1c10   :  { %37753 = vmatpush3.msra.mxu1 %v43899_v30 }
0x1c11   :  { %37755 = vmatmul.mubr.f32.vlgmr.msra.gmra.mxu1 %v31283_v6  ;;  %37768 = vmatprep.subr.mxu1 %v43529_v29 }
0x1c12   :  { %37722 = vmatmul.mubr.f32.vlgmr.msra.gmra.mxu0 %v31285_v58  ;;  %37769 = vmatpush3.msra.mxu1 %v43896_v0 }
0x1c13   :  { %v30970_v33 = vpop.f32.mrf.mxu0  ;;  %37736 = vmatpush3.msra.mxu0 %v43900_v38  ;;  %37770 = vmatprep.subr.mxu1 %v43529_v29 }
0x1c14   :  { %v30971_v41 = vadd.f32 %v30970_v33, %v30891_v50  ;;  %v31205_v9 = vpop.f32.mrf.mxu1  ;;  %37737 = vmatprep.subr.mxu0 %v43529_v29  ;;  %37771 = vmatpush3.msra.mxu1 %v43897_v16 }
0x1c15   :  { %v37679_v45 = vpop.f32.mrf.mxu0  ;;  %37738 = vmatpush3.msra.mxu0 %v43901_v60  ;;  %37772 = vmatprep.subr.mxu1 %v43529_v29 }
0x1c16   :  { %v37712_v8 = vpop.f32.mrf.mxu1  ;;  %37739 = vmatprep.subr.mxu0 %v43529_v29  ;;  %37773 = vmatpush3.msra.mxu1 %v43898_v62  ;;  %v31048_v10 = vadd.f32 %v31047_v56, %v30971_v41 }
0x1c17   :  { %37740 = vmatpush3.msra.mxu0 %v43902_v23  ;;  %37774 = vmatprep.subr.mxu1 %v43529_v29 }
0x1c18   :  { %37741 = vmatprep.subr.mxu0 %v43529_v29  ;;  %37743 = vmatprep.mubr.msk.f32.mxu0 %vm37987_vm1, %v43529_v29 }
0x1c19   :  { %37742 = vmatpush3.msra.mxu0 %v43903_v26  ;;  %37775 = vmatpush3.msra.mxu1 %v43899_v30 }
0x1c1a   :  { %37776 = vmatprep.mubr.msk.f32.mxu1 %vm37987_vm1, %v43529_v29  ;;  %37744 = vmatmul.mubr.f32.vlgmr.msra.gmra.mxu0 %v31282_v3 }
0x1c1b   :  { %37757 = vmatprep.subr.mxu0 %v43529_v29  ;;  %37777 = vmatmul.mubr.f32.vlgmr.msra.gmra.mxu1 %v31281_v52 }
0x1c1c   :  { %v31130_v32 = vpop.f32.mrf.mxu0  ;;  %37758 = vmatpush3.msra.mxu0 %v43904_v28  ;;  %37765 = vmatprep.mubr.msk.f32.mxu0 %vm37987_vm1, %v43529_v29 }
0x1c1d   :  { %v31131_v37 = vadd.f32 %v31130_v32, %v31048_v10  ;;  %37759 = vmatprep.subr.mxu0 %v43529_v29 }
0x1c1e   :  { %v37701_v53 = vpop.f32.mrf.mxu0  ;;  %37760 = vmatpush3.msra.mxu0 %v43905_v61 }
0x1c1f   :  { %37761 = vmatprep.subr.mxu0 %v43529_v29  ;;  %v31206_v21 = vadd.f32 %v31205_v9, %v31131_v37 }
0x1c20   :  { %37762 = vmatpush3.msra.mxu0 %v43906_v24 }
0x1c21   :  { %37763 = vmatprep.subr.mxu0 %v43529_v29 }
0x1c22   :  { %37764 = vmatpush3.msra.mxu0 %v43907_v35 }
0x1c23   :  { %37766 = vmatmul.mubr.f32.vlgmr.msra.gmra.mxu0 %v31281_v52 }
0x1c24   :  { %37975 = shalt.err (!%p37972_p4)
}
0x1c25   :  { %31711 = dma.vmem_to_hbm [thread:$0]  %s31709_s17, 32, %s43224_s10, [#allocation4]  }
0x1cc9   :  { %v31378_v63 = vpop.f32.mrf.mxu1 }
0x1ccb   :  { %v37734_v36 = vpop.f32.mrf.mxu1 }
0x1cd1   :  { %v31535_v29 = vpop.f32.mrf.mxu1 }
0x1cd2   :  { %v31287_v44 = vpop.f32.mrf.mxu0 }
0x1cd3   :  { %v37756_v57 = vpop.f32.mrf.mxu1  ;;  %v31288_v15 = vadd.f32 %v31287_v44, %v31206_v21 }
0x1cd4   :  { %v37723_v39 = vpop.f32.mrf.mxu0 }
0x1cd5   :  { %v31379_v13 = vadd.f32 %v31378_v63, %v31288_v15 }
0x1cda   :  { %v31458_v14 = vpop.f32.mrf.mxu0 }
0x1cdb   :  { %v31693_v42 = vpop.f32.mrf.mxu1  ;;  %v31459_v0 = vadd.f32 %v31458_v14, %v31379_v13 }
0x1cdc   :  { %v37745_v40 = vpop.f32.mrf.mxu0 }
0x1cdd   :  { %v37778_v11 = vpop.f32.mrf.mxu1  ;;  %v31536_v16 = vadd.f32 %v31535_v29, %v31459_v0 }
0x1ce3   :  { %v31618_v62 = vpop.f32.mrf.mxu0 }
0x1ce4   :  { %v31619_v30 = vadd.f32 %v31618_v62, %v31536_v16 }
0x1ce5   :  { %v37767_v17 = vpop.f32.mrf.mxu0 }
0x1ce6   :  { %v31694_v34 = vadd.f32 %v31693_v42, %v31619_v30 }
0x1ce8   :  { %37952 = vtanh.f32 %v31694_v34 }
0x1cf5   :  { %v37953_v47 = vpop.eup %37952 }
0x1cf6   :  { %31778 = vst.msk [vmem:[%s43223_s9 + $0x8] sm:$0xff] %vm91_vm0, %v37953_v47 }
0x1cf7   :  { %37984 = dma.done.wait [#allocation4], 32  }
0x1cf8   :  { %37985 = vsyncadd [#allocation4], 4294967264 }
0x1cf9   :  { %31717 = vsyncpa [#allocation4], 1 }

</bundles_post_ra>
